<compile_context>
chip_gen: v5e
topology: v5e:2x2
jax: 0.10.0
libtpu: 0.0.40
codegen_flags: <defaults>
</compile_context>

<pallas_src>
import functools

import jax
import jax.numpy as jnp
from jax.experimental import pallas as pl
from jax.experimental.pallas import tpu as pltpu

EPS_BN = 1e-5
EPS_NORM = 1e-12


def _round_up(n, m):
    return ((n + m - 1) // m) * m


# ----------------------------------------------------------------------------
# Kernel 1 (small, one-shot): prototype construction from the support rows.
#   h      = ReLU(x_sup @ w1_folded + shift1)           (conv 1x1 + BN eval)
#   sup    = mean over k_shot (contiguous row blocks)
#   logits = sup @ W_mh ; softmax over the row axis (dim=0)
#   protos = softmax^T @ sup ; L2-normalize rows  -> bf16 (reused as MXU operand)
# ----------------------------------------------------------------------------
def _protos_kernel(xs_ref, w1_ref, sh1_ref, wmh_ref, o_ref, *, shot, way_hw):
    h = jnp.dot(xs_ref[...], w1_ref[...], preferred_element_type=jnp.float32)
    h = jnp.maximum(h + sh1_ref[...], 0.0)                       # (shot*way_hw, Ch) f32

    # mean over k_shot: static unroll over contiguous row blocks (no reshape)
    sup = h[0:way_hw]
    for s in range(1, shot):
        sup = sup + h[s * way_hw:(s + 1) * way_hw]
    if shot > 1:
        sup = sup * (1.0 / shot)                                 # (Ns, Ch) f32

    logits = jnp.dot(sup, wmh_ref[...], preferred_element_type=jnp.float32)  # (Ns, P)
    logits = logits - jnp.max(logits, axis=0, keepdims=True)
    e = jnp.exp(logits)
    wsm = e * pl.reciprocal(jnp.sum(e, axis=0, keepdims=True), approx=True)  # softmax dim=0

    protos = jnp.dot(wsm.T, sup, preferred_element_type=jnp.float32)         # (P, Ch)
    inv = jax.lax.rsqrt(jnp.maximum(jnp.sum(protos * protos, axis=-1, keepdims=True),
                                    EPS_NORM * EPS_NORM))
    o_ref[...] = (protos * inv).astype(o_ref.dtype)              # F.normalize, cast bf16


def build_protos(x_sup, w1f, sh1, wmh, *, shot, way_hw):
    # TODO(synk): for large support sets (way*H*W rows not fitting VMEM) tile this
    # over rows with a grid + (P, Ch) accumulator finalized via pl.when; a single
    # block is plenty at these sizes.
    P = wmh.shape[1]
    Ch = w1f.shape[1]
    kern = functools.partial(_protos_kernel, shot=shot, way_hw=way_hw)
    return pl.pallas_call(
        kern,
        out_shape=jax.ShapeDtypeStruct((P, Ch), jnp.bfloat16),
    )(x_sup, w1f, sh1, wmh)


# ----------------------------------------------------------------------------
# Kernel 2 (fused, row-tiled): conv1+BN+ReLU -> prototype attention ->
#                              conv_o+BN+ReLU + residual
# ----------------------------------------------------------------------------
def _fused_kernel(x_ref, res_ref, w1_ref, sh1_ref, p_ref, pt_ref, wo_ref, sho_ref, o_ref):
    # proto_concept: 1x1 conv (BN scale folded into weights) + shift + ReLU
    h = jnp.dot(x_ref[...], w1_ref[...], preferred_element_type=jnp.float32)
    h = jnp.maximum(h + sh1_ref[...], 0.0)                        # (TM, Ch) f32
    h_b = h.astype(jnp.bfloat16)

    # prototype attention: score = h @ protos^T ; softmax over proto axis ;
    # weighted sum of protos ; L2-normalize.  protos^T is a precomputed input.
    s = jnp.dot(h_b, pt_ref[...], preferred_element_type=jnp.float32)        # (TM, P)
    s = s - jnp.max(s, axis=-1, keepdims=True)
    e = jnp.exp(s)
    sm = e * pl.reciprocal(jnp.sum(e, axis=-1, keepdims=True), approx=True)
    nq = jnp.dot(sm.astype(jnp.bfloat16), p_ref[...], preferred_element_type=jnp.float32)
    nq = nq * jax.lax.rsqrt(jnp.maximum(jnp.sum(nq * nq, axis=-1, keepdims=True),
                                        EPS_NORM * EPS_NORM))                # (TM, Ch)

    # o: 1x1 conv (BN scale folded) + shift + ReLU, then residual with module input
    z = jnp.dot(nq.astype(jnp.bfloat16), wo_ref[...], preferred_element_type=jnp.float32)
    z = jnp.maximum(z + sho_ref[...], 0.0)
    o_ref[...] = z + res_ref[...]


def fused_pipeline(x, res, w1f, sh1, protos, protos_t, wof, sho, *, tile_m=512):
    M, Cf = x.shape
    Ch = w1f.shape[1]
    P = protos.shape[0]

    # largest row tile that is a multiple of 16 (bf16 sublane packing) and <= M
    tile_m = min(_round_up(tile_m, 16), _round_up(M, 16))
    m_pad = _round_up(M, tile_m)
    if m_pad != M:                          # pad rows instead of asserting divisibility
        x = jnp.pad(x, ((0, m_pad - M), (0, 0)))
        res = jnp.pad(res, ((0, m_pad - M), (0, 0)))

    out = pl.pallas_call(
        _fused_kernel,
        out_shape=jax.ShapeDtypeStruct((m_pad, Cf), jnp.float32),
        grid=(m_pad // tile_m,),
        in_specs=[
            pl.BlockSpec((tile_m, Cf), lambda i: (i, 0)),   # x            (bf16)
            pl.BlockSpec((tile_m, Cf), lambda i: (i, 0)),   # residual     (f32)
            pl.BlockSpec((Cf, Ch), lambda i: (0, 0)),       # w1 folded    (bf16, broadcast)
            pl.BlockSpec((1, Ch), lambda i: (0, 0)),        # shift1       (f32,  broadcast)
            pl.BlockSpec((P, Ch), lambda i: (0, 0)),        # protos       (bf16, broadcast)
            pl.BlockSpec((Ch, P), lambda i: (0, 0)),        # protos^T     (bf16, broadcast)
            pl.BlockSpec((Ch, Cf), lambda i: (0, 0)),       # w_o folded   (bf16, broadcast)
            pl.BlockSpec((1, Cf), lambda i: (0, 0)),        # shift_o      (f32,  broadcast)
        ],
        out_specs=pl.BlockSpec((tile_m, Cf), lambda i: (i, 0)),
        compiler_params=pltpu.CompilerParams(dimension_semantics=("parallel",)),
    )(x, res, w1f, sh1, protos, protos_t, wof, sho)
    return out[:M] if m_pad != M else out


# ----------------------------------------------------------------------------
# Parameter construction (deterministic, synthetic) + BN folding
# ----------------------------------------------------------------------------
def init_params(rng, feature_dim, hidden_dim, proto_size):
    ks = jax.random.split(rng, 13)
    p = {}
    # proto_concept: Conv2d(feature_dim, hidden_dim, 1) + BN(hidden_dim)
    p["w1"] = 0.2 * jax.random.normal(ks[0], (feature_dim, hidden_dim), jnp.float32)
    p["b1"] = 0.1 * jax.random.normal(ks[1], (hidden_dim,), jnp.float32)
    p["bn1_gamma"] = 1.0 + 0.1 * jax.random.normal(ks[2], (hidden_dim,), jnp.float32)
    p["bn1_beta"] = 0.1 * jax.random.normal(ks[3], (hidden_dim,), jnp.float32)
    p["bn1_mean"] = 0.05 * jax.random.normal(ks[4], (hidden_dim,), jnp.float32)
    p["bn1_var"] = 0.5 + jnp.abs(jax.random.normal(ks[5], (hidden_dim,), jnp.float32))
    # Multi_heads: Linear(hidden_dim, proto_size, bias=False), stored transposed
    p["w_mh"] = 0.2 * jax.random.normal(ks[6], (hidden_dim, proto_size), jnp.float32)
    # o: Conv2d(hidden_dim, feature_dim, 1) + BN(feature_dim)
    p["w_o"] = 0.2 * jax.random.normal(ks[7], (hidden_dim, feature_dim), jnp.float32)
    p["b_o"] = 0.1 * jax.random.normal(ks[8], (feature_dim,), jnp.float32)
    p["bno_gamma"] = 1.0 + 0.1 * jax.random.normal(ks[9], (feature_dim,), jnp.float32)
    p["bno_beta"] = 0.1 * jax.random.normal(ks[10], (feature_dim,), jnp.float32)
    p["bno_mean"] = 0.05 * jax.random.normal(ks[11], (feature_dim,), jnp.float32)
    p["bno_var"] = 0.5 + jnp.abs(jax.random.normal(ks[12], (feature_dim,), jnp.float32))
    return p


def _fold_bn_into_conv(w, b, gamma, beta, mean, var):
    """Fold the BN(eval) scale into the conv weight; return (w_folded_bf16, shift_f32)."""
    scale = gamma / jnp.sqrt(var + EPS_BN)
    w_folded = (w * scale[None, :]).astype(jnp.bfloat16)
    shift = ((b - mean) * scale + beta)[None, :].astype(jnp.float32)
    return w_folded, shift


# ----------------------------------------------------------------------------
# Full forward (eval mode) driven by the Pallas kernels
# ----------------------------------------------------------------------------
def self_dynamic_prototype_forward(key, query, params, *, way, shot, tile_m=512):
    B, Cf, H, W = key.shape
    N = H * W
    num_spt = way * shot

    w1f, sh1 = _fold_bn_into_conv(params["w1"], params["b1"], params["bn1_gamma"],
                                  params["bn1_beta"], params["bn1_mean"], params["bn1_var"])
    wof, sho = _fold_bn_into_conv(params["w_o"], params["b_o"], params["bno_gamma"],
                                  params["bno_beta"], params["bno_mean"], params["bno_var"])

    # NCHW -> NHWC flat rows; bf16 MXU operands, f32 residual
    x = jnp.transpose(key, (0, 2, 3, 1)).reshape(B * N, Cf).astype(jnp.bfloat16)
    res = jnp.transpose(query, (0, 2, 3, 1)).reshape(B * N, Cf)

    # Pass 1 (small): prototypes from the num_spt*H*W support rows
    protos = build_protos(x[:num_spt * N], w1f, sh1, params["w_mh"],
                          shot=shot, way_hw=way * N)              # (P, Ch) bf16
    protos_t = protos.T                                           # one-time transpose

    # Pass 2 (fused): whole row-wise pipeline, tiled over B*H*W rows
    out_flat = fused_pipeline(x, res, w1f, sh1, protos, protos_t, wof, sho, tile_m=tile_m)
    return out_flat.reshape(B, H, W, Cf).transpose(0, 3, 1, 2)    # back to NCHW


# ----------------------------------------------------------------------------
# Pure-JAX reference mirroring the kernel's precision policy (bf16 on the MXU,
# f32 elsewhere) for verification.
# ----------------------------------------------------------------------------
def reference_forward(key, query, p, *, way, shot):
    B, Cf, H, W = key.shape
    Ch = p["w1"].shape[1]
    N = H * W
    num_spt = way * shot

    s1 = p["bn1_gamma"] / jnp.sqrt(p["bn1_var"] + EPS_BN)
    w1f = (p["w1"] * s1[None, :]).astype(jnp.bfloat16)
    sh1 = (p["b1"] - p["bn1_mean"]) * s1 + p["bn1_beta"]
    so = p["bno_gamma"] / jnp.sqrt(p["bno_var"] + EPS_BN)
    wof = (p["w_o"] * so[None, :]).astype(jnp.bfloat16)
    sho = (p["b_o"] - p["bno_mean"]) * so + p["bno_beta"]

    x = jnp.transpose(key, (0, 2, 3, 1)).reshape(-1, Cf).astype(jnp.bfloat16)
    h = jnp.maximum(jnp.dot(x, w1f, preferred_element_type=jnp.float32) + sh1, 0.0)

    sup = h[:num_spt * N].reshape(shot, way * N, Ch).mean(0)                  # f32
    wsm = jax.nn.softmax(jnp.dot(sup, p["w_mh"]), axis=0)
    protos = jnp.dot(wsm.T, sup)
    protos = protos * jax.lax.rsqrt(
        jnp.maximum(jnp.sum(protos * protos, -1, keepdims=True), EPS_NORM * EPS_NORM))
    protos_b = protos.astype(jnp.bfloat16)

    s = jnp.dot(h.astype(jnp.bfloat16), protos_b.T, preferred_element_type=jnp.float32)
    sm = jax.nn.softmax(s, axis=-1)
    nq = jnp.dot(sm.astype(jnp.bfloat16), protos_b, preferred_element_type=jnp.float32)
    nq = nq * jax.lax.rsqrt(
        jnp.maximum(jnp.sum(nq * nq, -1, keepdims=True), EPS_NORM * EPS_NORM))
    z = jnp.maximum(
        jnp.dot(nq.astype(jnp.bfloat16), wof, preferred_element_type=jnp.float32) + sho, 0.0)

    res = jnp.transpose(query, (0, 2, 3, 1)).reshape(-1, Cf)
    return (z + res).reshape(B, H, W, Cf).transpose(0, 3, 1, 2)


if __name__ == "__main__":
    # Small config consistent with the module:
    #   args.way=2, args.shot=1 -> num_spt=2 ; batch = 4 (2 support + 2 query)
    way, shot = 2, 1
    B, feature_dim, hidden_dim, proto_size = 4, 32, 64, 16
    H = W = 16

    root = jax.random.PRNGKey(0)
    k_in, k_q, k_par = jax.random.split(root, 3)
    key_inp = jax.random.normal(k_in, (B, feature_dim, H, W), jnp.float32)
    query_inp = jax.random.normal(k_q, (B, feature_dim, H, W), jnp.float32)
    params = init_params(k_par, feature_dim, hidden_dim, proto_size)

    fwd = jax.jit(functools.partial(self_dynamic_prototype_forward, way=way, shot=shot))
    out = jax.block_until_ready(fwd(key_inp, query_inp, params))

    ref = jax.block_until_ready(
        reference_forward(key_inp, query_inp, params, way=way, shot=shot))

    max_err = float(jnp.max(jnp.abs(out - ref)))
    if not jnp.allclose(out, ref, rtol=1e-2, atol=1e-2):
        raise AssertionError(f"Pallas output mismatch vs reference (max abs err {max_err})")
    print("KERNEL_OK")
</pallas_src>

<mosaic_0001>
module attributes {stable_mosaic.version = 11 : i64} {
  func.func @_protos_kernel(%arg0: memref<512x32xbf16, #tpu.memory_space<vmem>>, %arg1: memref<32x64xbf16, #tpu.memory_space<vmem>>, %arg2: memref<1x64xf32, #tpu.memory_space<vmem>>, %arg3: memref<64x16xf32, #tpu.memory_space<vmem>>, %arg4: memref<16x64xbf16, #tpu.memory_space<vmem>>) attributes {dimension_semantics = [], scalar_prefetch = 0 : i64, scratch_operands = 0 : i64, tpu.core_type = #tpu.core_type<tc>} {
    %c0 = arith.constant 0 : index
    %c0_0 = arith.constant 0 : index
    %0 = vector.load %arg0[%c0, %c0_0] : memref<512x32xbf16, #tpu.memory_space<vmem>>, vector<512x32xbf16>
    %c0_1 = arith.constant 0 : index
    %c0_2 = arith.constant 0 : index
    %1 = vector.load %arg1[%c0_1, %c0_2] : memref<32x64xbf16, #tpu.memory_space<vmem>>, vector<32x64xbf16>
    %cst = arith.constant dense<0.000000e+00> : vector<512x64xf32>
    %2 = tpu.matmul %0, %1, %cst {dimension_numbers = #tpu.dot_dimension_numbers<[1], [0], [0], [1], [0, 0, 1, 1], [], []>} : vector<512x32xbf16>, vector<32x64xbf16>, vector<512x64xf32> -> vector<512x64xf32>
    %c0_3 = arith.constant 0 : index
    %c0_4 = arith.constant 0 : index
    %3 = vector.load %arg2[%c0_3, %c0_4] : memref<1x64xf32, #tpu.memory_space<vmem>>, vector<1x64xf32>
    %4 = vector.broadcast %3 : vector<1x64xf32> to vector<512x64xf32>
    %5 = arith.addf %2, %4 : vector<512x64xf32>
    %cst_5 = arith.constant 0.000000e+00 : f32
    %6 = vector.broadcast %cst_5 : f32 to vector<512x64xf32>
    %7 = arith.maximumf %5, %6 : vector<512x64xf32>
    %c0_6 = arith.constant 0 : index
    %c0_7 = arith.constant 0 : index
    %8 = vector.load %arg3[%c0_6, %c0_7] : memref<64x16xf32, #tpu.memory_space<vmem>>, vector<64x16xf32>
    %cst_8 = arith.constant dense<0.000000e+00> : vector<512x16xf32>
    %9 = tpu.matmul %7, %8, %cst_8 {dimension_numbers = #tpu.dot_dimension_numbers<[1], [0], [0], [1], [0, 0, 1, 1], [], []>} : vector<512x64xf32>, vector<64x16xf32>, vector<512x16xf32> -> vector<512x16xf32>
    %cst_9 = arith.constant dense<0xFF800000> : vector<16xf32>
    %10 = vector.multi_reduction <maximumf>, %9, %cst_9 [0] : vector<512x16xf32> to vector<16xf32>
    %11 = vector.shape_cast %10 : vector<16xf32> to vector<1x16xf32>
    %12 = vector.broadcast %11 : vector<1x16xf32> to vector<512x16xf32>
    %13 = arith.subf %9, %12 : vector<512x16xf32>
    %14 = math.exp %13 : vector<512x16xf32>
    %cst_10 = arith.constant dense<0.000000e+00> : vector<16xf32>
    %15 = vector.multi_reduction <add>, %14, %cst_10 [0] : vector<512x16xf32> to vector<16xf32>
    %16 = vector.shape_cast %15 : vector<16xf32> to vector<1x16xf32>
    %17 = tpu.reciprocal %16 {approx = true} : vector<1x16xf32> -> vector<1x16xf32>
    %18 = vector.broadcast %17 : vector<1x16xf32> to vector<512x16xf32>
    %19 = arith.mulf %14, %18 : vector<512x16xf32>
    %20 = tpu.transpose %19, [1, 0] : vector<512x16xf32> -> vector<16x512xf32>
    %cst_11 = arith.constant dense<0.000000e+00> : vector<16x64xf32>
    %21 = tpu.matmul %20, %7, %cst_11 {dimension_numbers = #tpu.dot_dimension_numbers<[1], [0], [0], [1], [0, 0, 1, 1], [], []>} : vector<16x512xf32>, vector<512x64xf32>, vector<16x64xf32> -> vector<16x64xf32>
    %22 = arith.mulf %21, %21 : vector<16x64xf32>
    %cst_12 = arith.constant dense<0.000000e+00> : vector<16xf32>
    %23 = vector.multi_reduction <add>, %22, %cst_12 [1] : vector<16x64xf32> to vector<16xf32>
    %24 = vector.shape_cast %23 : vector<16xf32> to vector<16x1xf32>
    %cst_13 = arith.constant 1.000000e-24 : f32
    %25 = vector.broadcast %cst_13 : f32 to vector<16x1xf32>
    %26 = arith.maximumf %24, %25 : vector<16x1xf32>
    %27 = math.rsqrt %26 : vector<16x1xf32>
    %28 = vector.broadcast %27 : vector<16x1xf32> to vector<16x64xf32>
    %29 = arith.mulf %21, %28 : vector<16x64xf32>
    %30 = arith.truncf %29 : vector<16x64xf32> to vector<16x64xbf16>
    %c0_14 = arith.constant 0 : index
    %c0_15 = arith.constant 0 : index
    %31 = vector.load %arg4[%c0_14, %c0_15] : memref<16x64xbf16, #tpu.memory_space<vmem>>, vector<16x64xbf16>
    tpu.vector_store %arg4[%c0_14, %c0_15], %30 {strides = array<i32>} : memref<16x64xbf16, #tpu.memory_space<vmem>>, vector<16x64xbf16>,
    return
  }
}

module attributes {stable_mosaic.version = 11 : i64} {
  func.func @_fused_kernel(%arg0: i32, %arg1: memref<512x32xbf16, #tpu.memory_space<vmem>>, %arg2: memref<512x32xf32, #tpu.memory_space<vmem>>, %arg3: memref<32x64xbf16, #tpu.memory_space<vmem>>, %arg4: memref<1x64xf32, #tpu.memory_space<vmem>>, %arg5: memref<16x64xbf16, #tpu.memory_space<vmem>>, %arg6: memref<64x16xbf16, #tpu.memory_space<vmem>>, %arg7: memref<64x32xbf16, #tpu.memory_space<vmem>>, %arg8: memref<1x32xf32, #tpu.memory_space<vmem>>, %arg9: memref<512x32xf32, #tpu.memory_space<vmem>>) attributes {dimension_semantics = [#tpu.dimension_semantics<parallel>], iteration_bounds = array<i64: 2>, scalar_prefetch = 0 : i64, scratch_operands = 0 : i64, tpu.core_type = #tpu.core_type<tc>, window_params = [{transform_indices = @transform_0, window_bounds = array<i64: 512, 32>}, {transform_indices = @transform_1, window_bounds = array<i64: 512, 32>}, {pipeline_mode = #tpu.pipeline_mode<synchronous>, transform_indices = @transform_2, window_bounds = array<i64: 32, 64>}, {pipeline_mode = #tpu.pipeline_mode<synchronous>, transform_indices = @transform_3, window_bounds = array<i64: 1, 64>}, {pipeline_mode = #tpu.pipeline_mode<synchronous>, transform_indices = @transform_4, window_bounds = array<i64: 16, 64>}, {pipeline_mode = #tpu.pipeline_mode<synchronous>, transform_indices = @transform_5, window_bounds = array<i64: 64, 16>}, {pipeline_mode = #tpu.pipeline_mode<synchronous>, transform_indices = @transform_6, window_bounds = array<i64: 64, 32>}, {pipeline_mode = #tpu.pipeline_mode<synchronous>, transform_indices = @transform_7, window_bounds = array<i64: 1, 32>}, {transform_indices = @transform_8, window_bounds = array<i64: 512, 32>}]} {
    %c0 = arith.constant 0 : index
    %c0_0 = arith.constant 0 : index
    %0 = vector.load %arg1[%c0, %c0_0] : memref<512x32xbf16, #tpu.memory_space<vmem>>, vector<512x32xbf16>
    %c0_1 = arith.constant 0 : index
    %c0_2 = arith.constant 0 : index
    %1 = vector.load %arg3[%c0_1, %c0_2] : memref<32x64xbf16, #tpu.memory_space<vmem>>, vector<32x64xbf16>
    %cst = arith.constant dense<0.000000e+00> : vector<512x64xf32>
    %2 = tpu.matmul %0, %1, %cst {dimension_numbers = #tpu.dot_dimension_numbers<[1], [0], [0], [1], [0, 0, 1, 1], [], []>} : vector<512x32xbf16>, vector<32x64xbf16>, vector<512x64xf32> -> vector<512x64xf32>
    %c0_3 = arith.constant 0 : index
    %c0_4 = arith.constant 0 : index
    %3 = vector.load %arg4[%c0_3, %c0_4] : memref<1x64xf32, #tpu.memory_space<vmem>>, vector<1x64xf32>
    %4 = vector.broadcast %3 : vector<1x64xf32> to vector<512x64xf32>
    %5 = arith.addf %2, %4 : vector<512x64xf32>
    %cst_5 = arith.constant 0.000000e+00 : f32
    %6 = vector.broadcast %cst_5 : f32 to vector<512x64xf32>
    %7 = arith.maximumf %5, %6 : vector<512x64xf32>
    %8 = arith.truncf %7 : vector<512x64xf32> to vector<512x64xbf16>
    %c0_6 = arith.constant 0 : index
    %c0_7 = arith.constant 0 : index
    %9 = vector.load %arg6[%c0_6, %c0_7] : memref<64x16xbf16, #tpu.memory_space<vmem>>, vector<64x16xbf16>
    %cst_8 = arith.constant dense<0.000000e+00> : vector<512x16xf32>
    %10 = tpu.matmul %8, %9, %cst_8 {dimension_numbers = #tpu.dot_dimension_numbers<[1], [0], [0], [1], [0, 0, 1, 1], [], []>} : vector<512x64xbf16>, vector<64x16xbf16>, vector<512x16xf32> -> vector<512x16xf32>
    %cst_9 = arith.constant dense<0xFF800000> : vector<512xf32>
    %11 = vector.multi_reduction <maximumf>, %10, %cst_9 [1] : vector<512x16xf32> to vector<512xf32>
    %12 = vector.shape_cast %11 : vector<512xf32> to vector<512x1xf32>
    %13 = vector.broadcast %12 : vector<512x1xf32> to vector<512x16xf32>
    %14 = arith.subf %10, %13 : vector<512x16xf32>
    %15 = math.exp %14 : vector<512x16xf32>
    %cst_10 = arith.constant dense<0.000000e+00> : vector<512xf32>
    %16 = vector.multi_reduction <add>, %15, %cst_10 [1] : vector<512x16xf32> to vector<512xf32>
    %17 = vector.shape_cast %16 : vector<512xf32> to vector<512x1xf32>
    %18 = tpu.reciprocal %17 {approx = true} : vector<512x1xf32> -> vector<512x1xf32>
    %19 = vector.broadcast %18 : vector<512x1xf32> to vector<512x16xf32>
    %20 = arith.mulf %15, %19 : vector<512x16xf32>
    %21 = arith.truncf %20 : vector<512x16xf32> to vector<512x16xbf16>
    %c0_11 = arith.constant 0 : index
    %c0_12 = arith.constant 0 : index
    %22 = vector.load %arg5[%c0_11, %c0_12] : memref<16x64xbf16, #tpu.memory_space<vmem>>, vector<16x64xbf16>
    %cst_13 = arith.constant dense<0.000000e+00> : vector<512x64xf32>
    %23 = tpu.matmul %21, %22, %cst_13 {dimension_numbers = #tpu.dot_dimension_numbers<[1], [0], [0], [1], [0, 0, 1, 1], [], []>} : vector<512x16xbf16>, vector<16x64xbf16>, vector<512x64xf32> -> vector<512x64xf32>
    %24 = arith.mulf %23, %23 : vector<512x64xf32>
    %cst_14 = arith.constant dense<0.000000e+00> : vector<512xf32>
    %25 = vector.multi_reduction <add>, %24, %cst_14 [1] : vector<512x64xf32> to vector<512xf32>
    %26 = vector.shape_cast %25 : vector<512xf32> to vector<512x1xf32>
    %cst_15 = arith.constant 1.000000e-24 : f32
    %27 = vector.broadcast %cst_15 : f32 to vector<512x1xf32>
    %28 = arith.maximumf %26, %27 : vector<512x1xf32>
    %29 = math.rsqrt %28 : vector<512x1xf32>
    %30 = vector.broadcast %29 : vector<512x1xf32> to vector<512x64xf32>
    %31 = arith.mulf %23, %30 : vector<512x64xf32>
    %32 = arith.truncf %31 : vector<512x64xf32> to vector<512x64xbf16>
    %c0_16 = arith.constant 0 : index
    %c0_17 = arith.constant 0 : index
    %33 = vector.load %arg7[%c0_16, %c0_17] : memref<64x32xbf16, #tpu.memory_space<vmem>>, vector<64x32xbf16>
    %cst_18 = arith.constant dense<0.000000e+00> : vector<512x32xf32>
    %34 = tpu.matmul %32, %33, %cst_18 {dimension_numbers = #tpu.dot_dimension_numbers<[1], [0], [0], [1], [0, 0, 1, 1], [], []>} : vector<512x64xbf16>, vector<64x32xbf16>, vector<512x32xf32> -> vector<512x32xf32>
    %c0_19 = arith.constant 0 : index
    %c0_20 = arith.constant 0 : index
    %35 = vector.load %arg8[%c0_19, %c0_20] : memref<1x32xf32, #tpu.memory_space<vmem>>, vector<1x32xf32>
    %36 = vector.broadcast %35 : vector<1x32xf32> to vector<512x32xf32>
    %37 = arith.addf %34, %36 : vector<512x32xf32>
    %cst_21 = arith.constant 0.000000e+00 : f32
    %38 = vector.broadcast %cst_21 : f32 to vector<512x32xf32>
    %39 = arith.maximumf %37, %38 : vector<512x32xf32>
    %c0_22 = arith.constant 0 : index
    %c0_23 = arith.constant 0 : index
    %40 = vector.load %arg2[%c0_22, %c0_23] : memref<512x32xf32, #tpu.memory_space<vmem>>, vector<512x32xf32>
    %41 = arith.addf %39, %40 : vector<512x32xf32>
    %c0_24 = arith.constant 0 : index
    %c0_25 = arith.constant 0 : index
    %42 = vector.load %arg9[%c0_24, %c0_25] : memref<512x32xf32, #tpu.memory_space<vmem>>, vector<512x32xf32>
    tpu.vector_store %arg9[%c0_24, %c0_25], %41 {strides = array<i32>} : memref<512x32xf32, #tpu.memory_space<vmem>>, vector<512x32xf32>,
    return
  }
  func.func @transform_0(%arg0: i32) -> (i32, i32) {
    %c0_i32 = arith.constant 0 : i32
    %c0_i32_0 = arith.constant 0 : i32
    return %arg0, %c0_i32 : i32, i32
  }
  func.func @transform_1(%arg0: i32) -> (i32, i32) {
    %c0_i32 = arith.constant 0 : i32
    %c0_i32_0 = arith.constant 0 : i32
    return %arg0, %c0_i32 : i32, i32
  }
  func.func @transform_2(%arg0: i32) -> (i32, i32) {
    %c0_i32 = arith.constant 0 : i32
    %c0_i32_0 = arith.constant 0 : i32
    %c0_i32_1 = arith.constant 0 : i32
    return %c0_i32, %c0_i32_0 : i32, i32
  }
  func.func @transform_3(%arg0: i32) -> (i32, i32) {
    %c0_i32 = arith.constant 0 : i32
    %c0_i32_0 = arith.constant 0 : i32
    %c0_i32_1 = arith.constant 0 : i32
    return %c0_i32, %c0_i32_0 : i32, i32
  }
  func.func @transform_4(%arg0: i32) -> (i32, i32) {
    %c0_i32 = arith.constant 0 : i32
    %c0_i32_0 = arith.constant 0 : i32
    %c0_i32_1 = arith.constant 0 : i32
    return %c0_i32, %c0_i32_0 : i32, i32
  }
  func.func @transform_5(%arg0: i32) -> (i32, i32) {
    %c0_i32 = arith.constant 0 : i32
    %c0_i32_0 = arith.constant 0 : i32
    %c0_i32_1 = arith.constant 0 : i32
    return %c0_i32, %c0_i32_0 : i32, i32
  }
  func.func @transform_6(%arg0: i32) -> (i32, i32) {
    %c0_i32 = arith.constant 0 : i32
    %c0_i32_0 = arith.constant 0 : i32
    %c0_i32_1 = arith.constant 0 : i32
    return %c0_i32, %c0_i32_0 : i32, i32
  }
  func.func @transform_7(%arg0: i32) -> (i32, i32) {
    %c0_i32 = arith.constant 0 : i32
    %c0_i32_0 = arith.constant 0 : i32
    %c0_i32_1 = arith.constant 0 : i32
    return %c0_i32, %c0_i32_0 : i32, i32
  }
  func.func @transform_8(%arg0: i32) -> (i32, i32) {
    %c0_i32 = arith.constant 0 : i32
    %c0_i32_0 = arith.constant 0 : i32
    return %arg0, %c0_i32 : i32, i32
  }
}

</mosaic_0001>

<bundles_post_ra>
// kernel: self_dynamic_prototype_forward.2
= control target key start
LH: loop header
LB: loop body
LE: loop exit
PB: predicated region body
PF: predicated region fallthrough
CT: control target
= control target key end

     0   :  { %vm262_vm0 = vcmask 261120   ;;  %vm600_vm1 = vcmask 523264   ;;  %vm1002_vm2 = vcmask 130048   ;;  %vm1780_vm6 = vcmask 519168   ;;  %s3768_s1 = inlined_call_operand.vmem [shape: bf16[32,64], index: 1, kind: input, shape index: {}]   ;;  %s3769_s2 = inlined_call_operand.vmem [shape: f32[1,64], index: 2, kind: input, shape index: {}]   ;;  %s3770_s0 = inlined_call_operand.vmem [shape: bf16[512,32], index: 0, kind: input, shape index: {}]   ;;  %s3771_s3 = inlined_call_operand.vmem [shape: f32[64,16], index: 3, kind: input, shape index: {}]   ;;  %s3772_s4 = inlined_call_operand.vmem [shape: bf16[16,64], index: 4, kind: output, shape index: {}]  }
   0x1   :  { %v2052_v0 = vld [vmem:[%s3768_s1 + $0x8] sm:$0xff]  ;;  %v2051_v1 = vld [vmem:[%s3768_s1] sm:$0xff]  ;;  %v2037_v3 = vld [vmem:[%s3770_s0 + $0x90] sm:$0xff] }
   0x2   :  { %365 = vmatpush.bf16.msra.mxu0 %v2052_v0  ;;  %2053 = vmatpush.bf16.msra.mxu3 %v2052_v0  ;;  %v2019_v2 = vld [vmem:[%s3770_s0] sm:$0xff]  ;;  %v2020_v4 = vld [vmem:[%s3770_s0 + $0x8] sm:$0xff]  ;;  %v2038_v5 = vld [vmem:[%s3770_s0 + $0x98] sm:$0xff] }
   0x3   :  { %v2021_v6 = vld [vmem:[%s3770_s0 + $0x10] sm:$0xff]  ;;  %v2039_v7 = vld [vmem:[%s3770_s0 + $0xa0] sm:$0xff]  ;;  %v2022_v8 = vld [vmem:[%s3770_s0 + $0x18] sm:$0xff] }
   0x4   :  { %v2040_v9 = vld [vmem:[%s3770_s0 + $0xa8] sm:$0xff]  ;;  %v2023_v10 = vld [vmem:[%s3770_s0 + $0x20] sm:$0xff]  ;;  %v2041_v11 = vld [vmem:[%s3770_s0 + $0xb0] sm:$0xff] }
   0x5   :  { %v2024_v12 = vld [vmem:[%s3770_s0 + $0x28] sm:$0xff]  ;;  %v599_v13 = vld [vmem:[%s3771_s3 + $0x38] sm:$0xff]  ;;  %v598_v14 = vld [vmem:[%s3771_s3 + $0x30] sm:$0xff] }
   0x6   :  { %366 = vmatpush.bf16.msra.mxu0 %v2051_v1  ;;  %2054 = vmatpush.bf16.msra.mxu3 %v2051_v1  ;;  %v597_v15 = vld [vmem:[%s3771_s3 + $0x28] sm:$0xff]  ;;  %v2042_v16 = vld [vmem:[%s3770_s0 + $0xb8] sm:$0xff]  ;;  %v596_v17 = vld [vmem:[%s3771_s3 + $0x20] sm:$0xff] }
   0x7   :  { %801 = vmatpush.msra.mxu1 %v599_v13  ;;  %2055 = vmatpush.msra.mxu2 %v599_v13  ;;  %v595_v18 = vld [vmem:[%s3771_s3 + $0x18] sm:$0xff]  ;;  %v2025_v19 = vld [vmem:[%s3770_s0 + $0x30] sm:$0xff]  ;;  %v593_v21 = vld [vmem:[%s3771_s3 + $0x8] sm:$0xff] }
   0x8   :  { %v594_v20 = vld [vmem:[%s3771_s3 + $0x10] sm:$0xff]  ;;  %v592_v22 = vld [vmem:[%s3771_s3] sm:$0xff]  ;;  %v2026_v24 = vld [vmem:[%s3770_s0 + $0x38] sm:$0xff] }
   0x9   :  { %1923 = vmatmul.msk.bf16.vlgmr.msra.gmra.mxu0 %vm262_vm0, %v2019_v2  ;;  %1941 = vmatmul.msk.bf16.vlgmr.msra.gmra.mxu3 %vm262_vm0, %v2037_v3  ;;  %v2043_v23 = vld [vmem:[%s3770_s0 + $0xc0] sm:$0xff]  ;;  %v2044_v25 = vld [vmem:[%s3770_s0 + $0xc8] sm:$0xff]  ;;  %v2045_v31 = vld [vmem:[%s3770_s0 + $0xd0] sm:$0xff] }
   0xa   :  { %802 = vmatpush.msra.mxu1 %v598_v14  ;;  %2056 = vmatpush.msra.mxu2 %v598_v14  ;;  %v2414_v26 = vld [vmem:[%s3769_s2] ss:$0 sm:$0xff]  ;;  %v2028_v39 = vld [vmem:[%s3770_s0 + $0x48] sm:$0xff]  ;;  %v2046_v45 = vld [vmem:[%s3770_s0 + $0xd8] sm:$0xff] }
   0xb   :  { %v2027_v27 = vld [vmem:[%s3770_s0 + $0x40] sm:$0xff]  ;;  %v2029_v53 = vld [vmem:[%s3770_s0 + $0x50] sm:$0xff]  ;;  %v2030_v3 = vld [vmem:[%s3770_s0 + $0x58] sm:$0xff] }
   0xc   :  { %803 = vmatpush.msra.mxu1 %v597_v15  ;;  %2057 = vmatpush.msra.mxu2 %v597_v15  ;;  %v2047_v59 = vld [vmem:[%s3770_s0 + $0xe0] sm:$0xff] }
   0xe   :  { %804 = vmatpush.msra.mxu1 %v596_v17  ;;  %2058 = vmatpush.msra.mxu2 %v596_v17 }
  0x10   :  { %805 = vmatpush.msra.mxu1 %v595_v18  ;;  %2059 = vmatpush.msra.mxu2 %v595_v18 }
  0x12   :  { %806 = vmatpush.msra.mxu1 %v594_v20  ;;  %2060 = vmatpush.msra.mxu2 %v594_v20 }
  0x14   :  { %807 = vmatpush.msra.mxu1 %v593_v21  ;;  %2061 = vmatpush.msra.mxu2 %v593_v21 }
  0x16   :  { %808 = vmatpush.msra.mxu1 %v592_v22  ;;  %2062 = vmatpush.msra.mxu2 %v592_v22 }
  0x19   :  { %1924 = vmatmul.msk.bf16.gmra.mxu0 %vm262_vm0, %v2020_v4  ;;  %1942 = vmatmul.msk.bf16.gmra.mxu3 %vm262_vm0, %v2038_v5 }
  0x29   :  { %1925 = vmatmul.msk.bf16.gmra.mxu0 %vm262_vm0, %v2021_v6  ;;  %1943 = vmatmul.msk.bf16.gmra.mxu3 %vm262_vm0, %v2039_v7 }
  0x39   :  { %1926 = vmatmul.msk.bf16.gmra.mxu0 %vm262_vm0, %v2022_v8  ;;  %1944 = vmatmul.msk.bf16.gmra.mxu3 %vm262_vm0, %v2040_v9  ;;  %v2048_v9 = vld [vmem:[%s3770_s0 + $0xe8] sm:$0xff] }
  0x49   :  { %1927 = vmatmul.msk.bf16.gmra.mxu0 %vm262_vm0, %v2023_v10  ;;  %1945 = vmatmul.msk.bf16.gmra.mxu3 %vm262_vm0, %v2041_v11 }
  0x59   :  { %1928 = vmatmul.msk.bf16.gmra.mxu0 %vm262_vm0, %v2024_v12  ;;  %1946 = vmatmul.msk.bf16.gmra.mxu3 %vm262_vm0, %v2042_v16  ;;  %v2031_v16 = vld [vmem:[%s3770_s0 + $0x60] sm:$0xff] }
  0x69   :  { %1929 = vmatmul.msk.bf16.gmra.mxu0 %vm262_vm0, %v2025_v19  ;;  %1947 = vmatmul.msk.bf16.gmra.mxu3 %vm262_vm0, %v2043_v23 }
  0x79   :  { %1930 = vmatmul.msk.bf16.gmra.mxu0 %vm262_vm0, %v2026_v24  ;;  %1948 = vmatmul.msk.bf16.gmra.mxu3 %vm262_vm0, %v2044_v25 }
  0x86   :  { %v368_v28 = vpop.f32.mrf.mxu0 }
  0x87   :  { %v2420_v29 = vadd.f32 %v2414_v26, %v368_v28 }
  0x89   :  { %v528_v30 = vmax.f32 %v2420_v29, 0.0  ;;  %1931 = vmatmul.msk.bf16.gmra.mxu0 %vm262_vm0, %v2027_v27  ;;  %1949 = vmatmul.msk.bf16.gmra.mxu3 %vm262_vm0, %v2045_v31 }
  0x8b   :  { %1955 = vmatmul.msk.f32.vlgmr.msra.gmra.mxu1 %vm600_vm1, %v528_v30 }
  0x8c   :  { %v458_v32 = vpop.f32.mrf.mxu3 }
  0x8d   :  { %v2432_v33 = vadd.f32 %v2414_v26, %v458_v32  ;;  %v2032_v32 = vld [vmem:[%s3770_s0 + $0x68] sm:$0xff] }
  0x8e   :  { %v370_v34 = vpop.f32.mrf.mxu0 }
  0x8f   :  { %3877 = vst [vmem:[#allocation2_spill] sm:$0xff] %v2432_v33  ;;  %v2435_v35 = vadd.f32 %v2414_v26, %v370_v34  ;;  %v3778_v36 = vmax.f32 %v2432_v33, 0.0  ;;  %v2049_v34 = vld [vmem:[%s3770_s0 + $0xf0] sm:$0xff] }
  0x91   :  { %v529_v37 = vmax.f32 %v2435_v35, 0.0  ;;  %1991 = vmatmul.msk.f32.vlgmr.msra.gmra.mxu2 %vm600_vm1, %v3778_v36 }
  0x93   :  { %1956 = vmatmul.msk.f32.gmra.mxu1 %vm600_vm1, %v529_v37 }
  0x94   :  { %v460_v38 = vpop.f32.mrf.mxu3 }
  0x95   :  { %v2449_v40 = vadd.f32 %v2414_v26, %v460_v38 }
  0x96   :  { %v373_v41 = vpop.f32.mrf.mxu0 }
  0x97   :  { %3878 = vst [vmem:[#allocation3_spill] sm:$0xff] %v2449_v40  ;;  %v2452_v42 = vadd.f32 %v2414_v26, %v373_v41  ;;  %v3780_v43 = vmax.f32 %v2449_v40, 0.0 }
  0x99   :  { %v530_v44 = vmax.f32 %v2452_v42, 0.0  ;;  %1932 = vmatmul.msk.bf16.gmra.mxu0 %vm262_vm0, %v2028_v39  ;;  %1992 = vmatmul.msk.f32.gmra.mxu2 %vm600_vm1, %v3780_v43 }
  0x9a   :  { %1950 = vmatmul.msk.bf16.gmra.mxu3 %vm262_vm0, %v2046_v45 }
  0x9b   :  { %1957 = vmatmul.msk.f32.gmra.mxu1 %vm600_vm1, %v530_v44 }
  0x9c   :  { %v463_v46 = vpop.f32.mrf.mxu3 }
  0x9d   :  { %v2468_v47 = vadd.f32 %v2414_v26, %v463_v46 }
  0x9e   :  { %v375_v48 = vpop.f32.mrf.mxu0 }
  0x9f   :  { %3879 = vst [vmem:[#allocation4_spill] sm:$0xff] %v2468_v47  ;;  %v2471_v49 = vadd.f32 %v2414_v26, %v375_v48  ;;  %v3782_v50 = vmax.f32 %v2468_v47, 0.0 }
  0xa1   :  { %v531_v51 = vmax.f32 %v2471_v49, 0.0  ;;  %1993 = vmatmul.msk.f32.gmra.mxu2 %vm600_vm1, %v3782_v50 }
  0xa3   :  { %1958 = vmatmul.msk.f32.gmra.mxu1 %vm600_vm1, %v531_v51 }
  0xa4   :  { %v465_v52 = vpop.f32.mrf.mxu3 }
  0xa5   :  { %v2485_v54 = vadd.f32 %v2414_v26, %v465_v52 }
  0xa6   :  { %v378_v55 = vpop.f32.mrf.mxu0 }
  0xa7   :  { %3880 = vst [vmem:[#allocation5_spill] sm:$0xff] %v2485_v54  ;;  %v2488_v56 = vadd.f32 %v2414_v26, %v378_v55  ;;  %v3784_v57 = vmax.f32 %v2485_v54, 0.0 }
  0xa9   :  { %v532_v58 = vmax.f32 %v2488_v56, 0.0  ;;  %1933 = vmatmul.msk.bf16.gmra.mxu0 %vm262_vm0, %v2029_v53  ;;  %1994 = vmatmul.msk.f32.gmra.mxu2 %vm600_vm1, %v3784_v57 }
  0xaa   :  { %1951 = vmatmul.msk.bf16.gmra.mxu3 %vm262_vm0, %v2047_v59 }
  0xab   :  { %1959 = vmatmul.msk.f32.gmra.mxu1 %vm600_vm1, %v532_v58 }
  0xac   :  { %v468_v60 = vpop.f32.mrf.mxu3 }
  0xad   :  { %v2504_v61 = vadd.f32 %v2414_v26, %v468_v60 }
  0xae   :  { %v380_v62 = vpop.f32.mrf.mxu0 }
  0xaf   :  { %3881 = vst [vmem:[#allocation6_spill] sm:$0xff] %v2504_v61  ;;  %v2507_v63 = vadd.f32 %v2414_v26, %v380_v62  ;;  %v3786_v0 = vmax.f32 %v2504_v61, 0.0 }
  0xb1   :  { %v533_v1 = vmax.f32 %v2507_v63, 0.0  ;;  %1995 = vmatmul.msk.f32.gmra.mxu2 %vm600_vm1, %v3786_v0 }
  0xb3   :  { %1960 = vmatmul.msk.f32.gmra.mxu1 %vm600_vm1, %v533_v1 }
  0xb4   :  { %v470_v2 = vpop.f32.mrf.mxu3 }
  0xb5   :  { %v2521_v4 = vadd.f32 %v2414_v26, %v470_v2  ;;  %v2033_v2 = vld [vmem:[%s3770_s0 + $0x70] sm:$0xff] }
  0xb6   :  { %v383_v5 = vpop.f32.mrf.mxu0 }
  0xb7   :  { %3882 = vst [vmem:[#allocation7_spill] sm:$0xff] %v2521_v4  ;;  %v2524_v6 = vadd.f32 %v2414_v26, %v383_v5  ;;  %v3787_v7 = vmax.f32 %v2521_v4, 0.0 }
  0xb9   :  { %v534_v8 = vmax.f32 %v2524_v6, 0.0  ;;  %1934 = vmatmul.msk.bf16.gmra.mxu0 %vm262_vm0, %v2030_v3  ;;  %1996 = vmatmul.msk.f32.gmra.mxu2 %vm600_vm1, %v3787_v7  ;;  %v2050_v3 = vld [vmem:[%s3770_s0 + $0xf8] sm:$0xff] }
  0xba   :  { %1952 = vmatmul.msk.bf16.gmra.mxu3 %vm262_vm0, %v2048_v9 }
  0xbb   :  { %1961 = vmatmul.msk.f32.gmra.mxu1 %vm600_vm1, %v534_v8 }
  0xbc   :  { %v473_v10 = vpop.f32.mrf.mxu3 }
  0xbd   :  { %v2540_v11 = vadd.f32 %v2414_v26, %v473_v10 }
  0xbe   :  { %v385_v12 = vpop.f32.mrf.mxu0 }
  0xbf   :  { %3883 = vst [vmem:[#allocation8_spill] sm:$0xff] %v2540_v11  ;;  %v2543_v13 = vadd.f32 %v2414_v26, %v385_v12  ;;  %v3789_v14 = vmax.f32 %v2540_v11, 0.0 }
  0xc1   :  { %v535_v15 = vmax.f32 %v2543_v13, 0.0  ;;  %1997 = vmatmul.msk.f32.gmra.mxu2 %vm600_vm1, %v3789_v14 }
  0xc3   :  { %1962 = vmatmul.msk.f32.gmra.mxu1 %vm600_vm1, %v535_v15 }
  0xc4   :  { %v475_v19 = vpop.f32.mrf.mxu3 }
  0xc5   :  { %v2562_v21 = vadd.f32 %v2414_v26, %v475_v19 }
  0xc6   :  { %v388_v17 = vpop.f32.mrf.mxu0 }
  0xc7   :  { %v2557_v18 = vadd.f32 %v2414_v26, %v388_v17  ;;  %3884 = vst [vmem:[#allocation9_spill] sm:$0xff] %v2562_v21  ;;  %v3790_v22 = vmax.f32 %v2562_v21, 0.0 }
  0xc9   :  { %v536_v20 = vmax.f32 %v2557_v18, 0.0  ;;  %1935 = vmatmul.msk.bf16.gmra.mxu0 %vm262_vm0, %v2031_v16  ;;  %1998 = vmatmul.msk.f32.gmra.mxu2 %vm600_vm1, %v3790_v22  ;;  %v2036_v18 = vld [vmem:[%s3770_s0 + $0x88] sm:$0xff] }
  0xca   :  { %1953 = vmatmul.msk.bf16.gmra.mxu3 %vm262_vm0, %v2049_v34 }
  0xcb   :  { %1963 = vmatmul.msk.f32.gmra.mxu1 %vm600_vm1, %v536_v20 }
  0xcc   :  { %v478_v25 = vpop.f32.mrf.mxu3 }
  0xcd   :  { %v2576_v28 = vadd.f32 %v2414_v26, %v478_v25 }
  0xce   :  { %v390_v23 = vpop.f32.mrf.mxu0 }
  0xcf   :  { %v2572_v24 = vadd.f32 %v2414_v26, %v390_v23  ;;  %3885 = vst [vmem:[#allocation10_spill] sm:$0xff] %v2576_v28  ;;  %v3791_v31 = vmax.f32 %v2576_v28, 0.0 }
  0xd1   :  { %v537_v27 = vmax.f32 %v2572_v24, 0.0  ;;  %1999 = vmatmul.msk.f32.gmra.mxu2 %vm600_vm1, %v3791_v31 }
  0xd3   :  { %1964 = vmatmul.msk.f32.gmra.mxu1 %vm600_vm1, %v537_v27 }
  0xd4   :  { %v480_v41 = vpop.f32.mrf.mxu3 }
  0xd5   :  { %v2598_v46 = vadd.f32 %v2414_v26, %v480_v41  ;;  %v2034_v41 = vld [vmem:[%s3770_s0 + $0x78] sm:$0xff] }
  0xd6   :  { %v393_v38 = vpop.f32.mrf.mxu0 }
  0xd7   :  { %v2592_v39 = vadd.f32 %v2414_v26, %v393_v38  ;;  %3886 = vst [vmem:[#allocation11_spill] sm:$0xff] %v2598_v46  ;;  %v3792_v48 = vmax.f32 %v2598_v46, 0.0 }
  0xd9   :  { %v538_v45 = vmax.f32 %v2592_v39, 0.0  ;;  %1936 = vmatmul.msk.bf16.gmra.mxu0 %vm262_vm0, %v2032_v32  ;;  %2000 = vmatmul.msk.f32.gmra.mxu2 %vm600_vm1, %v3792_v48 }
  0xda   :  { %1954 = vmatmul.msk.bf16.gmra.mxu3 %vm262_vm0, %v2050_v3 }
  0xdb   :  { %1965 = vmatmul.msk.f32.gmra.mxu1 %vm600_vm1, %v538_v45 }
  0xdc   :  { %v483_v55 = vpop.f32.mrf.mxu3 }
  0xdd   :  { %v2609_v60 = vadd.f32 %v2414_v26, %v483_v55 }
  0xde   :  { %v395_v52 = vpop.f32.mrf.mxu0 }
  0xdf   :  { %v396_v53 = vadd.f32 %v2414_v26, %v395_v52  ;;  %3887 = vst [vmem:[#allocation12_spill] sm:$0xff] %v2609_v60  ;;  %v3794_v62 = vmax.f32 %v2609_v60, 0.0 }
  0xe1   :  { %v539_v59 = vmax.f32 %v396_v53, 0.0  ;;  %2001 = vmatmul.msk.f32.gmra.mxu2 %vm600_vm1, %v3794_v62 }
  0xe3   :  { %1966 = vmatmul.msk.f32.gmra.mxu1 %vm600_vm1, %v539_v59 }
  0xe4   :  { %v485_v10 = vpop.f32.mrf.mxu3 }
  0xe5   :  { %v2626_v16 = vadd.f32 %v2414_v26, %v485_v10 }
  0xe6   :  { %v398_v5 = vpop.f32.mrf.mxu0 }
  0xe7   :  { %v399_v9 = vadd.f32 %v2414_v26, %v398_v5  ;;  %3888 = vst [vmem:[#allocation13_spill] sm:$0xff] %v2626_v16  ;;  %v3795_v17 = vmax.f32 %v2626_v16, 0.0 }
  0xe9   :  { %v540_v12 = vmax.f32 %v399_v9, 0.0  ;;  %1937 = vmatmul.msk.bf16.gmra.mxu0 %vm262_vm0, %v2033_v2  ;;  %2002 = vmatmul.msk.f32.gmra.mxu2 %vm600_vm1, %v3795_v17 }
  0xeb   :  { %1967 = vmatmul.msk.f32.gmra.mxu1 %vm600_vm1, %v540_v12 }
  0xec   :  { %v488_v25 = vpop.f32.mrf.mxu3 }
  0xed   :  { %v2635_v34 = vadd.f32 %v2414_v26, %v488_v25 }
  0xee   :  { %v400_v19 = vpop.f32.mrf.mxu0 }
  0xef   :  { %v401_v23 = vadd.f32 %v2414_v26, %v400_v19  ;;  %3889 = vst [vmem:[#allocation14_spill] sm:$0xff] %v2635_v34  ;;  %v3773_v38 = vmax.f32 %v2635_v34, 0.0 }
  0xf1   :  { %v541_v32 = vmax.f32 %v401_v23, 0.0  ;;  %2003 = vmatmul.msk.f32.gmra.mxu2 %vm600_vm1, %v3773_v38 }
  0xf3   :  { %1968 = vmatmul.msk.f32.gmra.mxu1 %vm600_vm1, %v541_v32 }
  0xf4   :  { %v490_v55 = vpop.f32.mrf.mxu3 }
  0xf5   :  { %v2648_v3 = vadd.f32 %v2414_v26, %v490_v55 }
  0xf6   :  { %v403_v52 = vpop.f32.mrf.mxu0 }
  0xf7   :  { %v404_v53 = vadd.f32 %v2414_v26, %v403_v52  ;;  %3890 = vst [vmem:[#allocation15_spill] sm:$0xff] %v2648_v3  ;;  %v3774_v5 = vmax.f32 %v2648_v3, 0.0  ;;  %v2035_v52 = vld [vmem:[%s3770_s0 + $0x80] sm:$0xff] }
  0xf9   :  { %v542_v2 = vmax.f32 %v404_v53, 0.0  ;;  %1938 = vmatmul.msk.bf16.gmra.mxu0 %vm262_vm0, %v2034_v41  ;;  %2004 = vmatmul.msk.f32.gmra.mxu2 %vm600_vm1, %v3774_v5 }
  0xfb   :  { %1969 = vmatmul.msk.f32.gmra.mxu1 %vm600_vm1, %v542_v2 }
  0xfc   :  { %v493_v19 = vpop.f32.mrf.mxu3 }
  0xfd   :  { %v2657_v25 = vadd.f32 %v2414_v26, %v493_v19 }
  0xfe   :  { %v405_v9 = vpop.f32.mrf.mxu0 }
  0xff   :  { %v406_v10 = vadd.f32 %v2414_v26, %v405_v9  ;;  %3891 = vst [vmem:[#allocation16_spill] sm:$0xff] %v2657_v25  ;;  %v3775_v41 = vmax.f32 %v2657_v25, 0.0 }
 0x101   :  { %v543_v23 = vmax.f32 %v406_v10, 0.0  ;;  %2005 = vmatmul.msk.f32.gmra.mxu2 %vm600_vm1, %v3775_v41 }
 0x103   :  { %1970 = vmatmul.msk.f32.gmra.mxu1 %vm600_vm1, %v543_v23  ;;  %1654 = vmatpush.msra.mxu2 %v543_v23 }
 0x104   :  { %v495_v10 = vpop.f32.mrf.mxu3 }
 0x105   :  { %1655 = vmatpush.msra.mxu2 %v542_v2  ;;  %v2675_v2 = vadd.f32 %v2414_v26, %v495_v10 }
 0x106   :  { %v408_v53 = vpop.f32.mrf.mxu0 }
 0x107   :  { %v2668_v55 = vadd.f32 %v2414_v26, %v408_v53  ;;  %1656 = vmatpush.msra.mxu2 %v541_v32  ;;  %3892 = vst [vmem:[#allocation17_spill] sm:$0xff] %v2675_v2  ;;  %v3776_v23 = vmax.f32 %v2675_v2, 0.0 }
 0x108   :  { %v2670_v9 = vpop.f32.mrf.mxu1 }
 0x109   :  { %v3796_v19 = vmax.f32 %v2668_v55, 0.0  ;;  %1939 = vmatmul.msk.bf16.gmra.mxu0 %vm262_vm0, %v2035_v52  ;;  %1657 = vmatpush.msra.mxu2 %v540_v12 }
 0x10a   :  { %2006 = vmatmul.msk.f32.gmra.mxu2 %vm600_vm1, %v3776_v23 }
 0x10b   :  { %1971 = vmatmul.msk.f32.gmra.mxu1 %vm600_vm1, %v3796_v19  ;;  %1658 = vmatpush.msra.mxu2 %v539_v59 }
 0x10c   :  { %v498_v53 = vpop.f32.mrf.mxu3 }
 0x10d   :  { %1659 = vmatpush.msra.mxu2 %v538_v45  ;;  %v2697_v39 = vadd.f32 %v2414_v26, %v498_v53 }
 0x10e   :  { %v410_v32 = vpop.f32.mrf.mxu0 }
 0x10f   :  { %v2687_v12 = vadd.f32 %v2414_v26, %v410_v32  ;;  %1660 = vmatpush.msra.mxu2 %v537_v27  ;;  %3893 = vst [vmem:[#allocation18_spill] sm:$0xff] %v2697_v39  ;;  %v3777_v24 = vmax.f32 %v2697_v39, 0.0 }
 0x110   :  { %v2691_v52 = vpop.f32.mrf.mxu1 }
 0x111   :  { %v3797_v59 = vmax.f32 %v2687_v12, 0.0  ;;  %1661 = vmatpush.msra.mxu2 %v536_v20 }
 0x112   :  { %2007 = vmatmul.msk.f32.gmra.mxu2 %vm600_vm1, %v3777_v24 }
 0x113   :  { %1972 = vmatmul.msk.f32.gmra.mxu1 %vm600_vm1, %v3797_v59  ;;  %1662 = vmatpush.msra.mxu2 %v535_v15 }
 0x114   :  { %v2710_v20 = vpop.f32.mrf.mxu2  ;;  %v500_v6 = vpop.f32.mrf.mxu3 }
 0x115   :  { %1663 = vmatpush.msra.mxu2 %v534_v8  ;;  %v2727_v15 = vadd.f32 %v2414_v26, %v500_v6 }
 0x116   :  { %v413_v27 = vpop.f32.mrf.mxu0 }
 0x117   :  { %v2716_v45 = vadd.f32 %v2414_v26, %v413_v27  ;;  %1664 = vmatpush.msra.mxu2 %v533_v1  ;;  %3894 = vst [vmem:[#allocation19_spill] sm:$0xff] %v2727_v15  ;;  %v3779_v63 = vmax.f32 %v2727_v15, 0.0 }
 0x118   :  { %v2720_v13 = vpop.f32.mrf.mxu1 }
 0x119   :  { %v3798_v8 = vmax.f32 %v2716_v45, 0.0  ;;  %1940 = vmatmul.msk.bf16.gmra.mxu0 %vm262_vm0, %v2036_v18  ;;  %1665 = vmatpush.msra.mxu2 %v532_v58 }
 0x11a   :  { %2008 = vmatmul.msk.f32.gmra.mxu2 %vm600_vm1, %v3779_v63 }
 0x11b   :  { %1973 = vmatmul.msk.f32.gmra.mxu1 %vm600_vm1, %v3798_v8  ;;  %1666 = vmatpush.msra.mxu2 %v531_v51 }
 0x11c   :  { %v2745_v58 = vpop.f32.mrf.mxu2 }
 0x11d   :  { %1667 = vmatpush.msra.mxu2 %v530_v44  ;;  %v503_v51 = vpop.f32.mrf.mxu3 }
 0x11e   :  { %v415_v1 = vpop.f32.mrf.mxu0  ;;  %v2753_v42 = vadd.f32 %v2414_v26, %v503_v51 }
 0x11f   :  { %v2741_v56 = vadd.f32 %v2414_v26, %v415_v1  ;;  %1668 = vmatpush.msra.mxu2 %v529_v37 }
 0x120   :  { %v2747_v49 = vpop.f32.mrf.mxu1  ;;  %3895 = vst [vmem:[#allocation20_spill] sm:$0xff] %v2753_v42  ;;  %v3781_v35 = vmax.f32 %v2753_v42, 0.0 }
 0x121   :  { %v3799_v10 = vmax.f32 %v2741_v56, 0.0  ;;  %1669 = vmatpush.msra.mxu2 %v528_v30 }
 0x122   :  { %2009 = vmatmul.msk.f32.gmra.mxu2 %vm600_vm1, %v3781_v35 }
 0x123   :  { %1974 = vmatmul.msk.f32.gmra.mxu1 %vm600_vm1, %v3799_v10 }
 0x124   :  { %v2771_v18 = vpop.f32.mrf.mxu2 }
 0x125   :  { %v505_v29 = vpop.f32.mrf.mxu3 }
 0x126   :  { %v418_v37 = vpop.f32.mrf.mxu0  ;;  %v2769_v53 = vadd.f32 %v2414_v26, %v505_v29 }
 0x127   :  { %v2763_v44 = vadd.f32 %v2414_v26, %v418_v37 }
 0x128   :  { %v2765_v32 = vpop.f32.mrf.mxu1  ;;  %3896 = vst [vmem:[#allocation21_spill] sm:$0xff] %v2769_v53  ;;  %v3783_v27 = vmax.f32 %v2769_v53, 0.0 }
 0x129   :  { %v3800_v30 = vmax.f32 %v2763_v44, 0.0 }
 0x12a   :  { %2010 = vmatmul.msk.f32.gmra.mxu2 %vm600_vm1, %v3783_v27 }
 0x12b   :  { %1975 = vmatmul.msk.f32.gmra.mxu1 %vm600_vm1, %v3800_v30 }
 0x12c   :  { %v2793_v41 = vpop.f32.mrf.mxu2 }
 0x12d   :  { %v508_v37 = vpop.f32.mrf.mxu3 }
 0x12e   :  { %v420_v6 = vpop.f32.mrf.mxu0  ;;  %v2787_v38 = vadd.f32 %v2414_v26, %v508_v37 }
 0x12f   :  { %v2781_v1 = vadd.f32 %v2414_v26, %v420_v6 }
 0x130   :  { %v2783_v51 = vpop.f32.mrf.mxu1  ;;  %3897 = vst [vmem:[#allocation22_spill] sm:$0xff] %v2787_v38  ;;  %v3785_v5 = vmax.f32 %v2787_v38, 0.0 }
 0x131   :  { %v3801_v29 = vmax.f32 %v2781_v1, 0.0 }
 0x132   :  { %2011 = vmatmul.msk.f32.gmra.mxu2 %vm600_vm1, %v3785_v5 }
 0x133   :  { %1976 = vmatmul.msk.f32.gmra.mxu1 %vm600_vm1, %v3801_v29 }
 0x134   :  { %v2811_v50 = vpop.f32.mrf.mxu2 }
 0x135   :  { %v510_v37 = vpop.f32.mrf.mxu3 }
 0x136   :  { %v423_v23 = vpop.f32.mrf.mxu0  ;;  %v2805_v63 = vadd.f32 %v2414_v26, %v510_v37 }
 0x137   :  { %v2799_v6 = vadd.f32 %v2414_v26, %v423_v23 }
 0x138   :  { %v2801_v24 = vpop.f32.mrf.mxu1  ;;  %3898 = vst [vmem:[#allocation23_spill] sm:$0xff] %v2805_v63  ;;  %v3788_v43 = vmax.f32 %v2805_v63, 0.0 }
 0x139   :  { %v3802_v36 = vmax.f32 %v2799_v6, 0.0 }
 0x13a   :  { %2012 = vmatmul.msk.f32.gmra.mxu2 %vm600_vm1, %v3788_v43 }
 0x13b   :  { %1977 = vmatmul.msk.f32.gmra.mxu1 %vm600_vm1, %v3802_v36 }
 0x13c   :  { %v2837_v14 = vpop.f32.mrf.mxu2 }
 0x13d   :  { %v513_v37 = vpop.f32.mrf.mxu3 }
 0x13e   :  { %v425_v35 = vpop.f32.mrf.mxu0  ;;  %v2823_v5 = vadd.f32 %v2414_v26, %v513_v37 }
 0x13f   :  { %v2817_v23 = vadd.f32 %v2414_v26, %v425_v35 }
 0x140   :  { %v2819_v27 = vpop.f32.mrf.mxu1  ;;  %3899 = vst [vmem:[#allocation24_spill] sm:$0xff] %v2823_v5  ;;  %v3793_v0 = vmax.f32 %v2823_v5, 0.0 }
 0x141   :  { %v3803_v57 = vmax.f32 %v2817_v23, 0.0 }
 0x142   :  { %2013 = vmatmul.msk.f32.gmra.mxu2 %vm600_vm1, %v3793_v0 }
 0x143   :  { %1978 = vmatmul.msk.f32.gmra.mxu1 %vm600_vm1, %v3803_v57 }
 0x144   :  { %v2849_v62 = vpop.f32.mrf.mxu2 }
 0x146   :  { %v428_v7 = vpop.f32.mrf.mxu0 }
 0x147   :  { %v2833_v35 = vadd.f32 %v2414_v26, %v428_v7  ;;  %v515_v7 = vpop.f32.mrf.mxu3 }
 0x148   :  { %v2835_v43 = vpop.f32.mrf.mxu1  ;;  %v2855_v17 = vadd.f32 %v2414_v26, %v515_v7 }
 0x149   :  { %v3805_v37 = vmax.f32 %v2833_v35, 0.0 }
 0x14a   :  { %3900 = vst [vmem:[#allocation25_spill] sm:$0xff] %v2855_v17  ;;  %v3804_v19 = vmax.f32 %v2855_v17, 0.0 }
 0x14b   :  { %1979 = vmatmul.msk.f32.gmra.mxu1 %vm600_vm1, %v3805_v37 }
 0x14c   :  { %2014 = vmatmul.msk.f32.gmra.mxu2 %vm600_vm1, %v3804_v19  ;;  %v2864_v29 = vpop.f32.mrf.mxu2 }
 0x14d   :  { %3901 = vst [vmem:[#allocation26_spill] sm:$0xff] %v2864_v29  ;;  %v1085_v21 = vsel %vm1002_vm2, %v2864_v29, -inf }
 0x14e   :  { %v430_v22 = vpop.f32.mrf.mxu0 }
 0x14f   :  { %v2844_v31 = vadd.f32 %v2414_v26, %v430_v22  ;;  %v518_v30 = vpop.f32.mrf.mxu3 }
 0x150   :  { %v2846_v48 = vpop.f32.mrf.mxu1  ;;  %v2868_v7 = vadd.f32 %v2414_v26, %v518_v30 }
 0x151   :  { %v3806_v0 = vmax.f32 %v2844_v31, 0.0 }
 0x152   :  { %3902 = vst [vmem:[#allocation27_spill] sm:$0xff] %v2868_v7  ;;  %v3809_v36 = vmax.f32 %v2868_v7, 0.0 }
 0x153   :  { %1980 = vmatmul.msk.f32.gmra.mxu1 %vm600_vm1, %v3806_v0 }
 0x154   :  { %2015 = vmatmul.msk.f32.gmra.mxu2 %vm600_vm1, %v3809_v36  ;;  %v2881_v30 = vpop.f32.mrf.mxu2 }
 0x155   :  { %3904 = vst [vmem:[#allocation29_spill] sm:$0xff] %v2881_v30 }
 0x156   :  { %v433_v59 = vpop.f32.mrf.mxu0 }
 0x157   :  { %v434_v22 = vadd.f32 %v2414_v26, %v433_v59  ;;  %v520_v37 = vpop.f32.mrf.mxu3 }
 0x158   :  { %v2862_v8 = vpop.f32.mrf.mxu1  ;;  %v2879_v0 = vadd.f32 %v2414_v26, %v520_v37 }
 0x159   :  { %v554_v10 = vmax.f32 %v434_v22, 0.0 }
 0x15a   :  { %3903 = vst [vmem:[#allocation28_spill] sm:$0xff] %v2879_v0  ;;  %v3814_v34 = vmax.f32 %v2879_v0, 0.0 }
 0x15b   :  { %1981 = vmatmul.msk.f32.gmra.mxu1 %vm600_vm1, %v554_v10 }
 0x15c   :  { %2016 = vmatmul.msk.f32.gmra.mxu2 %vm600_vm1, %v3814_v34  ;;  %v2895_v33 = vpop.f32.mrf.mxu2 }
 0x15d   :  { %3906 = vst [vmem:[#allocation31_spill] sm:$0xff] %v2895_v33 }
 0x15e   :  { %v435_v57 = vpop.f32.mrf.mxu0 }
 0x15f   :  { %v436_v59 = vadd.f32 %v2414_v26, %v435_v57  ;;  %v523_v25 = vpop.f32.mrf.mxu3 }
 0x160   :  { %v2875_v19 = vpop.f32.mrf.mxu1  ;;  %v2892_v37 = vadd.f32 %v2414_v26, %v523_v25 }
 0x161   :  { %v555_v22 = vmax.f32 %v436_v59, 0.0 }
 0x162   :  { %3905 = vst [vmem:[#allocation30_spill] sm:$0xff] %v2892_v37  ;;  %v3819_v2 = vmax.f32 %v2892_v37, 0.0 }
 0x163   :  { %1982 = vmatmul.msk.f32.gmra.mxu1 %vm600_vm1, %v555_v22 }
 0x164   :  { %2017 = vmatmul.msk.f32.gmra.mxu2 %vm600_vm1, %v3819_v2  ;;  %v2914_v2 = vpop.f32.mrf.mxu2 }
 0x165   :  { %3908 = vst [vmem:[#allocation33_spill] sm:$0xff] %v2914_v2 }
 0x166   :  { %v438_v3 = vpop.f32.mrf.mxu0 }
 0x167   :  { %v439_v57 = vadd.f32 %v2414_v26, %v438_v3  ;;  %v525_v15 = vpop.f32.mrf.mxu3 }
 0x168   :  { %v2888_v36 = vpop.f32.mrf.mxu1  ;;  %v2905_v25 = vadd.f32 %v2414_v26, %v525_v15 }
 0x169   :  { %v556_v59 = vmax.f32 %v439_v57, 0.0 }
 0x16a   :  { %3907 = vst [vmem:[#allocation32_spill] sm:$0xff] %v2905_v25  ;;  %v3824_v40 = vmax.f32 %v2905_v25, 0.0 }
 0x16b   :  { %1983 = vmatmul.msk.f32.gmra.mxu1 %vm600_vm1, %v556_v59 }
 0x16c   :  { %2018 = vmatmul.msk.f32.gmra.mxu2 %vm600_vm1, %v3824_v40  ;;  %v2920_v61 = vpop.f32.mrf.mxu2 }
 0x16d   :  { %3909 = vst [vmem:[#allocation34_spill] sm:$0xff] %v2920_v61 }
 0x16e   :  { %v440_v39 = vpop.f32.mrf.mxu0 }
 0x16f   :  { %v441_v3 = vadd.f32 %v2414_v26, %v440_v39 }
 0x170   :  { %v2901_v34 = vpop.f32.mrf.mxu1 }
 0x171   :  { %v557_v57 = vmax.f32 %v441_v3, 0.0 }
 0x173   :  { %1984 = vmatmul.msk.f32.gmra.mxu1 %vm600_vm1, %v557_v57 }
 0x176   :  { %v443_v42 = vpop.f32.mrf.mxu0 }
 0x177   :  { %v444_v47 = vadd.f32 %v2414_v26, %v443_v42 }
 0x178   :  { %v2912_v39 = vpop.f32.mrf.mxu1 }
 0x179   :  { %v558_v3 = vmax.f32 %v444_v47, 0.0 }
 0x17b   :  { %1985 = vmatmul.msk.f32.gmra.mxu1 %vm600_vm1, %v558_v3 }
 0x17e   :  { %v445_v53 = vpop.f32.mrf.mxu0 }
 0x17f   :  { %v446_v15 = vadd.f32 %v2414_v26, %v445_v53  ;;  %v2932_v53 = vpop.f32.mrf.mxu2 }
 0x180   :  { %v2918_v54 = vpop.f32.mrf.mxu1  ;;  %3911 = vst [vmem:[#allocation36_spill] sm:$0xff] %v2932_v53 }
 0x181   :  { %v559_v38 = vmax.f32 %v446_v15, 0.0  ;;  %v3913_v15 = vmax.f32 %v2844_v31, 0.0 }
 0x183   :  { %1986 = vmatmul.msk.f32.gmra.mxu1 %vm600_vm1, %v559_v38  ;;  %1677 = vmatpush.msra.mxu3 %v559_v38 }
 0x185   :  { %1678 = vmatpush.msra.mxu3 %v558_v3 }
 0x186   :  { %v448_v42 = vpop.f32.mrf.mxu0 }
 0x187   :  { %v2924_v40 = vadd.f32 %v2414_v26, %v448_v42  ;;  %1679 = vmatpush.msra.mxu3 %v557_v57  ;;  %v2951_v31 = vpop.f32.mrf.mxu2 }
 0x188   :  { %v2926_v47 = vpop.f32.mrf.mxu1  ;;  %3917 = vst [vmem:[#allocation38_spill] sm:$0xff] %v2951_v31  ;;  %v1097_v28 = vsel %vm1002_vm2, %v2951_v31, -inf }
 0x189   :  { %3910 = vst [vmem:[#allocation35_spill] sm:$0xff] %v2924_v40  ;;  %v3826_v63 = vmax.f32 %v2924_v40, 0.0  ;;  %1680 = vmatpush.msra.mxu3 %v556_v59  ;;  %v3914_v59 = vmax.f32 %v2833_v35, 0.0  ;;  %v1013_v40 = vsel %vm1002_vm2, %v2819_v27, -inf }
 0x18b   :  { %1987 = vmatmul.msk.f32.gmra.mxu1 %vm600_vm1, %v3826_v63  ;;  %1681 = vmatpush.msra.mxu3 %v555_v22  ;;  %v3916_v22 = vmax.f32 %v2799_v6, 0.0  ;;  %v3919_v63 = vmax.f32 %v2781_v1, 0.0  ;;  %v3921_v6 = vmax.f32 %v2741_v56, 0.0  ;;  %v3924_v1 = vmax.f32 %v2687_v12, 0.0 }
 0x18c   :  { %v1073_v12 = vsel %vm1002_vm2, %v2745_v58, -inf }
 0x18d   :  { %1682 = vmatpush.msra.mxu3 %v554_v10  ;;  %v3915_v10 = vmax.f32 %v2817_v23, 0.0  ;;  %v3922_v23 = vmax.f32 %v2716_v45, 0.0 }
 0x18e   :  { %v450_v38 = vpop.f32.mrf.mxu0 }
 0x18f   :  { %v2935_v3 = vadd.f32 %v2414_v26, %v450_v38  ;;  %1683 = vmatpush.msra.mxu3 %v3913_v15 }
 0x190   :  { %v2939_v57 = vpop.f32.mrf.mxu1 }
 0x191   :  { %3912 = vst [vmem:[#allocation37_spill] sm:$0xff] %v2935_v3  ;;  %v3827_v42 = vmax.f32 %v2935_v3, 0.0  ;;  %1684 = vmatpush.msra.mxu3 %v3914_v59 }
 0x193   :  { %1988 = vmatmul.msk.f32.gmra.mxu1 %vm600_vm1, %v3827_v42  ;;  %1685 = vmatpush.msra.mxu3 %v3915_v10  ;;  %v3920_v42 = vmax.f32 %v2763_v44, 0.0  ;;  %v2977_v44 = vpop.f32.mrf.mxu2 }
 0x194   :  { %3925 = vst [vmem:[#allocation41_spill] sm:$0xff] %v2977_v44 }
 0x195   :  { %1686 = vmatpush.msra.mxu3 %v3916_v22 }
 0x196   :  { %v453_v38 = vpop.f32.mrf.mxu0 }
 0x197   :  { %v2954_v15 = vadd.f32 %v2414_v26, %v453_v38  ;;  %1687 = vmatpush.msra.mxu3 %v3919_v63  ;;  %v3926_v38 = vmax.f32 %v2668_v55, 0.0  ;;  %v1075_v55 = vsel %vm1002_vm2, %v2771_v18, -inf }
 0x198   :  { %v2958_v35 = vpop.f32.mrf.mxu1 }
 0x199   :  { %3918 = vst [vmem:[#allocation39_spill] sm:$0xff] %v2954_v15  ;;  %v3828_v59 = vmax.f32 %v2954_v15, 0.0  ;;  %1688 = vmatpush.msra.mxu3 %v3920_v42 }
 0x19b   :  { %1989 = vmatmul.msk.f32.gmra.mxu1 %vm600_vm1, %v3828_v59  ;;  %1689 = vmatpush.msra.mxu3 %v3921_v6  ;;  %v2991_v56 = vpop.f32.mrf.mxu2 }
 0x19c   :  { %3927 = vst [vmem:[#allocation42_spill] sm:$0xff] %v2991_v56 }
 0x19d   :  { %1690 = vmatpush.msra.mxu3 %v3922_v23 }
 0x19e   :  { %v455_v10 = vpop.f32.mrf.mxu0 }
 0x19f   :  { %v2971_v63 = vadd.f32 %v2414_v26, %v455_v10  ;;  %1691 = vmatpush.msra.mxu3 %v3924_v1  ;;  %v1071_v26 = vsel %vm1002_vm2, %v2710_v20, -inf  ;;  %v1077_v1 = vsel %vm1002_vm2, %v2793_v41, -inf }
 0x1a0   :  { %v2975_v22 = vpop.f32.mrf.mxu1  ;;  %v1038_v6 = vmax.f32 %v1073_v12, %v1071_v26  ;;  %v1006_v12 = vsel %vm1002_vm2, %v2747_v49, -inf }
 0x1a1   :  { %3923 = vst [vmem:[#allocation40_spill] sm:$0xff] %v2971_v63  ;;  %v3829_v42 = vmax.f32 %v2971_v63, 0.0  ;;  %1692 = vmatpush.msra.mxu3 %v3926_v38 }
 0x1a2   :  { %v1046_v23 = vmax.f32 %v1038_v6, %v1075_v55  ;;  %v1021_v6 = vsel %vm1002_vm2, %v2875_v19, -inf  ;;  %v1081_v55 = vsel %vm1002_vm2, %v2837_v14, -inf }
 0x1a3   :  { %1990 = vmatmul.msk.f32.gmra.mxu1 %vm600_vm1, %v3829_v42  ;;  %v2999_v59 = vpop.f32.mrf.mxu2  ;;  %v1079_v42 = vsel %vm1002_vm2, %v2811_v50, -inf }
 0x1a4   :  { %v1054_v38 = vmax.f32 %v1046_v23, %v1077_v1  ;;  %3928 = vst [vmem:[#allocation43_spill] sm:$0xff] %v2999_v59  ;;  %v1014_v23 = vmax.f32 %v1006_v12, %v1013_v40  ;;  %v1029_v1 = vsel %vm1002_vm2, %v2918_v54, -inf  ;;  %v1087_v40 = vsel %vm1002_vm2, %v2881_v30, -inf }
 0x1a6   :  { %v1062_v3 = vmax.f32 %v1054_v38, %v1079_v42  ;;  %v1022_v15 = vmax.f32 %v1014_v23, %v1021_v6  ;;  %v1083_v42 = vsel %vm1002_vm2, %v2849_v62, -inf }
 0x1a8   :  { %v2985_v45 = vpop.f32.mrf.mxu1  ;;  %v1072_v63 = vmax.f32 %v1081_v55, %v1062_v3  ;;  %v1030_v38 = vmax.f32 %v1022_v15, %v1029_v1  ;;  %v1089_v15 = vsel %vm1002_vm2, %v2895_v33, -inf  ;;  %v1027_v33 = vsel %vm1002_vm2, %v2912_v39, -inf }
 0x1aa   :  { %v1080_v5 = vmax.f32 %v1072_v63, %v1083_v42  ;;  %v1091_v63 = vsel %vm1002_vm2, %v2914_v2, -inf  ;;  %v1093_v42 = vsel %vm1002_vm2, %v2920_v61, -inf  ;;  %v1005_v2 = vsel %vm1002_vm2, %v2720_v13, -inf }
 0x1ab   :  { %v3017_v4 = vpop.f32.mrf.mxu2 }
 0x1ac   :  { %3929 = vst [vmem:[#allocation44_spill] sm:$0xff] %v3017_v4  ;;  %v1088_v17 = vmax.f32 %v1080_v5, %v1030_v38  ;;  %v1105_v37 = vsel %vm1002_vm2, %v3017_v4, -inf }
 0x1ae   :  { %v1096_v7 = vmax.f32 %v1088_v17, %v1085_v21  ;;  %v1037_v21 = vsel %vm1002_vm2, %v2975_v22, -inf }
 0x1b0   :  { %v2995_v10 = vpop.f32.mrf.mxu1  ;;  %v1104_v6 = vmax.f32 %v1096_v7, %v1087_v40  ;;  %v1095_v40 = vsel %vm1002_vm2, %v2932_v53, -inf  ;;  %v1033_v53 = vsel %vm1002_vm2, %v2939_v57, -inf }
 0x1b2   :  { %v1112_v55 = vmax.f32 %v1104_v6, %v1089_v15 }
 0x1b3   :  { %v3027_v3 = vpop.f32.mrf.mxu2 }
 0x1b4   :  { %3930 = vst [vmem:[#allocation45_spill] sm:$0xff] %v3027_v3  ;;  %v1120_v17 = vmax.f32 %v1112_v55, %v1091_v63  ;;  %v1099_v63 = vsel %vm1002_vm2, %v2977_v44, -inf }
 0x1b6   :  { %v1074_v1 = vmax.f32 %v1037_v21, %v1120_v17 }
 0x1b8   :  { %v3005_v26 = vpop.f32.mrf.mxu1  ;;  %v1082_v7 = vmax.f32 %v1074_v1, %v1093_v42 }
 0x1ba   :  { %v1090_v6 = vmax.f32 %v1082_v7, %v1095_v40  ;;  %v1101_v7 = vsel %vm1002_vm2, %v2991_v56, -inf }
 0x1bb   :  { %v3037_v23 = vpop.f32.mrf.mxu2 }
 0x1bc   :  { %3931 = vst [vmem:[#allocation46_spill] sm:$0xff] %v3037_v23  ;;  %v1098_v0 = vmax.f32 %v1090_v6, %v1097_v28  ;;  %v1103_v28 = vsel %vm1002_vm2, %v2999_v59, -inf }
 0x1be   :  { %v1106_v17 = vmax.f32 %v1098_v0, %v1099_v63  ;;  %v1107_v63 = vsel %vm1002_vm2, %v3027_v3, -inf }
 0x1c0   :  { %v3019_v11 = vpop.f32.mrf.mxu1 }
 0x1c1   :  { %v1045_v21 = vsel %vm1002_vm2, %v3019_v11, -inf }
 0x1c2   :  { %v1114_v1 = vmax.f32 %v1106_v17, %v1045_v21 }
 0x1c3   :  { %v3045_v15 = vpop.f32.mrf.mxu2 }
 0x1c4   :  { %3932 = vst [vmem:[#allocation47_spill] sm:$0xff] %v3045_v15  ;;  %v1122_v40 = vmax.f32 %v1114_v1, %v1101_v7 }
 0x1c6   :  { %v1127_v6 = vmax.f32 %v1103_v28, %v1122_v40  ;;  %v1007_v40 = vsel %vm1002_vm2, %v2765_v32, -inf  ;;  %v1109_v28 = vsel %vm1002_vm2, %v3037_v23, -inf }
 0x1c8   :  { %v3025_v12 = vpop.f32.mrf.mxu1  ;;  %v1076_v0 = vmax.f32 %v1105_v37, %v1127_v6  ;;  %v1003_v37 = vsel %vm1002_vm2, %v2670_v9, -inf  ;;  %v1015_v6 = vsel %vm1002_vm2, %v2835_v43, -inf }
 0x1ca   :  { %v1084_v17 = vmax.f32 %v1076_v0, %v1107_v63  ;;  %v1111_v0 = vsel %vm1002_vm2, %v3045_v15, -inf  ;;  %v1008_v63 = vmax.f32 %v1003_v37, %v1007_v40  ;;  %v1004_v40 = vsel %vm1002_vm2, %v2691_v52, -inf }
 0x1cb   :  { %v3055_v42 = vpop.f32.mrf.mxu2  ;;  %v1039_v37 = vsel %vm1002_vm2, %v2985_v45, -inf  ;;  %v1025_v15 = vsel %vm1002_vm2, %v2901_v34, -inf }
 0x1cc   :  { %3933 = vst [vmem:[#allocation48_spill] sm:$0xff] %v3055_v42  ;;  %v1113_v23 = vsel %vm1002_vm2, %v3055_v42, -inf }
 0x1d0   :  { %v3033_v5 = vpop.f32.mrf.mxu1 }
 0x1d3   :  { %v3067_v25 = vpop.f32.mrf.mxu2 }
 0x1d4   :  { %3934 = vst [vmem:[#allocation49_spill] sm:$0xff] %v3067_v25 }
 0x1d8   :  { %v3041_v38 = vpop.f32.mrf.mxu1 }
 0x1db   :  { %v3075_v16 = vpop.f32.mrf.mxu2 }
 0x1e0   :  { %v3049_v55 = vpop.f32.mrf.mxu1 }
 0x1e1   :  { %v1053_v21 = vsel %vm1002_vm2, %v3049_v55, -inf }
 0x1e2   :  { %v1092_v1 = vmax.f32 %v1084_v17, %v1053_v21  ;;  %v1023_v21 = vsel %vm1002_vm2, %v2888_v36, -inf  ;;  %v1016_v17 = vmax.f32 %v1008_v63, %v1015_v6 }
 0x1e3   :  { %v3097_v44 = vpop.f32.mrf.mxu2 }
 0x1e4   :  { %v1100_v4 = vmax.f32 %v1092_v1, %v1109_v28  ;;  %v1009_v1 = vsel %vm1002_vm2, %v2783_v51, -inf  ;;  %v1031_v28 = vsel %vm1002_vm2, %v2926_v47, -inf  ;;  %v1024_v56 = vmax.f32 %v1016_v17, %v1023_v21 }
 0x1e5   :  { %v1010_v6 = vmax.f32 %v1004_v40, %v1009_v1  ;;  %v1047_v21 = vsel %vm1002_vm2, %v3025_v12, -inf  ;;  %v1115_v17 = vsel %vm1002_vm2, %v3067_v25, -inf  ;;  %v1011_v40 = vsel %vm1002_vm2, %v2801_v24, -inf }
 0x1e6   :  { %v1108_v3 = vmax.f32 %v1100_v4, %v1111_v0  ;;  %v1017_v4 = vsel %vm1002_vm2, %v2846_v48, -inf  ;;  %v1032_v0 = vmax.f32 %v1024_v56, %v1031_v28 }
 0x1e7   :  { %v1018_v42 = vmax.f32 %v1010_v6, %v1017_v4  ;;  %v1041_v4 = vsel %vm1002_vm2, %v2995_v10, -inf }
 0x1e8   :  { %v3057_v46 = vpop.f32.mrf.mxu1  ;;  %v1116_v63 = vmax.f32 %v1108_v3, %v1113_v23  ;;  %v1040_v31 = vmax.f32 %v1032_v0, %v1039_v37 }
 0x1e9   :  { %v1055_v61 = vsel %vm1002_vm2, %v3057_v46, -inf  ;;  %v1026_v3 = vmax.f32 %v1018_v42, %v1025_v15  ;;  %v1049_v15 = vsel %vm1002_vm2, %v3033_v5, -inf  ;;  %v1012_v42 = vmax.f32 %v1005_v2, %v1011_v40 }
 0x1ea   :  { %v1048_v23 = vmax.f32 %v1040_v31, %v1047_v21  ;;  %v1124_v1 = vmax.f32 %v1116_v63, %v1115_v17  ;;  %v1019_v31 = vsel %vm1002_vm2, %v2862_v8, -inf }
 0x1eb   :  { %v1034_v6 = vmax.f32 %v1026_v3, %v1033_v53  ;;  %v3131_v17 = vpop.f32.mrf.mxu2  ;;  %v1117_v53 = vsel %vm1002_vm2, %v3075_v16, -inf }
 0x1ec   :  { %v1056_v0 = vmax.f32 %v1048_v23, %v1055_v61 }
 0x1ed   :  { %v1042_v63 = vmax.f32 %v1034_v6, %v1041_v4  ;;  %v1043_v6 = vsel %vm1002_vm2, %v3005_v26, -inf }
 0x1ef   :  { %v1050_v3 = vmax.f32 %v1042_v63, %v1049_v15 }
 0x1f0   :  { %v3065_v60 = vpop.f32.mrf.mxu1 }
 0x1f1   :  { %v1057_v61 = vsel %vm1002_vm2, %v3065_v60, -inf }
 0x1f2   :  { %v1058_v40 = vmax.f32 %v1050_v3, %v1057_v61  ;;  %v1121_v3 = vsel %vm1002_vm2, %v3131_v17, -inf }
 0x1f3   :  { %v3153_v61 = vpop.f32.mrf.mxu2 }
 0x1f8   :  { %v3073_v7 = vpop.f32.mrf.mxu1 }
 0x200   :  { %v3089_v59 = vpop.f32.mrf.mxu1 }
 0x201   :  { %v1061_v56 = vsel %vm1002_vm2, %v3089_v59, -inf }
 0x202   :  { %v1070_v25 = vmax.f32 %v1061_v56, %v1124_v1  ;;  %v1020_v56 = vmax.f32 %v1012_v42, %v1019_v31  ;;  %v1035_v1 = vsel %vm1002_vm2, %v2958_v35, -inf  ;;  %v1051_v31 = vsel %vm1002_vm2, %v3041_v38, -inf }
 0x203   :  { %v1059_v42 = vsel %vm1002_vm2, %v3073_v7, -inf }
 0x204   :  { %v1078_v23 = vmax.f32 %v1070_v25, %v1117_v53  ;;  %v1028_v2 = vmax.f32 %v1020_v56, %v1027_v33  ;;  %v1119_v25 = vsel %vm1002_vm2, %v3097_v44, -inf }
 0x206   :  { %v1036_v30 = vmax.f32 %v1028_v2, %v1035_v1 }
 0x208   :  { %v3117_v28 = vpop.f32.mrf.mxu1  ;;  %v1044_v15 = vmax.f32 %v1036_v30, %v1043_v6 }
 0x209   :  { %v1063_v37 = vsel %vm1002_vm2, %v3117_v28, -inf }
 0x20a   :  { %v1064_v21 = vmax.f32 %v1056_v0, %v1063_v37  ;;  %v1052_v63 = vmax.f32 %v1044_v15, %v1051_v31 }
 0x20c   :  { %v1086_v4 = vmax.f32 %v1078_v23, %v1064_v21  ;;  %v1060_v53 = vmax.f32 %v1052_v63, %v1059_v42 }
 0x20e   :  { %v1094_v33 = vmax.f32 %v1086_v4, %v1119_v25 }
 0x210   :  { %v3141_v37 = vpop.f32.mrf.mxu1 }
 0x211   :  { %v1065_v0 = vsel %vm1002_vm2, %v3141_v37, -inf }
 0x212   :  { %v1066_v29 = vmax.f32 %v1058_v40, %v1065_v0  ;;  %v1123_v40 = vsel %vm1002_vm2, %v3153_v61, -inf }
 0x214   :  { %v1102_v21 = vmax.f32 %v1094_v33, %v1066_v29  ;;  %v3165_v29 = vpop.f32.mrf.mxu2 }
 0x215   :  { %v1125_v25 = vsel %vm1002_vm2, %v3165_v29, -inf }
 0x216   :  { %v1110_v1 = vmax.f32 %v1102_v21, %v1121_v3 }
 0x218   :  { %v3155_v56 = vpop.f32.mrf.mxu1 }
 0x219   :  { %v1067_v23 = vsel %vm1002_vm2, %v3155_v56, -inf }
 0x21a   :  { %v1068_v2 = vmax.f32 %v1060_v53, %v1067_v23 }
 0x21c   :  { %v1118_v30 = vmax.f32 %v1110_v1, %v1068_v2 }
 0x21e   :  { %v1126_v4 = vmax.f32 %v1118_v30, %v1123_v40 }
 0x220   :  { %v3163_v6 = vpop.f32.mrf.mxu1 }
 0x221   :  { %v1069_v0 = vsel %vm1002_vm2, %v3163_v6, -inf }
 0x222   :  { %v1128_v31 = vmax.f32 %v1069_v0, %v1126_v4 }
 0x224   :  { %v1129_v15 = vmax.f32 %v1125_v25, %v1128_v31 }
 0x226   :  { %v1130_v33 = vrot.slane %v1129_v15, 4 }
 0x228   :  { %v1131_v42 = vmax.f32 %v1129_v15, %v1130_v33 }
 0x22a   :  { %v1132_v63 = vrot.slane %v1131_v42, 2 }
 0x22c   :  { %v1133_v21 = vmax.f32 %v1131_v42, %v1132_v63 }
 0x22e   :  { %v1134_v53 = vrot.slane %v1133_v21, 1 }
 0x230   :  { %v3171_v3 = vmax.f32 %v1133_v21, %v1134_v53 }
 0x232   :  { %v1169_v23 = vsub.f32 %v3141_v37, %v3171_v3  ;;  %v1170_v1 = vsub.f32 %v3155_v56, %v3171_v3  ;;  %v1171_v2 = vsub.f32 %v3163_v6, %v3171_v3  ;;  %v1136_v30 = vsub.f32 %v2670_v9, %v3171_v3 }
 0x233   :  { %v1137_v40 = vsub.f32 %v2691_v52, %v3171_v3  ;;  %v1138_v4 = vsub.f32 %v2720_v13, %v3171_v3  ;;  %v1139_v31 = vsub.f32 %v2747_v49, %v3171_v3  ;;  %v1140_v15 = vsub.f32 %v2765_v32, %v3171_v3 }
 0x234   :  { %v1200_v0 = vmul.f32 1.442695, %v1136_v30  ;;  %v1141_v42 = vsub.f32 %v2783_v51, %v3171_v3  ;;  %v1142_v52 = vsub.f32 %v2801_v24, %v3171_v3  ;;  %v1143_v63 = vsub.f32 %v2819_v27, %v3171_v3 }
 0x235   :  { %v1202_v25 = vmul.f32 1.442695, %v1137_v40  ;;  %v1204_v33 = vmul.f32 1.442695, %v1138_v4  ;;  %v1206_v9 = vmul.f32 1.442695, %v1139_v31  ;;  %v1144_v53 = vsub.f32 %v2835_v43, %v3171_v3 }
 0x236   :  { %2156 = vpow2.f32 %v1200_v0  ;;  %v1208_v13 = vmul.f32 1.442695, %v1140_v15  ;;  %v1210_v49 = vmul.f32 1.442695, %v1141_v42  ;;  %v1212_v51 = vmul.f32 1.442695, %v1142_v52 }
 0x237   :  { %2158 = vpow2.f32 %v1202_v25  ;;  %v1145_v24 = vsub.f32 %v2846_v48, %v3171_v3  ;;  %v1214_v40 = vmul.f32 1.442695, %v1143_v63  ;;  %v1146_v43 = vsub.f32 %v2862_v8, %v3171_v3 }
 0x238   :  { %2160 = vpow2.f32 %v1204_v33  ;;  %v1216_v31 = vmul.f32 1.442695, %v1144_v53  ;;  %v1147_v33 = vsub.f32 %v2875_v19, %v3171_v3  ;;  %v1148_v8 = vsub.f32 %v2888_v36, %v3171_v3 }
 0x239   :  { %2162 = vpow2.f32 %v1206_v9  ;;  %v1218_v42 = vmul.f32 1.442695, %v1145_v24  ;;  %v1220_v63 = vmul.f32 1.442695, %v1146_v43  ;;  %v1149_v19 = vsub.f32 %v2901_v34, %v3171_v3 }
 0x23a   :  { %2164 = vpow2.f32 %v1208_v13  ;;  %v1222_v24 = vmul.f32 1.442695, %v1147_v33  ;;  %v1150_v36 = vsub.f32 %v2912_v39, %v3171_v3  ;;  %v1224_v43 = vmul.f32 1.442695, %v1148_v8 }
 0x23b   :  { %2166 = vpow2.f32 %v1210_v49  ;;  %v1151_v34 = vsub.f32 %v2918_v54, %v3171_v3  ;;  %v1226_v33 = vmul.f32 1.442695, %v1149_v19  ;;  %v1152_v39 = vsub.f32 %v2926_v47, %v3171_v3 }
 0x23c   :  { %v3195_v21 = vpop.eup %2156  ;;  %2168 = vpow2.f32 %v1212_v51  ;;  %v1228_v8 = vmul.f32 1.442695, %v1150_v36  ;;  %v1153_v54 = vsub.f32 %v2939_v57, %v3171_v3  ;;  %v1154_v47 = vsub.f32 %v2958_v35, %v3171_v3 }
 0x23d   :  { %v3197_v32 = vpop.eup %2158  ;;  %v1328_v27 = vsel %vm1002_vm2, %v3195_v21, 0.0  ;;  %2170 = vpow2.f32 %v1214_v40  ;;  %v1230_v19 = vmul.f32 1.442695, %v1151_v34  ;;  %v1232_v36 = vmul.f32 1.442695, %v1152_v39 }
 0x23e   :  { %v3201_v30 = vpop.eup %2160  ;;  %v1329_v4 = vsel %vm1002_vm2, %v3197_v32, 0.0  ;;  %2172 = vpow2.f32 %v1216_v31  ;;  %v1155_v57 = vsub.f32 %v2975_v22, %v3171_v3  ;;  %v1234_v34 = vmul.f32 1.442695, %v1153_v54 }
 0x23f   :  { %v3209_v0 = vpop.eup %2162  ;;  %v1330_v25 = vadd.f32 %v1329_v4, %v1328_v27  ;;  %v1331_v15 = vsel %vm1002_vm2, %v3201_v30, 0.0  ;;  %2174 = vpow2.f32 %v1218_v42  ;;  %v1156_v35 = vsub.f32 %v2985_v45, %v3171_v3 }
 0x240   :  { %v3215_v48 = vpop.eup %2164  ;;  %v1333_v52 = vsel %vm1002_vm2, %v3209_v0, 0.0  ;;  %2176 = vpow2.f32 %v1220_v63  ;;  %v1236_v39 = vmul.f32 1.442695, %v1154_v47  ;;  %v1157_v22 = vsub.f32 %v2995_v10, %v3171_v3 }
 0x241   :  { %v1332_v9 = vadd.f32 %v1331_v15, %v1330_v25  ;;  %v3221_v13 = vpop.eup %2166  ;;  %v1335_v53 = vsel %vm1002_vm2, %v3215_v48, 0.0  ;;  %2178 = vpow2.f32 %v1222_v24  ;;  %v1238_v54 = vmul.f32 1.442695, %v1155_v57 }
 0x242   :  { %v3227_v51 = vpop.eup %2168  ;;  %v1337_v27 = vsel %vm1002_vm2, %v3221_v13, 0.0  ;;  %2180 = vpow2.f32 %v1224_v43  ;;  %v1158_v45 = vsub.f32 %v3005_v26, %v3171_v3  ;;  %v1240_v47 = vmul.f32 1.442695, %v1156_v35 }
 0x243   :  { %v1334_v49 = vadd.f32 %v1333_v52, %v1332_v9  ;;  %v3233_v4 = vpop.eup %2170  ;;  %v1339_v25 = vsel %vm1002_vm2, %v3227_v51, 0.0  ;;  %2182 = vpow2.f32 %v1226_v33  ;;  %v1159_v10 = vsub.f32 %v3019_v11, %v3171_v3 }
 0x244   :  { %v3239_v15 = vpop.eup %2172  ;;  %v1341_v9 = vsel %vm1002_vm2, %v3233_v4, 0.0  ;;  %2184 = vpow2.f32 %v1228_v8  ;;  %v1242_v57 = vmul.f32 1.442695, %v1157_v22  ;;  %v1160_v26 = vsub.f32 %v3025_v12, %v3171_v3 }
 0x245   :  { %v1336_v40 = vadd.f32 %v1335_v53, %v1334_v49  ;;  %v3245_v52 = vpop.eup %2174  ;;  %v1343_v49 = vsel %vm1002_vm2, %v3239_v15, 0.0  ;;  %2186 = vpow2.f32 %v1230_v19  ;;  %v1244_v35 = vmul.f32 1.442695, %v1158_v45 }
 0x246   :  { %v3251_v53 = vpop.eup %2176  ;;  %2188 = vpow2.f32 %v1232_v36  ;;  %v1161_v11 = vsub.f32 %v3033_v5, %v3171_v3  ;;  %v1246_v22 = vmul.f32 1.442695, %v1159_v10  ;;  %v1162_v12 = vsub.f32 %v3041_v38, %v3171_v3 }
 0x247   :  { %v1338_v31 = vadd.f32 %v1337_v27, %v1336_v40  ;;  %v1345_v40 = vsel %vm1002_vm2, %v3245_v52, 0.0  ;;  %v3257_v27 = vpop.eup %2178  ;;  %2190 = vpow2.f32 %v1234_v34  ;;  %v1248_v45 = vmul.f32 1.442695, %v1160_v26 }
 0x248   :  { %2192 = vpow2.f32 %v1236_v39  ;;  %v1163_v5 = vsub.f32 %v3049_v55, %v3171_v3  ;;  %v1250_v10 = vmul.f32 1.442695, %v1161_v11  ;;  %v1164_v38 = vsub.f32 %v3057_v46, %v3171_v3 }
 0x249   :  { %v1340_v42 = vadd.f32 %v1339_v25, %v1338_v31  ;;  %v1347_v31 = vsel %vm1002_vm2, %v3251_v53, 0.0  ;;  %v3263_v25 = vpop.eup %2180  ;;  %2194 = vpow2.f32 %v1238_v54  ;;  %v1252_v26 = vmul.f32 1.442695, %v1162_v12 }
 0x24a   :  { %2196 = vpow2.f32 %v1240_v47  ;;  %v1165_v55 = vsub.f32 %v3065_v60, %v3171_v3  ;;  %v1254_v11 = vmul.f32 1.442695, %v1163_v5  ;;  %v1166_v46 = vsub.f32 %v3073_v7, %v3171_v3 }
 0x24b   :  { %v1342_v63 = vadd.f32 %v1341_v9, %v1340_v42  ;;  %v1349_v42 = vsel %vm1002_vm2, %v3257_v27, 0.0  ;;  %v3269_v9 = vpop.eup %2182  ;;  %2198 = vpow2.f32 %v1242_v57  ;;  %v1256_v12 = vmul.f32 1.442695, %v1164_v38 }
 0x24c   :  { %2200 = vpow2.f32 %v1244_v35  ;;  %v1167_v60 = vsub.f32 %v3089_v59, %v3171_v3  ;;  %v1258_v5 = vmul.f32 1.442695, %v1165_v55  ;;  %v1168_v7 = vsub.f32 %v3117_v28, %v3171_v3 }
 0x24d   :  { %v1344_v24 = vadd.f32 %v1343_v49, %v1342_v63  ;;  %v1351_v63 = vsel %vm1002_vm2, %v3263_v25, 0.0  ;;  %v3275_v49 = vpop.eup %2184  ;;  %2202 = vpow2.f32 %v1246_v22  ;;  %v1260_v38 = vmul.f32 1.442695, %v1166_v46 }
 0x24e   :  { %2204 = vpow2.f32 %v1248_v45  ;;  %v1262_v59 = vmul.f32 1.442695, %v1167_v60  ;;  %v1175_v6 = vsub.f32 %v2793_v41, %v3171_v3  ;;  %v1177_v41 = vsub.f32 %v2837_v14, %v3171_v3  ;;  %v3935_v14 = vld [vmem:[#allocation26_spill] sm:$0xff] }
 0x24f   :  { %v1346_v43 = vadd.f32 %v1345_v40, %v1344_v24  ;;  %v1353_v24 = vsel %vm1002_vm2, %v3269_v9, 0.0  ;;  %v3281_v40 = vpop.eup %2186  ;;  %2206 = vpow2.f32 %v1250_v10 }
 0x250   :  { %2208 = vpow2.f32 %v1252_v26 }
 0x251   :  { %v1348_v33 = vadd.f32 %v1347_v31, %v1346_v43  ;;  %v1355_v43 = vsel %vm1002_vm2, %v3275_v49, 0.0  ;;  %v3287_v31 = vpop.eup %2188  ;;  %2210 = vpow2.f32 %v1254_v11 }
 0x252   :  { %2212 = vpow2.f32 %v1256_v12  ;;  %v1266_v12 = vmul.f32 1.442695, %v1169_v23  ;;  %v1173_v23 = vsub.f32 %v2745_v58, %v3171_v3 }
 0x253   :  { %v1350_v8 = vadd.f32 %v1349_v42, %v1348_v33  ;;  %v1357_v33 = vsel %vm1002_vm2, %v3281_v40, 0.0  ;;  %v3293_v42 = vpop.eup %2190  ;;  %2214 = vpow2.f32 %v1258_v5 }
 0x254   :  { %2216 = vpow2.f32 %v1260_v38 }
 0x255   :  { %v1352_v19 = vadd.f32 %v1351_v63, %v1350_v8  ;;  %v1359_v8 = vsel %vm1002_vm2, %v3287_v31, 0.0  ;;  %v3299_v63 = vpop.eup %2192  ;;  %2218 = vpow2.f32 %v1262_v59 }
 0x257   :  { %v1354_v36 = vadd.f32 %v1353_v24, %v1352_v19  ;;  %v1361_v19 = vsel %vm1002_vm2, %v3293_v42, 0.0  ;;  %v3305_v24 = vpop.eup %2194 }
 0x259   :  { %v1356_v34 = vadd.f32 %v1355_v43, %v1354_v36  ;;  %v1363_v36 = vsel %vm1002_vm2, %v3299_v63, 0.0  ;;  %v3311_v43 = vpop.eup %2196 }
 0x25b   :  { %v1358_v39 = vadd.f32 %v1357_v33, %v1356_v34  ;;  %v1365_v34 = vsel %vm1002_vm2, %v3305_v24, 0.0  ;;  %v3317_v33 = vpop.eup %2198 }
 0x25d   :  { %v1360_v54 = vadd.f32 %v1359_v8, %v1358_v39  ;;  %v1367_v39 = vsel %vm1002_vm2, %v3311_v43, 0.0  ;;  %v3323_v8 = vpop.eup %2200 }
 0x25f   :  { %v1362_v47 = vadd.f32 %v1361_v19, %v1360_v54  ;;  %v1369_v54 = vsel %vm1002_vm2, %v3317_v33, 0.0  ;;  %v3329_v19 = vpop.eup %2202 }
 0x261   :  { %v1364_v57 = vadd.f32 %v1363_v36, %v1362_v47  ;;  %v1371_v47 = vsel %vm1002_vm2, %v3323_v8, 0.0  ;;  %v3335_v36 = vpop.eup %2204 }
 0x263   :  { %v1366_v35 = vadd.f32 %v1365_v34, %v1364_v57  ;;  %v1373_v57 = vsel %vm1002_vm2, %v3329_v19, 0.0  ;;  %v3341_v34 = vpop.eup %2206 }
 0x264   :  { %v1377_v11 = vsel %vm1002_vm2, %v3341_v34, 0.0 }
 0x265   :  { %v1368_v22 = vadd.f32 %v1367_v39, %v1366_v35  ;;  %v1375_v35 = vsel %vm1002_vm2, %v3335_v36, 0.0  ;;  %v3347_v39 = vpop.eup %2208 }
 0x266   :  { %v1379_v28 = vsel %vm1002_vm2, %v3347_v39, 0.0 }
 0x267   :  { %v1370_v45 = vadd.f32 %v1369_v54, %v1368_v22  ;;  %v3351_v22 = vpop.eup %2210  ;;  %v1264_v54 = vmul.f32 1.442695, %v1168_v7 }
 0x268   :  { %v3355_v46 = vpop.eup %2212  ;;  %v1381_v60 = vsel %vm1002_vm2, %v3351_v22, 0.0 }
 0x269   :  { %v1372_v10 = vadd.f32 %v1371_v47, %v1370_v45  ;;  %v3362_v5 = vpop.eup %2214  ;;  %2220 = vpow2.f32 %v1264_v54  ;;  %v1383_v38 = vsel %vm1002_vm2, %v3355_v46, 0.0 }
 0x26a   :  { %v3371_v37 = vpop.eup %2216  ;;  %2222 = vpow2.f32 %v1266_v12 }
 0x26b   :  { %v1374_v26 = vadd.f32 %v1373_v57, %v1372_v10  ;;  %v1172_v10 = vsub.f32 %v2710_v20, %v3171_v3  ;;  %v1268_v57 = vmul.f32 1.442695, %v1170_v1  ;;  %v3380_v56 = vpop.eup %2218  ;;  %v1174_v1 = vsub.f32 %v2771_v18, %v3171_v3 }
 0x26c   :  { %v1387_v58 = vsel %vm1002_vm2, %v3371_v37, 0.0  ;;  %v1176_v18 = vsub.f32 %v2811_v50, %v3171_v3  ;;  %v1178_v50 = vsub.f32 %v2849_v62, %v3171_v3  ;;  %v3937_v62 = vld [vmem:[#allocation29_spill] sm:$0xff] }
 0x26d   :  { %v1376_v55 = vadd.f32 %v1375_v35, %v1374_v26  ;;  %v1270_v26 = vmul.f32 1.442695, %v1171_v2  ;;  %v1385_v35 = vsel %vm1002_vm2, %v3362_v5, 0.0  ;;  %2224 = vpow2.f32 %v1268_v57 }
 0x26e   :  { %v1272_v59 = vmul.f32 1.442695, %v1172_v10  ;;  %v1274_v2 = vmul.f32 1.442695, %v1173_v23  ;;  %v1276_v12 = vmul.f32 1.442695, %v1174_v1 }
 0x26f   :  { %v1378_v45 = vadd.f32 %v1377_v11, %v1376_v55  ;;  %v3386_v11 = vpop.eup %2220  ;;  %2226 = vpow2.f32 %v1270_v26  ;;  %v1278_v57 = vmul.f32 1.442695, %v1175_v6  ;;  %v1280_v26 = vmul.f32 1.442695, %v1176_v18 }
 0x270   :  { %2228 = vpow2.f32 %v1272_v59  ;;  %v1179_v59 = vsub.f32 %v3935_v14, %v3171_v3 }
 0x271   :  { %v1380_v47 = vadd.f32 %v1379_v28, %v1378_v45  ;;  %v1389_v45 = vsel %vm1002_vm2, %v3380_v56, 0.0  ;;  %v3392_v28 = vpop.eup %2222  ;;  %2230 = vpow2.f32 %v1274_v2 }
 0x272   :  { %2232 = vpow2.f32 %v1276_v12 }
 0x273   :  { %v1382_v7 = vadd.f32 %v1381_v60, %v1380_v47  ;;  %v1391_v60 = vsel %vm1002_vm2, %v3386_v11, 0.0  ;;  %v3398_v10 = vpop.eup %2224  ;;  %2234 = vpow2.f32 %v1278_v57  ;;  %v1286_v57 = vmul.f32 1.442695, %v1179_v59 }
 0x274   :  { %2236 = vpow2.f32 %v1280_v26  ;;  %v3941_v26 = vld [vmem:[#allocation33_spill] sm:$0xff] }
 0x275   :  { %v1384_v20 = vadd.f32 %v1383_v38, %v1382_v7  ;;  %v1393_v38 = vsel %vm1002_vm2, %v3392_v28, 0.0  ;;  %v3404_v23 = vpop.eup %2226 }
 0x276   :  { %v3410_v1 = vpop.eup %2228  ;;  %v1397_v6 = vsel %vm1002_vm2, %v3404_v23, 0.0 }
 0x277   :  { %v1386_v55 = vadd.f32 %v1385_v35, %v1384_v20  ;;  %v1395_v35 = vsel %vm1002_vm2, %v3398_v10, 0.0  ;;  %v3416_v2 = vpop.eup %2230  ;;  %v1399_v12 = vsel %vm1002_vm2, %v3410_v1, 0.0 }
 0x278   :  { %3936 = vst [vmem:[#allocation26_spill] sm:$0xff] %v3416_v2 }
 0x279   :  { %v1388_v54 = vadd.f32 %v1387_v58, %v1386_v55  ;;  %v1282_v55 = vmul.f32 1.442695, %v1177_v41 }
 0x27b   :  { %v1390_v47 = vadd.f32 %v1389_v45, %v1388_v54  ;;  %v1180_v54 = vsub.f32 %v3937_v62, %v3171_v3  ;;  %v1284_v45 = vmul.f32 1.442695, %v1178_v50  ;;  %2238 = vpow2.f32 %v1282_v55  ;;  %v3943_v55 = vld [vmem:[#allocation34_spill] sm:$0xff] }
 0x27c   :  { %v1182_v50 = vsub.f32 %v3941_v26, %v3171_v3  ;;  %v1183_v59 = vsub.f32 %v3943_v55, %v3171_v3 }
 0x27d   :  { %v1392_v7 = vadd.f32 %v1391_v60, %v1390_v47  ;;  %v3422_v47 = vpop.eup %2232  ;;  %v3939_v60 = vld [vmem:[#allocation31_spill] sm:$0xff]  ;;  %2240 = vpow2.f32 %v1284_v45  ;;  %v3945_v45 = vld [vmem:[#allocation36_spill] sm:$0xff] }
 0x27e   :  { %3938 = vst [vmem:[#allocation29_spill] sm:$0xff] %v3422_v47  ;;  %v1181_v41 = vsub.f32 %v3939_v60, %v3171_v3  ;;  %2242 = vpow2.f32 %v1286_v57  ;;  %v3947_v57 = vld [vmem:[#allocation38_spill] sm:$0xff] }
 0x27f   :  { %v1394_v20 = vadd.f32 %v1393_v38, %v1392_v7  ;;  %v1401_v38 = vsel %vm1002_vm2, %v3416_v2, 0.0 }
 0x280   :  { %v1290_v62 = vmul.f32 1.442695, %v1181_v41  ;;  %v1185_v41 = vsub.f32 %v3947_v57, %v3171_v3 }
 0x281   :  { %v1396_v58 = vadd.f32 %v1395_v35, %v1394_v20  ;;  %v3428_v20 = vpop.eup %2234  ;;  %v1288_v35 = vmul.f32 1.442695, %v1180_v54  ;;  %v1184_v54 = vsub.f32 %v3945_v45, %v3171_v3 }
 0x282   :  { %3940 = vst [vmem:[#allocation31_spill] sm:$0xff] %v3428_v20 }
 0x283   :  { %v1398_v18 = vadd.f32 %v1397_v6, %v1396_v58  ;;  %v1403_v58 = vsel %vm1002_vm2, %v3422_v47, 0.0  ;;  %v3434_v6 = vpop.eup %2236  ;;  %2244 = vpow2.f32 %v1288_v35  ;;  %v3949_v35 = vld [vmem:[#allocation41_spill] sm:$0xff] }
 0x284   :  { %3942 = vst [vmem:[#allocation33_spill] sm:$0xff] %v3434_v6  ;;  %v3440_v60 = vpop.eup %2238  ;;  %v1407_v26 = vsel %vm1002_vm2, %v3434_v6, 0.0  ;;  %2246 = vpow2.f32 %v1290_v62  ;;  %v3951_v62 = vld [vmem:[#allocation42_spill] sm:$0xff] }
 0x285   :  { %v1400_v7 = vadd.f32 %v1399_v12, %v1398_v18  ;;  %v1405_v12 = vsel %vm1002_vm2, %v3428_v20, 0.0  ;;  %3944 = vst [vmem:[#allocation34_spill] sm:$0xff] %v3440_v60  ;;  %v3446_v47 = vpop.eup %2240  ;;  %v1409_v55 = vsel %vm1002_vm2, %v3440_v60, 0.0 }
 0x286   :  { %3946 = vst [vmem:[#allocation36_spill] sm:$0xff] %v3446_v47  ;;  %v3452_v20 = vpop.eup %2242  ;;  %v1411_v45 = vsel %vm1002_vm2, %v3446_v47, 0.0 }
 0x287   :  { %v1402_v14 = vadd.f32 %v1401_v38, %v1400_v7  ;;  %v1292_v7 = vmul.f32 1.442695, %v1182_v50  ;;  %3948 = vst [vmem:[#allocation38_spill] sm:$0xff] %v3452_v20  ;;  %v1186_v50 = vsub.f32 %v3949_v35, %v3171_v3  ;;  %v1413_v57 = vsel %vm1002_vm2, %v3452_v20, 0.0 }
 0x289   :  { %v1404_v18 = vadd.f32 %v1403_v58, %v1402_v14  ;;  %v1294_v14 = vmul.f32 1.442695, %v1183_v59  ;;  %2248 = vpow2.f32 %v1292_v7  ;;  %v3458_v6 = vpop.eup %2244  ;;  %v1187_v59 = vsub.f32 %v3951_v62, %v3171_v3  ;;  %v3953_v7 = vld [vmem:[#allocation43_spill] sm:$0xff] }
 0x28a   :  { %3950 = vst [vmem:[#allocation41_spill] sm:$0xff] %v3458_v6  ;;  %v3464_v60 = vpop.eup %2246  ;;  %v1415_v35 = vsel %vm1002_vm2, %v3458_v6, 0.0 }
 0x28b   :  { %v1406_v38 = vadd.f32 %v1405_v12, %v1404_v18  ;;  %v1296_v18 = vmul.f32 1.442695, %v1184_v54  ;;  %2250 = vpow2.f32 %v1294_v14  ;;  %3952 = vst [vmem:[#allocation42_spill] sm:$0xff] %v3464_v60  ;;  %v1188_v54 = vsub.f32 %v3953_v7, %v3171_v3  ;;  %v3955_v14 = vld [vmem:[#allocation44_spill] sm:$0xff] }
 0x28c   :  { %v1417_v62 = vsel %vm1002_vm2, %v3464_v60, 0.0 }
 0x28d   :  { %v1408_v58 = vadd.f32 %v1407_v26, %v1406_v38  ;;  %v1298_v38 = vmul.f32 1.442695, %v1185_v41  ;;  %2252 = vpow2.f32 %v1296_v18  ;;  %v1189_v41 = vsub.f32 %v3955_v14, %v3171_v3  ;;  %v3957_v18 = vld [vmem:[#allocation45_spill] sm:$0xff] }
 0x28f   :  { %v1410_v12 = vadd.f32 %v1409_v55, %v1408_v58  ;;  %v1300_v58 = vmul.f32 1.442695, %v1186_v50  ;;  %v3470_v47 = vpop.eup %2248  ;;  %2254 = vpow2.f32 %v1298_v38  ;;  %v1190_v50 = vsub.f32 %v3957_v18, %v3171_v3  ;;  %v3958_v38 = vld [vmem:[#allocation46_spill] sm:$0xff] }
 0x290   :  { %3954 = vst [vmem:[#allocation43_spill] sm:$0xff] %v3470_v47  ;;  %v1419_v7 = vsel %vm1002_vm2, %v3470_v47, 0.0 }
 0x291   :  { %v1412_v26 = vadd.f32 %v1411_v45, %v1410_v12  ;;  %v1302_v12 = vmul.f32 1.442695, %v1187_v59  ;;  %v3476_v20 = vpop.eup %2250  ;;  %2256 = vpow2.f32 %v1300_v58  ;;  %v1191_v59 = vsub.f32 %v3958_v38, %v3171_v3  ;;  %v3959_v58 = vld [vmem:[#allocation47_spill] sm:$0xff] }
 0x292   :  { %3956 = vst [vmem:[#allocation44_spill] sm:$0xff] %v3476_v20  ;;  %v1421_v14 = vsel %vm1002_vm2, %v3476_v20, 0.0 }
 0x293   :  { %v1414_v55 = vadd.f32 %v1413_v57, %v1412_v26  ;;  %v1304_v26 = vmul.f32 1.442695, %v1188_v54  ;;  %v3482_v6 = vpop.eup %2252  ;;  %2258 = vpow2.f32 %v1302_v12  ;;  %v1192_v54 = vsub.f32 %v3959_v58, %v3171_v3  ;;  %v3960_v12 = vld [vmem:[#allocation48_spill] sm:$0xff] }
 0x294   :  { %v1423_v18 = vsel %vm1002_vm2, %v3482_v6, 0.0 }
 0x295   :  { %v1416_v45 = vadd.f32 %v1415_v35, %v1414_v55  ;;  %v1306_v55 = vmul.f32 1.442695, %v1189_v41  ;;  %v3488_v60 = vpop.eup %2254  ;;  %2260 = vpow2.f32 %v1304_v26  ;;  %v1193_v41 = vsub.f32 %v3960_v12, %v3171_v3  ;;  %v3961_v26 = vld [vmem:[#allocation49_spill] sm:$0xff] }
 0x296   :  { %v1425_v38 = vsel %vm1002_vm2, %v3488_v60, 0.0 }
 0x297   :  { %v1418_v57 = vadd.f32 %v1417_v62, %v1416_v45  ;;  %v1308_v45 = vmul.f32 1.442695, %v1190_v50  ;;  %v3494_v47 = vpop.eup %2256  ;;  %2262 = vpow2.f32 %v1306_v55  ;;  %v1194_v50 = vsub.f32 %v3961_v26, %v3171_v3 }
 0x298   :  { %v1427_v58 = vsel %vm1002_vm2, %v3494_v47, 0.0  ;;  %v1314_v55 = vmul.f32 1.442695, %v1193_v41 }
 0x299   :  { %v1420_v35 = vadd.f32 %v1419_v7, %v1418_v57  ;;  %v1310_v57 = vmul.f32 1.442695, %v1191_v59  ;;  %v3500_v20 = vpop.eup %2258  ;;  %2264 = vpow2.f32 %v1308_v45  ;;  %v1195_v59 = vsub.f32 %v3075_v16, %v3171_v3 }
 0x29a   :  { %v1316_v45 = vmul.f32 1.442695, %v1194_v50  ;;  %v1197_v16 = vsub.f32 %v3131_v17, %v3171_v3  ;;  %v1199_v17 = vsub.f32 %v3165_v29, %v3171_v3 }
 0x29b   :  { %v1422_v62 = vadd.f32 %v1421_v14, %v1420_v35  ;;  %v1312_v35 = vmul.f32 1.442695, %v1192_v54  ;;  %v3506_v2 = vpop.eup %2260  ;;  %2266 = vpow2.f32 %v1310_v57  ;;  %v1196_v54 = vsub.f32 %v3097_v44, %v3171_v3 }
 0x29c   :  { %v1318_v41 = vmul.f32 1.442695, %v1195_v59  ;;  %v1198_v44 = vsub.f32 %v3153_v61, %v3171_v3  ;;  %v1322_v59 = vmul.f32 1.442695, %v1197_v16 }
 0x29d   :  { %v1424_v7 = vadd.f32 %v1423_v18, %v1422_v62  ;;  %v1429_v18 = vsel %vm1002_vm2, %v3500_v20, 0.0  ;;  %v3512_v12 = vpop.eup %2262  ;;  %2268 = vpow2.f32 %v1312_v35  ;;  %v1320_v50 = vmul.f32 1.442695, %v1196_v54 }
 0x29e   :  { %2270 = vpow2.f32 %v1314_v55  ;;  %v1324_v61 = vmul.f32 1.442695, %v1198_v44 }
 0x29f   :  { %v1426_v14 = vadd.f32 %v1425_v38, %v1424_v7  ;;  %v1431_v38 = vsel %vm1002_vm2, %v3506_v2, 0.0  ;;  %v3518_v26 = vpop.eup %2264  ;;  %2272 = vpow2.f32 %v1316_v45 }
 0x2a0   :  { %3962 = vst [vmem:[#allocation45_spill] sm:$0xff] %v3518_v26  ;;  %2274 = vpow2.f32 %v1318_v41 }
 0x2a1   :  { %v1428_v62 = vadd.f32 %v1427_v58, %v1426_v14  ;;  %v1433_v14 = vsel %vm1002_vm2, %v3512_v12, 0.0  ;;  %v3524_v58 = vpop.eup %2266  ;;  %2276 = vpow2.f32 %v1320_v50 }
 0x2a2   :  { %2278 = vpow2.f32 %v1322_v59 }
 0x2a3   :  { %v1430_v7 = vadd.f32 %v1429_v18, %v1428_v62  ;;  %v1435_v62 = vsel %vm1002_vm2, %v3518_v26, 0.0  ;;  %v3530_v18 = vpop.eup %2268  ;;  %2280 = vpow2.f32 %v1324_v61 }
 0x2a4   :  { %v1439_v45 = vsel %vm1002_vm2, %v3530_v18, 0.0 }
 0x2a5   :  { %v1432_v57 = vadd.f32 %v1431_v38, %v1430_v7  ;;  %v1437_v7 = vsel %vm1002_vm2, %v3524_v58, 0.0  ;;  %v3536_v38 = vpop.eup %2270 }
 0x2a6   :  { %v1441_v29 = vsel %vm1002_vm2, %v3536_v38, 0.0 }
 0x2a7   :  { %v1434_v35 = vadd.f32 %v1433_v14, %v1432_v57  ;;  %v3540_v57 = vpop.eup %2272  ;;  %v1326_v14 = vmul.f32 1.442695, %v1199_v17 }
 0x2a8   :  { %v3544_v3 = vpop.eup %2274  ;;  %v1443_v41 = vsel %vm1002_vm2, %v3540_v57, 0.0 }
 0x2a9   :  { %v1436_v55 = vadd.f32 %v1435_v62, %v1434_v35  ;;  %3963 = vst [vmem:[#allocation46_spill] sm:$0xff] %v3544_v3  ;;  %v3548_v44 = vpop.eup %2276  ;;  %2282 = vpow2.f32 %v1326_v14  ;;  %v1445_v35 = vsel %vm1002_vm2, %v3544_v3, 0.0 }
 0x2aa   :  { %3964 = vst [vmem:[#allocation47_spill] sm:$0xff] %v3548_v44  ;;  %v3552_v62 = vpop.eup %2278  ;;  %v1447_v59 = vsel %vm1002_vm2, %v3548_v44, 0.0 }
 0x2ab   :  { %v1438_v54 = vadd.f32 %v1437_v7, %v1436_v55  ;;  %v3556_v55 = vpop.eup %2280 }
 0x2ad   :  { %v1440_v26 = vadd.f32 %v1439_v45, %v1438_v54  ;;  %v1451_v45 = vsel %vm1002_vm2, %v3556_v55, 0.0 }
 0x2af   :  { %v1442_v16 = vadd.f32 %v1441_v29, %v1440_v26  ;;  %v1449_v26 = vsel %vm1002_vm2, %v3552_v62, 0.0  ;;  %v3560_v61 = vpop.eup %2282 }
 0x2b0   :  { %v1453_v29 = vsel %vm1002_vm2, %v3560_v61, 0.0 }
 0x2b1   :  { %v1444_v50 = vadd.f32 %v1443_v41, %v1442_v16 }
 0x2b3   :  { %v1446_v17 = vadd.f32 %v1445_v35, %v1444_v50 }
 0x2b5   :  { %v1448_v7 = vadd.f32 %v1447_v59, %v1446_v17 }
 0x2b7   :  { %v1450_v54 = vadd.f32 %v1449_v26, %v1448_v7 }
 0x2b9   :  { %v1452_v14 = vadd.f32 %v1451_v45, %v1450_v54 }
 0x2bb   :  { %v1454_v16 = vadd.f32 %v1453_v29, %v1452_v14 }
 0x2bd   :  { %v1455_v41 = vrot.slane %v1454_v16, 4 }
 0x2bf   :  { %v1456_v50 = vadd.f32 %v1455_v41, %v1454_v16 }
 0x2c1   :  { %v1457_v35 = vrot.slane %v1456_v50, 2 }
 0x2c3   :  { %v1458_v44 = vadd.f32 %v1457_v35, %v1456_v50  ;;  %v3966_v35 = vld [vmem:[#allocation29_spill] sm:$0xff] }
 0x2c5   :  { %v1459_v3 = vrot.slane %v1458_v44, 1 }
 0x2c7   :  { %v1460_v17 = vadd.f32 %v1459_v3, %v1458_v44 }
 0x2c9   :  { %2284 = vrcp.f32 %v1460_v17  ;;  %v3967_v17 = vld [vmem:[#allocation45_spill] sm:$0xff] }
 0x2cf   :  { %v3566_v59 = vpop.eup %2284 }
 0x2d0   :  { %v1477_v7 = vmul.f32 %v3566_v59, %v3281_v40  ;;  %v1493_v26 = vmul.f32 %v3566_v59, %v3380_v56  ;;  %v1494_v54 = vmul.f32 %v3566_v59, %v3386_v11  ;;  %v1510_v45 = vmul.f32 %v3566_v59, %v3482_v6 }
 0x2d1   :  { %v1476_v3 = vmul.f32 %v3566_v59, %v3275_v49  ;;  %v1492_v44 = vmul.f32 %v3566_v59, %v3371_v37  ;;  %v1495_v40 = vmul.f32 %v3566_v59, %v3392_v28  ;;  %v1511_v56 = vmul.f32 %v3566_v59, %v3488_v60 }
 0x2d2   :  { %2069 = vmatpush.lsf.msrb.mxu2 %v1477_v7  ;;  %2094 = vmatpush.lsf.msrb.mxu3 %v1493_v26  ;;  %v2113_v14 = vpack.i.bf16 %v1510_v45, %v1494_v54  ;;  %v1475_v11 = vmul.f32 %v3566_v59, %v3269_v9  ;;  %v1491_v6 = vmul.f32 %v3566_v59, %v3362_v5  ;;  %v3968_v26 = vld [vmem:[#allocation31_spill] sm:$0xff] }
 0x2d3   :  { %v2115_v29 = vpack.i.bf16 %v1511_v56, %v1495_v40  ;;  %v1474_v49 = vmul.f32 %v3566_v59, %v3263_v25  ;;  %v1496_v37 = vmul.f32 %v3566_v59, %v3398_v10  ;;  %v1512_v28 = vmul.f32 %v3566_v59, %v3494_v47  ;;  %v3970_v56 = vld [vmem:[#allocation13_spill] sm:$0xff] }
 0x2d4   :  { %2114 = vxpose.xlu0.b32.start [1/16] (narrow) %v2113_v14, 16  ;;  %2070 = vmatpush.lsf.msrb.mxu2 %v1476_v3  ;;  %v1490_v60 = vmul.f32 %v3566_v59, %v3355_v46  ;;  %v1473_v9 = vmul.f32 %v3566_v59, %v3257_v27  ;;  %v1489_v16 = vmul.f32 %v3566_v59, %v3351_v22  ;;  %v3969_v3 = vld [vmem:[#allocation33_spill] sm:$0xff] }
 0x2d5   :  { %2095 = vmatpush.lsf.msrb.mxu3 %v1492_v44  ;;  %v2117_v5 = vpack.i.bf16 %v1512_v28, %v1496_v37  ;;  %v1472_v25 = vmul.f32 %v3566_v59, %v3251_v53  ;;  %v1488_v10 = vmul.f32 %v3566_v59, %v3347_v39  ;;  %v1471_v46 = vmul.f32 %v3566_v59, %v3245_v52  ;;  %v3976_v37 = vld [vmem:[#allocation30_spill] sm:$0xff] }
 0x2d6   :  { %2071 = vmatpush.lsf.msrb.mxu2 %v1475_v11  ;;  %v1487_v27 = vmul.f32 %v3566_v59, %v3341_v34  ;;  %v1470_v22 = vmul.f32 %v3566_v59, %v3239_v15  ;;  %v1486_v53 = vmul.f32 %v3566_v59, %v3335_v36  ;;  %v1469_v39 = vmul.f32 %v3566_v59, %v3233_v4 }
 0x2d7   :  { %2096 = vmatpush.lsf.msrb.mxu3 %v1491_v6  ;;  %v1485_v52 = vmul.f32 %v3566_v59, %v3329_v19  ;;  %v1468_v34 = vmul.f32 %v3566_v59, %v3227_v51  ;;  %v1484_v15 = vmul.f32 %v3566_v59, %v3323_v8  ;;  %v1467_v36 = vmul.f32 %v3566_v59, %v3221_v13  ;;  %v3972_v6 = vld [vmem:[#allocation32_spill] sm:$0xff] }
 0x2d8   :  { %2072 = vmatpush.lsf.msrb.mxu2 %v1474_v49  ;;  %v1483_v4 = vmul.f32 %v3566_v59, %v3317_v33  ;;  %v1466_v19 = vmul.f32 %v3566_v59, %v3215_v48  ;;  %v1497_v51 = vmul.f32 %v3566_v59, %v3404_v23  ;;  %v1513_v47 = vmul.f32 %v3566_v59, %v3500_v20  ;;  %v3974_v49 = vld [vmem:[#allocation12_spill] sm:$0xff] }
 0x2d9   :  { %2097 = vmatpush.lsf.msrb.mxu3 %v1490_v60  ;;  %v1482_v8 = vmul.f32 %v3566_v59, %v3311_v43  ;;  %v1465_v13 = vmul.f32 %v3566_v59, %v3209_v0  ;;  %v1481_v33 = vmul.f32 %v3566_v59, %v3305_v24  ;;  %v1464_v23 = vmul.f32 %v3566_v59, %v3201_v30  ;;  %v3978_v60 = vld [vmem:[#allocation34_spill] sm:$0xff] }
 0x2da   :  { %2073 = vmatpush.lsf.msrb.mxu2 %v1473_v9  ;;  %v2119_v48 = vpack.i.bf16 %v1513_v47, %v1497_v51  ;;  %v1480_v20 = vmul.f32 %v3566_v59, %v3299_v63  ;;  %v1463_v43 = vmul.f32 %v3566_v59, %v3197_v32  ;;  %v1479_v0 = vmul.f32 %v3566_v59, %v3293_v42  ;;  %v3965_v42 = vld [vmem:[#allocation26_spill] sm:$0xff]  ;;  %v3995_v47 = vld [vmem:[#allocation36_spill] sm:$0xff] }
 0x2db   :  { %2098 = vmatpush.lsf.msrb.mxu3 %v1489_v16  ;;  %v1462_v24 = vmul.f32 %v3566_v59, %v3195_v21  ;;  %v1498_v30 = vmul.f32 %v3566_v59, %v3410_v1  ;;  %v1514_v41 = vmul.f32 %v3566_v59, %v3506_v2  ;;  %v1478_v63 = vmul.f32 %v3566_v59, %v3287_v31 }
 0x2dc   :  { %2116 = vxpose.xlu0.b32.cont [2/16] (narrow) %v2115_v29, 16  ;;  %2074 = vmatpush.lsf.msrb.mxu2 %v1472_v25  ;;  %v1499_v50 = vmul.f32 %v3566_v59, %v3965_v42  ;;  %v1515_v21 = vmul.f32 %v3566_v59, %v3512_v12  ;;  %v1500_v2 = vmul.f32 %v3566_v59, %v3966_v35  ;;  %v3971_v11 = vmax.f32 %v3970_v56, 0.0  ;;  %v3981_v25 = vld [vmem:[#allocation28_spill] sm:$0xff]  ;;  %v4006_v42 = vld [vmem:[#allocation21_spill] sm:$0xff] }
 0x2dd   :  { %2099 = vmatpush.lsf.msrb.mxu3 %v1488_v10  ;;  %v2121_v32 = vpack.i.bf16 %v1514_v41, %v1498_v30  ;;  %v1516_v31 = vmul.f32 %v3566_v59, %v3967_v17  ;;  %v1501_v54 = vmul.f32 %v3566_v59, %v3968_v26  ;;  %v1517_v45 = vmul.f32 %v3566_v59, %v3524_v58  ;;  %v4014_v26 = vld [vmem:[#allocation3_spill] sm:$0xff] }
 0x2de   :  { %2075 = vmatpush.lsf.msrb.mxu2 %v1471_v46  ;;  %v2123_v1 = vpack.i.bf16 %v1515_v21, %v1499_v50  ;;  %v1502_v12 = vmul.f32 %v3566_v59, %v3969_v3  ;;  %v1518_v44 = vmul.f32 %v3566_v59, %v3530_v18  ;;  %v3973_v29 = vmax.f32 %v3972_v6, 0.0  ;;  %v3983_v46 = vld [vmem:[#allocation10_spill] sm:$0xff] }
 0x2df   :  { %2100 = vmatpush.lsf.msrb.mxu3 %v1487_v27  ;;  %v2125_v7 = vpack.i.bf16 %v1516_v31, %v1500_v2  ;;  %v2127_v14 = vpack.i.bf16 %v1517_v45, %v1501_v54  ;;  %v3975_v58 = vmax.f32 %v3974_v49, 0.0  ;;  %v3977_v28 = vmax.f32 %v3976_v37, 0.0  ;;  %v4012_v2 = vld [vmem:[#allocation38_spill] sm:$0xff]  ;;  %v4016_v45 = vld [vmem:[#allocation19_spill] sm:$0xff] }
 0x2e0   :  { %2076 = vmatpush.lsf.msrb.mxu2 %v1470_v22  ;;  %v2129_v40 = vpack.i.bf16 %v1518_v44, %v1502_v12  ;;  %v1503_v9 = vmul.f32 %v3566_v59, %v3978_v60  ;;  %v1519_v18 = vmul.f32 %v3566_v59, %v3536_v38  ;;  %v3982_v10 = vmax.f32 %v3981_v25, 0.0  ;;  %v3985_v22 = vld [vmem:[#allocation27_spill] sm:$0xff]  ;;  %v4013_v31 = vld [vmem:[#allocation46_spill] sm:$0xff]  ;;  %v4032_v25 = vld [vmem:[#allocation37_spill] sm:$0xff] }
 0x2e1   :  { %2101 = vmatpush.lsf.msrb.mxu3 %v1486_v53  ;;  %v3984_v27 = vmax.f32 %v3983_v46, 0.0  ;;  %v3986_v53 = vmax.f32 %v3985_v22, 0.0  ;;  %v4007_v50 = vmax.f32 %v4006_v42, 0.0  ;;  %v1505_v17 = vmul.f32 %v3566_v59, %v4012_v2  ;;  %v4018_v3 = vld [vmem:[#allocation2_spill] sm:$0xff]  ;;  %v4034_v46 = vld [vmem:[#allocation15_spill] sm:$0xff] }
 0x2e2   :  { %2077 = vmatpush.lsf.msrb.mxu2 %v1469_v39  ;;  %v2131_v39 = vpack.i.bf16 %v1519_v18, %v1503_v9  ;;  %v4015_v54 = vmax.f32 %v4014_v26, 0.0  ;;  %v4019_v12 = vmax.f32 %v4018_v3, 0.0  ;;  %v4020_v44 = vld [vmem:[#allocation18_spill] sm:$0xff]  ;;  %v4030_v9 = vld [vmem:[#allocation41_spill] sm:$0xff]  ;;  %v4036_v22 = vld [vmem:[#allocation35_spill] sm:$0xff] }
 0x2e3   :  { %2102 = vmatpush.lsf.msrb.mxu3 %v1485_v52  ;;  %v3987_v52 = vld [vmem:[#allocation9_spill] sm:$0xff]  ;;  %v1506_v18 = vmul.f32 %v3566_v59, %v4030_v9 }
 0x2e4   :  { %2118 = vxpose.xlu0.b32.cont [3/16] (narrow) %v2117_v5, 16  ;;  %2078 = vmatpush.lsf.msrb.mxu2 %v1468_v34  ;;  %v3979_v5 = vld [vmem:[#allocation11_spill] sm:$0xff]  ;;  %v3988_v34 = vmax.f32 %v3987_v52, 0.0 }
 0x2e5   :  { %2103 = vmatpush.lsf.msrb.mxu3 %v1484_v15  ;;  %v3980_v16 = vmax.f32 %v3979_v5, 0.0  ;;  %v3989_v15 = vld [vmem:[#allocation25_spill] sm:$0xff]  ;;  %v4031_v5 = vld [vmem:[#allocation47_spill] sm:$0xff] }
 0x2e6   :  { %2079 = vmatpush.lsf.msrb.mxu2 %v1467_v36  ;;  %v3990_v38 = vmax.f32 %v3989_v15, 0.0  ;;  %v3991_v36 = vld [vmem:[#allocation8_spill] sm:$0xff]  ;;  %v4040_v15 = vld [vmem:[#allocation42_spill] sm:$0xff] }
 0x2e7   :  { %2104 = vmatpush.lsf.msrb.mxu3 %v1483_v4  ;;  %v3992_v4 = vmax.f32 %v3991_v36, 0.0  ;;  %v1523_v36 = vmul.f32 %v3566_v59, %v3552_v62 }
 0x2e8   :  { %2080 = vmatpush.lsf.msrb.mxu2 %v1466_v19  ;;  %v3993_v19 = vld [vmem:[#allocation24_spill] sm:$0xff] }
 0x2e9   :  { %2105 = vmatpush.lsf.msrb.mxu3 %v1482_v8  ;;  %v3994_v51 = vmax.f32 %v3993_v19, 0.0  ;;  %v1504_v8 = vmul.f32 %v3566_v59, %v3995_v47  ;;  %v4041_v19 = vld [vmem:[#allocation43_spill] sm:$0xff]  ;;  %v1524_v47 = vmul.f32 %v3566_v59, %v3556_v55 }
 0x2ea   :  { %2081 = vmatpush.lsf.msrb.mxu2 %v1465_v13  ;;  %v1520_v13 = vmul.f32 %v3566_v59, %v3540_v57  ;;  %v4008_v57 = vld [vmem:[#allocation4_spill] sm:$0xff] }
 0x2eb   :  { %2106 = vmatpush.lsf.msrb.mxu3 %v1481_v33  ;;  %v3996_v33 = vld [vmem:[#allocation7_spill] sm:$0xff]  ;;  %v4009_v21 = vmax.f32 %v4008_v57, 0.0 }
 0x2ec   :  { %2120 = vxpose.xlu0.b32.cont [4/16] (narrow) %v2119_v48, 16  ;;  %2082 = vmatpush.lsf.msrb.mxu2 %v1464_v23  ;;  %v3997_v48 = vmax.f32 %v3996_v33, 0.0  ;;  %v3998_v23 = vld [vmem:[#allocation23_spill] sm:$0xff]  ;;  %v2133_v41 = vpack.i.bf16 %v1520_v13, %v1504_v8  ;;  %v4042_v13 = vld [vmem:[#allocation44_spill] sm:$0xff] }
 0x2ed   :  { %2107 = vmatpush.lsf.msrb.mxu3 %v1480_v20  ;;  %v3999_v20 = vmax.f32 %v3998_v23, 0.0  ;;  %v1509_v33 = vmul.f32 %v3566_v59, %v4042_v13 }
 0x2ee   :  { %2083 = vmatpush.lsf.msrb.mxu2 %v1463_v43  ;;  %v4000_v43 = vld [vmem:[#allocation6_spill] sm:$0xff] }
 0x2ef   :  { %2108 = vmatpush.lsf.msrb.mxu3 %v1479_v0  ;;  %v4001_v0 = vmax.f32 %v4000_v43, 0.0 }
 0x2f0   :  { %2084 = vmatpush.lsf.msrb.mxu2 %v1462_v24  ;;  %v4002_v24 = vld [vmem:[#allocation22_spill] sm:$0xff] }
 0x2f1   :  { %2109 = vmatpush.lsf.msrb.mxu3 %v1478_v63  ;;  %2085 = vllmr.2.mxu2  ;;  %v4003_v30 = vmax.f32 %v4002_v24, 0.0  ;;  %v4004_v63 = vld [vmem:[#allocation5_spill] sm:$0xff] }
 0x2f2   :  { %2110 = vllmr.2.mxu3 }
 0x2f4   :  { %2122 = vxpose.xlu0.b32.cont [5/16] (narrow) %v2121_v32, 16  ;;  %v4005_v32 = vmax.f32 %v4004_v63, 0.0 }
 0x2fc   :  { %2124 = vxpose.xlu0.b32.cont [6/16] (narrow) %v2123_v1, 16  ;;  %v4010_v1 = vld [vmem:[#allocation20_spill] sm:$0xff] }
 0x2fd   :  { %v4011_v35 = vmax.f32 %v4010_v1, 0.0 }
 0x304   :  { %2126 = vxpose.xlu0.b32.cont [7/16] (narrow) %v2125_v7, 16  ;;  %v1521_v7 = vmul.f32 %v3566_v59, %v4013_v31 }
 0x306   :  { %v2135_v56 = vpack.i.bf16 %v1521_v7, %v1505_v17 }
 0x30c   :  { %2128 = vxpose.xlu0.b32.cont [8/16] (narrow) %v2127_v14, 16  ;;  %v4017_v14 = vmax.f32 %v4016_v45, 0.0 }
 0x312   :  { %2086 = vmatmul.lmr.bf16.vlgmr.msra.gmra.2.mxu2 }
 0x313   :  { %2111 = vmatmul.lmr.bf16.vlgmr.msra.gmra.2.mxu3  ;;  %1700 = vmatpush.msra.mxu2 %v3971_v11  ;;  %v4022_v11 = vld [vmem:[#allocation40_spill] sm:$0xff] }
 0x314   :  { %1723 = vmatpush.msra.mxu3 %v3973_v29  ;;  %2130 = vxpose.xlu0.b32.cont [9/16] (narrow) %v2129_v40, 16  ;;  %v4021_v40 = vmax.f32 %v4020_v44, 0.0  ;;  %v4023_v6 = vmax.f32 %v4022_v11, 0.0  ;;  %v4024_v29 = vld [vmem:[#allocation17_spill] sm:$0xff] }
 0x315   :  { %1701 = vmatpush.msra.mxu2 %v3975_v58  ;;  %v4025_v49 = vmax.f32 %v4024_v29, 0.0  ;;  %v4026_v58 = vld [vmem:[#allocation39_spill] sm:$0xff] }
 0x316   :  { %1724 = vmatpush.msra.mxu3 %v3977_v28  ;;  %v4027_v37 = vmax.f32 %v4026_v58, 0.0  ;;  %v4028_v28 = vld [vmem:[#allocation16_spill] sm:$0xff] }
 0x317   :  { %1702 = vmatpush.msra.mxu2 %v3980_v16  ;;  %v4029_v60 = vmax.f32 %v4028_v28, 0.0  ;;  %v1522_v16 = vmul.f32 %v3566_v59, %v4031_v5 }
 0x318   :  { %1725 = vmatpush.msra.mxu3 %v3982_v10  ;;  %v4033_v10 = vmax.f32 %v4032_v25, 0.0 }
 0x319   :  { %1703 = vmatpush.msra.mxu2 %v3984_v27  ;;  %v4035_v27 = vmax.f32 %v4034_v46, 0.0 }
 0x31a   :  { %1726 = vmatpush.msra.mxu3 %v3986_v53  ;;  %2087 = vmatmul.lmr.bf16.gmra.2.mxu2  ;;  %v4037_v53 = vmax.f32 %v4036_v22, 0.0 }
 0x31b   :  { %1704 = vmatpush.msra.mxu2 %v3988_v34  ;;  %2112 = vmatmul.lmr.bf16.gmra.2.mxu3  ;;  %v2137_v34 = vpack.i.bf16 %v1522_v16, %v1506_v18 }
 0x31c   :  { %1727 = vmatpush.msra.mxu3 %v3990_v38  ;;  %2132 = vxpose.xlu0.b32.cont [10/16] (narrow) %v2131_v39, 16  ;;  %v4038_v39 = vld [vmem:[#allocation14_spill] sm:$0xff]  ;;  %v1507_v38 = vmul.f32 %v3566_v59, %v4040_v15 }
 0x31d   :  { %1705 = vmatpush.msra.mxu2 %v3992_v4  ;;  %v4039_v52 = vmax.f32 %v4038_v39, 0.0 }
 0x31e   :  { %1728 = vmatpush.msra.mxu3 %v3994_v51  ;;  %v2139_v4 = vpack.i.bf16 %v1523_v36, %v1507_v38  ;;  %v1508_v51 = vmul.f32 %v3566_v59, %v4041_v19 }
 0x31f   :  { %1706 = vmatpush.msra.mxu2 %v3997_v48  ;;  %v1525_v48 = vmul.f32 %v3566_v59, %v3560_v61 }
 0x320   :  { %1729 = vmatpush.msra.mxu3 %v3999_v20  ;;  %v2141_v8 = vpack.i.bf16 %v1524_v47, %v1508_v51 }
 0x321   :  { %1707 = vmatpush.msra.mxu2 %v4001_v0  ;;  %v2143_v23 = vpack.i.bf16 %v1525_v48, %v1509_v33 }
 0x322   :  { %1730 = vmatpush.msra.mxu3 %v4003_v30 }
 0x323   :  { %1708 = vmatpush.msra.mxu2 %v4005_v32 }
 0x324   :  { %1731 = vmatpush.msra.mxu3 %v4007_v50  ;;  %2134 = vxpose.xlu0.b32.cont [11/16] (narrow) %v2133_v41, 16 }
 0x325   :  { %1709 = vmatpush.msra.mxu2 %v4009_v21 }
 0x326   :  { %1732 = vmatpush.msra.mxu3 %v4011_v35 }
 0x327   :  { %1710 = vmatpush.msra.mxu2 %v4015_v54 }
 0x328   :  { %1733 = vmatpush.msra.mxu3 %v4017_v14 }
 0x329   :  { %1711 = vmatpush.msra.mxu2 %v4019_v12 }
 0x32a   :  { %1734 = vmatpush.msra.mxu3 %v4021_v40 }
 0x32b   :  { %1712 = vmatpush.msra.mxu2 %v4023_v6 }
 0x32c   :  { %1735 = vmatpush.msra.mxu3 %v4025_v49  ;;  %2136 = vxpose.xlu0.b32.cont [12/16] (narrow) %v2135_v56, 16 }
 0x32d   :  { %1713 = vmatpush.msra.mxu2 %v4027_v37 }
 0x32e   :  { %1736 = vmatpush.msra.mxu3 %v4029_v60 }
 0x32f   :  { %1714 = vmatpush.msra.mxu2 %v4033_v10 }
 0x330   :  { %1737 = vmatpush.msra.mxu3 %v4035_v27 }
 0x331   :  { %1715 = vmatpush.msra.mxu2 %v4037_v53 }
 0x332   :  { %1738 = vmatpush.msra.mxu3 %v4039_v52 }
 0x334   :  { %2138 = vxpose.xlu0.b32.cont [13/16] (narrow) %v2137_v34, 16 }
 0x33c   :  { %2140 = vxpose.xlu0.b32.cont [14/16] (narrow) %v2139_v4, 16 }
 0x344   :  { %2142 = vxpose.xlu0.b32.cont [15/16] (narrow) %v2141_v8, 16 }
 0x34c   :  { %2144 = vxpose.xlu0.b32.end [16/16] (narrow) %v2143_v23, 16 }
 0x378   :  { %v2145_v20 = vpop.trf.xlu0 }
 0x379   :  { %v2149_v62 = vunpack.i.h.bf16 %v2145_v20  ;;  %v2146_v43 = vunpack.i.l.bf16 %v2145_v20 }
 0x37b   :  { %1716 = vmatmul.f32.vlgmr.msra.gmra.mxu2 %v2146_v43  ;;  %1739 = vmatmul.f32.vlgmr.msra.gmra.mxu3 %v2149_v62 }
 0x380   :  { %v2150_v0 = vpop.trf.xlu0 }
 0x381   :  { %v2154_v24 = vunpack.i.h.bf16 %v2150_v0  ;;  %v2151_v30 = vunpack.i.l.bf16 %v2150_v0 }
 0x383   :  { %1719 = vmatmul.f32.gmra.mxu2 %v2151_v30  ;;  %1742 = vmatmul.f32.gmra.mxu3 %v2154_v24 }
 0x395   :  { %v1671_v55 = vpop.f32.mrf.mxu2 }
 0x396   :  { %v1694_v41 = vpop.f32.mrf.mxu3 }
 0x397   :  { %v1695_v42 = vadd.f32 %v1694_v41, %v1671_v55 }
 0x39d   :  { %v1674_v63 = vpop.f32.mrf.mxu2 }
 0x39e   :  { %v1697_v32 = vpop.f32.mrf.mxu3 }
 0x39f   :  { %v1698_v1 = vadd.f32 %v1697_v32, %v1674_v63 }
 0x3fe   :  { %v1717_v50 = vpop.f32.mrf.mxu2  ;;  %v1740_v57 = vpop.f32.mrf.mxu3 }
 0x3ff   :  { %v1718_v61 = vadd.f32 %v1717_v50, %v1695_v42 }
 0x401   :  { %v1741_v59 = vadd.f32 %v1740_v57, %v1718_v61 }
 0x403   :  { %v1746_v21 = vmul.f32 %v1741_v59, %v1741_v59 }
 0x405   :  { %v1748_v35 = vsel %vm600_vm1, %v1746_v21, 0.0 }
 0x406   :  { %v1720_v2 = vpop.f32.mrf.mxu2  ;;  %1749 = vadd.xlane.f32.xlu1 %v1748_v35  ;;  %v1743_v31 = vpop.f32.mrf.mxu3 }
 0x407   :  { %v1721_v17 = vadd.f32 %v1720_v2, %v1698_v1 }
 0x409   :  { %v1744_v7 = vadd.f32 %v1743_v31, %v1721_v17 }
 0x40b   :  { %v1747_v26 = vmul.f32 %v1744_v7, %v1744_v7 }
 0x40d   :  { %v1751_v54 = vsel %vm600_vm1, %v1747_v26, 0.0 }
 0x40e   :  { %1752 = vadd.xlane.f32.xlu1 %v1751_v54 }
 0x479   :  { %v1750_v45 = vpop.xlane.xlu1 %1749 }
 0x47a   :  { %v1754_v14 = vmax.f32 %v1750_v45, 1e-24 }
 0x47c   :  { %2286 = vrsqrt.f32 %v1754_v14  ;;  %vm1762_vm4 = vweird.f32 %v1754_v14 }
 0x481   :  { %v1753_v3 = vpop.xlane.xlu1 %1752 }
 0x482   :  { %v2287_v12 = vpop.eup %2286  ;;  %v1755_v44 = vmax.f32 %v1753_v3, 1e-24 }
 0x483   :  { %v1757_v40 = vmul.f32 %v2287_v12, %v1754_v14  ;;  %vm1763_vm3 = vweird.f32 %v2287_v12 }
 0x484   :  { %2288 = vrsqrt.f32 %v1755_v44  ;;  %vm1764_vm5 = vmor %vm1762_vm4, %vm1763_vm3  ;;  %vm1772_vm8 = vweird.f32 %v1755_v44 }
 0x485   :  { %v1758_v56 = vmul.f32 %v2287_v12, %v1757_v40 }
 0x487   :  { %v1759_v11 = vmul.f32 0.5, %v1758_v56 }
 0x489   :  { %v1760_v6 = vsub.f32 1.5, %v1759_v11 }
 0x48a   :  { %v2289_v29 = vpop.eup %2288 }
 0x48b   :  { %v1761_v49 = vmul.f32 %v2287_v12, %v1760_v6  ;;  %v1767_v58 = vmul.f32 %v2289_v29, %v1755_v44  ;;  %vm1773_vm7 = vweird.f32 %v2289_v29 }
 0x48c   :  { %vm1774_vm9 = vmor %vm1772_vm8, %vm1773_vm7 }
 0x48d   :  { %v1765_v37 = vsel %vm1764_vm5, %v2287_v12, %v1761_v49  ;;  %v1768_v28 = vmul.f32 %v2289_v29, %v1767_v58 }
 0x48e   :  { %v1776_v60 = vmul.f32 %v1765_v37, %v1741_v59 }
 0x48f   :  { %v1769_v9 = vmul.f32 0.5, %v1768_v28 }
 0x490   :  { %v1778_v18 = vpack.c.bf16 %v1776_v60, %v1776_v60 }
 0x491   :  { %v1770_v5 = vsub.f32 1.5, %v1769_v9 }
 0x492   :  { %1781 = vst.msk [vmem:[%s3772_s4] sm:$0xf] %vm1780_vm6, %v1778_v18 }
 0x493   :  { %v1771_v16 = vmul.f32 %v2289_v29, %v1770_v5 }
 0x495   :  { %v1775_v25 = vsel %vm1774_vm9, %v2289_v29, %v1771_v16 }
 0x496   :  { %v1777_v10 = vmul.f32 %v1775_v25, %v1744_v7 }
 0x498   :  { %v1779_v46 = vpack.c.bf16 %v1777_v10, %v1777_v10 }
 0x49a   :  { %1782 = vst.msk [vmem:[%s3772_s4 + $0x4] sm:$0xf] %vm1780_vm6, %v1779_v46 }

// kernel: self_dynamic_prototype_forward.3
= control target key start
LH: loop header
LB: loop body
LE: loop exit
PB: predicated region body
PF: predicated region fallthrough
CT: control target
= control target key end

     0   :  { %13 = vsyncpa [#allocation3], 0  ;;  %s7035_s0 = inlined_call_operand.vmem [shape: bf16[1024,32], index: 0, kind: input, shape index: {}]   ;;  %s7036_s1 = inlined_call_operand.vmem [shape: f32[1024,32], index: 1, kind: input, shape index: {}]   ;;  %s7037_s2 = inlined_call_operand.vmem [shape: bf16[32,64], index: 2, kind: input, shape index: {}]   ;;  %s7038_s3 = inlined_call_operand.vmem [shape: f32[1,64], index: 3, kind: input, shape index: {}]   ;;  %s7039_s4 = inlined_call_operand.vmem [shape: bf16[16,64], index: 4, kind: input, shape index: {}]   ;;  %s7040_s5 = inlined_call_operand.vmem [shape: bf16[64,16], index: 5, kind: input, shape index: {}]   ;;  %s7041_s6 = inlined_call_operand.vmem [shape: bf16[64,32], index: 6, kind: input, shape index: {}]   ;;  %s7042_s7 = inlined_call_operand.vmem [shape: f32[1,32], index: 7, kind: input, shape index: {}]   ;;  %s7043_s8 = inlined_call_operand.hbm [shape: f32[1024,32], index: 8, kind: output, shape index: {}]  }
   0x1   :  { %15 = vsyncpa [#allocation3 + $0x1], 0  ;;  %s4846_s27 = smov 0   ;;  %s4848_s28 = smov 0  }
   0x2   :  { %s4850_s29 = smov 0   ;;  %s4852_s30 = smov 0  }
   0x3 LB: > { %s4867_s9 = sadd.s32 4294967295, %s4797_s30   ;;  %s3947_s10 = sadd.s32 4294967294, %s4797_s30   ;;  %s4797_s30 = sphi %s4852_s30, %s7111_s30   ;;  %s4793_s29 = sphi %s4850_s29, %s7110_s29   ;;  %s4789_s28 = sphi %s4848_s28, %s7109_s28   ;;  %s4785_s27 = sphi %s4846_s27, %s7108_s27  }
   0x4   : > { %s4871_s11 = sadd.s32 1, %s4797_s30   ;;  %s206_s12 = sadd.s32 1, %s4793_s29 }
   0x5   : > { %s203_s13 = ssub.s32 %s4797_s30, %s4871_s11  ;;  %p216_p0 = scmp.ne.s32.totalorder %s4793_s29, %s4789_s28 }
   0x6   : > { %p204_p1 = scmp.eq.s32.totalorder %s203_s13, 0  ;;  %p217_p2 = scmp.eq.s32.totalorder %s4867_s9, 1 }
   0x7   : > { %p222_p3 = scmp.ne.s32.totalorder %s4789_s28, %s4785_s27  ;;  %p223_p4 = scmp.eq.s32.totalorder %s3947_s10, 1 }
   0x8   : > { %s4882_s14 = scalar_select %p204_p1, %s4793_s29, %s206_s12  }
   0x9   : > { %p4884_p5 = por %p217_p2, %p216_p0  ;;  %p4888_p6 = por %p223_p4, %p222_p3 }
   0xa   : > { %p3950_p7 = scmp.ge.s32.totalorder %s4797_s30, 1  ;;  %p277_p8 = scmp.lt.s32.totalorder %s4797_s30, 3 }
   0xc   : > { %p278_p9 = pnand %p3950_p7, %p277_p8 }
   0xe   : > { %281 = sbr.rel (%p278_p9) target bundleno = 1828 (0x724), region = 52 }
  0x13   : > { %v4294_v0 = vld [vmem:[%s7037_s2 + $0x8] sm:$0xff]  ;;  %s3952_s19 = sshll.u32 %s4867_s9, 6  ;;  %v4293_v1 = vld [vmem:[%s7037_s2] sm:$0xff]  ;;  %vm574_vm0 = vcmask 261120   ;;  %v4298_v7 = vld [vmem:[%s7040_s5 + $0x18] sm:$0xff]  ;;  %vm968_vm1 = vcmask 523264  }
  0x14   : > { %p317_p10 = scmp.lt.s32.totalorder %s3952_s19, 127  ;;  %677 = vmatpush.bf16.msra.mxu0 %v4294_v0  ;;  %1069 = vmatpush.bf16.msra.mxu1 %v4298_v7  ;;  %v4297_v9 = vld [vmem:[%s7040_s5 + $0x10] sm:$0xff]  ;;  %v4296_v10 = vld [vmem:[%s7040_s5 + $0x8] sm:$0xff]  ;;  %v4295_v11 = vld [vmem:[%s7040_s5] sm:$0xff]  ;;  %vm1234_vm2 = vcmask 130048  }
  0x15   : > { %v4939_v15 = vld [vmem:[%s7038_s3] ss:$0 sm:$0xff] }
  0x16   : > { %s7113_s19 = smov (!%p317_p10, %s3952_s19), 127 }
  0x17   : > { %s3953_s22 = sshll.u32 %s7113_s19, 2  ;;  %s3955_s24 = sshll.u32 %s7113_s19, 3 }
  0x18   : > { %678 = vmatpush.bf16.msra.mxu0 %v4293_v1  ;;  %s4907_s25 = scalar_lea.vmem %s7035_s0, %s3953_s22  ;;  %1070 = vmatpush.bf16.msra.mxu1 %v4297_v9  ;;  %s313_s19 = sand.u32 1, %s4789_s28  }
  0x19   : > { %v4261_v2 = vld [vmem:[%s4907_s25] sm:$0xff]  ;;  %v4262_v3 = vld [vmem:[%s4907_s25 + $0x8] sm:$0xff]  ;;  %v4263_v4 = vld [vmem:[%s4907_s25 + $0x10] sm:$0xff]  ;;  %s5871_s13 = scalar_lea.vmem %s7036_s1, %s3955_s24  ;;  %s3951_s17 = sshll.u32 %s313_s19, 9 }
  0x1a   : > { %v4264_v5 = vld [vmem:[%s4907_s25 + $0x18] sm:$0xff]  ;;  %v4265_v6 = vld [vmem:[%s4907_s25 + $0x20] sm:$0xff]  ;;  %v4266_v8 = vld [vmem:[%s4907_s25 + $0x28] sm:$0xff]  ;;  %s5909_s18 = scalar_lea.vmem [#allocation2], %s3951_s17  ;;  %s4304_s24 = sshll.u32 %s4867_s9, 9 }
  0x1b   : > { %4092 = vmatmul.msk.bf16.vlgmr.msra.gmra.mxu0 %vm574_vm0, %v4261_v2  ;;  %v4267_v12 = vld [vmem:[%s4907_s25 + $0x30] sm:$0xff]  ;;  %v4268_v14 = vld [vmem:[%s4907_s25 + $0x38] sm:$0xff]  ;;  %v4269_v30 = vld [vmem:[%s4907_s25 + $0x40] sm:$0xff]  ;;  %s3869_s12 = scalar_lea.hbm %s7043_s8, %s4304_s24  ;;  %s3858_s9 = scalar_lea.sflag [#allocation3], %s313_s19 }
  0x1c   : > { %1071 = vmatpush.bf16.msra.mxu1 %v4296_v10  ;;  %v4270_v37 = vld [vmem:[%s4907_s25 + $0x48] sm:$0xff]  ;;  %v4271_v59 = vld [vmem:[%s4907_s25 + $0x50] sm:$0xff]  ;;  %s3872_s17 = sshll.u32 %s3869_s12, 4  ;;  %s4755_s24 = scalar_lea.hbm %s7043_s8, 1024  ;;  %s3873_s17 = int_to_ptr.hbm [resolvable:$true] %s3872_s17 }
  0x1d   : > { %s4749_s20 = sshra.s32 %s3873_s17, 4  ;;  %s4750_s20 = int_to_ptr.hbm [resolvable:$true] %s4749_s20 }
  0x1e   : > { %s4751_s21 = scalar_lea.hbm %s4750_s20, 512  ;;  %p4756_p0 = scmp.lt.s32.totalorder %s4750_s20, %s7043_s8 }
  0x1f   : > { %p4752_p11 = scmp.ne.s32.totalorder %s4750_s20, %s4751_s21  ;;  %p4757_p1 = scmp.lt.s32.totalorder %s4755_s24, %s4751_s21 }
  0x20   : > { %1072 = vmatpush.bf16.msra.mxu1 %v4295_v11 }
  0x21   : > { %p4753_p12 = pnand %p4752_p11, %p4884_p5  ;;  %p4758_p2 = por %p4757_p1, %p4756_p0 }
  0x23   : > { %p4754_p13 = pneg %p4753_p12 }
  0x25   : > { %p4759_p3 = pnand %p4758_p2, %p4754_p13 }
  0x2b   : > { %4093 = vmatmul.msk.bf16.gmra.mxu0 %vm574_vm0, %v4262_v3  ;;  %v4272_v3 = vld [vmem:[%s4907_s25 + $0x58] sm:$0xff] }
  0x3b   : > { %4094 = vmatmul.msk.bf16.gmra.mxu0 %vm574_vm0, %v4263_v4 }
  0x4b   : > { %4095 = vmatmul.msk.bf16.gmra.mxu0 %vm574_vm0, %v4264_v5 }
  0x5b   : > { %4096 = vmatmul.msk.bf16.gmra.mxu0 %vm574_vm0, %v4265_v6 }
  0x6b   : > { %4097 = vmatmul.msk.bf16.gmra.mxu0 %vm574_vm0, %v4266_v8 }
  0x7b   : > { %4098 = vmatmul.msk.bf16.gmra.mxu0 %vm574_vm0, %v4267_v12 }
  0x8b   : > { %4099 = vmatmul.msk.bf16.gmra.mxu0 %vm574_vm0, %v4268_v14 }
  0x98   : > { %v680_v13 = vpop.f32.mrf.mxu0 }
  0x99   : > { %v681_v16 = vadd.f32 %v4939_v15, %v680_v13 }
  0x9b   : > { %v840_v19 = vmax.f32 %v681_v16, 0.0  ;;  %4100 = vmatmul.msk.bf16.gmra.mxu0 %vm574_vm0, %v4269_v30  ;;  %v4274_v30 = vld [vmem:[%s4907_s25 + $0x68] sm:$0xff] }
  0xa0   : > { %v682_v17 = vpop.f32.mrf.mxu0 }
  0xa1   : > { %v683_v18 = vadd.f32 %v4939_v15, %v682_v17 }
  0xa3   : > { %v841_v20 = vmax.f32 %v683_v18, 0.0  ;;  %v4273_v18 = vld [vmem:[%s4907_s25 + $0x60] sm:$0xff] }
  0xa5   : > { %v904_v21 = vpack.c.bf16 %v841_v20, %v840_v19 }
  0xa7   : > { %4140 = vmatmul.msk.bf16.vlgmr.msra.gmra.mxu1 %vm968_vm1, %v904_v21 }
  0xa8   : > { %v685_v22 = vpop.f32.mrf.mxu0 }
  0xa9   : > { %v686_v23 = vadd.f32 %v4939_v15, %v685_v22 }
  0xab   : > { %v842_v26 = vmax.f32 %v686_v23, 0.0  ;;  %4101 = vmatmul.msk.bf16.gmra.mxu0 %vm574_vm0, %v4270_v37 }
  0xb0   : > { %v687_v24 = vpop.f32.mrf.mxu0 }
  0xb1   : > { %v688_v25 = vadd.f32 %v4939_v15, %v687_v24 }
  0xb3   : > { %v843_v27 = vmax.f32 %v688_v25, 0.0 }
  0xb5   : > { %v905_v28 = vpack.c.bf16 %v843_v27, %v842_v26 }
  0xb7   : > { %4141 = vmatmul.msk.bf16.gmra.mxu1 %vm968_vm1, %v905_v28 }
  0xb8   : > { %v690_v29 = vpop.f32.mrf.mxu0 }
  0xb9   : > { %v691_v31 = vadd.f32 %v4939_v15, %v690_v29 }
  0xbb   : > { %v844_v34 = vmax.f32 %v691_v31, 0.0  ;;  %4102 = vmatmul.msk.bf16.gmra.mxu0 %vm574_vm0, %v4271_v59 }
  0xc0   : > { %v692_v32 = vpop.f32.mrf.mxu0 }
  0xc1   : > { %v693_v33 = vadd.f32 %v4939_v15, %v692_v32 }
  0xc3   : > { %v845_v35 = vmax.f32 %v693_v33, 0.0 }
  0xc5   : > { %v906_v36 = vpack.c.bf16 %v845_v35, %v844_v34 }
  0xc7   : > { %4142 = vmatmul.msk.bf16.gmra.mxu1 %vm968_vm1, %v906_v36 }
  0xc8   : > { %v695_v38 = vpop.f32.mrf.mxu0 }
  0xc9   : > { %v696_v39 = vadd.f32 %v4939_v15, %v695_v38 }
  0xcb   : > { %v846_v41 = vmax.f32 %v696_v39, 0.0  ;;  %4103 = vmatmul.msk.bf16.gmra.mxu0 %vm574_vm0, %v4272_v3 }
  0xd0   : > { %v697_v40 = vpop.f32.mrf.mxu0 }
  0xd1   : > { %v698_v42 = vadd.f32 %v4939_v15, %v697_v40  ;;  %v4275_v40 = vld [vmem:[%s4907_s25 + $0x70] sm:$0xff] }
  0xd3   : > { %v847_v43 = vmax.f32 %v698_v42, 0.0 }
  0xd5   : > { %v907_v44 = vpack.c.bf16 %v847_v43, %v846_v41 }
  0xd7   : > { %4143 = vmatmul.msk.bf16.gmra.mxu1 %vm968_vm1, %v907_v44 }
  0xd8   : > { %v700_v45 = vpop.f32.mrf.mxu0 }
  0xd9   : > { %v701_v46 = vadd.f32 %v4939_v15, %v700_v45 }
  0xdb   : > { %v848_v48 = vmax.f32 %v701_v46, 0.0  ;;  %4104 = vmatmul.msk.bf16.gmra.mxu0 %vm574_vm0, %v4273_v18 }
  0xe0   : > { %v702_v47 = vpop.f32.mrf.mxu0 }
  0xe1   : > { %v703_v49 = vadd.f32 %v4939_v15, %v702_v47 }
  0xe3   : > { %v849_v50 = vmax.f32 %v703_v49, 0.0 }
  0xe5   : > { %v908_v51 = vpack.c.bf16 %v849_v50, %v848_v48 }
  0xe7   : > { %4144 = vmatmul.msk.bf16.gmra.mxu1 %vm968_vm1, %v908_v51 }
  0xe8   : > { %v705_v52 = vpop.f32.mrf.mxu0 }
  0xe9   : > { %v706_v53 = vadd.f32 %v4939_v15, %v705_v52 }
  0xeb   : > { %v850_v55 = vmax.f32 %v706_v53, 0.0  ;;  %4105 = vmatmul.msk.bf16.gmra.mxu0 %vm574_vm0, %v4274_v30 }
  0xf0   : > { %v707_v54 = vpop.f32.mrf.mxu0 }
  0xf1   : > { %v708_v56 = vadd.f32 %v4939_v15, %v707_v54 }
  0xf3   : > { %v851_v57 = vmax.f32 %v708_v56, 0.0 }
  0xf5   : > { %v909_v58 = vpack.c.bf16 %v851_v57, %v850_v55 }
  0xf7   : > { %4145 = vmatmul.msk.bf16.gmra.mxu1 %vm968_vm1, %v909_v58 }
  0xf8   : > { %v710_v60 = vpop.f32.mrf.mxu0 }
  0xf9   : > { %v711_v61 = vadd.f32 %v4939_v15, %v710_v60 }
  0xfb   : > { %v852_v63 = vmax.f32 %v711_v61, 0.0  ;;  %4106 = vmatmul.msk.bf16.gmra.mxu0 %vm574_vm0, %v4275_v40 }
 0x100   : > { %v712_v62 = vpop.f32.mrf.mxu0 }
 0x101   : > { %v713_v0 = vadd.f32 %v4939_v15, %v712_v62 }
 0x103   : > { %v853_v1 = vmax.f32 %v713_v0, 0.0 }
 0x105   : > { %v910_v2 = vpack.c.bf16 %v853_v1, %v852_v63  ;;  %v4276_v1 = vld [vmem:[%s4907_s25 + $0x78] sm:$0xff] }
 0x107   : > { %4146 = vmatmul.msk.bf16.gmra.mxu1 %vm968_vm1, %v910_v2 }
 0x108   : > { %v715_v4 = vpop.f32.mrf.mxu0 }
 0x109   : > { %v716_v5 = vadd.f32 %v4939_v15, %v715_v4 }
 0x10b   : > { %v854_v7 = vmax.f32 %v716_v5, 0.0  ;;  %4107 = vmatmul.msk.bf16.gmra.mxu0 %vm574_vm0, %v4276_v1 }
 0x110   : > { %v717_v6 = vpop.f32.mrf.mxu0 }
 0x111   : > { %v718_v8 = vadd.f32 %v4939_v15, %v717_v6 }
 0x113   : > { %v855_v9 = vmax.f32 %v718_v8, 0.0 }
 0x115   : > { %v911_v12 = vpack.c.bf16 %v855_v9, %v854_v7 }
 0x117   : > { %4147 = vmatmul.msk.bf16.gmra.mxu1 %vm968_vm1, %v911_v12 }
 0x118   : > { %v720_v19 = vpop.f32.mrf.mxu0 }
 0x119   : > { %v721_v22 = vadd.f32 %v4939_v15, %v720_v19 }
 0x11b   : > { %v856_v24 = vmax.f32 %v721_v22, 0.0 }
 0x120   : > { %v722_v23 = vpop.f32.mrf.mxu0 }
 0x121   : > { %v723_v25 = vadd.f32 %v4939_v15, %v722_v23 }
 0x123   : > { %v857_v26 = vmax.f32 %v723_v25, 0.0 }
 0x124   : > { %v4973_v10 = vpop.f32.mrf.mxu1 }
 0x125   : > { %v1235_v11 = vsel %vm1234_vm2, %v4973_v10, -inf  ;;  %v912_v29 = vpack.c.bf16 %v857_v26, %v856_v24  ;;  %v4277_v26 = vld [vmem:[%s4907_s25 + $0x80] sm:$0xff] }
 0x126   : > { %1236 = vmax.xlane.f32.xlu0 %v1235_v11  ;;  %4108 = vmatmul.msk.bf16.gmra.mxu0 %vm574_vm0, %v4277_v26 }
 0x127   : > { %4148 = vmatmul.msk.bf16.gmra.mxu1 %vm968_vm1, %v912_v29 }
 0x128   : > { %v725_v31 = vpop.f32.mrf.mxu0 }
 0x129   : > { %v726_v34 = vadd.f32 %v4939_v15, %v725_v31 }
 0x12b   : > { %v858_v36 = vmax.f32 %v726_v34, 0.0 }
 0x12c   : > { %v4978_v13 = vpop.f32.mrf.mxu1 }
 0x12d   : > { %v1238_v14 = vsel %vm1234_vm2, %v4978_v13, -inf }
 0x12e   : > { %1239 = vmax.xlane.f32.xlu0 %v1238_v14 }
 0x130   : > { %v727_v35 = vpop.f32.mrf.mxu0 }
 0x131   : > { %v728_v37 = vadd.f32 %v4939_v15, %v727_v35 }
 0x133   : > { %v859_v38 = vmax.f32 %v728_v37, 0.0 }
 0x134   : > { %v4982_v16 = vpop.f32.mrf.mxu1 }
 0x135   : > { %v1241_v17 = vsel %vm1234_vm2, %v4982_v16, -inf  ;;  %v913_v42 = vpack.c.bf16 %v859_v38, %v858_v36 }
 0x136   : > { %1242 = vmax.xlane.f32.xlu1 %v1241_v17 }
 0x137   : > { %4149 = vmatmul.msk.bf16.gmra.mxu1 %vm968_vm1, %v913_v42 }
 0x138   : > { %v730_v47 = vpop.f32.mrf.mxu0 }
 0x139   : > { %v731_v48 = vadd.f32 %v4939_v15, %v730_v47 }
 0x13b   : > { %v860_v51 = vmax.f32 %v731_v48, 0.0 }
 0x13c   : > { %v4988_v20 = vpop.f32.mrf.mxu1 }
 0x13d   : > { %v1244_v21 = vsel %vm1234_vm2, %v4988_v20, -inf }
 0x13e   : > { %1245 = vmax.xlane.f32.xlu1 %v1244_v21 }
 0x140   : > { %v732_v49 = vpop.f32.mrf.mxu0 }
 0x141   : > { %v733_v50 = vadd.f32 %v4939_v15, %v732_v49  ;;  %v4278_v49 = vld [vmem:[%s4907_s25 + $0x88] sm:$0xff] }
 0x142   : > { %4109 = vmatmul.msk.bf16.gmra.mxu0 %vm574_vm0, %v4278_v49 }
 0x143   : > { %v861_v52 = vmax.f32 %v733_v50, 0.0 }
 0x144   : > { %v4994_v27 = vpop.f32.mrf.mxu1 }
 0x145   : > { %v1247_v28 = vsel %vm1234_vm2, %v4994_v27, -inf  ;;  %v914_v53 = vpack.c.bf16 %v861_v52, %v860_v51 }
 0x146   : > { %1248 = vmax.xlane.f32.xlu2 %v1247_v28 }
 0x147   : > { %4150 = vmatmul.msk.bf16.gmra.mxu1 %vm968_vm1, %v914_v53 }
 0x148   : > { %v735_v54 = vpop.f32.mrf.mxu0 }
 0x149   : > { %v736_v59 = vadd.f32 %v4939_v15, %v735_v54 }
 0x14b   : > { %v862_v63 = vmax.f32 %v736_v59, 0.0 }
 0x14c   : > { %v5001_v32 = vpop.f32.mrf.mxu1 }
 0x14d   : > { %v1250_v33 = vsel %vm1234_vm2, %v5001_v32, -inf }
 0x14e   : > { %1251 = vmax.xlane.f32.xlu2 %v1250_v33 }
 0x150   : > { %v737_v60 = vpop.f32.mrf.mxu0 }
 0x151   : > { %v738_v61 = vadd.f32 %v4939_v15, %v737_v60 }
 0x153   : > { %v863_v0 = vmax.f32 %v738_v61, 0.0 }
 0x154   : > { %v5007_v39 = vpop.f32.mrf.mxu1 }
 0x155   : > { %v1253_v41 = vsel %vm1234_vm2, %v5007_v39, -inf  ;;  %v915_v7 = vpack.c.bf16 %v863_v0, %v862_v63 }
 0x156   : > { %1254 = vmax.xlane.f32.xlu0 %v1253_v41 }
 0x157   : > { %4151 = vmatmul.msk.bf16.gmra.mxu1 %vm968_vm1, %v915_v7 }
 0x158   : > { %v740_v24 = vpop.f32.mrf.mxu0 }
 0x15c   : > { %v5014_v43 = vpop.f32.mrf.mxu1 }
 0x15d   : > { %v1256_v44 = vsel %vm1234_vm2, %v5014_v43, -inf }
 0x15e   : > { %1257 = vmax.xlane.f32.xlu1 %v1256_v44 }
 0x160   : > { %v742_v34 = vpop.f32.mrf.mxu0 }
 0x164   : > { %v5018_v45 = vpop.f32.mrf.mxu1 }
 0x165   : > { %v1259_v46 = vsel %vm1234_vm2, %v5018_v45, -inf }
 0x166   : > { %1260 = vmax.xlane.f32.xlu1 %v1259_v46 }
 0x168   : > { %v745_v48 = vpop.f32.mrf.mxu0 }
 0x169   : > { %v746_v52 = vadd.f32 %v4939_v15, %v745_v48 }
 0x16b   : > { %v866_v59 = vmax.f32 %v746_v52, 0.0 }
 0x16c   : > { %v5025_v55 = vpop.f32.mrf.mxu1 }
 0x16d   : > { %v1262_v14 = vsel %vm1234_vm2, %v5025_v55, -inf }
 0x174   : > { %v5032_v3 = vpop.f32.mrf.mxu1 }
 0x175   : > { %v1265_v22 = vsel %vm1234_vm2, %v5032_v3, -inf }
 0x17c   : > { %v5043_v12 = vpop.f32.mrf.mxu1 }
 0x17d   : > { %v1268_v33 = vsel %vm1234_vm2, %v5043_v12, -inf }
 0x184   : > { %v5056_v23 = vpop.f32.mrf.mxu1 }
 0x185   : > { %v1271_v47 = vsel %vm1234_vm2, %v5056_v23, -inf }
 0x18c   : > { %v5069_v36 = vpop.f32.mrf.mxu1 }
 0x194   : > { %v5080_v51 = vpop.f32.mrf.mxu1 }
 0x199   : > { %v1237_v56 = vpop.xlane.xlu0 %1236 }
 0x19a   : > { %v1427_v57 = vsub.f32 %v4973_v10, %v1237_v56 }
 0x19c   : > { %v1491_v58 = vmul.f32 1.442695, %v1427_v57  ;;  %v1274_v57 = vsel %vm1234_vm2, %v5069_v36, -inf  ;;  %v5095_v1 = vpop.f32.mrf.mxu1 }
 0x19e   : > { %4348 = vpow2.f32 %v1491_v58  ;;  %v747_v58 = vpop.f32.mrf.mxu0 }
 0x1a1   : > { %v1240_v62 = vpop.xlane.xlu0 %1239 }
 0x1a2   : > { %v1428_v2 = vsub.f32 %v4978_v13, %v1240_v62 }
 0x1a4   : > { %v5035_v4 = vpop.eup %4348  ;;  %v1493_v5 = vmul.f32 1.442695, %v1428_v2 }
 0x1a5   : > { %v1619_v6 = vsel %vm1234_vm2, %v5035_v4, 0.0 }
 0x1a6   : > { %4350 = vpow2.f32 %v1493_v5  ;;  %1620 = vadd.xlane.f32.xlu2 %v1619_v6  ;;  %v1277_v6 = vsel %vm1234_vm2, %v5080_v51, -inf  ;;  %v750_v7 = vpop.f32.mrf.mxu0 }
 0x1a9   : > { %v1243_v8 = vpop.xlane.xlu1 %1242 }
 0x1aa   : > { %v1429_v9 = vsub.f32 %v4982_v16, %v1243_v8  ;;  %v4279_v8 = vld [vmem:[%s4907_s25 + $0x90] sm:$0xff] }
 0x1ab   : > { %4110 = vmatmul.msk.bf16.gmra.mxu0 %vm574_vm0, %v4279_v8 }
 0x1ac   : > { %v5041_v10 = vpop.eup %4350  ;;  %v1495_v11 = vmul.f32 1.442695, %v1429_v9 }
 0x1ad   : > { %v1622_v13 = vsel %vm1234_vm2, %v5041_v10, 0.0 }
 0x1ae   : > { %4352 = vpow2.f32 %v1495_v11  ;;  %1623 = vadd.xlane.f32.xlu0 %v1622_v13  ;;  %1263 = vmax.xlane.f32.xlu2 %v1262_v14  ;;  %v751_v11 = vadd.f32 %v4939_v15, %v750_v7 }
 0x1b1   : > { %v1246_v17 = vpop.xlane.xlu1 %1245 }
 0x1b2   : > { %v1430_v18 = vsub.f32 %v4988_v20, %v1246_v17  ;;  %v741_v20 = vadd.f32 %v4939_v15, %v740_v24  ;;  %v5108_v17 = vpop.f32.mrf.mxu1 }
 0x1b4   : > { %v5050_v19 = vpop.eup %4352  ;;  %v1497_v16 = vmul.f32 1.442695, %v1430_v18  ;;  %v864_v35 = vmax.f32 %v741_v20, 0.0 }
 0x1b5   : > { %v1625_v21 = vsel %vm1234_vm2, %v5050_v19, 0.0 }
 0x1b6   : > { %4354 = vpow2.f32 %v1497_v16  ;;  %1626 = vadd.xlane.f32.xlu0 %v1625_v21  ;;  %1266 = vmax.xlane.f32.xlu2 %v1265_v22  ;;  %v1280_v16 = vsel %vm1234_vm2, %v5095_v1, -inf  ;;  %v868_v21 = vmax.f32 %v751_v11, 0.0 }
 0x1b9   : > { %v1249_v25 = vpop.xlane.xlu2 %1248 }
 0x1ba   : > { %v1431_v28 = vsub.f32 %v4994_v27, %v1249_v25  ;;  %v743_v27 = vadd.f32 %v4939_v15, %v742_v34  ;;  %v1283_v25 = vsel %vm1234_vm2, %v5108_v17, -inf }
 0x1bc   : > { %v5062_v29 = vpop.eup %4354  ;;  %v1499_v30 = vmul.f32 1.442695, %v1431_v28  ;;  %v865_v38 = vmax.f32 %v743_v27, 0.0  ;;  %v4281_v27 = vld [vmem:[%s4907_s25 + $0xa0] sm:$0xff] }
 0x1bd   : > { %v1628_v31 = vsel %vm1234_vm2, %v5062_v29, 0.0 }
 0x1be   : > { %4356 = vpow2.f32 %v1499_v30  ;;  %1629 = vadd.xlane.f32.xlu1 %v1628_v31  ;;  %1269 = vmax.xlane.f32.xlu0 %v1268_v33  ;;  %v916_v41 = vpack.c.bf16 %v865_v38, %v864_v35  ;;  %v5122_v30 = vpop.f32.mrf.mxu1  ;;  %v4280_v31 = vld [vmem:[%s4907_s25 + $0x98] sm:$0xff]  ;;  %v4282_v38 = vld [vmem:[%s4907_s25 + $0xa8] sm:$0xff] }
 0x1bf   : > { %v1286_v33 = vsel %vm1234_vm2, %v5122_v30, -inf  ;;  %4111 = vmatmul.msk.bf16.gmra.mxu0 %vm574_vm0, %v4280_v31 }
 0x1c0   : > { %4152 = vmatmul.msk.bf16.gmra.mxu1 %vm968_vm1, %v916_v41 }
 0x1c1   : > { %v1252_v37 = vpop.xlane.xlu2 %1251 }
 0x1c2   : > { %v1432_v40 = vsub.f32 %v5001_v32, %v1252_v37  ;;  %v4299_v37 = vld [vmem:[%s7039_s4] sm:$0xff] }
 0x1c3   : > { %2082 = vmatpush.bf16.msra.mxu2 %v4299_v37 }
 0x1c4   : > { %v5072_v42 = vpop.eup %4356  ;;  %v1501_v44 = vmul.f32 1.442695, %v1432_v40 }
 0x1c5   : > { %v1631_v46 = vsel %vm1234_vm2, %v5072_v42, 0.0 }
 0x1c6   : > { %4358 = vpow2.f32 %v1501_v44  ;;  %1632 = vadd.xlane.f32.xlu1 %v1631_v46  ;;  %1272 = vmax.xlane.f32.xlu0 %v1271_v47  ;;  %v5128_v34 = vpop.f32.mrf.mxu1 }
 0x1c7   : > { %v1289_v35 = vsel %vm1234_vm2, %v5128_v34, -inf }
 0x1c9   : > { %v1255_v50 = vpop.xlane.xlu0 %1254 }
 0x1ca   : > { %v1433_v32 = vsub.f32 %v5007_v39, %v1255_v50  ;;  %v748_v39 = vadd.f32 %v4939_v15, %v747_v58 }
 0x1cc   : > { %v5085_v53 = vpop.eup %4358  ;;  %v1503_v54 = vmul.f32 1.442695, %v1433_v32  ;;  %v867_v61 = vmax.f32 %v748_v39, 0.0  ;;  %v4283_v32 = vld [vmem:[%s4907_s25 + $0xb0] sm:$0xff] }
 0x1cd   : > { %v1634_v56 = vsel %vm1234_vm2, %v5085_v53, 0.0 }
 0x1ce   : > { %4360 = vpow2.f32 %v1503_v54  ;;  %1635 = vadd.xlane.f32.xlu2 %v1634_v56  ;;  %1275 = vmax.xlane.f32.xlu1 %v1274_v57  ;;  %v917_v63 = vpack.c.bf16 %v867_v61, %v866_v59  ;;  %v5142_v54 = vpop.f32.mrf.mxu1 }
 0x1cf   : > { %4112 = vmatmul.msk.bf16.gmra.mxu0 %vm574_vm0, %v4281_v27  ;;  %v1292_v27 = vsel %vm1234_vm2, %v5142_v54, -inf }
 0x1d0   : > { %4153 = vmatmul.msk.bf16.gmra.mxu1 %vm968_vm1, %v917_v63 }
 0x1d1   : > { %v1258_v60 = vpop.xlane.xlu1 %1257 }
 0x1d2   : > { %v1434_v62 = vsub.f32 %v5014_v43, %v1258_v60 }
 0x1d4   : > { %v5093_v0 = vpop.eup %4360  ;;  %v1505_v2 = vmul.f32 1.442695, %v1434_v62 }
 0x1d5   : > { %v1637_v5 = vsel %vm1234_vm2, %v5093_v0, 0.0 }
 0x1d6   : > { %4362 = vpow2.f32 %v1505_v2  ;;  %1638 = vadd.xlane.f32.xlu2 %v1637_v5  ;;  %1278 = vmax.xlane.f32.xlu1 %v1277_v6  ;;  %v5156_v8 = vpop.f32.mrf.mxu1 }
 0x1d9   : > { %v1261_v43 = vpop.xlane.xlu1 %1260 }
 0x1da   : > { %v1435_v9 = vsub.f32 %v5018_v45, %v1261_v43  ;;  %v752_v45 = vpop.f32.mrf.mxu0 }
 0x1db   : > { %v753_v22 = vadd.f32 %v4939_v15, %v752_v45 }
 0x1dc   : > { %v5106_v13 = vpop.eup %4362  ;;  %v1507_v14 = vmul.f32 1.442695, %v1435_v9 }
 0x1dd   : > { %v1640_v18 = vsel %vm1234_vm2, %v5106_v13, 0.0  ;;  %v869_v24 = vmax.f32 %v753_v22, 0.0 }
 0x1de   : > { %4364 = vpow2.f32 %v1507_v14  ;;  %1641 = vadd.xlane.f32.xlu0 %v1640_v18  ;;  %1281 = vmax.xlane.f32.xlu2 %v1280_v16  ;;  %v4284_v18 = vld [vmem:[%s4907_s25 + $0xb8] sm:$0xff] }
 0x1df   : > { %v918_v26 = vpack.c.bf16 %v869_v24, %v868_v21  ;;  %4113 = vmatmul.msk.bf16.gmra.mxu0 %vm574_vm0, %v4282_v38 }
 0x1e1   : > { %4154 = vmatmul.msk.bf16.gmra.mxu1 %vm968_vm1, %v918_v26 }
 0x1e2   : > { %v755_v41 = vpop.f32.mrf.mxu0 }
 0x1e3   : > { %v756_v49 = vadd.f32 %v4939_v15, %v755_v41 }
 0x1e4   : > { %v5117_v28 = vpop.eup %4364 }
 0x1e5   : > { %v1643_v20 = vsel %vm1234_vm2, %v5117_v28, 0.0  ;;  %v870_v60 = vmax.f32 %v756_v49, 0.0  ;;  %v1295_v49 = vsel %vm1234_vm2, %v5156_v8, -inf }
 0x1e6   : > { %1644 = vadd.xlane.f32.xlu0 %v1643_v20  ;;  %1284 = vmax.xlane.f32.xlu2 %v1283_v25 }
 0x1ea   : > { %v757_v56 = vpop.f32.mrf.mxu0 }
 0x1ee   : > { %1287 = vmax.xlane.f32.xlu0 %v1286_v33  ;;  %v5169_v33 = vpop.f32.mrf.mxu1 }
 0x1ef   : > { %4114 = vmatmul.msk.bf16.gmra.mxu0 %vm574_vm0, %v4283_v32 }
 0x1f2   : > { %v760_v45 = vpop.f32.mrf.mxu0 }
 0x1f6   : > { %1290 = vmax.xlane.f32.xlu0 %v1289_v35 }
 0x1ff   : > { %4115 = vmatmul.msk.bf16.gmra.mxu0 %vm574_vm0, %v4284_v18 }
 0x219   : > { %v1621_v40 = vpop.xlane.xlu2 %1620 }
 0x21a   : > { %4366 = vrcp.f32 %v1621_v40 }
 0x220   : > { %v4367_v50 = vpop.eup %4366 }
 0x221   : > { %v1624_v44 = vpop.xlane.xlu0 %1623  ;;  %v1264_v46 = vpop.xlane.xlu2 %1263  ;;  %v1875_v59 = vmul.f32 %v4367_v50, %v5035_v4 }
 0x222   : > { %4368 = vrcp.f32 %v1624_v44  ;;  %v1436_v47 = vsub.f32 %v5025_v55, %v1264_v46  ;;  %v758_v55 = vadd.f32 %v4939_v15, %v757_v56  ;;  %v4285_v56 = vld [vmem:[%s4907_s25 + $0xc0] sm:$0xff] }
 0x223   : > { %4116 = vmatmul.msk.bf16.gmra.mxu0 %vm574_vm0, %v4285_v56 }
 0x224   : > { %v1509_v48 = vmul.f32 1.442695, %v1436_v47  ;;  %v871_v63 = vmax.f32 %v758_v55, 0.0 }
 0x226   : > { %4370 = vpow2.f32 %v1509_v48  ;;  %v919_v7 = vpack.c.bf16 %v871_v63, %v870_v60 }
 0x228   : > { %v4369_v52 = vpop.eup %4368  ;;  %4155 = vmatmul.msk.bf16.gmra.mxu1 %vm968_vm1, %v919_v7 }
 0x229   : > { %v1627_v57 = vpop.xlane.xlu0 %1626  ;;  %v1267_v58 = vpop.xlane.xlu2 %1266  ;;  %v1876_v39 = vmul.f32 %v4369_v52, %v5041_v10 }
 0x22a   : > { %v1437_v61 = vsub.f32 %v5032_v3, %v1267_v58  ;;  %v5185_v52 = vpop.f32.mrf.mxu1 }
 0x22b   : > { %v1939_v62 = vpack.c.bf16 %v1876_v39, %v1875_v59 }
 0x22c   : > { %v5149_v2 = vpop.eup %4370  ;;  %v1511_v5 = vmul.f32 1.442695, %v1437_v61 }
 0x22d   : > { %4176 = vmatmul.msk.bf16.vlgmr.msra.gmra.mxu2 %vm1234_vm2, %v1939_v62  ;;  %v1646_v6 = vsel %vm1234_vm2, %v5149_v2, 0.0 }
 0x22e   : > { %4372 = vpow2.f32 %v1511_v5  ;;  %1647 = vadd.xlane.f32.xlu1 %v1646_v6  ;;  %v1298_v6 = vsel %vm1234_vm2, %v5169_v33, -inf }
 0x22f   : > { %4374 = vrcp.f32 %v1627_v57 }
 0x231   : > { %v1630_v4 = vpop.xlane.xlu1 %1629  ;;  %v1270_v10 = vpop.xlane.xlu0 %1269 }
 0x232   : > { %4376 = vrcp.f32 %v1630_v4  ;;  %v1438_v3 = vsub.f32 %v5043_v12, %v1270_v10 }
 0x234   : > { %v5158_v43 = vpop.eup %4372  ;;  %v1513_v9 = vmul.f32 1.442695, %v1438_v3 }
 0x235   : > { %v1649_v11 = vsel %vm1234_vm2, %v5158_v43, 0.0  ;;  %v4375_v14 = vpop.eup %4374 }
 0x236   : > { %4378 = vpow2.f32 %v1513_v9  ;;  %1650 = vadd.xlane.f32.xlu1 %v1649_v11  ;;  %v1877_v12 = vmul.f32 %v4375_v14, %v5050_v19  ;;  %v761_v19 = vadd.f32 %v4939_v15, %v760_v45  ;;  %v1301_v45 = vsel %vm1234_vm2, %v5185_v52, -inf }
 0x238   : > { %v4377_v16 = vpop.eup %4376  ;;  %v872_v38 = vmax.f32 %v761_v19, 0.0 }
 0x239   : > { %v1633_v21 = vpop.xlane.xlu1 %1632  ;;  %v1273_v22 = vpop.xlane.xlu0 %1272  ;;  %v1878_v24 = vmul.f32 %v4377_v16, %v5062_v29 }
 0x23a   : > { %v1439_v25 = vsub.f32 %v5056_v23, %v1273_v22  ;;  %v762_v23 = vpop.f32.mrf.mxu0 }
 0x23b   : > { %v1940_v26 = vpack.c.bf16 %v1878_v24, %v1877_v12  ;;  %v763_v40 = vadd.f32 %v4939_v15, %v762_v23 }
 0x23c   : > { %v5167_v20 = vpop.eup %4378  ;;  %v1515_v31 = vmul.f32 1.442695, %v1439_v25 }
 0x23d   : > { %4177 = vmatmul.msk.bf16.gmra.mxu2 %vm1234_vm2, %v1940_v26  ;;  %v1652_v35 = vsel %vm1234_vm2, %v5167_v20, 0.0  ;;  %v873_v44 = vmax.f32 %v763_v40, 0.0 }
 0x23e   : > { %4380 = vpow2.f32 %v1515_v31  ;;  %1653 = vadd.xlane.f32.xlu2 %v1652_v35  ;;  %1293 = vmax.xlane.f32.xlu1 %v1292_v27 }
 0x23f   : > { %4382 = vrcp.f32 %v1633_v21  ;;  %v920_v50 = vpack.c.bf16 %v873_v44, %v872_v38 }
 0x241   : > { %v1636_v29 = vpop.xlane.xlu2 %1635  ;;  %v1276_v37 = vpop.xlane.xlu1 %1275  ;;  %4156 = vmatmul.msk.bf16.gmra.mxu1 %vm968_vm1, %v920_v50 }
 0x242   : > { %4384 = vrcp.f32 %v1636_v29  ;;  %v1440_v41 = vsub.f32 %v5069_v36, %v1276_v37  ;;  %v765_v57 = vpop.f32.mrf.mxu0 }
 0x243   : > { %v766_v7 = vadd.f32 %v4939_v15, %v765_v57 }
 0x244   : > { %v5179_v46 = vpop.eup %4380  ;;  %v1517_v47 = vmul.f32 1.442695, %v1440_v41 }
 0x245   : > { %v1655_v48 = vsel %vm1234_vm2, %v5179_v46, 0.0  ;;  %v4383_v32 = vpop.eup %4382  ;;  %v874_v10 = vmax.f32 %v766_v7, 0.0 }
 0x246   : > { %4386 = vpow2.f32 %v1517_v47  ;;  %1656 = vadd.xlane.f32.xlu2 %v1655_v48  ;;  %1296 = vmax.xlane.f32.xlu1 %v1295_v49  ;;  %v1879_v39 = vmul.f32 %v4383_v32, %v5072_v42  ;;  %v5201_v42 = vpop.f32.mrf.mxu1 }
 0x247   : > { %v1304_v38 = vsel %vm1234_vm2, %v5201_v42, -inf }
 0x248   : > { %v4385_v36 = vpop.eup %4384 }
 0x249   : > { %v1639_v58 = vpop.xlane.xlu2 %1638  ;;  %v1279_v59 = vpop.xlane.xlu1 %1278  ;;  %v1880_v60 = vmul.f32 %v4385_v36, %v5085_v53 }
 0x24a   : > { %v1441_v55 = vsub.f32 %v5080_v51, %v1279_v59  ;;  %v767_v51 = vpop.f32.mrf.mxu0 }
 0x24b   : > { %v1941_v61 = vpack.c.bf16 %v1880_v60, %v1879_v39  ;;  %v768_v3 = vadd.f32 %v4939_v15, %v767_v51 }
 0x24c   : > { %v5193_v62 = vpop.eup %4386  ;;  %v1519_v63 = vmul.f32 1.442695, %v1441_v55 }
 0x24d   : > { %4178 = vmatmul.msk.bf16.gmra.mxu2 %vm1234_vm2, %v1941_v61  ;;  %v1658_v5 = vsel %vm1234_vm2, %v5193_v62, 0.0  ;;  %v875_v11 = vmax.f32 %v768_v3, 0.0 }
 0x24e   : > { %4388 = vpow2.f32 %v1519_v63  ;;  %1659 = vadd.xlane.f32.xlu0 %v1658_v5  ;;  %1299 = vmax.xlane.f32.xlu2 %v1298_v6  ;;  %v5212_v24 = vpop.f32.mrf.mxu1 }
 0x24f   : > { %4390 = vrcp.f32 %v1639_v58  ;;  %v921_v21 = vpack.c.bf16 %v875_v11, %v874_v10  ;;  %v1307_v48 = vsel %vm1234_vm2, %v5212_v24, -inf }
 0x251   : > { %v1642_v53 = vpop.xlane.xlu0 %1641  ;;  %v1282_v4 = vpop.xlane.xlu2 %1281  ;;  %4157 = vmatmul.msk.bf16.gmra.mxu1 %vm968_vm1, %v921_v21 }
 0x252   : > { %4392 = vrcp.f32 %v1642_v53  ;;  %v1442_v9 = vsub.f32 %v5095_v1, %v1282_v4  ;;  %v770_v1 = vpop.f32.mrf.mxu0 }
 0x253   : > { %v771_v40 = vadd.f32 %v4939_v15, %v770_v1 }
 0x254   : > { %v5205_v14 = vpop.eup %4388  ;;  %v1521_v18 = vmul.f32 1.442695, %v1442_v9 }
 0x255   : > { %v1661_v16 = vsel %vm1234_vm2, %v5205_v14, 0.0  ;;  %v4391_v22 = vpop.eup %4390 }
 0x256   : > { %4394 = vpow2.f32 %v1521_v18  ;;  %1662 = vadd.xlane.f32.xlu0 %v1661_v16  ;;  %1302 = vmax.xlane.f32.xlu2 %v1301_v45  ;;  %v1881_v31 = vmul.f32 %v4391_v22, %v5093_v0  ;;  %v5229_v47 = vpop.f32.mrf.mxu1  ;;  %v4286_v18 = vld [vmem:[%s4907_s25 + $0xc8] sm:$0xff] }
 0x257   : > { %v1310_v59 = vsel %vm1234_vm2, %v5229_v47, -inf  ;;  %4117 = vmatmul.msk.bf16.gmra.mxu0 %vm574_vm0, %v4286_v18 }
 0x258   : > { %v4393_v12 = vpop.eup %4392 }
 0x259   : > { %v5214_v25 = vpop.xlane.xlu0 %1644  ;;  %v1285_v26 = vpop.xlane.xlu2 %1284  ;;  %v1882_v35 = vmul.f32 %v4393_v12, %v5106_v13 }
 0x25a   : > { %v1443_v27 = vsub.f32 %v5108_v17, %v1285_v26  ;;  %v772_v0 = vpop.f32.mrf.mxu0  ;;  %v876_v17 = vmax.f32 %v771_v40, 0.0 }
 0x25b   : > { %v1942_v19 = vpack.c.bf16 %v1882_v35, %v1881_v31  ;;  %v773_v41 = vadd.f32 %v4939_v15, %v772_v0 }
 0x25c   : > { %v5219_v23 = vpop.eup %4394  ;;  %v1523_v29 = vmul.f32 1.442695, %v1443_v27  ;;  %v4287_v27 = vld [vmem:[%s4907_s25 + $0xd0] sm:$0xff] }
 0x25d   : > { %4179 = vmatmul.msk.bf16.gmra.mxu2 %vm1234_vm2, %v1942_v19  ;;  %v1664_v37 = vsel %vm1234_vm2, %v5219_v23, 0.0  ;;  %v877_v49 = vmax.f32 %v773_v41, 0.0 }
 0x25e   : > { %4396 = vpow2.f32 %v1523_v29  ;;  %1665 = vadd.xlane.f32.xlu1 %v1664_v37  ;;  %1305 = vmax.xlane.f32.xlu0 %v1304_v38  ;;  %v5243_v55 = vpop.f32.mrf.mxu1 }
 0x25f   : > { %v922_v36 = vpack.c.bf16 %v877_v49, %v876_v17  ;;  %v1313_v7 = vsel %vm1234_vm2, %v5243_v55, -inf }
 0x261   : > { %v1288_v13 = vpop.xlane.xlu0 %1287  ;;  %4158 = vmatmul.msk.bf16.gmra.mxu1 %vm968_vm1, %v922_v36 }
 0x262   : > { %v1444_v44 = vsub.f32 %v5122_v30, %v1288_v13  ;;  %v775_v57 = vpop.f32.mrf.mxu0 }
 0x263   : > { %v776_v63 = vadd.f32 %v4939_v15, %v775_v57 }
 0x264   : > { %v5233_v50 = vpop.eup %4396  ;;  %v1525_v32 = vmul.f32 1.442695, %v1444_v44  ;;  %v4288_v44 = vld [vmem:[%s4907_s25 + $0xd8] sm:$0xff] }
 0x265   : > { %v1667_v56 = vsel %vm1234_vm2, %v5233_v50, 0.0  ;;  %v878_v6 = vmax.f32 %v776_v63, 0.0 }
 0x266   : > { %4398 = vpow2.f32 %v1525_v32  ;;  %1668 = vadd.xlane.f32.xlu1 %v1667_v56  ;;  %1308 = vmax.xlane.f32.xlu0 %v1307_v48  ;;  %v5255_v3 = vpop.f32.mrf.mxu1 }
 0x267   : > { %v1316_v9 = vsel %vm1234_vm2, %v5255_v3, -inf  ;;  %4118 = vmatmul.msk.bf16.gmra.mxu0 %vm574_vm0, %v4287_v27 }
 0x269   : > { %v1291_v30 = vpop.xlane.xlu0 %1290 }
 0x26a   : > { %v1445_v58 = vsub.f32 %v5128_v34, %v1291_v30  ;;  %v777_v5 = vpop.f32.mrf.mxu0 }
 0x26b   : > { %v778_v34 = vadd.f32 %v4939_v15, %v777_v5 }
 0x26c   : > { %v5241_v39 = vpop.eup %4398  ;;  %v1527_v60 = vmul.f32 1.442695, %v1445_v58 }
 0x26d   : > { %v1670_v61 = vsel %vm1234_vm2, %v5241_v39, 0.0  ;;  %v879_v51 = vmax.f32 %v778_v34, 0.0 }
 0x26e   : > { %4400 = vpow2.f32 %v1527_v60  ;;  %1671 = vadd.xlane.f32.xlu2 %v1670_v61  ;;  %1311 = vmax.xlane.f32.xlu1 %v1310_v59  ;;  %v5260_v11 = vpop.f32.mrf.mxu1 }
 0x26f   : > { %v923_v10 = vpack.c.bf16 %v879_v51, %v878_v6  ;;  %v1319_v16 = vsel %vm1234_vm2, %v5260_v11, -inf  ;;  %4402 = vrcp.f32 %v5214_v25 }
 0x271   : > { %4159 = vmatmul.msk.bf16.gmra.mxu1 %vm968_vm1, %v923_v10 }
 0x272   : > { %v780_v45 = vpop.f32.mrf.mxu0 }
 0x273   : > { %v781_v21 = vadd.f32 %v4939_v15, %v780_v45 }
 0x274   : > { %v5251_v53 = vpop.eup %4400 }
 0x275   : > { %v1673_v4 = vsel %vm1234_vm2, %v5251_v53, 0.0  ;;  %v880_v12 = vmax.f32 %v781_v21, 0.0  ;;  %v4403_v17 = vpop.eup %4402 }
 0x276   : > { %1674 = vadd.xlane.f32.xlu2 %v1673_v4  ;;  %1314 = vmax.xlane.f32.xlu1 %v1313_v7  ;;  %v1883_v32 = vmul.f32 %v4403_v17, %v5117_v28  ;;  %v5283_v63 = vpop.f32.mrf.mxu1 }
 0x277   : > { %4119 = vmatmul.msk.bf16.gmra.mxu0 %vm574_vm0, %v4288_v44 }
 0x27a   : > { %v782_v22 = vpop.f32.mrf.mxu0 }
 0x27b   : > { %v783_v1 = vadd.f32 %v4939_v15, %v782_v22 }
 0x27d   : > { %v881_v26 = vmax.f32 %v783_v1, 0.0 }
 0x27e   : > { %1317 = vmax.xlane.f32.xlu2 %v1316_v9 }
 0x27f   : > { %v924_v31 = vpack.c.bf16 %v881_v26, %v880_v12 }
 0x281   : > { %4160 = vmatmul.msk.bf16.gmra.mxu1 %vm968_vm1, %v924_v31 }
 0x282   : > { %v785_v35 = vpop.f32.mrf.mxu0 }
 0x283   : > { %v786_v19 = vadd.f32 %v4939_v15, %v785_v35 }
 0x285   : > { %v882_v37 = vmax.f32 %v786_v19, 0.0 }
 0x286   : > { %1320 = vmax.xlane.f32.xlu2 %v1319_v16 }
 0x28a   : > { %v787_v29 = vpop.f32.mrf.mxu0 }
 0x28b   : > { %v788_v38 = vadd.f32 %v4939_v15, %v787_v29 }
 0x28d   : > { %v883_v0 = vmax.f32 %v788_v38, 0.0 }
 0x28f   : > { %v925_v13 = vpack.c.bf16 %v883_v0, %v882_v37 }
 0x291   : > { %4161 = vmatmul.msk.bf16.gmra.mxu1 %vm968_vm1, %v925_v13  ;;  %v4289_v13 = vld [vmem:[%s4907_s25 + $0xe0] sm:$0xff] }
 0x292   : > { %v790_v41 = vpop.f32.mrf.mxu0  ;;  %4120 = vmatmul.msk.bf16.gmra.mxu0 %vm574_vm0, %v4289_v13 }
 0x293   : > { %v791_v25 = vadd.f32 %v4939_v15, %v790_v41 }
 0x295   : > { %v884_v30 = vmax.f32 %v791_v25, 0.0 }
 0x29a   : > { %v792_v57 = vpop.f32.mrf.mxu0 }
 0x29b   : > { %v793_v58 = vadd.f32 %v4939_v15, %v792_v57 }
 0x29d   : > { %v885_v61 = vmax.f32 %v793_v58, 0.0 }
 0x2a1   : > { %v1648_v40 = vpop.xlane.xlu1 %1647 }
 0x2a2   : > { %4404 = vrcp.f32 %v1648_v40  ;;  %v795_v34 = vpop.f32.mrf.mxu0 }
 0x2a5   : > { %v5297_v22 = vpop.f32.mrf.mxu1 }
 0x2a8   : > { %v4405_v48 = vpop.eup %4404 }
 0x2a9   : > { %v1651_v49 = vpop.xlane.xlu1 %1650  ;;  %v1884_v56 = vmul.f32 %v4405_v48, %v5149_v2  ;;  %v926_v2 = vpack.c.bf16 %v885_v61, %v884_v30 }
 0x2aa   : > { %4406 = vrcp.f32 %v1651_v49 }
 0x2ab   : > { %v1943_v36 = vpack.c.bf16 %v1884_v56, %v1883_v32  ;;  %4162 = vmatmul.msk.bf16.gmra.mxu1 %vm968_vm1, %v926_v2 }
 0x2ad   : > { %4180 = vmatmul.msk.bf16.gmra.mxu2 %vm1234_vm2, %v1943_v36  ;;  %v5309_v40 = vpop.f32.mrf.mxu1 }
 0x2b0   : > { %v4407_v6 = vpop.eup %4406  ;;  %v5328_v2 = vpop.f32.mrf.mxu2 }
 0x2b1   : > { %v1654_v59 = vpop.xlane.xlu2 %1653  ;;  %v1294_v60 = vpop.xlane.xlu1 %1293  ;;  %v1885_v15 = vmul.f32 %v4407_v6, %v5158_v43 }
 0x2b2   : > { %4408 = vrcp.f32 %v1654_v59  ;;  %v1446_v28 = vsub.f32 %v5142_v54, %v1294_v60  ;;  %v5292_v54 = vld [vmem:[%s7038_s3] ss:$0 sm:$0xff] }
 0x2b3   : > { %v796_v16 = vadd.f32 %v5292_v54, %v795_v34 }
 0x2b4   : > { %v1529_v5 = vmul.f32 1.442695, %v1446_v28 }
 0x2b6   : > { %4410 = vpow2.f32 %v1529_v5  ;;  %v1325_v5 = vsel %vm1234_vm2, %v5297_v22, -inf }
 0x2b8   : > { %v4409_v7 = vpop.eup %4408 }
 0x2b9   : > { %v1657_v51 = vpop.xlane.xlu2 %1656  ;;  %v1297_v4 = vpop.xlane.xlu1 %1296  ;;  %v1886_v10 = vmul.f32 %v4409_v7, %v5167_v20  ;;  %v886_v20 = vmax.f32 %v796_v16, 0.0 }
 0x2ba   : > { %v1447_v9 = vsub.f32 %v5156_v8, %v1297_v4  ;;  %v797_v8 = vpop.f32.mrf.mxu0 }
 0x2bb   : > { %v1944_v18 = vpack.c.bf16 %v1886_v10, %v1885_v15  ;;  %v798_v12 = vadd.f32 %v5292_v54, %v797_v8  ;;  %v4290_v15 = vld [vmem:[%s4907_s25 + $0xe8] sm:$0xff] }
 0x2bc   : > { %v5295_v45 = vpop.eup %4410  ;;  %v1531_v21 = vmul.f32 1.442695, %v1447_v9  ;;  %4121 = vmatmul.msk.bf16.gmra.mxu0 %vm574_vm0, %v4290_v15 }
 0x2bd   : > { %4181 = vmatmul.msk.bf16.gmra.mxu2 %vm1234_vm2, %v1944_v18  ;;  %v1676_v43 = vsel %vm1234_vm2, %v5295_v45, 0.0  ;;  %v887_v31 = vmax.f32 %v798_v12, 0.0 }
 0x2be   : > { %4412 = vpow2.f32 %v1531_v21  ;;  %1677 = vadd.xlane.f32.xlu0 %v1676_v43 }
 0x2bf   : > { %4414 = vrcp.f32 %v1657_v51  ;;  %v927_v27 = vpack.c.bf16 %v887_v31, %v886_v20 }
 0x2c1   : > { %v1660_v1 = vpop.xlane.xlu0 %1659  ;;  %v1300_v26 = vpop.xlane.xlu2 %1299  ;;  %4163 = vmatmul.msk.bf16.gmra.mxu1 %vm968_vm1, %v927_v27 }
 0x2c2   : > { %4416 = vrcp.f32 %v1660_v1  ;;  %v1448_v35 = vsub.f32 %v5169_v33, %v1300_v26  ;;  %v800_v0 = vpop.f32.mrf.mxu0  ;;  %v5346_v1 = vpop.f32.mrf.mxu2 }
 0x2c3   : > { %v801_v56 = vadd.f32 %v5292_v54, %v800_v0 }
 0x2c4   : > { %v5304_v19 = vpop.eup %4412  ;;  %v1533_v29 = vmul.f32 1.442695, %v1448_v35 }
 0x2c5   : > { %v1679_v37 = vsel %vm1234_vm2, %v5304_v19, 0.0  ;;  %v4415_v38 = vpop.eup %4414  ;;  %v888_v30 = vmax.f32 %v801_v56, 0.0 }
 0x2c6   : > { %4418 = vpow2.f32 %v1533_v29  ;;  %1680 = vadd.xlane.f32.xlu0 %v1679_v37  ;;  %v1887_v33 = vmul.f32 %v4415_v38, %v5179_v46  ;;  %v1322_v46 = vsel %vm1234_vm2, %v5283_v63, -inf }
 0x2c8   : > { %v4417_v17 = vpop.eup %4416 }
 0x2c9   : > { %v1663_v41 = vpop.xlane.xlu0 %1662  ;;  %v1303_v44 = vpop.xlane.xlu2 %1302  ;;  %v1888_v48 = vmul.f32 %v4417_v17, %v5193_v62 }
 0x2ca   : > { %v1449_v49 = vsub.f32 %v5185_v52, %v1303_v44  ;;  %v5324_v62 = vpop.f32.mrf.mxu1  ;;  %v802_v52 = vpop.f32.mrf.mxu0 }
 0x2cb   : > { %v1945_v32 = vpack.c.bf16 %v1888_v48, %v1887_v33  ;;  %v803_v58 = vadd.f32 %v5292_v54, %v802_v52  ;;  %v5363_v17 = vpop.f32.mrf.mxu2 }
 0x2cc   : > { %v5317_v36 = vpop.eup %4418  ;;  %v1535_v25 = vmul.f32 1.442695, %v1449_v49  ;;  %v2245_v49 = vmul.f32 %v5346_v1, %v5346_v1 }
 0x2cd   : > { %4182 = vmatmul.msk.bf16.gmra.mxu2 %vm1234_vm2, %v1945_v32  ;;  %v1682_v57 = vsel %vm1234_vm2, %v5317_v36, 0.0  ;;  %v889_v61 = vmax.f32 %v803_v58, 0.0  ;;  %v2246_v58 = vmul.f32 %v5363_v17, %v5363_v17 }
 0x2ce   : > { %4420 = vpow2.f32 %v1535_v25  ;;  %1683 = vadd.xlane.f32.xlu1 %v1682_v57  ;;  %1323 = vmax.xlane.f32.xlu0 %v1322_v46 }
 0x2cf   : > { %4422 = vrcp.f32 %v1663_v41  ;;  %v928_v6 = vpack.c.bf16 %v889_v61, %v888_v30 }
 0x2d1   : > { %v1666_v59 = vpop.xlane.xlu1 %1665  ;;  %v1306_v60 = vpop.xlane.xlu0 %1305  ;;  %4164 = vmatmul.msk.bf16.gmra.mxu1 %vm968_vm1, %v928_v6  ;;  %v2314_v6 = vsel %vm968_vm1, %v2246_v58, 0.0 }
 0x2d2   : > { %4424 = vrcp.f32 %v1666_v59  ;;  %v1450_v28 = vsub.f32 %v5201_v42, %v1306_v60  ;;  %v5338_v10 = vpop.f32.mrf.mxu1  ;;  %v1331_v60 = vsel %vm1234_vm2, %v5324_v62, -inf }
 0x2d3   : > { %v1334_v46 = vsel %vm1234_vm2, %v5338_v10, -inf }
 0x2d4   : > { %v5332_v34 = vpop.eup %4420  ;;  %v1537_v7 = vmul.f32 1.442695, %v1450_v28 }
 0x2d5   : > { %v1685_v51 = vsel %vm1234_vm2, %v5332_v34, 0.0  ;;  %v4423_v4 = vpop.eup %4422 }
 0x2d6   : > { %4426 = vpow2.f32 %v1537_v7  ;;  %1686 = vadd.xlane.f32.xlu1 %v1685_v51  ;;  %1326 = vmax.xlane.f32.xlu0 %v1325_v5  ;;  %v1889_v16 = vmul.f32 %v4423_v4, %v5205_v14  ;;  %v1328_v14 = vsel %vm1234_vm2, %v5309_v40, -inf }
 0x2d8   : > { %v4425_v42 = vpop.eup %4424 }
 0x2d9   : > { %v1669_v9 = vpop.xlane.xlu1 %1668  ;;  %v1309_v18 = vpop.xlane.xlu0 %1308  ;;  %v1890_v21 = vmul.f32 %v4425_v42, %v5219_v23 }
 0x2da   : > { %v1451_v43 = vsub.f32 %v5212_v24, %v1309_v18  ;;  %v2244_v24 = vmul.f32 %v5328_v2, %v5328_v2  ;;  %v5356_v27 = vpop.f32.mrf.mxu1 }
 0x2db   : > { %v1946_v8 = vpack.c.bf16 %v1890_v21, %v1889_v16 }
 0x2dc   : > { %v5344_v20 = vpop.eup %4426  ;;  %v1539_v12 = vmul.f32 1.442695, %v1451_v43  ;;  %v2308_v0 = vsel %vm968_vm1, %v2244_v24, 0.0 }
 0x2dd   : > { %4183 = vmatmul.msk.bf16.gmra.mxu2 %vm1234_vm2, %v1946_v8  ;;  %v1688_v26 = vsel %vm1234_vm2, %v5344_v20, 0.0 }
 0x2de   : > { %4428 = vpow2.f32 %v1539_v12  ;;  %1689 = vadd.xlane.f32.xlu2 %v1688_v26  ;;  %1329 = vmax.xlane.f32.xlu1 %v1328_v14  ;;  %v1337_v12 = vsel %vm1234_vm2, %v5356_v27, -inf }
 0x2df   : > { %4430 = vrcp.f32 %v1669_v9 }
 0x2e1   : > { %v1672_v23 = vpop.xlane.xlu2 %1671  ;;  %v1312_v31 = vpop.xlane.xlu1 %1311 }
 0x2e2   : > { %4432 = vrcp.f32 %v1672_v23  ;;  %v1452_v35 = vsub.f32 %v5229_v47, %v1312_v31  ;;  %v5376_v52 = vpop.f32.mrf.mxu1 }
 0x2e3   : > { %v1340_v18 = vsel %vm1234_vm2, %v5376_v52, -inf }
 0x2e4   : > { %v5358_v29 = vpop.eup %4428  ;;  %v1541_v37 = vmul.f32 1.442695, %v1452_v35 }
 0x2e5   : > { %v1691_v38 = vsel %vm1234_vm2, %v5358_v29, 0.0  ;;  %v4431_v13 = vpop.eup %4430 }
 0x2e6   : > { %4434 = vpow2.f32 %v1541_v37  ;;  %1692 = vadd.xlane.f32.xlu2 %v1691_v38  ;;  %2309 = vadd.xlane.f32.xlu1 %v2308_v0  ;;  %v1891_v33 = vmul.f32 %v4431_v13, %v5233_v50  ;;  %v2311_v50 = vsel %vm968_vm1, %v2245_v49, 0.0 }
 0x2e8   : > { %v4433_v41 = vpop.eup %4432 }
 0x2e9   : > { %v5365_v44 = vpop.xlane.xlu2 %1674  ;;  %v1315_v47 = vpop.xlane.xlu1 %1314  ;;  %v1892_v48 = vmul.f32 %v4433_v41, %v5241_v39 }
 0x2ea   : > { %v1453_v32 = vsub.f32 %v5243_v55, %v1315_v47  ;;  %v5382_v55 = vpop.f32.mrf.mxu2  ;;  %v5394_v7 = vpop.f32.mrf.mxu1 }
 0x2eb   : > { %v1947_v56 = vpack.c.bf16 %v1892_v48, %v1891_v33 }
 0x2ec   : > { %v5372_v25 = vpop.eup %4434  ;;  %v1543_v57 = vmul.f32 1.442695, %v1453_v32 }
 0x2ed   : > { %4184 = vmatmul.msk.bf16.gmra.mxu2 %vm1234_vm2, %v1947_v56  ;;  %v1694_v39 = vsel %vm1234_vm2, %v5372_v25, 0.0 }
 0x2ee   : > { %4436 = vpow2.f32 %v1543_v57  ;;  %2312 = vadd.xlane.f32.xlu2 %v2311_v50  ;;  %1695 = vadd.xlane.f32.xlu0 %v1694_v39 }
 0x2ef   : > { %1335 = vmax.xlane.f32.xlu1 %v1334_v46 }
 0x2f1   : > { %v1318_v30 = vpop.xlane.xlu2 %1317 }
 0x2f2   : > { %v1454_v59 = vsub.f32 %v5255_v3, %v1318_v30  ;;  %v2247_v3 = vmul.f32 %v5382_v55, %v5382_v55  ;;  %v5399_v15 = vpop.f32.mrf.mxu2  ;;  %v5408_v43 = vpop.f32.mrf.mxu1 }
 0x2f3   : > { %v2248_v8 = vmul.f32 %v5399_v15, %v5399_v15  ;;  %v1346_v41 = vsel %vm1234_vm2, %v5408_v43, -inf }
 0x2f4   : > { %v5389_v61 = vpop.eup %4436  ;;  %v1545_v28 = vmul.f32 1.442695, %v1454_v59  ;;  %v2317_v16 = vsel %vm968_vm1, %v2247_v3, 0.0 }
 0x2f5   : > { %v1697_v5 = vsel %vm1234_vm2, %v5389_v61, 0.0  ;;  %v2320_v23 = vsel %vm968_vm1, %v2248_v8, 0.0 }
 0x2f6   : > { %4438 = vpow2.f32 %v1545_v28  ;;  %1698 = vadd.xlane.f32.xlu2 %v1697_v5  ;;  %1332 = vmax.xlane.f32.xlu0 %v1331_v60  ;;  %v4291_v28 = vld [vmem:[%s4907_s25 + $0xf0] sm:$0xff] }
 0x2f7   : > { %2315 = vadd.xlane.f32.xlu1 %v2314_v6  ;;  %4122 = vmatmul.msk.bf16.gmra.mxu0 %vm574_vm0, %v4291_v28 }
 0x2f9   : > { %v1321_v51 = vpop.xlane.xlu2 %1320 }
 0x2fa   : > { %v1455_v4 = vsub.f32 %v5260_v11, %v1321_v51  ;;  %v805_v11 = vpop.f32.mrf.mxu0  ;;  %v5416_v14 = vpop.f32.mrf.mxu2 }
 0x2fb   : > { %v806_v31 = vadd.f32 %v5292_v54, %v805_v11  ;;  %v2249_v35 = vmul.f32 %v5416_v14, %v5416_v14  ;;  %v5424_v38 = vpop.f32.mrf.mxu1 }
 0x2fc   : > { %v5401_v42 = vpop.eup %4438  ;;  %v1547_v9 = vmul.f32 1.442695, %v1455_v4 }
 0x2fd   : > { %v1700_v21 = vsel %vm1234_vm2, %v5401_v42, 0.0  ;;  %v890_v0 = vmax.f32 %v806_v31, 0.0  ;;  %v2323_v33 = vsel %vm968_vm1, %v2249_v35, 0.0 }
 0x2fe   : > { %4440 = vpow2.f32 %v1547_v9  ;;  %2318 = vadd.xlane.f32.xlu2 %v2317_v16  ;;  %1701 = vadd.xlane.f32.xlu0 %v1700_v21 }
 0x2ff   : > { %1341 = vmax.xlane.f32.xlu1 %v1340_v18  ;;  %4442 = vrcp.f32 %v5365_v44 }
 0x302   : > { %v807_v37 = vpop.f32.mrf.mxu0  ;;  %v5430_v49 = vpop.f32.mrf.mxu2 }
 0x303   : > { %v808_v13 = vadd.f32 %v5292_v54, %v807_v37  ;;  %v2250_v32 = vmul.f32 %v5430_v49, %v5430_v49  ;;  %v5435_v56 = vpop.f32.mrf.mxu1 }
 0x304   : > { %v5414_v26 = vpop.eup %4440  ;;  %v1352_v39 = vsel %vm1234_vm2, %v5435_v56, -inf }
 0x305   : > { %v1703_v24 = vsel %vm1234_vm2, %v5414_v26, 0.0  ;;  %v891_v47 = vmax.f32 %v808_v13, 0.0  ;;  %v2326_v57 = vsel %vm968_vm1, %v2250_v32, 0.0  ;;  %v4443_v44 = vpop.eup %4442 }
 0x306   : > { %1704 = vadd.xlane.f32.xlu2 %v1703_v24  ;;  %1338 = vmax.xlane.f32.xlu0 %v1337_v12  ;;  %v4292_v12 = vld [vmem:[%s4907_s25 + $0xf8] sm:$0xff]  ;;  %s3870_s25 = sshll.u32 %s5909_s18, 4  ;;  %s3871_s25 = int_to_ptr.vmem [resolvable:$true] %s3870_s25 }
 0x307   : > { %2321 = vadd.xlane.f32.xlu1 %v2320_v23  ;;  %v929_v48 = vpack.c.bf16 %v891_v47, %v890_v0  ;;  %4123 = vmatmul.msk.bf16.gmra.mxu0 %vm574_vm0, %v4292_v12 }
 0x309   : > { %4165 = vmatmul.msk.bf16.gmra.mxu1 %vm968_vm1, %v929_v48 }
 0x30a   : > { %v810_v46 = vpop.f32.mrf.mxu0  ;;  %v5449_v4 = vpop.f32.mrf.mxu2 }
 0x30b   : > { %v811_v50 = vadd.f32 %v5292_v54, %v810_v46  ;;  %v5441_v30 = vpop.f32.mrf.mxu1 }
 0x30d   : > { %v892_v59 = vmax.f32 %v811_v50, 0.0 }
 0x30e   : > { %2324 = vadd.xlane.f32.xlu2 %v2323_v33  ;;  %v1893_v33 = vmul.f32 %v4443_v44, %v5251_v53 }
 0x30f   : > { %1347 = vmax.xlane.f32.xlu1 %v1346_v41 }
 0x312   : > { %v812_v58 = vpop.f32.mrf.mxu0 }
 0x313   : > { %v813_v60 = vadd.f32 %v5292_v54, %v812_v58  ;;  %v5447_v51 = vpop.f32.mrf.mxu1 }
 0x314   : > { %v1358_v47 = vsel %vm1234_vm2, %v5447_v51, -inf }
 0x315   : > { %v893_v5 = vmax.f32 %v813_v60, 0.0 }
 0x317   : > { %2327 = vadd.xlane.f32.xlu1 %v2326_v57  ;;  %v930_v6 = vpack.c.bf16 %v893_v5, %v892_v59 }
 0x319   : > { %4166 = vmatmul.msk.bf16.gmra.mxu1 %vm968_vm1, %v930_v6 }
 0x31a   : > { %v815_v3 = vpop.f32.mrf.mxu0 }
 0x31b   : > { %v816_v9 = vadd.f32 %v5292_v54, %v815_v3  ;;  %v5456_v8 = vpop.f32.mrf.mxu1 }
 0x31d   : > { %v894_v16 = vmax.f32 %v816_v9, 0.0 }
 0x31f   : > { %1353 = vmax.xlane.f32.xlu1 %v1352_v39 }
 0x322   : > { %v817_v18 = vpop.f32.mrf.mxu0 }
 0x323   : > { %v818_v21 = vadd.f32 %v5292_v54, %v817_v18  ;;  %v5470_v32 = vpop.f32.mrf.mxu1 }
 0x325   : > { %v895_v31 = vmax.f32 %v818_v21, 0.0 }
 0x327   : > { %v931_v37 = vpack.c.bf16 %v895_v31, %v894_v16  ;;  %v1364_v16 = vsel %vm1234_vm2, %v5470_v32, -inf }
 0x329   : > { %4167 = vmatmul.msk.bf16.gmra.mxu1 %vm968_vm1, %v931_v37 }
 0x32a   : > { %v820_v5 = vpop.f32.mrf.mxu0 }
 0x32b   : > { %v5479_v60 = vpop.f32.mrf.mxu1 }
 0x330   : > { %v5454_v11 = vpop.f32.mrf.mxu2 }
 0x331   : > { %v2252_v24 = vmul.f32 %v5454_v11, %v5454_v11  ;;  %v1678_v23 = vpop.xlane.xlu0 %1677 }
 0x332   : > { %4444 = vrcp.f32 %v1678_v23 }
 0x333   : > { %v2332_v35 = vsel %vm968_vm1, %v2252_v24, 0.0  ;;  %v4303_v24 = vld [vmem:[%s7041_s6 + $0x18] sm:$0xff] }
 0x334   : > { %2333 = vadd.xlane.f32.xlu1 %v2332_v35  ;;  %3436 = vmatpush.bf16.msra.mxu3 %v4303_v24 }
 0x338   : > { %v4445_v0 = vpop.eup %4444  ;;  %v5464_v13 = vpop.f32.mrf.mxu2 }
 0x339   : > { %v1681_v41 = vpop.xlane.xlu0 %1680  ;;  %v1894_v48 = vmul.f32 %v4445_v0, %v5295_v45  ;;  %v821_v0 = vadd.f32 %v5292_v54, %v820_v5 }
 0x33a   : > { %4446 = vrcp.f32 %v1681_v41 }
 0x33b   : > { %v1948_v57 = vpack.c.bf16 %v1894_v48, %v1893_v33 }
 0x33c   : > { %1359 = vmax.xlane.f32.xlu1 %v1358_v47 }
 0x33d   : > { %4185 = vmatmul.msk.bf16.gmra.mxu2 %vm1234_vm2, %v1948_v57 }
 0x340   : > { %v5473_v46 = vpop.f32.mrf.mxu2  ;;  %v4447_v28 = vpop.eup %4446 }
 0x341   : > { %v2254_v50 = vmul.f32 %v5473_v46, %v5473_v46  ;;  %v1684_v39 = vpop.xlane.xlu1 %1683  ;;  %v1324_v58 = vpop.xlane.xlu0 %1323  ;;  %v1895_v21 = vmul.f32 %v4447_v28, %v5304_v19 }
 0x342   : > { %4448 = vrcp.f32 %v1684_v39  ;;  %v1456_v59 = vsub.f32 %v5283_v63, %v1324_v58  ;;  %v5496_v19 = vpop.f32.mrf.mxu1  ;;  %v4301_v58 = vld [vmem:[%s7041_s6 + $0x8] sm:$0xff] }
 0x343   : > { %v2338_v53 = vsel %vm968_vm1, %v2254_v50, 0.0  ;;  %v896_v50 = vmax.f32 %v821_v0, 0.0 }
 0x344   : > { %v1549_v45 = vmul.f32 1.442695, %v1456_v59  ;;  %2339 = vadd.xlane.f32.xlu1 %v2338_v53 }
 0x346   : > { %4450 = vpow2.f32 %v1549_v45 }
 0x348   : > { %v4449_v6 = vpop.eup %4448  ;;  %v5481_v3 = vpop.f32.mrf.mxu2 }
 0x349   : > { %v1687_v9 = vpop.xlane.xlu1 %1686  ;;  %v1327_v18 = vpop.xlane.xlu0 %1326  ;;  %v1896_v63 = vmul.f32 %v4449_v6, %v5317_v36 }
 0x34a   : > { %v1457_v12 = vsub.f32 %v5297_v22, %v1327_v18  ;;  %v4302_v22 = vld [vmem:[%s7041_s6 + $0x10] sm:$0xff]  ;;  %v822_v36 = vpop.f32.mrf.mxu0 }
 0x34b   : > { %v1949_v23 = vpack.c.bf16 %v1896_v63, %v1895_v21  ;;  %v823_v41 = vadd.f32 %v5292_v54, %v822_v36  ;;  %3437 = vmatpush.bf16.msra.mxu3 %v4302_v22  ;;  %v5524_v63 = vpop.f32.mrf.mxu1  ;;  %v2251_v22 = vmul.f32 %v5449_v4, %v5449_v4 }
 0x34c   : > { %v5491_v31 = vpop.eup %4450  ;;  %v1551_v35 = vmul.f32 1.442695, %v1457_v12  ;;  %1365 = vmax.xlane.f32.xlu1 %v1364_v16 }
 0x34d   : > { %4186 = vmatmul.msk.bf16.gmra.mxu2 %vm1234_vm2, %v1949_v23  ;;  %v1706_v37 = vsel %vm1234_vm2, %v5491_v31, 0.0  ;;  %v897_v39 = vmax.f32 %v823_v41, 0.0  ;;  %v1370_v23 = vsel %vm1234_vm2, %v5496_v19, -inf }
 0x34e   : > { %4452 = vpow2.f32 %v1551_v35  ;;  %1707 = vadd.xlane.f32.xlu0 %v1706_v37 }
 0x34f   : > { %4454 = vrcp.f32 %v1687_v9  ;;  %v932_v28 = vpack.c.bf16 %v897_v39, %v896_v50  ;;  %3438 = vmatpush.bf16.msra.mxu3 %v4301_v58  ;;  %v4300_v9 = vld [vmem:[%s7041_s6] sm:$0xff] }
 0x350   : > { %v5501_v44 = vpop.f32.mrf.mxu2 }
 0x351   : > { %v2256_v47 = vmul.f32 %v5501_v44, %v5501_v44  ;;  %v1690_v33 = vpop.xlane.xlu2 %1689  ;;  %v1330_v48 = vpop.xlane.xlu1 %1329  ;;  %4168 = vmatmul.msk.bf16.gmra.mxu1 %vm968_vm1, %v932_v28 }
 0x352   : > { %4456 = vrcp.f32 %v1690_v33  ;;  %v1458_v57 = vsub.f32 %v5309_v40, %v1330_v48  ;;  %v1343_v40 = vsel %vm1234_vm2, %v5394_v7, -inf  ;;  %v825_v18 = vpop.f32.mrf.mxu0 }
 0x353   : > { %v2344_v59 = vsel %vm968_vm1, %v2256_v47, 0.0  ;;  %3439 = vmatpush.bf16.msra.mxu3 %v4300_v9  ;;  %v2329_v47 = vsel %vm968_vm1, %v2251_v22, 0.0  ;;  %v826_v48 = vadd.f32 %v5292_v54, %v825_v18 }
 0x354   : > { %v5512_v53 = vpop.eup %4452  ;;  %v1553_v45 = vmul.f32 1.442695, %v1458_v57  ;;  %2345 = vadd.xlane.f32.xlu1 %v2344_v59 }
 0x355   : > { %v1709_v5 = vsel %vm1234_vm2, %v5512_v53, 0.0  ;;  %v4455_v6 = vpop.eup %4454 }
 0x356   : > { %4458 = vpow2.f32 %v1553_v45  ;;  %1710 = vadd.xlane.f32.xlu2 %v1709_v5  ;;  %1344 = vmax.xlane.f32.xlu0 %v1343_v40  ;;  %v1897_v35 = vmul.f32 %v4455_v6, %v5332_v34  ;;  %v5551_v5 = vpop.f32.mrf.mxu1  ;;  %v898_v40 = vmax.f32 %v826_v48, 0.0 }
 0x357   : > { %v1376_v48 = vsel %vm1234_vm2, %v5551_v5, -inf }
 0x358   : > { %v4457_v16 = vpop.eup %4456  ;;  %v5522_v21 = vpop.f32.mrf.mxu2 }
 0x359   : > { %v1693_v12 = vpop.xlane.xlu2 %1692  ;;  %v2310_v24 = vpop.xlane.xlu1 %2309  ;;  %v1898_v37 = vmul.f32 %v4457_v16, %v5344_v20 }
 0x35a   : > { %v5532_v36 = vmax.f32 %v2310_v24, 1e-24  ;;  %v827_v20 = vpop.f32.mrf.mxu0 }
 0x35b   : > { %v1950_v0 = vpack.c.bf16 %v1898_v37, %v1897_v35  ;;  %v828_v57 = vadd.f32 %v5292_v54, %v827_v20  ;;  %v1349_v35 = vsel %vm1234_vm2, %v5424_v38, -inf }
 0x35c   : > { %v5534_v41 = vpop.eup %4458  ;;  %4460 = vrsqrt.f32 %v5532_v36  ;;  %1371 = vmax.xlane.f32.xlu1 %v1370_v23  ;;  %vm2570_vm4 = vweird.f32 %v5532_v36 }
 0x35d   : > { %4187 = vmatmul.msk.bf16.gmra.mxu2 %vm1234_vm2, %v1950_v0  ;;  %v1712_v34 = vsel %vm1234_vm2, %v5534_v41, 0.0  ;;  %4462 = vrcp.f32 %v1693_v12  ;;  %v899_v6 = vmax.f32 %v828_v57, 0.0 }
 0x35e   : > { %2330 = vadd.xlane.f32.xlu2 %v2329_v47  ;;  %1713 = vadd.xlane.f32.xlu0 %v1712_v34 }
 0x35f   : > { %v933_v12 = vpack.c.bf16 %v899_v6, %v898_v40 }
 0x360   : > { %v5541_v33 = vpop.f32.mrf.mxu2 }
 0x361   : > { %v2258_v50 = vmul.f32 %v5541_v33, %v5541_v33  ;;  %v2313_v39 = vpop.xlane.xlu2 %2312  ;;  %v1696_v58 = vpop.xlane.xlu0 %1695  ;;  %4169 = vmatmul.msk.bf16.gmra.mxu1 %vm968_vm1, %v933_v12 }
 0x362   : > { %v5547_v59 = vpop.eup %4460  ;;  %v5549_v45 = vmax.f32 %v2313_v39, 1e-24  ;;  %4464 = vrcp.f32 %v1696_v58  ;;  %v1336_v28 = vpop.xlane.xlu1 %1335 }
 0x363   : > { %v2565_v9 = vmul.f32 %v5547_v59, %v5532_v36  ;;  %v1460_v18 = vsub.f32 %v5338_v10, %v1336_v28  ;;  %v2350_v16 = vsel %vm968_vm1, %v2258_v50, 0.0  ;;  %v4463_v37 = vpop.eup %4462  ;;  %vm2571_vm3 = vweird.f32 %v5547_v59 }
 0x364   : > { %4466 = vrsqrt.f32 %v5549_v45  ;;  %2351 = vadd.xlane.f32.xlu1 %v2350_v16  ;;  %v1899_v50 = vmul.f32 %v4463_v37, %v5358_v29  ;;  %vm5587_vm6 = vmor %vm2570_vm4, %vm2571_vm3  ;;  %vm2580_vm7 = vweird.f32 %v5549_v45 }
 0x365   : > { %v2566_v24 = vmul.f32 %v5547_v59, %v2565_v9  ;;  %v1557_v23 = vmul.f32 1.442695, %v1460_v18 }
 0x366   : > { %1350 = vmax.xlane.f32.xlu0 %v1349_v35 }
 0x367   : > { %v2567_v22 = vmul.f32 0.5, %v2566_v24  ;;  %4468 = vpow2.f32 %v1557_v23 }
 0x368   : > { %v4465_v0 = vpop.eup %4464  ;;  %v5562_v10 = vpop.f32.mrf.mxu2 }
 0x369   : > { %v1900_v47 = vmul.f32 %v4465_v0, %v5372_v25  ;;  %v1699_v34 = vpop.xlane.xlu2 %1698  ;;  %v1333_v20 = vpop.xlane.xlu0 %1332  ;;  %v2568_v28 = vsub.f32 1.5, %v2567_v22 }
 0x36a   : > { %v4467_v57 = vpop.eup %4466  ;;  %v1459_v39 = vsub.f32 %v5324_v62, %v1333_v20  ;;  %v2316_v58 = vpop.xlane.xlu1 %2315 }
 0x36b   : > { %v2575_v40 = vmul.f32 %v4467_v57, %v5549_v45  ;;  %v5570_v6 = vmax.f32 %v2316_v58, 1e-24  ;;  %v1951_v18 = vpack.c.bf16 %v1900_v47, %v1899_v50  ;;  %v5572_v25 = vpop.f32.mrf.mxu1  ;;  %v2569_v29 = vmul.f32 %v5547_v59, %v2568_v28 }
 0x36c   : > { %v1555_v9 = vmul.f32 1.442695, %v1459_v39  ;;  %1377 = vmax.xlane.f32.xlu1 %v1376_v48  ;;  %vm2581_vm5 = vweird.f32 %v4467_v57 }
 0x36d   : > { %v5574_v16 = vpop.eup %4468  ;;  %v2576_v12 = vmul.f32 %v4467_v57, %v2575_v40  ;;  %4470 = vrsqrt.f32 %v5570_v6  ;;  %4188 = vmatmul.msk.bf16.gmra.mxu2 %vm1234_vm2, %v1951_v18  ;;  %v2573_v58 = vsel %vm5587_vm6, %v5547_v59, %v2569_v29  ;;  %vm2582_vm8 = vmor %vm2580_vm7, %vm2581_vm5  ;;  %v1355_v59 = vsel %vm1234_vm2, %v5441_v30, -inf }
 0x36e   : > { %4472 = vpow2.f32 %v1555_v9  ;;  %v1718_v62 = vsel %vm1234_vm2, %v5574_v16, 0.0  ;;  %v3204_v29 = vmul.f32 %v2573_v58, %v5328_v2  ;;  %v2253_v2 = vmul.f32 %v5464_v13, %v5464_v13 }
 0x36f   : > { %v2577_v24 = vmul.f32 0.5, %v2576_v12  ;;  %1719 = vadd.xlane.f32.xlu0 %v1718_v62  ;;  %4474 = vrcp.f32 %v1699_v34  ;;  %vm2590_vm10 = vweird.f32 %v5570_v6 }
 0x370   : > { %v5582_v23 = vpop.f32.mrf.mxu2 }
 0x371   : > { %v2578_v35 = vsub.f32 1.5, %v2577_v24  ;;  %v2260_v37 = vmul.f32 %v5582_v23, %v5582_v23  ;;  %v2319_v22 = vpop.xlane.xlu2 %2318  ;;  %v1702_v0 = vpop.xlane.xlu0 %1701 }
 0x372   : > { %v5592_v20 = vmax.f32 %v2319_v22, 1e-24  ;;  %4476 = vrcp.f32 %v1702_v0  ;;  %v1342_v34 = vpop.xlane.xlu1 %1341 }
 0x373   : > { %v5594_v48 = vpop.eup %4470  ;;  %v2579_v36 = vmul.f32 %v4467_v57, %v2578_v35  ;;  %v1462_v50 = vsub.f32 %v5376_v52, %v1342_v34  ;;  %v2356_v39 = vsel %vm968_vm1, %v2260_v37, 0.0  ;;  %v5612_v62 = vpop.f32.mrf.mxu1 }
 0x374   : > { %v5601_v28 = vpop.eup %4472  ;;  %v2585_v45 = vmul.f32 %v5594_v48, %v5570_v6  ;;  %4478 = vrsqrt.f32 %v5592_v20  ;;  %2357 = vadd.xlane.f32.xlu1 %v2356_v39  ;;  %vm2591_vm9 = vweird.f32 %v5594_v48  ;;  %vm2600_vm13 = vweird.f32 %v5592_v20 }
 0x375   : > { %v1561_v40 = vmul.f32 1.442695, %v1462_v50  ;;  %v1715_v52 = vsel %vm1234_vm2, %v5601_v28, 0.0  ;;  %v2583_v9 = vsel %vm2582_vm8, %v4467_v57, %v2579_v36  ;;  %v4475_v18 = vpop.eup %4474  ;;  %v1382_v36 = vsel %vm1234_vm2, %v5612_v62, -inf  ;;  %vm5636_vm12 = vmor %vm2590_vm10, %vm2591_vm9 }
 0x376   : > { %v2586_v12 = vmul.f32 %v5594_v48, %v2585_v45  ;;  %1716 = vadd.xlane.f32.xlu2 %v1715_v52  ;;  %v3205_v24 = vmul.f32 %v2583_v9, %v5346_v1  ;;  %v1901_v57 = vmul.f32 %v4475_v18, %v5389_v61  ;;  %v2335_v18 = vsel %vm968_vm1, %v2253_v2, 0.0 }
 0x377   : > { %4480 = vpow2.f32 %v1561_v40  ;;  %1356 = vmax.xlane.f32.xlu0 %v1355_v59 }
 0x378   : > { %v4477_v35 = vpop.eup %4476  ;;  %v2587_v37 = vmul.f32 0.5, %v2586_v12  ;;  %v3268_v22 = vpack.c.bf16 %v3205_v24, %v3204_v29 }
 0x379   : > { %v1902_v0 = vmul.f32 %v4477_v35, %v5401_v42  ;;  %v5618_v47 = vpop.xlane.xlu2 %1704  ;;  %v1339_v34 = vpop.xlane.xlu0 %1338 }
 0x37a   : > { %v4479_v50 = vpop.eup %4478  ;;  %v1461_v1 = vsub.f32 %v5356_v27, %v1339_v34  ;;  %v2322_v39 = vpop.xlane.xlu1 %2321  ;;  %4224 = vmatmul.msk.bf16.vlgmr.msra.gmra.mxu3 %vm968_vm1, %v3268_v22  ;;  %v2588_v58 = vsub.f32 1.5, %v2587_v37 }
 0x37b   : > { %v2595_v61 = vmul.f32 %v4479_v50, %v5592_v20  ;;  %v2504_v45 = vmax.f32 %v2322_v39, 1e-24  ;;  %v1952_v42 = vpack.c.bf16 %v1902_v0, %v1901_v57  ;;  %vm2601_vm11 = vweird.f32 %v4479_v50 }
 0x37c   : > { %v1559_v40 = vmul.f32 1.442695, %v1461_v1  ;;  %1383 = vmax.xlane.f32.xlu1 %v1382_v36  ;;  %v2589_v12 = vmul.f32 %v5594_v48, %v2588_v58  ;;  %vm2602_vm14 = vmor %vm2600_vm13, %vm2601_vm11  ;;  %v1361_v20 = vsel %vm1234_vm2, %v5456_v8, -inf }
 0x37d   : > { %v5627_v52 = vpop.eup %4480  ;;  %v2596_v9 = vmul.f32 %v4479_v50, %v2595_v61  ;;  %4482 = vrsqrt.f32 %v2504_v45  ;;  %4189 = vmatmul.msk.bf16.gmra.mxu2 %vm1234_vm2, %v1952_v42  ;;  %vm2610_vm3 = vweird.f32 %v2504_v45 }
 0x37e   : > { %4484 = vpow2.f32 %v1559_v40  ;;  %2336 = vadd.xlane.f32.xlu2 %v2335_v18  ;;  %v1724_v27 = vsel %vm1234_vm2, %v5627_v52, 0.0  ;;  %v2593_v36 = vsel %vm5636_vm12, %v5594_v48, %v2589_v12 }
 0x37f   : > { %v2597_v59 = vmul.f32 0.5, %v2596_v9  ;;  %1725 = vadd.xlane.f32.xlu0 %v1724_v27  ;;  %v2255_v9 = vmul.f32 %v5481_v3, %v5481_v3 }
 0x381   : > { %v2598_v29 = vsub.f32 1.5, %v2597_v59  ;;  %v2325_v24 = vpop.xlane.xlu2 %2324 }
 0x382   : > { %v2505_v37 = vmax.f32 %v2325_v24, 1e-24  ;;  %v1348_v22 = vpop.xlane.xlu1 %1347 }
 0x383   : > { %v4483_v57 = vpop.eup %4482  ;;  %v2599_v0 = vmul.f32 %v4479_v50, %v2598_v29  ;;  %v1464_v34 = vsub.f32 %v5408_v43, %v1348_v22  ;;  %v3206_v43 = vmul.f32 %v2593_v36, %v5363_v17  ;;  %v2341_v17 = vsel %vm968_vm1, %v2255_v9, 0.0 }
 0x384   : > { %v5645_v6 = vpop.eup %4484  ;;  %v2605_v2 = vmul.f32 %v4483_v57, %v2504_v45  ;;  %4486 = vrsqrt.f32 %v2505_v37  ;;  %vm2611_vm15 = vweird.f32 %v4483_v57  ;;  %vm2620_vm6 = vweird.f32 %v2505_v37 }
 0x385   : > { %v1565_v1 = vmul.f32 1.442695, %v1464_v34  ;;  %v1721_v39 = vsel %vm1234_vm2, %v5645_v6, 0.0  ;;  %v2603_v58 = vsel %vm2602_vm14, %v4479_v50, %v2599_v0  ;;  %vm2612_vm5 = vmor %vm2610_vm3, %vm2611_vm15 }
 0x386   : > { %v2606_v61 = vmul.f32 %v4483_v57, %v2605_v2  ;;  %1722 = vadd.xlane.f32.xlu2 %v1721_v39  ;;  %v3207_v42 = vmul.f32 %v2603_v58, %v5382_v55  ;;  %v1367_v58 = vsel %vm1234_vm2, %v5479_v60, -inf }
 0x387   : > { %4488 = vpow2.f32 %v1565_v1  ;;  %1362 = vmax.xlane.f32.xlu0 %v1361_v20 }
 0x388   : > { %v2607_v48 = vmul.f32 0.5, %v2606_v61  ;;  %v3269_v40 = vpack.c.bf16 %v3207_v42, %v3206_v43 }
 0x38a   : > { %v4487_v18 = vpop.eup %4486  ;;  %v5655_v27 = vpop.xlane.xlu1 %2327  ;;  %4225 = vmatmul.msk.bf16.gmra.mxu3 %vm968_vm1, %v3269_v40  ;;  %v2608_v50 = vsub.f32 1.5, %v2607_v48 }
 0x38b   : > { %v2615_v12 = vmul.f32 %v4487_v18, %v2505_v37  ;;  %vm2621_vm4 = vweird.f32 %v4487_v18  ;;  %v830_v37 = vpop.f32.mrf.mxu0 }
 0x38c   : > { %v2609_v24 = vmul.f32 %v4483_v57, %v2608_v50  ;;  %vm2622_vm7 = vmor %vm2620_vm6, %vm2621_vm4  ;;  %v5679_v50 = vpop.f32.mrf.mxu1 }
 0x38d   : > { %v5658_v59 = vpop.eup %4488  ;;  %v2616_v29 = vmul.f32 %v4487_v18, %v2615_v12 }
 0x38e   : > { %2342 = vadd.xlane.f32.xlu2 %v2341_v17  ;;  %v1730_v55 = vsel %vm1234_vm2, %v5658_v59, 0.0  ;;  %v2613_v2 = vsel %vm2612_vm5, %v4483_v57, %v2609_v24  ;;  %v1373_v57 = vsel %vm1234_vm2, %v5524_v63, -inf }
 0x38f   : > { %v2617_v35 = vmul.f32 0.5, %v2616_v29  ;;  %1731 = vadd.xlane.f32.xlu0 %v1730_v55  ;;  %v3208_v61 = vmul.f32 %v2613_v2, %v5399_v15 }
 0x391   : > { %v2618_v22 = vsub.f32 1.5, %v2617_v35 }
 0x392   : > { %v1354_v0 = vpop.xlane.xlu1 %1353 }
 0x393   : > { %v2619_v34 = vmul.f32 %v4487_v18, %v2618_v22  ;;  %v1466_v36 = vsub.f32 %v5435_v56, %v1354_v0  ;;  %v832_v15 = vpop.f32.mrf.mxu0  ;;  %v5685_v22 = vpop.f32.mrf.mxu2 }
 0x394   : > { %v833_v48 = vadd.f32 %v5292_v54, %v832_v15 }
 0x395   : > { %v1569_v1 = vmul.f32 1.442695, %v1466_v36  ;;  %v2623_v39 = vsel %vm2622_vm7, %v4487_v18, %v2619_v34  ;;  %v5689_v36 = vpop.f32.mrf.mxu1 }
 0x396   : > { %v3209_v20 = vmul.f32 %v2623_v39, %v5416_v14  ;;  %v831_v14 = vadd.f32 %v5292_v54, %v830_v37  ;;  %v901_v9 = vmax.f32 %v833_v48, 0.0 }
 0x397   : > { %4490 = vpow2.f32 %v1569_v1  ;;  %1368 = vmax.xlane.f32.xlu0 %v1367_v58 }
 0x398   : > { %v3270_v45 = vpack.c.bf16 %v3209_v20, %v3208_v61  ;;  %v900_v40 = vmax.f32 %v831_v14, 0.0  ;;  %v1379_v14 = vsel %vm1234_vm2, %v5572_v25, -inf }
 0x39a   : > { %4226 = vmatmul.msk.bf16.gmra.mxu3 %vm968_vm1, %v3270_v45  ;;  %v934_v18 = vpack.c.bf16 %v901_v9, %v900_v40 }
 0x39b   : > { %v835_v29 = vpop.f32.mrf.mxu0 }
 0x39c   : > { %4170 = vmatmul.msk.bf16.gmra.mxu1 %vm968_vm1, %v934_v18  ;;  %v836_v0 = vadd.f32 %v5292_v54, %v835_v29 }
 0x39d   : > { %v5669_v43 = vpop.eup %4490  ;;  %v5705_v15 = vpop.f32.mrf.mxu1 }
 0x39e   : > { %v1736_v56 = vsel %vm1234_vm2, %v5669_v43, 0.0  ;;  %v902_v1 = vmax.f32 %v836_v0, 0.0  ;;  %v1388_v0 = vsel %vm1234_vm2, %v5689_v36, -inf }
 0x39f   : > { %1737 = vadd.xlane.f32.xlu0 %v1736_v56 }
 0x3a3   : > { %v837_v35 = vpop.f32.mrf.mxu0 }
 0x3a4   : > { %v838_v34 = vadd.f32 %v5292_v54, %v837_v35 }
 0x3a6   : > { %v903_v39 = vmax.f32 %v838_v34, 0.0 }
 0x3a7   : > { %1374 = vmax.xlane.f32.xlu0 %v1373_v57  ;;  %v5675_v42 = vpop.xlane.xlu1 %2333  ;;  %v5703_v57 = vmax.f32 %v5655_v27, 1e-24 }
 0x3a8   : > { %v935_v58 = vpack.c.bf16 %v903_v39, %v902_v1 }
 0x3a9   : > { %vm2630_vm9 = vweird.f32 %v5703_v57 }
 0x3ac   : > { %4171 = vmatmul.msk.bf16.gmra.mxu1 %vm968_vm1, %v935_v58 }
 0x3af   : > { %v1360_v12 = vpop.xlane.xlu1 %1359 }
 0x3b0   : > { %v1468_v17 = vsub.f32 %v5447_v51, %v1360_v12 }
 0x3b2   : > { %v1573_v55 = vmul.f32 1.442695, %v1468_v17 }
 0x3b4   : > { %4492 = vpow2.f32 %v1573_v55 }
 0x3b5   : > { %4494 = vrcp.f32 %v5618_v47 }
 0x3b7   : > { %v5683_v24 = vpop.xlane.xlu1 %2339 }
 0x3ba   : > { %v5691_v2 = vpop.eup %4492 }
 0x3bb   : > { %v1742_v51 = vsel %vm1234_vm2, %v5691_v2, 0.0 }
 0x3bc   : > { %1743 = vadd.xlane.f32.xlu0 %v1742_v51 }
 0x3bf   : > { %v1366_v61 = vpop.xlane.xlu1 %1365 }
 0x3c0   : > { %v1470_v20 = vsub.f32 %v5470_v32, %v1366_v61  ;;  %v5698_v45 = vpop.f32.mrf.mxu2  ;;  %v4495_v32 = vpop.eup %4494 }
 0x3c1   : > { %v2262_v54 = vmul.f32 %v5698_v45, %v5698_v45  ;;  %v1708_v56 = vpop.xlane.xlu0 %1707  ;;  %v1903_v27 = vmul.f32 %v4495_v32, %v5414_v26  ;;  %v5726_v26 = vpop.f32.mrf.mxu1 }
 0x3c2   : > { %v1577_v37 = vmul.f32 1.442695, %v1470_v20  ;;  %4496 = vrcp.f32 %v1708_v56 }
 0x3c3   : > { %v2362_v47 = vsel %vm968_vm1, %v2262_v54, 0.0 }
 0x3c4   : > { %4498 = vpow2.f32 %v1577_v37  ;;  %1380 = vmax.xlane.f32.xlu0 %v1379_v14  ;;  %2363 = vadd.xlane.f32.xlu1 %v2362_v47  ;;  %v1385_v14 = vsel %vm1234_vm2, %v5679_v50, -inf }
 0x3c5   : > { %4500 = vrsqrt.f32 %v5703_v57 }
 0x3c7   : > { %v5711_v48 = vpop.xlane.xlu1 %2345 }
 0x3c8   : > { %v4497_v40 = vpop.eup %4496  ;;  %v5713_v9 = vpop.f32.mrf.mxu2 }
 0x3c9   : > { %v1904_v18 = vmul.f32 %v4497_v40, %v5491_v31  ;;  %v1711_v12 = vpop.xlane.xlu2 %1710  ;;  %v1345_v29 = vpop.xlane.xlu0 %1344 }
 0x3ca   : > { %v5717_v17 = vpop.eup %4498  ;;  %v1463_v55 = vsub.f32 %v5394_v7, %v1345_v29 }
 0x3cb   : > { %v1748_v35 = vsel %vm1234_vm2, %v5717_v17, 0.0  ;;  %v1953_v34 = vpack.c.bf16 %v1904_v18, %v1903_v27  ;;  %v5724_v39 = vpop.eup %4500  ;;  %v5747_v18 = vpop.f32.mrf.mxu1 }
 0x3cc   : > { %v1563_v1 = vmul.f32 1.442695, %v1463_v55  ;;  %1749 = vadd.xlane.f32.xlu0 %v1748_v35  ;;  %1389 = vmax.xlane.f32.xlu1 %v1388_v0  ;;  %v2625_v7 = vmul.f32 %v5724_v39, %v5703_v57  ;;  %vm2631_vm8 = vweird.f32 %v5724_v39 }
 0x3cd   : > { %4190 = vmatmul.msk.bf16.gmra.mxu2 %vm1234_vm2, %v1953_v34  ;;  %vm5780_vm11 = vmor %vm2630_vm9, %vm2631_vm8 }
 0x3ce   : > { %4502 = vpow2.f32 %v1563_v1 }
 0x3cf   : > { %v1372_v31 = vpop.xlane.xlu1 %1371  ;;  %4504 = vrcp.f32 %v1711_v12 }
 0x3d0   : > { %v1472_v51 = vsub.f32 %v5496_v19, %v1372_v31  ;;  %v5732_v58 = vpop.f32.mrf.mxu2  ;;  %v2626_v19 = vmul.f32 %v5724_v39, %v2625_v7  ;;  %v2257_v31 = vmul.f32 %v5522_v21, %v5522_v21 }
 0x3d1   : > { %7060 = vst [vmem:[#allocation5_spill] sm:$0xff] %v5732_v58  ;;  %v2264_v61 = vmul.f32 %v5732_v58, %v5732_v58  ;;  %v2331_v20 = vpop.xlane.xlu2 %2330  ;;  %v1714_v54 = vpop.xlane.xlu0 %1713 }
 0x3d2   : > { %v1581_v56 = vmul.f32 1.442695, %v1472_v51  ;;  %v5736_v37 = vmax.f32 %v2331_v20, 1e-24  ;;  %4506 = vrcp.f32 %v1714_v54  ;;  %v2627_v55 = vmul.f32 0.5, %v2626_v19 }
 0x3d3   : > { %v2368_v47 = vsel %vm968_vm1, %v2264_v61, 0.0  ;;  %v1394_v54 = vsel %vm1234_vm2, %v5726_v26, -inf }
 0x3d4   : > { %v5741_v32 = vpop.eup %4502  ;;  %4508 = vpow2.f32 %v1581_v56  ;;  %1386 = vmax.xlane.f32.xlu0 %v1385_v14  ;;  %2369 = vadd.xlane.f32.xlu1 %v2368_v47  ;;  %v2628_v14 = vsub.f32 1.5, %v2627_v55  ;;  %v2347_v47 = vsel %vm968_vm1, %v2257_v31, 0.0  ;;  %vm2640_vm12 = vweird.f32 %v5736_v37 }
 0x3d5   : > { %4510 = vrsqrt.f32 %v5736_v37  ;;  %v1727_v40 = vsel %vm1234_vm2, %v5741_v32, 0.0  ;;  %v4505_v27 = vpop.eup %4504 }
 0x3d6   : > { %1728 = vadd.xlane.f32.xlu2 %v1727_v40  ;;  %v1905_v0 = vmul.f32 %v4505_v27, %v5512_v53  ;;  %v2629_v40 = vmul.f32 %v5724_v39, %v2628_v14 }
 0x3d7   : > { %v5749_v12 = vpop.xlane.xlu1 %2351 }
 0x3d8   : > { %v4507_v29 = vpop.eup %4506  ;;  %v5751_v35 = vpop.f32.mrf.mxu2 }
 0x3d9   : > { %v1906_v34 = vmul.f32 %v4507_v29, %v5534_v41  ;;  %v1351_v1 = vpop.xlane.xlu0 %1350 }
 0x3da   : > { %v5757_v7 = vpop.eup %4508  ;;  %v1465_v51 = vsub.f32 %v5424_v38, %v1351_v1  ;;  %v5778_v1 = vmax.f32 %v5675_v42, 1e-24  ;;  %v2633_v42 = vsel %vm5780_vm11, %v5724_v39, %v2629_v40  ;;  %v2259_v39 = vmul.f32 %v5562_v10, %v5562_v10 }
 0x3db   : > { %v4511_v61 = vpop.eup %4510  ;;  %v1754_v20 = vsel %vm1234_vm2, %v5757_v7, 0.0  ;;  %v1954_v56 = vpack.c.bf16 %v1906_v34, %v1905_v0  ;;  %v5773_v0 = vpop.f32.mrf.mxu1 }
 0x3dc   : > { %v2635_v53 = vmul.f32 %v4511_v61, %v5736_v37  ;;  %v1567_v41 = vmul.f32 1.442695, %v1465_v51  ;;  %1755 = vadd.xlane.f32.xlu0 %v1754_v20  ;;  %1395 = vmax.xlane.f32.xlu1 %v1394_v54  ;;  %vm2641_vm10 = vweird.f32 %v4511_v61  ;;  %v2353_v54 = vsel %vm968_vm1, %v2259_v39, 0.0 }
 0x3dd   : > { %4191 = vmatmul.msk.bf16.gmra.mxu2 %vm1234_vm2, %v1954_v56  ;;  %vm2642_vm13 = vmor %vm2640_vm12, %vm2641_vm10  ;;  %vm2650_vm15 = vweird.f32 %v5778_v1 }
 0x3de   : > { %v2636_v19 = vmul.f32 %v4511_v61, %v2635_v53  ;;  %4512 = vpow2.f32 %v1567_v41  ;;  %2348 = vadd.xlane.f32.xlu2 %v2347_v47 }
 0x3df   : > { %v1378_v38 = vpop.xlane.xlu1 %1377 }
 0x3e0   : > { %v2637_v27 = vmul.f32 0.5, %v2636_v19  ;;  %v1474_v29 = vsub.f32 %v5551_v5, %v1378_v38  ;;  %v5770_v55 = vpop.f32.mrf.mxu2  ;;  %v1391_v5 = vsel %vm1234_vm2, %v5705_v15, -inf  ;;  %v3210_v19 = vmul.f32 %v2633_v42, %v5430_v49 }
 0x3e1   : > { %7061 = vst [vmem:[#allocation6_spill] sm:$0xff] %v5770_v55  ;;  %v2266_v34 = vmul.f32 %v5770_v55, %v5770_v55 }
 0x3e2   : > { %v2638_v31 = vsub.f32 1.5, %v2637_v27  ;;  %v1585_v51 = vmul.f32 1.442695, %v1474_v29  ;;  %v1720_v20 = vpop.xlane.xlu0 %1719 }
 0x3e3   : > { %v2374_v57 = vsel %vm968_vm1, %v2266_v34, 0.0  ;;  %v5804_v40 = vpop.f32.mrf.mxu1 }
 0x3e4   : > { %v5787_v56 = vpop.eup %4512  ;;  %v2639_v14 = vmul.f32 %v4511_v61, %v2638_v31  ;;  %4514 = vpow2.f32 %v1585_v51  ;;  %1392 = vmax.xlane.f32.xlu0 %v1391_v5  ;;  %2375 = vadd.xlane.f32.xlu1 %v2374_v57  ;;  %v1403_v58 = vsel %vm1234_vm2, %v5804_v40, -inf }
 0x3e5   : > { %v1733_v53 = vsel %vm1234_vm2, %v5787_v56, 0.0  ;;  %4516 = vrsqrt.f32 %v5778_v1 }
 0x3e6   : > { %1734 = vadd.xlane.f32.xlu2 %v1733_v53  ;;  %v2643_v41 = vsel %vm2642_vm13, %v4511_v61, %v2639_v14  ;;  %4518 = vrcp.f32 %v1720_v20  ;;  %v5821_v53 = vmax.f32 %v5683_v24, 1e-24  ;;  %v1397_v24 = vsel %vm1234_vm2, %v5747_v18, -inf }
 0x3e7   : > { %v5796_v47 = vpop.xlane.xlu1 %2357  ;;  %v3211_v37 = vmul.f32 %v2643_v41, %v5449_v4  ;;  %v1400_v4 = vsel %vm1234_vm2, %v5773_v0, -inf }
 0x3e8   : > { %v5800_v38 = vpop.f32.mrf.mxu2  ;;  %vm2670_vm8 = vweird.f32 %v5821_v53 }
 0x3e9   : > { %v1717_v27 = vpop.xlane.xlu2 %1716  ;;  %v3271_v29 = vpack.c.bf16 %v3211_v37, %v3210_v19 }
 0x3ea   : > { %v5806_v34 = vpop.eup %4514  ;;  %v1357_v31 = vpop.xlane.xlu0 %1356  ;;  %4520 = vrcp.f32 %v1717_v27 }
 0x3eb   : > { %7064 = vst [vmem:[#allocation7_spill] sm:$0xff] %v5806_v34  ;;  %v1467_v61 = vsub.f32 %v5441_v30, %v1357_v31  ;;  %4227 = vmatmul.msk.bf16.gmra.mxu3 %vm968_vm1, %v3271_v29  ;;  %v1760_v49 = vsel %vm1234_vm2, %v5806_v34, 0.0  ;;  %v5814_v51 = vpop.eup %4516 }
 0x3ec   : > { %1761 = vadd.xlane.f32.xlu0 %v1760_v49  ;;  %1401 = vmax.xlane.f32.xlu1 %v1400_v4  ;;  %v4519_v5 = vpop.eup %4518  ;;  %v2645_v30 = vmul.f32 %v5814_v51, %v5778_v1  ;;  %v5834_v49 = vpop.f32.mrf.mxu1  ;;  %vm2651_vm14 = vweird.f32 %v5814_v51 }
 0x3ed   : > { %v1571_v20 = vmul.f32 1.442695, %v1467_v61  ;;  %v1908_v41 = vmul.f32 %v4519_v5, %v5574_v16  ;;  %vm5895_vm4 = vmor %vm2650_vm15, %vm2651_vm14 }
 0x3ee   : > { %2354 = vadd.xlane.f32.xlu2 %v2353_v54 }
 0x3ef   : > { %4522 = vpow2.f32 %v1571_v20  ;;  %v1384_v57 = vpop.xlane.xlu1 %1383 }
 0x3f0   : > { %v1476_v14 = vsub.f32 %v5612_v62, %v1384_v57  ;;  %v4521_v42 = vpop.eup %4520  ;;  %v5824_v19 = vpop.f32.mrf.mxu2  ;;  %v2646_v62 = vmul.f32 %v5814_v51, %v2645_v30 }
 0x3f1   : > { %7065 = vst [vmem:[#allocation8_spill] sm:$0xff] %v5824_v19  ;;  %v2337_v37 = vpop.xlane.xlu2 %2336  ;;  %v1907_v27 = vmul.f32 %v4521_v42, %v5601_v28  ;;  %v2268_v39 = vmul.f32 %v5824_v19, %v5824_v19  ;;  %v1406_v42 = vsel %vm1234_vm2, %v5834_v49, -inf }
 0x3f2   : > { %v1589_v29 = vmul.f32 1.442695, %v1476_v14  ;;  %v5829_v31 = vmax.f32 %v2337_v37, 1e-24  ;;  %v1726_v61 = vpop.xlane.xlu0 %1725  ;;  %v2647_v54 = vmul.f32 0.5, %v2646_v62  ;;  %v2261_v37 = vmul.f32 %v5685_v22, %v5685_v22 }
 0x3f3   : > { %v2380_v16 = vsel %vm968_vm1, %v2268_v39, 0.0  ;;  %v1955_v28 = vpack.c.bf16 %v1908_v41, %v1907_v27  ;;  %v5854_v41 = vld [vmem:[%s7042_s7] ss:$0 sm:$0xff] }
 0x3f4   : > { %4524 = vpow2.f32 %v1589_v29  ;;  %1398 = vmax.xlane.f32.xlu0 %v1397_v24  ;;  %2381 = vadd.xlane.f32.xlu1 %v2380_v16  ;;  %v2648_v29 = vsub.f32 1.5, %v2647_v54  ;;  %vm2660_vm5 = vweird.f32 %v5829_v31 }
 0x3f5   : > { %v5837_v4 = vpop.eup %4522  ;;  %4526 = vrsqrt.f32 %v5829_v31  ;;  %4192 = vmatmul.msk.bf16.gmra.mxu2 %vm1234_vm2, %v1955_v28 }
 0x3f6   : > { %4528 = vrsqrt.f32 %v5821_v53  ;;  %v1739_v20 = vsel %vm1234_vm2, %v5837_v4, 0.0 }
 0x3f7   : > { %1740 = vadd.xlane.f32.xlu2 %v1739_v20  ;;  %4530 = vrcp.f32 %v1726_v61 }
 0x3f8   : > { %v5845_v5 = vpop.f32.mrf.mxu2 }
 0x3f9   : > { %v1723_v30 = vpop.xlane.xlu2 %1722 }
 0x3fa   : > { %v5847_v57 = vpop.eup %4524  ;;  %4532 = vrcp.f32 %v1723_v30  ;;  %v1363_v14 = vpop.xlane.xlu0 %1362 }
 0x3fb   : > { %7066 = vst [vmem:[#allocation9_spill] sm:$0xff] %v5847_v57  ;;  %v5858_v27 = vpop.eup %4526  ;;  %v1469_v39 = vsub.f32 %v5456_v8, %v1363_v14  ;;  %v1766_v61 = vsel %vm1234_vm2, %v5847_v57, 0.0  ;;  %v5873_v8 = vpop.f32.mrf.mxu1  ;;  %v2359_v14 = vsel %vm968_vm1, %v2261_v37, 0.0 }
 0x3fc   : > { %v5864_v62 = vpop.eup %4528  ;;  %v2655_v24 = vmul.f32 %v5858_v27, %v5829_v31  ;;  %1767 = vadd.xlane.f32.xlu0 %v1766_v61  ;;  %1407 = vmax.xlane.f32.xlu1 %v1406_v42  ;;  %v2649_v61 = vmul.f32 %v5814_v51, %v2648_v29  ;;  %v3665_v42 = vld [vmem:[%s5871_s13] sm:$0xff]  ;;  %vm2661_vm3 = vweird.f32 %v5858_v27 }
 0x3fd   : > { %v1575_v16 = vmul.f32 1.442695, %v1469_v39  ;;  %v3441_v28 = vpop.f32.mrf.mxu3  ;;  %v4531_v20 = vpop.eup %4530  ;;  %v2665_v39 = vmul.f32 %v5864_v62, %v5821_v53  ;;  %vm2662_vm6 = vmor %vm2660_vm5, %vm2661_vm3  ;;  %vm2671_vm7 = vweird.f32 %v5864_v62 }
 0x3fe   : > { %v2656_v54 = vmul.f32 %v5858_v27, %v2655_v24  ;;  %v3442_v30 = vadd.f32 %v5854_v41, %v3441_v28  ;;  %v1910_v28 = vmul.f32 %v4531_v20, %v5627_v52  ;;  %vm2672_vm10 = vmor %vm2670_vm8, %vm2671_vm7 }
 0x3ff   : > { %4534 = vpow2.f32 %v1575_v16  ;;  %2360 = vadd.xlane.f32.xlu2 %v2359_v14  ;;  %v2653_v14 = vsel %vm5895_vm4, %v5814_v51, %v2649_v61 }
 0x400   : > { %v4533_v19 = vpop.eup %4532  ;;  %v2657_v24 = vmul.f32 0.5, %v2656_v54  ;;  %v3601_v57 = vmax.f32 %v3442_v30, 0.0  ;;  %v5889_v29 = vpop.f32.mrf.mxu2 }
 0x401   : > { %v1909_v37 = vmul.f32 %v4533_v19, %v5645_v6  ;;  %7067 = vst [vmem:[#allocation10_spill] sm:$0xff] %v5889_v29  ;;  %v2343_v55 = vpop.xlane.xlu2 %2342  ;;  %v2270_v30 = vmul.f32 %v5889_v29, %v5889_v29  ;;  %v2666_v6 = vmul.f32 %v5864_v62, %v2665_v39 }
 0x402   : > { %v2658_v1 = vsub.f32 1.5, %v2657_v24  ;;  %v3729_v54 = vadd.f32 %v3665_v42, %v3601_v57  ;;  %v2511_v52 = vmax.f32 %v2343_v55, 1e-24  ;;  %v5901_v20 = vpop.xlane.xlu0 %1731 }
 0x403   : > { %v1956_v19 = vpack.c.bf16 %v1910_v28, %v1909_v37  ;;  %v2386_v55 = vsel %vm968_vm1, %v2270_v30, 0.0  ;;  %v2667_v42 = vmul.f32 0.5, %v2666_v6  ;;  %v5924_v24 = vpop.f32.mrf.mxu1  ;;  %v3212_v28 = vmul.f32 %v2653_v14, %v5454_v11 }
 0x404   : > { %v2659_v34 = vmul.f32 %v5858_v27, %v2658_v1  ;;  %3793 = vst.msk [vmem:[%s5909_s18] sm:$0xff] %vm574_vm0, %v3729_v54  ;;  %4536 = vrsqrt.f32 %v2511_v52  ;;  %1404 = vmax.xlane.f32.xlu0 %v1403_v58  ;;  %2387 = vadd.xlane.f32.xlu1 %v2386_v55  ;;  %v3666_v58 = vld [vmem:[%s5871_s13 + $0x8] sm:$0xff]  ;;  %v1412_v55 = vsel %vm1234_vm2, %v5924_v24, -inf  ;;  %vm2680_vm11 = vweird.f32 %v2511_v52 }
 0x405   : > { %v5914_v57 = vpop.eup %4534  ;;  %v3443_v51 = vpop.f32.mrf.mxu3  ;;  %4193 = vmatmul.msk.bf16.gmra.mxu2 %vm1234_vm2, %v1956_v19 }
 0x406   : > { %v3444_v31 = vadd.f32 %v5854_v41, %v3443_v51  ;;  %v1745_v61 = vsel %vm1234_vm2, %v5914_v57, 0.0  ;;  %v2663_v39 = vsel %vm2662_vm6, %v5858_v27, %v2659_v34  ;;  %v2263_v34 = vmul.f32 %v5713_v9, %v5713_v9 }
 0x407   : > { %1746 = vadd.xlane.f32.xlu2 %v1745_v61  ;;  %v3213_v37 = vmul.f32 %v2663_v39, %v5464_v13  ;;  %v2668_v27 = vsub.f32 1.5, %v2667_v42 }
 0x408   : > { %v3602_v16 = vmax.f32 %v3444_v31, 0.0  ;;  %v2365_v61 = vsel %vm968_vm1, %v2263_v34, 0.0 }
 0x409   : > { %v3272_v1 = vpack.c.bf16 %v3213_v37, %v3212_v28  ;;  %v2669_v39 = vmul.f32 %v5864_v62, %v2668_v27 }
 0x40a   : > { %v4537_v54 = vpop.eup %4536  ;;  %v3730_v30 = vadd.f32 %v3666_v58, %v3602_v16  ;;  %v1369_v19 = vpop.xlane.xlu0 %1368 }
 0x40b   : > { %v2675_v6 = vmul.f32 %v4537_v54, %v2511_v52  ;;  %v1471_v51 = vsub.f32 %v5479_v60, %v1369_v19  ;;  %4228 = vmatmul.msk.bf16.gmra.mxu3 %vm968_vm1, %v3272_v1  ;;  %v3667_v60 = vld [vmem:[%s5871_s13 + $0x10] sm:$0xff]  ;;  %vm2681_vm9 = vweird.f32 %v4537_v54  ;;  %v3668_v52 = vld [vmem:[%s5871_s13 + $0x18] sm:$0xff] }
 0x40c   : > { %3794 = vst.msk [vmem:[%s5909_s18 + $0x8] sm:$0xff] %vm574_vm0, %v3730_v30  ;;  %1413 = vmax.xlane.f32.xlu1 %v1412_v55  ;;  %v2673_v30 = vsel %vm2672_vm10, %v5864_v62, %v2669_v39  ;;  %vm2682_vm12 = vmor %vm2680_vm11, %vm2681_vm9 }
 0x40d   : > { %v2676_v11 = vmul.f32 %v4537_v54, %v2675_v6  ;;  %v1579_v13 = vmul.f32 1.442695, %v1471_v51  ;;  %v3446_v14 = vpop.f32.mrf.mxu3  ;;  %v3214_v6 = vmul.f32 %v2673_v30, %v5473_v46  ;;  %v3670_v30 = vld [vmem:[%s5871_s13 + $0x28] sm:$0xff] }
 0x40e   : > { %v3447_v31 = vadd.f32 %v5854_v41, %v3446_v14 }
 0x40f   : > { %v2677_v42 = vmul.f32 0.5, %v2676_v11  ;;  %4538 = vpow2.f32 %v1579_v13  ;;  %2366 = vadd.xlane.f32.xlu2 %v2365_v61 }
 0x410   : > { %v3603_v58 = vmax.f32 %v3447_v31, 0.0 }
 0x411   : > { %v2678_v28 = vsub.f32 1.5, %v2677_v42  ;;  %v3669_v42 = vld [vmem:[%s5871_s13 + $0x20] sm:$0xff] }
 0x412   : > { %v3731_v37 = vadd.f32 %v3667_v60, %v3603_v58  ;;  %v5942_v16 = vpop.xlane.xlu0 %1737 }
 0x413   : > { %v2679_v1 = vmul.f32 %v4537_v54, %v2678_v28 }
 0x414   : > { %3795 = vst.msk [vmem:[%s5909_s18 + $0x10] sm:$0xff] %vm574_vm0, %v3731_v37 }
 0x415   : > { %v5947_v19 = vpop.eup %4538  ;;  %v3448_v55 = vpop.f32.mrf.mxu3  ;;  %v2683_v34 = vsel %vm2682_vm12, %v4537_v54, %v2679_v1  ;;  %v2265_v54 = vmul.f32 %v5751_v35, %v5751_v35 }
 0x416   : > { %v3449_v53 = vadd.f32 %v5854_v41, %v3448_v55  ;;  %v1751_v27 = vsel %vm1234_vm2, %v5947_v19, 0.0  ;;  %v3215_v51 = vmul.f32 %v2683_v34, %v5481_v3 }
 0x417   : > { %1752 = vadd.xlane.f32.xlu2 %v1751_v27  ;;  %v2371_v39 = vsel %vm968_vm1, %v2265_v54, 0.0 }
 0x418   : > { %v3604_v62 = vmax.f32 %v3449_v53, 0.0  ;;  %v3273_v11 = vpack.c.bf16 %v3215_v51, %v3214_v6  ;;  %v2267_v53 = vmul.f32 %v5800_v38, %v5800_v38 }
 0x41a   : > { %v3732_v13 = vadd.f32 %v3668_v52, %v3604_v62  ;;  %v1375_v14 = vpop.xlane.xlu0 %1374  ;;  %v2377_v27 = vsel %vm968_vm1, %v2267_v53, 0.0 }
 0x41b   : > { %v1473_v31 = vsub.f32 %v5524_v63, %v1375_v14  ;;  %4229 = vmatmul.msk.bf16.gmra.mxu3 %vm968_vm1, %v3273_v11 }
 0x41c   : > { %3796 = vst.msk [vmem:[%s5909_s18 + $0x18] sm:$0xff] %vm574_vm0, %v3732_v13  ;;  %v5983_v13 = vmax.f32 %v5711_v48, 1e-24  ;;  %v2269_v48 = vmul.f32 %v5845_v5, %v5845_v5 }
 0x41d   : > { %v1583_v46 = vmul.f32 1.442695, %v1473_v31  ;;  %v3451_v3 = vpop.f32.mrf.mxu3 }
 0x41e   : > { %v3452_v61 = vadd.f32 %v5854_v41, %v3451_v3  ;;  %vm2690_vm14 = vweird.f32 %v5983_v13 }
 0x41f   : > { %4540 = vpow2.f32 %v1583_v46  ;;  %2372 = vadd.xlane.f32.xlu2 %v2371_v39 }
 0x420   : > { %v3605_v60 = vmax.f32 %v3452_v61, 0.0 }
 0x422   : > { %v3733_v58 = vadd.f32 %v3669_v42, %v3605_v60  ;;  %v5997_v42 = vpop.f32.mrf.mxu2 }
 0x423   : > { %7070 = vst [vmem:[#allocation11_spill] sm:$0xff] %v5997_v42 }
 0x424   : > { %3797 = vst.msk [vmem:[%s5909_s18 + $0x20] sm:$0xff] %vm574_vm0, %v3733_v58 }
 0x425   : > { %v5966_v63 = vpop.eup %4540  ;;  %v3453_v28 = vpop.f32.mrf.mxu3 }
 0x426   : > { %v3454_v37 = vadd.f32 %v5854_v41, %v3453_v28  ;;  %v1757_v1 = vsel %vm1234_vm2, %v5966_v63, 0.0 }
 0x427   : > { %1758 = vadd.xlane.f32.xlu2 %v1757_v1  ;;  %v6005_v1 = vpop.f32.mrf.mxu1 }
 0x428   : > { %v3606_v55 = vmax.f32 %v3454_v37, 0.0 }
 0x42a   : > { %v3734_v34 = vadd.f32 %v3670_v30, %v3606_v55  ;;  %v2383_v30 = vsel %vm968_vm1, %v2269_v48, 0.0 }
 0x42c   : > { %3798 = vst.msk [vmem:[%s5909_s18 + $0x28] sm:$0xff] %vm574_vm0, %v3734_v34 }
 0x42f   : > { %2378 = vadd.xlane.f32.xlu2 %v2377_v27  ;;  %v5977_v6 = vpop.xlane.xlu0 %1743 }
 0x437   : > { %v1381_v51 = vpop.xlane.xlu0 %1380  ;;  %v5979_v52 = vpop.xlane.xlu1 %2363 }
 0x438   : > { %v1475_v62 = vsub.f32 %v5572_v25, %v1381_v51 }
 0x43a   : > { %v1587_v11 = vmul.f32 1.442695, %v1475_v62 }
 0x43c   : > { %4542 = vpow2.f32 %v1587_v11 }
 0x43d   : > { %4544 = vrsqrt.f32 %v5983_v13 }
 0x43f   : > { %v5985_v14 = vpop.xlane.xlu0 %1749  ;;  %v1390_v54 = vpop.xlane.xlu1 %1389 }
 0x440   : > { %v1478_v31 = vsub.f32 %v5689_v36, %v1390_v54 }
 0x442   : > { %v5988_v46 = vpop.eup %4542  ;;  %v1593_v3 = vmul.f32 1.442695, %v1478_v31 }
 0x443   : > { %v1763_v61 = vsel %vm1234_vm2, %v5988_v46, 0.0  ;;  %v6000_v60 = vpop.eup %4544 }
 0x444   : > { %4546 = vpow2.f32 %v1593_v3  ;;  %1764 = vadd.xlane.f32.xlu2 %v1763_v61  ;;  %v2685_v34 = vmul.f32 %v6000_v60, %v5983_v13  ;;  %vm2691_vm13 = vweird.f32 %v6000_v60 }
 0x445   : > { %4548 = vrcp.f32 %v5901_v20  ;;  %v6013_v20 = vmax.f32 %v5749_v12, 1e-24  ;;  %vm6066_vm15 = vmor %vm2690_vm14, %vm2691_vm13 }
 0x446   : > { %v2686_v51 = vmul.f32 %v6000_v60, %v2685_v34 }
 0x447   : > { %v1387_v25 = vpop.xlane.xlu0 %1386  ;;  %v5993_v39 = vpop.xlane.xlu1 %2369  ;;  %vm2710_vm7 = vweird.f32 %v6013_v20 }
 0x448   : > { %v1477_v36 = vsub.f32 %v5679_v50, %v1387_v25 }
 0x449   : > { %v1729_v58 = vpop.xlane.xlu2 %1728 }
 0x44a   : > { %v6003_v28 = vpop.eup %4546  ;;  %v1591_v37 = vmul.f32 1.442695, %v1477_v36  ;;  %4550 = vrcp.f32 %v1729_v58  ;;  %v1409_v58 = vsel %vm1234_vm2, %v5873_v8, -inf }
 0x44b   : > { %v1772_v55 = vsel %vm1234_vm2, %v6003_v28, 0.0  ;;  %v4549_v50 = vpop.eup %4548 }
 0x44c   : > { %4552 = vpow2.f32 %v1591_v37  ;;  %2384 = vadd.xlane.f32.xlu2 %v2383_v30  ;;  %1773 = vadd.xlane.f32.xlu0 %v1772_v55  ;;  %v1912_v25 = vmul.f32 %v4549_v50, %v5658_v59  ;;  %v2687_v30 = vmul.f32 0.5, %v2686_v51  ;;  %v6035_v55 = vpop.f32.mrf.mxu1  ;;  %v2271_v50 = vmul.f32 %v5997_v42, %v5997_v42 }
 0x44d   : > { %4554 = vrsqrt.f32 %v6013_v20 }
 0x44f   : > { %v6015_v53 = vpop.xlane.xlu0 %1755  ;;  %v1396_v27 = vpop.xlane.xlu1 %1395 }
 0x450   : > { %v1480_v62 = vsub.f32 %v5726_v26, %v1396_v27  ;;  %v6019_v11 = vpop.f32.mrf.mxu2  ;;  %v4551_v54 = vpop.eup %4550  ;;  %v2688_v27 = vsub.f32 1.5, %v2687_v30 }
 0x451   : > { %7071 = vst [vmem:[#allocation12_spill] sm:$0xff] %v6019_v11  ;;  %v2272_v31 = vmul.f32 %v6019_v11, %v6019_v11  ;;  %v2349_v3 = vpop.xlane.xlu2 %2348  ;;  %v1911_v12 = vmul.f32 %v4551_v54, %v5741_v32 }
 0x452   : > { %v6023_v61 = vpop.eup %4552  ;;  %v1597_v48 = vmul.f32 1.442695, %v1480_v62  ;;  %v6027_v36 = vmax.f32 %v2349_v3, 1e-24 }
 0x453   : > { %v1769_v26 = vsel %vm1234_vm2, %v6023_v61, 0.0  ;;  %v2392_v37 = vsel %vm968_vm1, %v2272_v31, 0.0  ;;  %v1957_v59 = vpack.c.bf16 %v1912_v25, %v1911_v12  ;;  %v6047_v54 = vpop.eup %4554 }
 0x454   : > { %4556 = vpow2.f32 %v1597_v48  ;;  %1770 = vadd.xlane.f32.xlu2 %v1769_v26  ;;  %1410 = vmax.xlane.f32.xlu0 %v1409_v58  ;;  %v2389_v48 = vsel %vm968_vm1, %v2271_v50, 0.0  ;;  %v1418_v58 = vsel %vm1234_vm2, %v6035_v55, -inf  ;;  %vm2700_vm4 = vweird.f32 %v6027_v36 }
 0x455   : > { %4558 = vrsqrt.f32 %v6027_v36  ;;  %2393 = vadd.xlane.f32.xlu1 %v2392_v37  ;;  %4194 = vmatmul.msk.bf16.gmra.mxu2 %vm1234_vm2, %v1957_v59  ;;  %v2705_v37 = vmul.f32 %v6047_v54, %v6013_v20  ;;  %vm2711_vm6 = vweird.f32 %v6047_v54 }
 0x456   : > { %4560 = vrcp.f32 %v5942_v16  ;;  %v2689_v16 = vmul.f32 %v6000_v60, %v2688_v27  ;;  %v6071_v27 = vmax.f32 %v5796_v47, 1e-24  ;;  %vm6129_vm8 = vmor %vm2710_vm7, %vm2711_vm6 }
 0x457   : > { %v1393_v32 = vpop.xlane.xlu0 %1392  ;;  %v6039_v34 = vpop.xlane.xlu1 %2375 }
 0x458   : > { %v1479_v51 = vsub.f32 %v5705_v15, %v1393_v32  ;;  %v6045_v62 = vpop.f32.mrf.mxu2  ;;  %v6062_v32 = vpop.f32.mrf.mxu1  ;;  %v2693_v13 = vsel %vm6066_vm15, %v6000_v60, %v2689_v16  ;;  %vm2730_vm13 = vweird.f32 %v6071_v27 }
 0x459   : > { %v1735_v31 = vpop.xlane.xlu2 %1734 }
 0x45a   : > { %v6049_v3 = vpop.eup %4556  ;;  %v1595_v25 = vmul.f32 1.442695, %v1479_v51  ;;  %4562 = vrcp.f32 %v1735_v31 }
 0x45b   : > { %7072 = vst [vmem:[#allocation13_spill] sm:$0xff] %v6049_v3  ;;  %v4559_v12 = vpop.eup %4558  ;;  %v1778_v26 = vsel %vm1234_vm2, %v6049_v3, 0.0 }
 0x45c   : > { %v2695_v15 = vmul.f32 %v4559_v12, %v6027_v36  ;;  %4564 = vpow2.f32 %v1595_v25  ;;  %2390 = vadd.xlane.f32.xlu2 %v2389_v48  ;;  %1779 = vadd.xlane.f32.xlu0 %v1778_v26  ;;  %v4561_v30 = vpop.eup %4560  ;;  %vm2701_vm3 = vweird.f32 %v4559_v12  ;;  %v2273_v36 = vmul.f32 %v6045_v62, %v6045_v62 }
 0x45d   : > { %1419 = vmax.xlane.f32.xlu1 %v1418_v58  ;;  %v2706_v58 = vmul.f32 %v6047_v54, %v2705_v37  ;;  %v1914_v11 = vmul.f32 %v4561_v30, %v5669_v43  ;;  %4566 = vrsqrt.f32 %v6071_v27  ;;  %v1415_v43 = vsel %vm1234_vm2, %v6005_v1, -inf  ;;  %vm2702_vm5 = vmor %vm2700_vm4, %vm2701_vm3 }
 0x45e   : > { %v2696_v59 = vmul.f32 %v4559_v12, %v2695_v15 }
 0x45f   : > { %v6073_v51 = vpop.xlane.xlu0 %1761  ;;  %v1402_v31 = vpop.xlane.xlu1 %1401  ;;  %v2707_v30 = vmul.f32 0.5, %v2706_v58 }
 0x460   : > { %v2697_v25 = vmul.f32 0.5, %v2696_v59  ;;  %v1482_v48 = vsub.f32 %v5773_v0, %v1402_v31  ;;  %v6076_v26 = vpop.f32.mrf.mxu2  ;;  %v4563_v15 = vpop.eup %4562 }
 0x461   : > { %7075 = vst [vmem:[#allocation14_spill] sm:$0xff] %v6076_v26  ;;  %v2274_v47 = vmul.f32 %v6076_v26, %v6076_v26  ;;  %v2355_v42 = vpop.xlane.xlu2 %2354  ;;  %v1913_v0 = vmul.f32 %v4563_v15, %v5787_v56 }
 0x462   : > { %v6085_v29 = vpop.eup %4564  ;;  %v2698_v59 = vsub.f32 1.5, %v2697_v25  ;;  %v1601_v31 = vmul.f32 1.442695, %v1482_v48  ;;  %v6088_v3 = vmax.f32 %v2355_v42, 1e-24  ;;  %v3216_v25 = vmul.f32 %v2693_v13, %v5501_v44 }
 0x463   : > { %v1775_v60 = vsel %vm1234_vm2, %v6085_v29, 0.0  ;;  %v2398_v16 = vsel %vm968_vm1, %v2274_v47, 0.0  ;;  %v1958_v56 = vpack.c.bf16 %v1914_v11, %v1913_v0  ;;  %v6107_v58 = vpop.eup %4566  ;;  %v2708_v47 = vsub.f32 1.5, %v2707_v30 }
 0x464   : > { %v2699_v37 = vmul.f32 %v4559_v12, %v2698_v59  ;;  %4568 = vpow2.f32 %v1601_v31  ;;  %1776 = vadd.xlane.f32.xlu2 %v1775_v60  ;;  %1416 = vmax.xlane.f32.xlu0 %v1415_v43  ;;  %v6110_v59 = vpop.f32.mrf.mxu1  ;;  %v2395_v31 = vsel %vm968_vm1, %v2273_v36, 0.0  ;;  %v3671_v36 = vld [vmem:[%s5871_s13 + $0x30] sm:$0xff]  ;;  %vm2720_vm10 = vweird.f32 %v6088_v3 }
 0x465   : > { %4570 = vrsqrt.f32 %v6088_v3  ;;  %2399 = vadd.xlane.f32.xlu1 %v2398_v16  ;;  %4195 = vmatmul.msk.bf16.gmra.mxu2 %vm1234_vm2, %v1958_v56  ;;  %v2709_v43 = vmul.f32 %v6047_v54, %v2708_v47  ;;  %v2725_v16 = vmul.f32 %v6107_v58, %v6071_v27  ;;  %vm2731_vm12 = vweird.f32 %v6107_v58 }
 0x466   : > { %v2703_v42 = vsel %vm2702_vm5, %v4559_v12, %v2699_v37  ;;  %4572 = vrcp.f32 %v5977_v6  ;;  %v1424_v6 = vsel %vm1234_vm2, %v6110_v59, -inf  ;;  %vm6199_vm15 = vmor %vm2730_vm13, %vm2731_vm12 }
 0x467   : > { %v1399_v50 = vpop.xlane.xlu0 %1398  ;;  %v3217_v48 = vmul.f32 %v2703_v42, %v5522_v21  ;;  %v6105_v11 = vpop.xlane.xlu1 %2381  ;;  %v2726_v47 = vmul.f32 %v6107_v58, %v2725_v16  ;;  %v2713_v20 = vsel %vm6129_vm8, %v6047_v54, %v2709_v43  ;;  %v1421_v16 = vsel %vm1234_vm2, %v6062_v32, -inf }
 0x468   : > { %v1481_v15 = vsub.f32 %v5747_v18, %v1399_v50  ;;  %v6151_v54 = vmax.f32 %v5979_v52, 1e-24 }
 0x469   : > { %v3274_v12 = vpack.c.bf16 %v3217_v48, %v3216_v25 }
 0x46a   : > { %v6112_v0 = vpop.eup %4568  ;;  %v1599_v44 = vmul.f32 1.442695, %v1481_v15  ;;  %v1741_v13 = vpop.xlane.xlu2 %1740  ;;  %vm2750_vm5 = vweird.f32 %v6151_v54 }
 0x46b   : > { %v4571_v21 = vpop.eup %4570  ;;  %4230 = vmatmul.msk.bf16.gmra.mxu3 %vm968_vm1, %v3274_v12  ;;  %v1784_v18 = vsel %vm1234_vm2, %v6112_v0, 0.0  ;;  %v6135_v12 = vpop.f32.mrf.mxu2 }
 0x46c   : > { %v2715_v60 = vmul.f32 %v4571_v21, %v6088_v3  ;;  %4574 = vpow2.f32 %v1599_v44  ;;  %2396 = vadd.xlane.f32.xlu2 %v2395_v31  ;;  %1785 = vadd.xlane.f32.xlu0 %v1784_v18  ;;  %v4573_v30 = vpop.eup %4572  ;;  %vm2721_vm9 = vweird.f32 %v4571_v21  ;;  %v2275_v52 = vmul.f32 %v6135_v12, %v6135_v12 }
 0x46d   : > { %4576 = vrcp.f32 %v1741_v13  ;;  %1425 = vmax.xlane.f32.xlu1 %v1424_v6  ;;  %v1916_v18 = vmul.f32 %v4573_v30, %v5691_v2  ;;  %vm2722_vm11 = vmor %vm2720_vm10, %vm2721_vm9 }
 0x46e   : > { %v2716_v37 = vmul.f32 %v4571_v21, %v2715_v60  ;;  %v3456_v56 = vpop.f32.mrf.mxu3 }
 0x46f   : > { %v3457_v42 = vadd.f32 %v5854_v41, %v3456_v56  ;;  %v6127_v50 = vpop.xlane.xlu0 %1767  ;;  %v1408_v15 = vpop.xlane.xlu1 %1407 }
 0x470   : > { %v2717_v48 = vmul.f32 0.5, %v2716_v37  ;;  %v1484_v13 = vsub.f32 %v5834_v49, %v1408_v15 }
 0x471   : > { %v3607_v44 = vmax.f32 %v3457_v42, 0.0 }
 0x472   : > { %v6141_v31 = vpop.eup %4574  ;;  %v2718_v60 = vsub.f32 1.5, %v2717_v48  ;;  %v2361_v6 = vpop.xlane.xlu2 %2360  ;;  %v1605_v42 = vmul.f32 1.442695, %v1484_v13  ;;  %v3672_v13 = vld [vmem:[%s5871_s13 + $0x38] sm:$0xff] }
 0x473   : > { %v4577_v37 = vpop.eup %4576  ;;  %v3735_v56 = vadd.f32 %v3671_v36, %v3607_v44  ;;  %v6146_v26 = vmax.f32 %v2361_v6, 1e-24  ;;  %v1781_v49 = vsel %vm1234_vm2, %v6141_v31, 0.0  ;;  %v2727_v44 = vmul.f32 0.5, %v2726_v47 }
 0x474   : > { %v2719_v43 = vmul.f32 %v4571_v21, %v2718_v60  ;;  %v1915_v2 = vmul.f32 %v4577_v37, %v5837_v4  ;;  %1782 = vadd.xlane.f32.xlu2 %v1781_v49  ;;  %1422 = vmax.xlane.f32.xlu0 %v1421_v16  ;;  %4578 = vpow2.f32 %v1605_v42  ;;  %v3218_v4 = vmul.f32 %v2713_v20, %v5541_v33 }
 0x475   : > { %3799 = vst.msk [vmem:[%s5909_s18 + $0x30] sm:$0xff] %vm574_vm0, %v3735_v56  ;;  %4580 = vrsqrt.f32 %v6146_v26  ;;  %v2728_v42 = vsub.f32 1.5, %v2727_v44  ;;  %vm2740_vm3 = vweird.f32 %v6146_v26 }
 0x476   : > { %v1959_v30 = vpack.c.bf16 %v1916_v18, %v1915_v2  ;;  %v3458_v25 = vpop.f32.mrf.mxu3  ;;  %v2723_v48 = vsel %vm2722_vm11, %v4571_v21, %v2719_v43  ;;  %4582 = vrsqrt.f32 %v6151_v54 }
 0x477   : > { %v3459_v36 = vadd.f32 %v5854_v41, %v3458_v25  ;;  %v1405_v3 = vpop.xlane.xlu0 %1404  ;;  %v3219_v15 = vmul.f32 %v2723_v48, %v5562_v10  ;;  %v6167_v60 = vpop.xlane.xlu1 %2387  ;;  %4584 = vrcp.f32 %v5985_v14  ;;  %v2729_v25 = vmul.f32 %v6107_v58, %v2728_v42 }
 0x478   : > { %4196 = vmatmul.msk.bf16.gmra.mxu2 %vm1234_vm2, %v1959_v30  ;;  %v1483_v18 = vsub.f32 %v5804_v40, %v1405_v3  ;;  %v6169_v6 = vpop.f32.mrf.mxu2  ;;  %v2401_v40 = vsel %vm968_vm1, %v2275_v52, 0.0  ;;  %v6189_v48 = vmax.f32 %v5993_v39, 1e-24 }
 0x479   : > { %v3608_v21 = vmax.f32 %v3459_v36, 0.0  ;;  %v3275_v16 = vpack.c.bf16 %v3219_v15, %v3218_v4  ;;  %v2276_v33 = vmul.f32 %v6169_v6, %v6169_v6 }
 0x47a   : > { %v1603_v37 = vmul.f32 1.442695, %v1483_v18  ;;  %v1747_v10 = vpop.xlane.xlu2 %1746  ;;  %v6173_v47 = vpop.eup %4578  ;;  %vm2770_vm12 = vweird.f32 %v6189_v48 }
 0x47b   : > { %v3736_v20 = vadd.f32 %v3672_v13, %v3608_v21  ;;  %4231 = vmatmul.msk.bf16.gmra.mxu3 %vm968_vm1, %v3275_v16  ;;  %v4581_v56 = vpop.eup %4580  ;;  %v1790_v49 = vsel %vm1234_vm2, %v6173_v47, 0.0  ;;  %v2404_v43 = vsel %vm968_vm1, %v2276_v33, 0.0 }
 0x47c   : > { %4586 = vpow2.f32 %v1603_v37  ;;  %2402 = vadd.xlane.f32.xlu2 %v2401_v40  ;;  %v2735_v2 = vmul.f32 %v4581_v56, %v6146_v26  ;;  %1791 = vadd.xlane.f32.xlu0 %v1790_v49  ;;  %v6184_v14 = vpop.eup %4582  ;;  %vm2741_vm14 = vweird.f32 %v4581_v56 }
 0x47d   : > { %3800 = vst.msk [vmem:[%s5909_s18 + $0x38] sm:$0xff] %vm574_vm0, %v3736_v20  ;;  %4588 = vrcp.f32 %v1747_v10  ;;  %2405 = vadd.xlane.f32.xlu1 %v2404_v43  ;;  %v4585_v36 = vpop.eup %4584  ;;  %v2745_v3 = vmul.f32 %v6184_v14, %v6151_v54  ;;  %v2733_v20 = vsel %vm6199_vm15, %v6107_v58, %v2729_v25  ;;  %vm2742_vm4 = vmor %vm2740_vm3, %vm2741_vm14  ;;  %vm2751_vm6 = vweird.f32 %v6184_v14 }
 0x47e   : > { %v2736_v30 = vmul.f32 %v4581_v56, %v2735_v2  ;;  %v1918_v10 = vmul.f32 %v4585_v36, %v5717_v17  ;;  %4590 = vrsqrt.f32 %v6189_v48  ;;  %v3220_v43 = vmul.f32 %v2733_v20, %v5582_v23  ;;  %vm6254_vm8 = vmor %vm2750_vm5, %vm2751_vm6 }
 0x47f   : > { %v1414_v52 = vpop.xlane.xlu1 %1413  ;;  %v2746_v40 = vmul.f32 %v6184_v14, %v2745_v3 }
 0x480   : > { %v2737_v4 = vmul.f32 0.5, %v2736_v30  ;;  %v1486_v15 = vsub.f32 %v5924_v24, %v1414_v52  ;;  %v6194_v44 = vpop.f32.mrf.mxu2 }
 0x481   : > { %v2277_v49 = vmul.f32 %v6194_v44, %v6194_v44  ;;  %v2747_v2 = vmul.f32 0.5, %v2746_v40 }
 0x482   : > { %v6196_v13 = vpop.eup %4586  ;;  %v2367_v18 = vpop.xlane.xlu2 %2366  ;;  %v2738_v16 = vsub.f32 1.5, %v2737_v4  ;;  %v1609_v37 = vmul.f32 1.442695, %v1486_v15 }
 0x483   : > { %v4589_v21 = vpop.eup %4588  ;;  %v6203_v33 = vmax.f32 %v2367_v18, 1e-24  ;;  %v1787_v24 = vsel %vm1234_vm2, %v6196_v13, 0.0 }
 0x484   : > { %v1917_v27 = vmul.f32 %v4589_v21, %v5914_v57  ;;  %1788 = vadd.xlane.f32.xlu2 %v1787_v24  ;;  %v2739_v42 = vmul.f32 %v4581_v56, %v2738_v16  ;;  %4592 = vpow2.f32 %v1609_v37  ;;  %v6223_v26 = vpop.eup %4590  ;;  %v3673_v37 = vld [vmem:[%s5871_s13 + $0x40] sm:$0xff] }
 0x485   : > { %4594 = vrsqrt.f32 %v6203_v33  ;;  %vm2760_vm9 = vweird.f32 %v6203_v33  ;;  %vm2771_vm11 = vweird.f32 %v6223_v26 }
 0x486   : > { %v1960_v17 = vpack.c.bf16 %v1918_v10, %v1917_v27  ;;  %v2743_v57 = vsel %vm2742_vm4, %v4581_v56, %v2739_v42  ;;  %4596 = vrcp.f32 %v6015_v53  ;;  %v2407_v56 = vsel %vm968_vm1, %v2277_v49, 0.0  ;;  %vm6283_vm13 = vmor %vm2770_vm12, %vm2771_vm11 }
 0x487   : > { %v3221_v58 = vmul.f32 %v2743_v57, %v5685_v22  ;;  %v2748_v22 = vsub.f32 1.5, %v2747_v2  ;;  %v2765_v53 = vmul.f32 %v6223_v26, %v6189_v48 }
 0x488   : > { %4197 = vmatmul.msk.bf16.gmra.mxu2 %vm1234_vm2, %v1960_v17  ;;  %v6227_v36 = vpop.f32.mrf.mxu2  ;;  %v6246_v17 = vmax.f32 %v6039_v34, 1e-24 }
 0x489   : > { %v3276_v25 = vpack.c.bf16 %v3221_v58, %v3220_v43  ;;  %v2278_v15 = vmul.f32 %v6227_v36, %v6227_v36  ;;  %v2749_v10 = vmul.f32 %v6184_v14, %v2748_v22  ;;  %v2766_v27 = vmul.f32 %v6223_v26, %v2765_v53  ;;  %v3674_v53 = vld [vmem:[%s5871_s13 + $0x48] sm:$0xff] }
 0x48a   : > { %v1753_v30 = vpop.xlane.xlu2 %1752  ;;  %v6225_v52 = vpop.eup %4592  ;;  %vm2790_vm5 = vweird.f32 %v6246_v17 }
 0x48b   : > { %4598 = vrcp.f32 %v1753_v30  ;;  %v4595_v3 = vpop.eup %4594  ;;  %4232 = vmatmul.msk.bf16.gmra.mxu3 %vm968_vm1, %v3276_v25  ;;  %v1796_v23 = vsel %vm1234_vm2, %v6225_v52, 0.0  ;;  %v2410_v43 = vsel %vm968_vm1, %v2278_v15, 0.0  ;;  %v2767_v54 = vmul.f32 0.5, %v2766_v27 }
 0x48c   : > { %2408 = vadd.xlane.f32.xlu2 %v2407_v56  ;;  %v2755_v4 = vmul.f32 %v4595_v3, %v6203_v33  ;;  %1797 = vadd.xlane.f32.xlu1 %v1796_v23  ;;  %v4597_v21 = vpop.eup %4596  ;;  %vm2761_vm7 = vweird.f32 %v4595_v3 }
 0x48d   : > { %v1920_v42 = vmul.f32 %v4597_v21, %v5757_v7  ;;  %vm2762_vm10 = vmor %vm2760_vm9, %vm2761_vm7 }
 0x48e   : > { %v3461_v18 = vpop.f32.mrf.mxu3  ;;  %v2756_v39 = vmul.f32 %v4595_v3, %v2755_v4 }
 0x48f   : > { %v3462_v16 = vadd.f32 %v5854_v41, %v3461_v18 }
 0x490   : > { %v2757_v20 = vmul.f32 0.5, %v2756_v39  ;;  %v2768_v39 = vsub.f32 1.5, %v2767_v54 }
 0x491   : > { %v4599_v24 = vpop.eup %4598  ;;  %v3609_v40 = vmax.f32 %v3462_v16, 0.0 }
 0x492   : > { %v1919_v49 = vmul.f32 %v4599_v24, %v5947_v19  ;;  %v2373_v57 = vpop.xlane.xlu2 %2372  ;;  %v2758_v58 = vsub.f32 1.5, %v2757_v20  ;;  %v2753_v19 = vsel %vm6254_vm8, %v6184_v14, %v2749_v10 }
 0x493   : > { %v3737_v2 = vadd.f32 %v3673_v37, %v3609_v40  ;;  %v2521_v30 = vmax.f32 %v2373_v57, 1e-24  ;;  %v3222_v33 = vmul.f32 %v2753_v19, %v5698_v45  ;;  %v3675_v40 = vld [vmem:[%s5871_s13 + $0x50] sm:$0xff] }
 0x494   : > { %2411 = vadd.xlane.f32.xlu2 %v2410_v43  ;;  %v1961_v7 = vpack.c.bf16 %v1920_v42, %v1919_v49  ;;  %v2759_v34 = vmul.f32 %v4595_v3, %v2758_v58  ;;  %v7084_v43 = vld [vmem:[#allocation7_spill] sm:$0xff] }
 0x495   : > { %3801 = vst.msk [vmem:[%s5909_s18 + $0x40] sm:$0xff] %vm574_vm0, %v3737_v2  ;;  %4600 = vrsqrt.f32 %v2521_v30  ;;  %vm2780_vm15 = vweird.f32 %v2521_v30 }
 0x496   : > { %v3463_v56 = vpop.f32.mrf.mxu3  ;;  %4602 = vrsqrt.f32 %v6246_v17  ;;  %v2763_v22 = vsel %vm2762_vm10, %v4595_v3, %v2759_v34 }
 0x497   : > { %v3464_v23 = vadd.f32 %v5854_v41, %v3463_v56  ;;  %v3223_v4 = vmul.f32 %v2763_v22, %v5713_v9  ;;  %4604 = vrcp.f32 %v6073_v51  ;;  %v2769_v51 = vmul.f32 %v6223_v26, %v2768_v39 }
 0x498   : > { %4198 = vmatmul.msk.bf16.gmra.mxu2 %vm1234_vm2, %v1961_v7 }
 0x499   : > { %v3610_v15 = vmax.f32 %v3464_v23, 0.0  ;;  %v3277_v18 = vpack.c.bf16 %v3223_v4, %v3222_v33  ;;  %v2773_v48 = vsel %vm6283_vm13, %v6223_v26, %v2769_v51  ;;  %v7085_v33 = vld [vmem:[#allocation5_spill] sm:$0xff]  ;;  %v3676_v26 = vld [vmem:[%s5871_s13 + $0x58] sm:$0xff] }
 0x49a   : > { %v1759_v14 = vpop.xlane.xlu2 %1758  ;;  %v3224_v4 = vmul.f32 %v2773_v48, %v7085_v33 }
 0x49b   : > { %v4601_v21 = vpop.eup %4600  ;;  %v3738_v16 = vadd.f32 %v3674_v53, %v3610_v15  ;;  %4606 = vrcp.f32 %v1759_v14  ;;  %4233 = vmatmul.msk.bf16.gmra.mxu3 %vm968_vm1, %v3277_v18 }
 0x49c   : > { %v2775_v37 = vmul.f32 %v4601_v21, %v2521_v30  ;;  %v6272_v3 = vpop.eup %4602  ;;  %vm2781_vm14 = vweird.f32 %v4601_v21 }
 0x49d   : > { %3802 = vst.msk [vmem:[%s5909_s18 + $0x48] sm:$0xff] %vm574_vm0, %v3738_v16  ;;  %v4605_v9 = vpop.eup %4604  ;;  %v2785_v27 = vmul.f32 %v6272_v3, %v6246_v17  ;;  %vm2782_vm3 = vmor %vm2780_vm15, %vm2781_vm14  ;;  %vm2791_vm4 = vweird.f32 %v6272_v3 }
 0x49e   : > { %v2776_v45 = vmul.f32 %v4601_v21, %v2775_v37  ;;  %v3466_v24 = vpop.f32.mrf.mxu3  ;;  %v1922_v58 = vmul.f32 %v4605_v9, %v7084_v43  ;;  %vm2792_vm7 = vmor %vm2790_vm5, %vm2791_vm4 }
 0x49f   : > { %v3467_v10 = vadd.f32 %v5854_v41, %v3466_v24  ;;  %v2786_v56 = vmul.f32 %v6272_v3, %v2785_v27 }
 0x4a0   : > { %v2777_v20 = vmul.f32 0.5, %v2776_v45 }
 0x4a1   : > { %v4607_v42 = vpop.eup %4606  ;;  %v3611_v49 = vmax.f32 %v3467_v10, 0.0  ;;  %v2787_v14 = vmul.f32 0.5, %v2786_v56 }
 0x4a2   : > { %v2778_v2 = vsub.f32 1.5, %v2777_v20  ;;  %v1921_v25 = vmul.f32 %v4607_v42, %v5966_v63  ;;  %v2379_v7 = vpop.xlane.xlu2 %2378  ;;  %v7086_v20 = vld [vmem:[#allocation6_spill] sm:$0xff] }
 0x4a3   : > { %v3739_v34 = vadd.f32 %v3675_v40, %v3611_v49  ;;  %v2523_v19 = vmax.f32 %v2379_v7, 1e-24  ;;  %v2788_v37 = vsub.f32 1.5, %v2787_v14 }
 0x4a4   : > { %v2779_v54 = vmul.f32 %v4601_v21, %v2778_v2  ;;  %v1962_v23 = vpack.c.bf16 %v1922_v58, %v1921_v25 }
 0x4a5   : > { %3803 = vst.msk [vmem:[%s5909_s18 + $0x50] sm:$0xff] %vm574_vm0, %v3739_v34  ;;  %4608 = vrsqrt.f32 %v2523_v19  ;;  %v2789_v24 = vmul.f32 %v6272_v3, %v2788_v37  ;;  %vm2800_vm8 = vweird.f32 %v2523_v19 }
 0x4a6   : > { %v3468_v22 = vpop.f32.mrf.mxu3  ;;  %v2783_v63 = vsel %vm2782_vm3, %v4601_v21, %v2779_v54 }
 0x4a7   : > { %v3469_v53 = vadd.f32 %v5854_v41, %v3468_v22  ;;  %v3225_v15 = vmul.f32 %v2783_v63, %v5751_v35  ;;  %v2524_v41 = vmax.f32 %v6105_v11, 1e-24  ;;  %v2793_v10 = vsel %vm2792_vm7, %v6272_v3, %v2789_v24  ;;  %v7087_v3 = vld [vmem:[#allocation9_spill] sm:$0xff] }
 0x4a8   : > { %4199 = vmatmul.msk.bf16.gmra.mxu2 %vm1234_vm2, %v1962_v23  ;;  %v3226_v40 = vmul.f32 %v2793_v10, %v7086_v20  ;;  %v6344_v10 = vpop.f32.mrf.mxu2 }
 0x4a9   : > { %v3612_v18 = vmax.f32 %v3469_v53, 0.0  ;;  %v3278_v30 = vpack.c.bf16 %v3225_v15, %v3224_v4  ;;  %4610 = vrsqrt.f32 %v2524_v41  ;;  %vm2810_vm11 = vweird.f32 %v2524_v41 }
 0x4aa   : > { %4612 = vrcp.f32 %v6127_v50  ;;  %v6317_v50 = vmax.f32 %v6167_v60, 1e-24 }
 0x4ab   : > { %v4609_v39 = vpop.eup %4608  ;;  %v3740_v16 = vadd.f32 %v3676_v26, %v3612_v18  ;;  %4234 = vmatmul.msk.bf16.gmra.mxu3 %vm968_vm1, %v3278_v30 }
 0x4ac   : > { %v2795_v45 = vmul.f32 %v4609_v39, %v2523_v19  ;;  %vm2801_vm6 = vweird.f32 %v4609_v39  ;;  %vm2830_vm4 = vweird.f32 %v6317_v50 }
 0x4ad   : > { %3804 = vst.msk [vmem:[%s5909_s18 + $0x58] sm:$0xff] %vm574_vm0, %v3740_v16  ;;  %vm2802_vm9 = vmor %vm2800_vm8, %vm2801_vm6 }
 0x4ae   : > { %v2796_v21 = vmul.f32 %v4609_v39, %v2795_v45 }
 0x4af   : > { %v6311_v49 = vpop.eup %4610 }
 0x4b0   : > { %v2797_v35 = vmul.f32 0.5, %v2796_v21  ;;  %v4613_v57 = vpop.eup %4612  ;;  %v2805_v43 = vmul.f32 %v6311_v49, %v2524_v41  ;;  %vm2811_vm10 = vweird.f32 %v6311_v49 }
 0x4b1   : > { %v1924_v2 = vmul.f32 %v4613_v57, %v7087_v3  ;;  %vm6331_vm12 = vmor %vm2810_vm11, %vm2811_vm10  ;;  %v2279_v3 = vmul.f32 %v6344_v10, %v6344_v10 }
 0x4b2   : > { %v2798_v9 = vsub.f32 1.5, %v2797_v35 }
 0x4b4   : > { %v2799_v51 = vmul.f32 %v4609_v39, %v2798_v9 }
 0x4b6   : > { %v2803_v27 = vsel %vm2802_vm9, %v4609_v39, %v2799_v51 }
 0x4b7   : > { %v1765_v11 = vpop.xlane.xlu2 %1764  ;;  %v3227_v42 = vmul.f32 %v2803_v27, %v5800_v38  ;;  %v2806_v38 = vmul.f32 %v6311_v49, %v2805_v43 }
 0x4b8   : > { %4614 = vrcp.f32 %v1765_v11 }
 0x4b9   : > { %v3279_v17 = vpack.c.bf16 %v3227_v42, %v3226_v40  ;;  %v2807_v56 = vmul.f32 0.5, %v2806_v38 }
 0x4bb   : > { %4235 = vmatmul.msk.bf16.gmra.mxu3 %vm968_vm1, %v3279_v17  ;;  %v2808_v60 = vsub.f32 1.5, %v2807_v56  ;;  %v7090_v17 = vld [vmem:[#allocation8_spill] sm:$0xff] }
 0x4bd   : > { %v2809_v26 = vmul.f32 %v6311_v49, %v2808_v60 }
 0x4be   : > { %v4615_v58 = vpop.eup %4614 }
 0x4bf   : > { %v1923_v25 = vmul.f32 %v4615_v58, %v5988_v46  ;;  %v2385_v7 = vpop.xlane.xlu2 %2384  ;;  %v1774_v34 = vpop.xlane.xlu0 %1773  ;;  %v2813_v9 = vsel %vm6331_vm12, %v6311_v49, %v2809_v26  ;;  %v7091_v26 = vld [vmem:[#allocation13_spill] sm:$0xff] }
 0x4c0   : > { %v2525_v19 = vmax.f32 %v2385_v7, 1e-24  ;;  %v3228_v57 = vmul.f32 %v2813_v9, %v7090_v17  ;;  %v7095_v17 = vld [vmem:[#allocation11_spill] sm:$0xff] }
 0x4c1   : > { %v1963_v48 = vpack.c.bf16 %v1924_v2, %v1923_v25 }
 0x4c2   : > { %4616 = vrsqrt.f32 %v2525_v19  ;;  %vm2820_vm14 = vweird.f32 %v2525_v19 }
 0x4c3   : > { %4618 = vrsqrt.f32 %v6317_v50  ;;  %4200 = vmatmul.msk.bf16.gmra.mxu2 %vm1234_vm2, %v1963_v48 }
 0x4c4   : > { %4620 = vrcp.f32 %v1774_v34 }
 0x4c7   : > { %v1771_v54 = vpop.xlane.xlu2 %1770  ;;  %v1411_v23 = vpop.xlane.xlu0 %1410 }
 0x4c8   : > { %v4617_v22 = vpop.eup %4616  ;;  %4622 = vrcp.f32 %v1771_v54  ;;  %v1485_v46 = vsub.f32 %v5873_v8, %v1411_v23  ;;  %v2394_v63 = vpop.xlane.xlu1 %2393 }
 0x4c9   : > { %v6324_v53 = vpop.eup %4618  ;;  %v2815_v33 = vmul.f32 %v4617_v22, %v2525_v19  ;;  %vm2821_vm13 = vweird.f32 %v4617_v22  ;;  %v6336_v21 = vmax.f32 %v2394_v63, 1e-24 }
 0x4ca   : > { %v1607_v4 = vmul.f32 1.442695, %v1485_v46  ;;  %v4621_v15 = vpop.eup %4620  ;;  %v2825_v18 = vmul.f32 %v6324_v53, %v6317_v50  ;;  %vm2822_vm15 = vmor %vm2820_vm14, %vm2821_vm13  ;;  %vm2831_vm3 = vweird.f32 %v6324_v53  ;;  %v2413_v46 = vsel %vm968_vm1, %v2279_v3, 0.0 }
 0x4cb   : > { %v2816_v14 = vmul.f32 %v4617_v22, %v2815_v33  ;;  %v1926_v8 = vmul.f32 %v4621_v15, %v6003_v28  ;;  %vm6379_vm5 = vmor %vm2830_vm4, %vm2831_vm3  ;;  %vm2850_vm10 = vweird.f32 %v6336_v21 }
 0x4cc   : > { %4624 = vpow2.f32 %v1607_v4  ;;  %v2826_v41 = vmul.f32 %v6324_v53, %v2825_v18 }
 0x4cd   : > { %v2817_v30 = vmul.f32 0.5, %v2816_v14 }
 0x4ce   : > { %v4623_v39 = vpop.eup %4622  ;;  %v2827_v43 = vmul.f32 0.5, %v2826_v41 }
 0x4cf   : > { %v2818_v37 = vsub.f32 1.5, %v2817_v30  ;;  %v1925_v45 = vmul.f32 %v4623_v39, %v6023_v61  ;;  %v2391_v24 = vpop.xlane.xlu2 %2390  ;;  %v1780_v35 = vpop.xlane.xlu0 %1779 }
 0x4d0   : > { %v6342_v51 = vmax.f32 %v2391_v24, 1e-24  ;;  %v1420_v28 = vpop.xlane.xlu1 %1419  ;;  %v2828_v34 = vsub.f32 1.5, %v2827_v43 }
 0x4d1   : > { %v2819_v27 = vmul.f32 %v4617_v22, %v2818_v37  ;;  %v1488_v11 = vsub.f32 %v6035_v55, %v1420_v28  ;;  %v1964_v61 = vpack.c.bf16 %v1926_v8, %v1925_v45 }
 0x4d2   : > { %v6347_v20 = vpop.eup %4624  ;;  %4626 = vrsqrt.f32 %v6342_v51  ;;  %vm2840_vm7 = vweird.f32 %v6342_v51 }
 0x4d3   : > { %v2823_v40 = vsel %vm2822_vm15, %v4617_v22, %v2819_v27  ;;  %4628 = vrsqrt.f32 %v6336_v21  ;;  %v1613_v42 = vmul.f32 1.442695, %v1488_v11  ;;  %4201 = vmatmul.msk.bf16.gmra.mxu2 %vm1234_vm2, %v1964_v61  ;;  %v1793_v49 = vsel %vm1234_vm2, %v6347_v20, 0.0 }
 0x4d4   : > { %v3229_v55 = vmul.f32 %v2823_v40, %v5845_v5  ;;  %4630 = vrcp.f32 %v1780_v35  ;;  %1794 = vadd.xlane.f32.xlu0 %v1793_v49 }
 0x4d5   : > { %4632 = vpow2.f32 %v1613_v42  ;;  %v7094_v42 = vld [vmem:[#allocation10_spill] sm:$0xff] }
 0x4d6   : > { %v3280_v58 = vpack.c.bf16 %v3229_v55, %v3228_v57 }
 0x4d7   : > { %v1777_v2 = vpop.xlane.xlu2 %1776  ;;  %v1417_v25 = vpop.xlane.xlu0 %1416 }
 0x4d8   : > { %v4627_v7 = vpop.eup %4626  ;;  %4634 = vrcp.f32 %v1777_v2  ;;  %v1487_v38 = vsub.f32 %v6005_v1, %v1417_v25  ;;  %v2400_v19 = vpop.xlane.xlu1 %2399  ;;  %4236 = vmatmul.msk.bf16.gmra.mxu3 %vm968_vm1, %v3280_v58  ;;  %v2829_v1 = vmul.f32 %v6324_v53, %v2828_v34 }
 0x4d9   : > { %v6361_v48 = vpop.eup %4628  ;;  %v2835_v5 = vmul.f32 %v4627_v7, %v6342_v51  ;;  %v6364_v56 = vpop.f32.mrf.mxu2  ;;  %v6375_v15 = vmax.f32 %v2400_v19, 1e-24  ;;  %vm2841_vm6 = vweird.f32 %v4627_v7 }
 0x4da   : > { %v4631_v54 = vpop.eup %4630  ;;  %v1611_v23 = vmul.f32 1.442695, %v1487_v38  ;;  %v2845_v63 = vmul.f32 %v6361_v48, %v6336_v21  ;;  %v2280_v16 = vmul.f32 %v6364_v56, %v6364_v56  ;;  %v2833_v24 = vsel %vm6379_vm5, %v6324_v53, %v2829_v1  ;;  %vm2842_vm8 = vmor %vm2840_vm7, %vm2841_vm6 }
 0x4db   : > { %v6366_v22 = vpop.eup %4632  ;;  %v2836_v60 = vmul.f32 %v4627_v7, %v2835_v5  ;;  %v1928_v18 = vmul.f32 %v4631_v54, %v7091_v26  ;;  %vm2851_vm9 = vweird.f32 %v6361_v48  ;;  %vm2870_vm3 = vweird.f32 %v6375_v15 }
 0x4dc   : > { %4636 = vpow2.f32 %v1611_v23  ;;  %v1802_v33 = vsel %vm1234_vm2, %v6366_v22, 0.0  ;;  %2414 = vadd.xlane.f32.xlu0 %v2413_v46  ;;  %v2846_v50 = vmul.f32 %v6361_v48, %v2845_v63  ;;  %v2416_v51 = vsel %vm968_vm1, %v2280_v16, 0.0  ;;  %vm6428_vm12 = vmor %vm2850_vm10, %vm2851_vm9 }
 0x4dd   : > { %v2837_v4 = vmul.f32 0.5, %v2836_v60  ;;  %1803 = vadd.xlane.f32.xlu2 %v1802_v33  ;;  %4638 = vrsqrt.f32 %v6375_v15 }
 0x4de   : > { %v4635_v14 = vpop.eup %4634  ;;  %v2847_v49 = vmul.f32 0.5, %v2846_v50 }
 0x4df   : > { %v2838_v39 = vsub.f32 1.5, %v2837_v4  ;;  %v1927_v8 = vmul.f32 %v4635_v14, %v6085_v29  ;;  %v2397_v37 = vpop.xlane.xlu2 %2396  ;;  %v1786_v45 = vpop.xlane.xlu0 %1785 }
 0x4e0   : > { %v6391_v35 = vmax.f32 %v2397_v37, 1e-24  ;;  %v1426_v9 = vpop.xlane.xlu1 %1425 }
 0x4e1   : > { %v2839_v41 = vmul.f32 %v4627_v7, %v2838_v39  ;;  %v1490_v29 = vsub.f32 %v6110_v59, %v1426_v9  ;;  %v6395_v28 = vpop.f32.mrf.mxu2  ;;  %v1965_v27 = vpack.c.bf16 %v1928_v18, %v1927_v8  ;;  %v3230_v59 = vmul.f32 %v2833_v24, %v7094_v42  ;;  %v6438_v8 = vld [vmem:[%s7042_s7] ss:$0 sm:$0xff] }
 0x4e2   : > { %v6397_v11 = vpop.eup %4636  ;;  %4640 = vrsqrt.f32 %v6391_v35  ;;  %v2281_v58 = vmul.f32 %v6395_v28, %v6395_v28  ;;  %vm2860_vm13 = vweird.f32 %v6391_v35 }
 0x4e3   : > { %v2843_v53 = vsel %vm2842_vm8, %v4627_v7, %v2839_v41  ;;  %v1617_v61 = vmul.f32 1.442695, %v1490_v29  ;;  %4202 = vmatmul.msk.bf16.gmra.mxu2 %vm1234_vm2, %v1965_v27  ;;  %v1799_v40 = vsel %vm1234_vm2, %v6397_v11, 0.0  ;;  %v6407_v55 = vpop.eup %4638  ;;  %v2848_v7 = vsub.f32 1.5, %v2847_v49 }
 0x4e4   : > { %v3231_v57 = vmul.f32 %v2843_v53, %v7095_v17  ;;  %2417 = vadd.xlane.f32.xlu0 %v2416_v51  ;;  %1800 = vadd.xlane.f32.xlu1 %v1799_v40  ;;  %v2419_v60 = vsel %vm968_vm1, %v2281_v58, 0.0  ;;  %v2865_v1 = vmul.f32 %v6407_v55, %v6375_v15  ;;  %v7098_v51 = vld [vmem:[#allocation12_spill] sm:$0xff]  ;;  %vm2871_vm15 = vweird.f32 %v6407_v55 }
 0x4e5   : > { %4642 = vpow2.f32 %v1617_v61  ;;  %v2849_v46 = vmul.f32 %v6361_v48, %v2848_v7  ;;  %vm6489_vm4 = vmor %vm2870_vm3, %vm2871_vm15 }
 0x4e6   : > { %v3281_v43 = vpack.c.bf16 %v3231_v57, %v3230_v59  ;;  %4644 = vrcp.f32 %v1786_v45  ;;  %v2866_v45 = vmul.f32 %v6407_v55, %v2865_v1 }
 0x4e7   : > { %v1783_v3 = vpop.xlane.xlu2 %1782  ;;  %v1423_v2 = vpop.xlane.xlu0 %1422  ;;  %v2853_v37 = vsel %vm6428_vm12, %v6361_v48, %v2849_v46 }
 0x4e8   : > { %v4641_v25 = vpop.eup %4640  ;;  %4646 = vrcp.f32 %v1783_v3  ;;  %v1489_v34 = vsub.f32 %v6062_v32, %v1423_v2  ;;  %4237 = vmatmul.msk.bf16.gmra.mxu3 %vm968_vm1, %v3281_v43  ;;  %v3232_v40 = vmul.f32 %v2853_v37, %v7098_v51  ;;  %v2867_v49 = vmul.f32 0.5, %v2866_v45 }
 0x4e9   : > { %v2855_v38 = vmul.f32 %v4641_v25, %v6391_v35  ;;  %v6414_v19 = vpop.f32.mrf.mxu2  ;;  %vm2861_vm11 = vweird.f32 %v4641_v25 }
 0x4ea   : > { %v1615_v5 = vmul.f32 1.442695, %v1489_v34  ;;  %v2282_v39 = vmul.f32 %v6414_v19, %v6414_v19  ;;  %vm2862_vm14 = vmor %vm2860_vm13, %vm2861_vm11  ;;  %v2868_v7 = vsub.f32 1.5, %v2867_v49  ;;  %v3678_v34 = vld [vmem:[%s5871_s13 + $0x68] sm:$0xff] }
 0x4eb   : > { %v6416_v54 = vpop.eup %4642  ;;  %v2856_v23 = vmul.f32 %v4641_v25, %v2855_v38 }
 0x4ec   : > { %4648 = vpow2.f32 %v1615_v5  ;;  %2420 = vadd.xlane.f32.xlu1 %v2419_v60  ;;  %v1808_v32 = vsel %vm1234_vm2, %v6416_v54, 0.0  ;;  %v4645_v63 = vpop.eup %4644  ;;  %v2422_v35 = vsel %vm968_vm1, %v2282_v39, 0.0 }
 0x4ed   : > { %v2857_v33 = vmul.f32 0.5, %v2856_v23  ;;  %1809 = vadd.xlane.f32.xlu0 %v1808_v32  ;;  %v1930_v24 = vmul.f32 %v4645_v63, %v6112_v0  ;;  %v2869_v63 = vmul.f32 %v6407_v55, %v2868_v7 }
 0x4ee   : > { %v4647_v4 = vpop.eup %4646  ;;  %v3471_v14 = vpop.f32.mrf.mxu3 }
 0x4ef   : > { %v2858_v18 = vsub.f32 1.5, %v2857_v33  ;;  %v1929_v30 = vmul.f32 %v4647_v4, %v6141_v31  ;;  %v3472_v21 = vadd.f32 %v6438_v8, %v3471_v14  ;;  %v2403_v16 = vpop.xlane.xlu2 %2402  ;;  %v3677_v31 = vld [vmem:[%s5871_s13 + $0x60] sm:$0xff]  ;;  %v1792_v0 = vpop.xlane.xlu0 %1791  ;;  %v2873_v15 = vsel %vm6489_vm4, %v6407_v55, %v2869_v63 }
 0x4f0   : > { %v6447_v50 = vmax.f32 %v2403_v16, 1e-24  ;;  %v2406_v9 = vpop.xlane.xlu1 %2405 }
 0x4f1   : > { %v2859_v41 = vmul.f32 %v4641_v25, %v2858_v18  ;;  %v3613_v29 = vmax.f32 %v3472_v21, 0.0  ;;  %v6450_v27 = vmax.f32 %v2406_v9, 1e-24  ;;  %v6452_v53 = vpop.f32.mrf.mxu2  ;;  %v1966_v48 = vpack.c.bf16 %v1930_v24, %v1929_v30 }
 0x4f2   : > { %v6454_v61 = vpop.eup %4648  ;;  %4650 = vrsqrt.f32 %v6447_v50  ;;  %vm2880_vm6 = vweird.f32 %v6447_v50 }
 0x4f3   : > { %v2863_v42 = vsel %vm2862_vm14, %v4641_v25, %v2859_v41  ;;  %v3741_v59 = vadd.f32 %v3677_v31, %v3613_v29  ;;  %4652 = vrsqrt.f32 %v6450_v27  ;;  %4203 = vmatmul.msk.bf16.gmra.mxu2 %vm1234_vm2, %v1966_v48  ;;  %v1805_v57 = vsel %vm1234_vm2, %v6454_v61, 0.0 }
 0x4f4   : > { %v3233_v17 = vmul.f32 %v2863_v42, %v6045_v62  ;;  %2423 = vadd.xlane.f32.xlu1 %v2422_v35  ;;  %4654 = vrcp.f32 %v1792_v0  ;;  %1806 = vadd.xlane.f32.xlu2 %v1805_v57  ;;  %v2283_v62 = vmul.f32 %v6452_v53, %v6452_v53  ;;  %v7101_v42 = vld [vmem:[#allocation14_spill] sm:$0xff]  ;;  %vm2890_vm9 = vweird.f32 %v6450_v27 }
 0x4f5   : > { %3805 = vst.msk [vmem:[%s5909_s18 + $0x60] sm:$0xff] %vm574_vm0, %v3741_v59  ;;  %v3234_v59 = vmul.f32 %v2873_v15, %v7101_v42 }
 0x4f6   : > { %v3473_v43 = vpop.f32.mrf.mxu3  ;;  %v3282_v58 = vpack.c.bf16 %v3233_v17, %v3232_v40  ;;  %v2425_v4 = vsel %vm968_vm1, %v2283_v62, 0.0 }
 0x4f7   : > { %v3474_v3 = vadd.f32 %v6438_v8, %v3473_v43  ;;  %v1789_v2 = vpop.xlane.xlu2 %1788 }
 0x4f8   : > { %v4651_v25 = vpop.eup %4650  ;;  %4656 = vrcp.f32 %v1789_v2  ;;  %4238 = vmatmul.msk.bf16.gmra.mxu3 %vm968_vm1, %v3282_v58 }
 0x4f9   : > { %v2875_v38 = vmul.f32 %v4651_v25, %v6447_v50  ;;  %v3614_v5 = vmax.f32 %v3474_v3, 0.0  ;;  %v6473_v23 = vpop.eup %4652  ;;  %vm2881_vm5 = vweird.f32 %v4651_v25  ;;  %v3680_v3 = vld [vmem:[%s5871_s13 + $0x78] sm:$0xff] }
 0x4fa   : > { %v4655_v60 = vpop.eup %4654  ;;  %v2885_v26 = vmul.f32 %v6473_v23, %v6450_v27  ;;  %vm2882_vm7 = vmor %vm2880_vm6, %vm2881_vm5  ;;  %vm2891_vm8 = vweird.f32 %v6473_v23 }
 0x4fb   : > { %v2876_v46 = vmul.f32 %v4651_v25, %v2875_v38  ;;  %v3742_v1 = vadd.f32 %v3678_v34, %v3614_v5  ;;  %v6475_v32 = vpop.f32.mrf.mxu2  ;;  %v1932_v30 = vmul.f32 %v4655_v60, %v6173_v47  ;;  %v3679_v47 = vld [vmem:[%s5871_s13 + $0x70] sm:$0xff]  ;;  %vm2892_vm11 = vmor %vm2890_vm9, %vm2891_vm8 }
 0x4fc   : > { %v2284_v33 = vmul.f32 %v6475_v32, %v6475_v32  ;;  %2426 = vadd.xlane.f32.xlu2 %v2425_v4  ;;  %v2886_v29 = vmul.f32 %v6473_v23, %v2885_v26  ;;  %v3681_v26 = vld [vmem:[%s5871_s13 + $0x80] sm:$0xff] }
 0x4fd   : > { %v2877_v14 = vmul.f32 0.5, %v2876_v46  ;;  %3806 = vst.msk [vmem:[%s5909_s18 + $0x68] sm:$0xff] %vm574_vm0, %v3742_v1 }
 0x4fe   : > { %v4657_v18 = vpop.eup %4656  ;;  %v2428_v39 = vsel %vm968_vm1, %v2284_v33, 0.0  ;;  %v3476_v21 = vpop.f32.mrf.mxu3  ;;  %v2887_v35 = vmul.f32 0.5, %v2886_v29 }
 0x4ff   : > { %v2878_v37 = vsub.f32 1.5, %v2877_v14  ;;  %v1931_v45 = vmul.f32 %v4657_v18, %v6196_v13  ;;  %2429 = vadd.xlane.f32.xlu0 %v2428_v39  ;;  %v3477_v24 = vadd.f32 %v6438_v8, %v3476_v21  ;;  %v2409_v31 = vpop.xlane.xlu2 %2408 }
 0x500   : > { %v2533_v9 = vmax.f32 %v2409_v31, 1e-24 }
 0x501   : > { %v2879_v41 = vmul.f32 %v4651_v25, %v2878_v37  ;;  %v3615_v0 = vmax.f32 %v3477_v24, 0.0  ;;  %v1967_v48 = vpack.c.bf16 %v1932_v30, %v1931_v45 }
 0x502   : > { %4658 = vrsqrt.f32 %v2533_v9  ;;  %vm2900_vm12 = vweird.f32 %v2533_v9 }
 0x503   : > { %v2883_v13 = vsel %vm2882_vm7, %v4651_v25, %v2879_v41  ;;  %v3743_v51 = vadd.f32 %v3679_v47, %v3615_v0  ;;  %v6501_v40 = vpop.f32.mrf.mxu2  ;;  %4204 = vmatmul.msk.bf16.gmra.mxu2 %vm1234_vm2, %v1967_v48  ;;  %v3683_v48 = vld [vmem:[%s5871_s13 + $0x90] sm:$0xff] }
 0x504   : > { %v3235_v55 = vmul.f32 %v2883_v13, %v6135_v12  ;;  %v2285_v50 = vmul.f32 %v6501_v40, %v6501_v40  ;;  %v2888_v12 = vsub.f32 1.5, %v2887_v35 }
 0x505   : > { %3807 = vst.msk [vmem:[%s5909_s18 + $0x70] sm:$0xff] %vm574_vm0, %v3743_v51 }
 0x506   : > { %v2431_v49 = vsel %vm968_vm1, %v2285_v50, 0.0  ;;  %v3478_v17 = vpop.f32.mrf.mxu3  ;;  %v3283_v57 = vpack.c.bf16 %v3235_v55, %v3234_v59  ;;  %v2889_v5 = vmul.f32 %v6473_v23, %v2888_v12 }
 0x507   : > { %2432 = vadd.xlane.f32.xlu1 %v2431_v49  ;;  %v3479_v43 = vadd.f32 %v6438_v8, %v3478_v17  ;;  %v3684_v49 = vld [vmem:[%s5871_s13 + $0x98] sm:$0xff] }
 0x508   : > { %v4659_v58 = vpop.eup %4658  ;;  %4239 = vmatmul.msk.bf16.gmra.mxu3 %vm968_vm1, %v3283_v57  ;;  %v2893_v4 = vsel %vm2892_vm11, %v6473_v23, %v2889_v5 }
 0x509   : > { %v2895_v2 = vmul.f32 %v4659_v58, %v2533_v9  ;;  %v3616_v25 = vmax.f32 %v3479_v43, 0.0  ;;  %vm2901_vm10 = vweird.f32 %v4659_v58  ;;  %v3236_v27 = vmul.f32 %v2893_v4, %v6169_v6  ;;  %v3682_v6 = vld [vmem:[%s5871_s13 + $0x88] sm:$0xff] }
 0x50a   : > { %vm2902_vm13 = vmor %vm2900_vm12, %vm2901_vm10 }
 0x50b   : > { %v2896_v7 = vmul.f32 %v4659_v58, %v2895_v2  ;;  %v3744_v62 = vadd.f32 %v3680_v3, %v3616_v25  ;;  %v6514_v34 = vpop.f32.mrf.mxu2  ;;  %v3685_v25 = vld [vmem:[%s5871_s13 + $0xa0] sm:$0xff] }
 0x50c   : > { %v2286_v38 = vmul.f32 %v6514_v34, %v6514_v34 }
 0x50d   : > { %v2897_v60 = vmul.f32 0.5, %v2896_v7  ;;  %3808 = vst.msk [vmem:[%s5909_s18 + $0x78] sm:$0xff] %vm574_vm0, %v3744_v62 }
 0x50e   : > { %v2434_v46 = vsel %vm968_vm1, %v2286_v38, 0.0  ;;  %v3481_v63 = vpop.f32.mrf.mxu3 }
 0x50f   : > { %v2898_v1 = vsub.f32 1.5, %v2897_v60  ;;  %2435 = vadd.xlane.f32.xlu2 %v2434_v46  ;;  %v3482_v33 = vadd.f32 %v6438_v8, %v3481_v63  ;;  %v3686_v63 = vld [vmem:[%s5871_s13 + $0xa8] sm:$0xff] }
 0x511   : > { %v2899_v14 = vmul.f32 %v4659_v58, %v2898_v1  ;;  %v3617_v18 = vmax.f32 %v3482_v33, 0.0 }
 0x513   : > { %v2903_v30 = vsel %vm2902_vm13, %v4659_v58, %v2899_v14  ;;  %v6527_v39 = vpop.f32.mrf.mxu2  ;;  %v3745_v16 = vadd.f32 %v3681_v26, %v3617_v18  ;;  %v2412_v14 = vpop.xlane.xlu2 %2411 }
 0x514   : > { %v3237_v21 = vmul.f32 %v2903_v30, %v6194_v44  ;;  %v2287_v37 = vmul.f32 %v6527_v39, %v6527_v39  ;;  %v6577_v18 = vmax.f32 %v2412_v14, 1e-24 }
 0x515   : > { %3809 = vst.msk [vmem:[%s5909_s18 + $0x80] sm:$0xff] %vm574_vm0, %v3745_v16  ;;  %v1798_v16 = vpop.xlane.xlu1 %1797 }
 0x516   : > { %v2437_v23 = vsel %vm968_vm1, %v2287_v37, 0.0  ;;  %v3284_v45 = vpack.c.bf16 %v3237_v21, %v3236_v27  ;;  %v3483_v24 = vpop.f32.mrf.mxu3  ;;  %v3687_v27 = vld [vmem:[%s5871_s13 + $0xb0] sm:$0xff]  ;;  %4660 = vrsqrt.f32 %v6577_v18  ;;  %vm2910_vm15 = vweird.f32 %v6577_v18 }
 0x517   : > { %2438 = vadd.xlane.f32.xlu0 %v2437_v23  ;;  %v3484_v31 = vadd.f32 %v6438_v8, %v3483_v24  ;;  %4662 = vrcp.f32 %v1798_v16 }
 0x518   : > { %4240 = vmatmul.msk.bf16.gmra.mxu3 %vm968_vm1, %v3284_v45 }
 0x519   : > { %v3618_v15 = vmax.f32 %v3484_v31, 0.0 }
 0x51b   : > { %v6539_v44 = vpop.f32.mrf.mxu2  ;;  %v3746_v47 = vadd.f32 %v3682_v6, %v3618_v15  ;;  %v3688_v15 = vld [vmem:[%s5871_s13 + $0xb8] sm:$0xff] }
 0x51c   : > { %v2288_v9 = vmul.f32 %v6539_v44, %v6539_v44 }
 0x51d   : > { %3810 = vst.msk [vmem:[%s5909_s18 + $0x88] sm:$0xff] %vm574_vm0, %v3746_v47 }
 0x51e   : > { %v2440_v41 = vsel %vm968_vm1, %v2288_v9, 0.0  ;;  %v3486_v29 = vpop.f32.mrf.mxu3  ;;  %v6591_v9 = vpop.eup %4660 }
 0x51f   : > { %2441 = vadd.xlane.f32.xlu1 %v2440_v41  ;;  %v3487_v0 = vadd.f32 %v6438_v8, %v3486_v29  ;;  %v4663_v29 = vpop.eup %4662  ;;  %vm2911_vm14 = vweird.f32 %v6591_v9 }
 0x520   : > { %vm6626_vm4 = vmor %vm2910_vm15, %vm2911_vm14 }
 0x521   : > { %v3619_v13 = vmax.f32 %v3487_v0, 0.0 }
 0x523   : > { %v6548_v51 = vpop.f32.mrf.mxu2  ;;  %v3747_v42 = vadd.f32 %v3683_v48, %v3619_v13  ;;  %v2905_v48 = vmul.f32 %v6591_v9, %v6577_v18 }
 0x524   : > { %v2289_v59 = vmul.f32 %v6548_v51, %v6548_v51 }
 0x525   : > { %3811 = vst.msk [vmem:[%s5909_s18 + $0x90] sm:$0xff] %vm574_vm0, %v3747_v42 }
 0x526   : > { %v2443_v55 = vsel %vm968_vm1, %v2289_v59, 0.0  ;;  %v3488_v50 = vpop.f32.mrf.mxu3  ;;  %v1934_v59 = vmul.f32 %v4663_v29, %v6225_v52 }
 0x527   : > { %2444 = vadd.xlane.f32.xlu2 %v2443_v55  ;;  %v3489_v35 = vadd.f32 %v6438_v8, %v3488_v50 }
 0x529   : > { %v3620_v17 = vmax.f32 %v3489_v35, 0.0 }
 0x52b   : > { %v6557_v57 = vpop.f32.mrf.mxu2  ;;  %v3748_v43 = vadd.f32 %v3684_v49, %v3620_v17  ;;  %v2906_v17 = vmul.f32 %v6591_v9, %v2905_v48 }
 0x52c   : > { %v2290_v58 = vmul.f32 %v6557_v57, %v6557_v57 }
 0x52d   : > { %3812 = vst.msk [vmem:[%s5909_s18 + $0x98] sm:$0xff] %vm574_vm0, %v3748_v43 }
 0x52e   : > { %v2446_v3 = vsel %vm968_vm1, %v2290_v58, 0.0  ;;  %v3491_v12 = vpop.f32.mrf.mxu3 }
 0x52f   : > { %2447 = vadd.xlane.f32.xlu0 %v2446_v3  ;;  %v3492_v2 = vadd.f32 %v6438_v8, %v3491_v12  ;;  %v2907_v12 = vmul.f32 0.5, %v2906_v17 }
 0x531   : > { %v3621_v7 = vmax.f32 %v3492_v2, 0.0 }
 0x533   : > { %v6566_v62 = vpop.f32.mrf.mxu2  ;;  %v3749_v38 = vadd.f32 %v3685_v25, %v3621_v7 }
 0x534   : > { %v2291_v5 = vmul.f32 %v6566_v62, %v6566_v62 }
 0x535   : > { %3813 = vst.msk [vmem:[%s5909_s18 + $0xa0] sm:$0xff] %vm574_vm0, %v3749_v38 }
 0x536   : > { %v2449_v60 = vsel %vm968_vm1, %v2291_v5, 0.0  ;;  %v3493_v46 = vpop.f32.mrf.mxu3  ;;  %v2908_v5 = vsub.f32 1.5, %v2907_v12 }
 0x537   : > { %2450 = vadd.xlane.f32.xlu1 %v2449_v60  ;;  %v3494_v1 = vadd.f32 %v6438_v8, %v3493_v46 }
 0x538   : > { %v2909_v14 = vmul.f32 %v6591_v9, %v2908_v5 }
 0x539   : > { %v3622_v33 = vmax.f32 %v3494_v1, 0.0 }
 0x53a   : > { %v2913_v29 = vsel %vm6626_vm4, %v6591_v9, %v2909_v14 }
 0x53b   : > { %v3750_v4 = vadd.f32 %v3686_v63, %v3622_v33  ;;  %v3238_v9 = vmul.f32 %v2913_v29, %v6227_v36 }
 0x53d   : > { %3814 = vst.msk [vmem:[%s5909_s18 + $0xa8] sm:$0xff] %vm574_vm0, %v3750_v4 }
 0x53e   : > { %v3496_v26 = vpop.f32.mrf.mxu3 }
 0x53f   : > { %v3497_v30 = vadd.f32 %v6438_v8, %v3496_v26 }
 0x541   : > { %v3623_v21 = vmax.f32 %v3497_v30, 0.0  ;;  %v3689_v30 = vld [vmem:[%s5871_s13 + $0xc0] sm:$0xff] }
 0x543   : > { %v3751_v37 = vadd.f32 %v3687_v27, %v3623_v21 }
 0x545   : > { %3815 = vst.msk [vmem:[%s5909_s18 + $0xb0] sm:$0xff] %vm574_vm0, %v3751_v37 }
 0x546   : > { %v6584_v23 = vpop.f32.mrf.mxu2  ;;  %v3498_v45 = vpop.f32.mrf.mxu3 }
 0x547   : > { %v2292_v24 = vmul.f32 %v6584_v23, %v6584_v23  ;;  %v1795_v31 = vpop.xlane.xlu0 %1794  ;;  %v3499_v6 = vadd.f32 %v6438_v8, %v3498_v45 }
 0x548   : > { %4664 = vrcp.f32 %v1795_v31 }
 0x549   : > { %v2452_v47 = vsel %vm968_vm1, %v2292_v24, 0.0  ;;  %v3624_v41 = vmax.f32 %v3499_v6, 0.0 }
 0x54a   : > { %2453 = vadd.xlane.f32.xlu2 %v2452_v47 }
 0x54b   : > { %v3752_v0 = vadd.f32 %v3688_v15, %v3624_v41 }
 0x54d   : > { %3816 = vst.msk [vmem:[%s5909_s18 + $0xb8] sm:$0xff] %vm574_vm0, %v3752_v0 }
 0x54e   : > { %v4665_v13 = vpop.eup %4664  ;;  %v6597_v42 = vpop.f32.mrf.mxu2 }
 0x54f   : > { %v1933_v55 = vmul.f32 %v4665_v13, %v6347_v20  ;;  %v2293_v50 = vmul.f32 %v6597_v42, %v6597_v42  ;;  %v2415_v35 = vpop.xlane.xlu0 %2414 }
 0x550   : > { %v2535_v49 = vmax.f32 %v2415_v35, 1e-24  ;;  %v1804_v3 = vpop.xlane.xlu2 %1803 }
 0x551   : > { %v2455_v43 = vsel %vm968_vm1, %v2293_v50, 0.0  ;;  %v1968_v58 = vpack.c.bf16 %v1934_v59, %v1933_v55 }
 0x552   : > { %4666 = vrsqrt.f32 %v2535_v49  ;;  %2456 = vadd.xlane.f32.xlu0 %v2455_v43  ;;  %vm2920_vm5 = vweird.f32 %v2535_v49  ;;  %v3690_v43 = vld [vmem:[%s5871_s13 + $0xc8] sm:$0xff] }
 0x553   : > { %4205 = vmatmul.msk.bf16.gmra.mxu2 %vm1234_vm2, %v1968_v58  ;;  %4668 = vrcp.f32 %v1804_v3 }
 0x556   : > { %v6606_v2 = vpop.f32.mrf.mxu2 }
 0x557   : > { %v2294_v52 = vmul.f32 %v6606_v2, %v6606_v2  ;;  %v2418_v20 = vpop.xlane.xlu0 %2417  ;;  %v1801_v25 = vpop.xlane.xlu1 %1800 }
 0x558   : > { %v4667_v7 = vpop.eup %4666  ;;  %v6610_v38 = vmax.f32 %v2418_v20, 1e-24  ;;  %4670 = vrcp.f32 %v1801_v25 }
 0x559   : > { %v2915_v60 = vmul.f32 %v4667_v7, %v2535_v49  ;;  %v2458_v46 = vsel %vm968_vm1, %v2294_v52, 0.0  ;;  %v4669_v4 = vpop.eup %4668  ;;  %vm2921_vm3 = vweird.f32 %v4667_v7 }
 0x55a   : > { %4672 = vrsqrt.f32 %v6610_v38  ;;  %2459 = vadd.xlane.f32.xlu1 %v2458_v46  ;;  %v1936_v18 = vmul.f32 %v4669_v4, %v6366_v22  ;;  %vm2922_vm6 = vmor %vm2920_vm5, %vm2921_vm3  ;;  %vm2930_vm8 = vweird.f32 %v6610_v38 }
 0x55b   : > { %v2916_v1 = vmul.f32 %v4667_v7, %v2915_v60  ;;  %v3501_v63 = vpop.f32.mrf.mxu3 }
 0x55c   : > { %v3502_v33 = vadd.f32 %v6438_v8, %v3501_v63 }
 0x55d   : > { %v2917_v26 = vmul.f32 0.5, %v2916_v1 }
 0x55e   : > { %v4671_v27 = vpop.eup %4670  ;;  %v3625_v21 = vmax.f32 %v3502_v33, 0.0  ;;  %v6619_v16 = vpop.f32.mrf.mxu2 }
 0x55f   : > { %v2918_v37 = vsub.f32 1.5, %v2917_v26  ;;  %v1935_v45 = vmul.f32 %v4671_v27, %v6397_v11  ;;  %v2295_v24 = vmul.f32 %v6619_v16, %v6619_v16  ;;  %v2421_v31 = vpop.xlane.xlu1 %2420 }
 0x560   : > { %v6624_v6 = vpop.eup %4672  ;;  %v3753_v47 = vadd.f32 %v3689_v30, %v3625_v21  ;;  %v6631_v41 = vmax.f32 %v2421_v31, 1e-24  ;;  %v1810_v35 = vpop.xlane.xlu0 %1809  ;;  %v3691_v30 = vld [vmem:[%s5871_s13 + $0xd0] sm:$0xff] }
 0x561   : > { %v2919_v11 = vmul.f32 %v4667_v7, %v2918_v37  ;;  %v2925_v0 = vmul.f32 %v6624_v6, %v6610_v38  ;;  %v2461_v22 = vsel %vm968_vm1, %v2295_v24, 0.0  ;;  %v1969_v48 = vpack.c.bf16 %v1936_v18, %v1935_v45 }
 0x562   : > { %3817 = vst.msk [vmem:[%s5909_s18 + $0xc0] sm:$0xff] %vm574_vm0, %v3753_v47  ;;  %4674 = vrsqrt.f32 %v6631_v41  ;;  %2462 = vadd.xlane.f32.xlu2 %v2461_v22  ;;  %vm2931_vm7 = vweird.f32 %v6624_v6  ;;  %vm2940_vm11 = vweird.f32 %v6631_v41 }
 0x563   : > { %v2923_v13 = vsel %vm2922_vm6, %v4667_v7, %v2919_v11  ;;  %v2926_v59 = vmul.f32 %v6624_v6, %v2925_v0  ;;  %v3503_v55 = vpop.f32.mrf.mxu3  ;;  %4206 = vmatmul.msk.bf16.gmra.mxu2 %vm1234_vm2, %v1969_v48  ;;  %4676 = vrcp.f32 %v1810_v35  ;;  %vm6671_vm10 = vmor %vm2930_vm8, %vm2931_vm7 }
 0x564   : > { %v3239_v50 = vmul.f32 %v2923_v13, %v6344_v10  ;;  %v3504_v49 = vadd.f32 %v6438_v8, %v3503_v55 }
 0x565   : > { %v2927_v17 = vmul.f32 0.5, %v2926_v59 }
 0x566   : > { %v3626_v58 = vmax.f32 %v3504_v49, 0.0  ;;  %v6648_v3 = vpop.f32.mrf.mxu2  ;;  %v3285_v12 = vpack.c.bf16 %v3239_v50, %v3238_v9  ;;  %v3692_v49 = vld [vmem:[%s5871_s13 + $0xd8] sm:$0xff] }
 0x567   : > { %v2296_v52 = vmul.f32 %v6648_v3, %v6648_v3  ;;  %v2424_v20 = vpop.xlane.xlu1 %2423  ;;  %v1807_v10 = vpop.xlane.xlu2 %1806  ;;  %v2928_v5 = vsub.f32 1.5, %v2927_v17 }
 0x568   : > { %v4675_v36 = vpop.eup %4674  ;;  %v3754_v25 = vadd.f32 %v3690_v43, %v3626_v58  ;;  %v6652_v7 = vmax.f32 %v2424_v20, 1e-24  ;;  %4241 = vmatmul.msk.bf16.gmra.mxu3 %vm968_vm1, %v3285_v12  ;;  %4678 = vrcp.f32 %v1807_v10 }
 0x569   : > { %v2935_v60 = vmul.f32 %v4675_v36, %v6631_v41  ;;  %v2464_v46 = vsel %vm968_vm1, %v2296_v52, 0.0  ;;  %v4677_v4 = vpop.eup %4676  ;;  %v2929_v14 = vmul.f32 %v6624_v6, %v2928_v5  ;;  %vm2941_vm9 = vweird.f32 %v4675_v36 }
 0x56a   : > { %3818 = vst.msk [vmem:[%s5909_s18 + $0xc8] sm:$0xff] %vm574_vm0, %v3754_v25  ;;  %4680 = vrsqrt.f32 %v6652_v7  ;;  %2465 = vadd.xlane.f32.xlu0 %v2464_v46  ;;  %v1938_v18 = vmul.f32 %v4677_v4, %v6416_v54  ;;  %vm2942_vm12 = vmor %vm2940_vm11, %vm2941_vm9  ;;  %vm2950_vm13 = vweird.f32 %v6652_v7 }
 0x56b   : > { %v2936_v1 = vmul.f32 %v4675_v36, %v2935_v60  ;;  %v3506_v63 = vpop.f32.mrf.mxu3  ;;  %v2933_v11 = vsel %vm6671_vm10, %v6624_v6, %v2929_v14 }
 0x56c   : > { %v3507_v33 = vadd.f32 %v6438_v8, %v3506_v63  ;;  %v3240_v6 = vmul.f32 %v2933_v11, %v6364_v56 }
 0x56d   : > { %v2937_v26 = vmul.f32 0.5, %v2936_v1 }
 0x56e   : > { %v3627_v27 = vmax.f32 %v3507_v33, 0.0  ;;  %v6664_v21 = vpop.f32.mrf.mxu2  ;;  %v4679_v37 = vpop.eup %4678  ;;  %v3693_v33 = vld [vmem:[%s5871_s13 + $0xe0] sm:$0xff] }
 0x56f   : > { %v2938_v45 = vsub.f32 1.5, %v2937_v26  ;;  %v2297_v24 = vmul.f32 %v6664_v21, %v6664_v21  ;;  %v1937_v47 = vmul.f32 %v4679_v37, %v6454_v61  ;;  %v2427_v38 = vpop.xlane.xlu2 %2426 }
 0x570   : > { %v6669_v31 = vpop.eup %4680  ;;  %v3755_v29 = vadd.f32 %v3691_v30, %v3627_v27  ;;  %v2539_v48 = vmax.f32 %v2427_v38, 1e-24 }
 0x571   : > { %v2939_v0 = vmul.f32 %v4675_v36, %v2938_v45  ;;  %v2945_v22 = vmul.f32 %v6669_v31, %v6652_v7  ;;  %v2467_v41 = vsel %vm968_vm1, %v2297_v24, 0.0  ;;  %v1970_v13 = vpack.c.bf16 %v1938_v18, %v1937_v47 }
 0x572   : > { %3819 = vst.msk [vmem:[%s5909_s18 + $0xd0] sm:$0xff] %vm574_vm0, %v3755_v29  ;;  %v2430_v54 = vpop.xlane.xlu0 %2429  ;;  %4682 = vrsqrt.f32 %v2539_v48  ;;  %2468 = vadd.xlane.f32.xlu1 %v2467_v41  ;;  %vm2960_vm3 = vweird.f32 %v2539_v48 }
 0x573   : > { %v2943_v61 = vsel %vm2942_vm12, %v4675_v36, %v2939_v0  ;;  %v2946_v59 = vmul.f32 %v6669_v31, %v2945_v22  ;;  %v3508_v55 = vpop.f32.mrf.mxu3  ;;  %v6689_v50 = vmax.f32 %v2430_v54, 1e-24  ;;  %4207 = vmatmul.msk.bf16.gmra.mxu2 %vm1234_vm2, %v1970_v13  ;;  %vm2951_vm2 = vweird.f32 %v6669_v31 }
 0x574   : > { %v3241_v9 = vmul.f32 %v2943_v61, %v6395_v28  ;;  %v3509_v35 = vadd.f32 %v6438_v8, %v3508_v55  ;;  %vm6719_vm15 = vmor %vm2950_vm13, %vm2951_vm2  ;;  %v3694_v61 = vld [vmem:[%s5871_s13 + $0xe8] sm:$0xff] }
 0x575   : > { %v2947_v17 = vmul.f32 0.5, %v2946_v59  ;;  %4684 = vrsqrt.f32 %v6689_v50  ;;  %vm2970_vm9 = vweird.f32 %v6689_v50 }
 0x576   : > { %v3628_v43 = vmax.f32 %v3509_v35, 0.0  ;;  %v3286_v58 = vpack.c.bf16 %v3241_v9, %v3240_v6  ;;  %v6695_v12 = vpop.f32.mrf.mxu2 }
 0x577   : > { %v2298_v56 = vmul.f32 %v6695_v12, %v6695_v12  ;;  %v2948_v20 = vsub.f32 1.5, %v2947_v17 }
 0x578   : > { %v3756_v52 = vadd.f32 %v3692_v49, %v3628_v43  ;;  %4242 = vmatmul.msk.bf16.gmra.mxu3 %vm968_vm1, %v3286_v58  ;;  %v4683_v28 = vpop.eup %4682 }
 0x579   : > { %v2955_v36 = vmul.f32 %v4683_v28, %v2539_v48  ;;  %v2470_v10 = vsel %vm968_vm1, %v2298_v56, 0.0  ;;  %v2949_v4 = vmul.f32 %v6669_v31, %v2948_v20  ;;  %vm2961_vm14 = vweird.f32 %v4683_v28 }
 0x57a   : > { %3820 = vst.msk [vmem:[%s5909_s18 + $0xd8] sm:$0xff] %vm574_vm0, %v3756_v52  ;;  %v2433_v25 = vpop.xlane.xlu1 %2432  ;;  %2471 = vadd.xlane.f32.xlu2 %v2470_v10  ;;  %vm2962_vm4 = vmor %vm2960_vm3, %vm2961_vm14  ;;  %v3695_v10 = vld [vmem:[%s5871_s13 + $0xf0] sm:$0xff] }
 0x57b   : > { %v6703_v5 = vmax.f32 %v2433_v25, 1e-24  ;;  %v3511_v60 = vpop.f32.mrf.mxu3  ;;  %v6705_v46 = vpop.eup %4684  ;;  %v2956_v1 = vmul.f32 %v4683_v28, %v2955_v36  ;;  %v2953_v18 = vsel %vm6719_vm15, %v6669_v31, %v2949_v4 }
 0x57c   : > { %v3512_v63 = vadd.f32 %v6438_v8, %v3511_v60  ;;  %v2965_v26 = vmul.f32 %v6705_v46, %v6689_v50  ;;  %v3242_v41 = vmul.f32 %v2953_v18, %v6414_v19  ;;  %vm2971_vm6 = vweird.f32 %v6705_v46 }
 0x57d   : > { %4686 = vrsqrt.f32 %v6703_v5  ;;  %v2957_v14 = vmul.f32 0.5, %v2956_v1  ;;  %vm2980_vm7 = vweird.f32 %v6703_v5  ;;  %vm2972_vm10 = vmor %vm2970_vm9, %vm2971_vm6 }
 0x57e   : > { %v3629_v30 = vmax.f32 %v3512_v63, 0.0  ;;  %v6715_v27 = vpop.f32.mrf.mxu2  ;;  %v2966_v7 = vmul.f32 %v6705_v46, %v2965_v26 }
 0x57f   : > { %v2958_v37 = vsub.f32 1.5, %v2957_v14  ;;  %v2299_v24 = vmul.f32 %v6715_v27, %v6715_v27 }
 0x580   : > { %v3757_v45 = vadd.f32 %v3693_v33, %v3629_v30  ;;  %v2967_v59 = vmul.f32 0.5, %v2966_v7 }
 0x581   : > { %v2959_v47 = vmul.f32 %v4683_v28, %v2958_v37  ;;  %v2473_v38 = vsel %vm968_vm1, %v2299_v24, 0.0 }
 0x582   : > { %3821 = vst.msk [vmem:[%s5909_s18 + $0xe0] sm:$0xff] %vm574_vm0, %v3757_v45  ;;  %v2436_v29 = vpop.xlane.xlu2 %2435  ;;  %2474 = vadd.xlane.f32.xlu0 %v2473_v38  ;;  %v2968_v19 = vsub.f32 1.5, %v2967_v59 }
 0x583   : > { %v4687_v11 = vpop.eup %4686  ;;  %v6730_v0 = vmax.f32 %v2436_v29, 1e-24  ;;  %v3513_v22 = vpop.f32.mrf.mxu3  ;;  %v2963_v48 = vsel %vm2962_vm4, %v4683_v28, %v2959_v47  ;;  %v3696_v29 = vld [vmem:[%s5871_s13 + $0xf8] sm:$0xff] }
 0x584   : > { %v2975_v54 = vmul.f32 %v4687_v11, %v6703_v5  ;;  %v3514_v31 = vadd.f32 %v6438_v8, %v3513_v22  ;;  %v3243_v13 = vmul.f32 %v2963_v48, %v6452_v53  ;;  %vm2981_vm5 = vweird.f32 %v4687_v11 }
 0x585   : > { %4688 = vrsqrt.f32 %v6730_v0  ;;  %v2969_v60 = vmul.f32 %v6705_v46, %v2968_v19  ;;  %vm2982_vm8 = vmor %vm2980_vm7, %vm2981_vm5  ;;  %vm2990_vm14 = vweird.f32 %v6730_v0 }
 0x586   : > { %v2976_v55 = vmul.f32 %v4687_v11, %v2975_v54  ;;  %v3630_v6 = vmax.f32 %v3514_v31, 0.0  ;;  %v6738_v9 = vpop.f32.mrf.mxu2  ;;  %v3287_v35 = vpack.c.bf16 %v3243_v13, %v3242_v41 }
 0x587   : > { %v2300_v43 = vmul.f32 %v6738_v9, %v6738_v9  ;;  %v2973_v30 = vsel %vm2972_vm10, %v6705_v46, %v2969_v60 }
 0x588   : > { %v2977_v49 = vmul.f32 0.5, %v2976_v55  ;;  %v3758_v17 = vadd.f32 %v3694_v61, %v3630_v6  ;;  %4243 = vmatmul.msk.bf16.gmra.mxu3 %vm968_vm1, %v3287_v35  ;;  %v3244_v46 = vmul.f32 %v2973_v30, %v6475_v32  ;;  %v3697_v35 = vld [vmem:[%s5871_s13 + $0x100] sm:$0xff] }
 0x589   : > { %v2476_v52 = vsel %vm968_vm1, %v2300_v43, 0.0 }
 0x58a   : > { %v2978_v58 = vsub.f32 1.5, %v2977_v49  ;;  %3822 = vst.msk [vmem:[%s5909_s18 + $0xe8] sm:$0xff] %vm574_vm0, %v3758_v17  ;;  %v2439_v53 = vpop.xlane.xlu0 %2438  ;;  %2477 = vadd.xlane.f32.xlu1 %v2476_v52 }
 0x58b   : > { %v6746_v56 = vpop.eup %4688  ;;  %v2543_v28 = vmax.f32 %v2439_v53, 1e-24  ;;  %v3516_v20 = vpop.f32.mrf.mxu3 }
 0x58c   : > { %v2979_v36 = vmul.f32 %v4687_v11, %v2978_v58  ;;  %v3517_v25 = vadd.f32 %v6438_v8, %v3516_v20  ;;  %v2985_v1 = vmul.f32 %v6746_v56, %v6730_v0  ;;  %vm2991_vm12 = vweird.f32 %v6746_v56 }
 0x58d   : > { %4690 = vrsqrt.f32 %v2543_v28  ;;  %vm3000_vm2 = vweird.f32 %v2543_v28  ;;  %vm2992_vm15 = vmor %vm2990_vm14, %vm2991_vm12 }
 0x58e   : > { %v3631_v63 = vmax.f32 %v3517_v25, 0.0  ;;  %v6755_v33 = vpop.f32.mrf.mxu2  ;;  %v2983_v4 = vsel %vm2982_vm8, %v4687_v11, %v2979_v36  ;;  %v2986_v5 = vmul.f32 %v6746_v56, %v2985_v1 }
 0x58f   : > { %v2301_v26 = vmul.f32 %v6755_v33, %v6755_v33  ;;  %v3245_v15 = vmul.f32 %v2983_v4, %v6501_v40 }
 0x590   : > { %v3759_v14 = vadd.f32 %v3695_v10, %v3631_v63  ;;  %v2987_v38 = vmul.f32 0.5, %v2986_v5  ;;  %v3698_v63 = vld [vmem:[%s5871_s13 + $0x108] sm:$0xff] }
 0x591   : > { %v2479_v45 = vsel %vm968_vm1, %v2301_v26, 0.0  ;;  %v3288_v48 = vpack.c.bf16 %v3245_v15, %v3244_v46 }
 0x592   : > { %3823 = vst.msk [vmem:[%s5909_s18 + $0xf0] sm:$0xff] %vm574_vm0, %v3759_v14  ;;  %v2442_v37 = vpop.xlane.xlu1 %2441  ;;  %2480 = vadd.xlane.f32.xlu2 %v2479_v45  ;;  %v2988_v31 = vsub.f32 1.5, %v2987_v38 }
 0x593   : > { %v4691_v24 = vpop.eup %4690  ;;  %v6766_v50 = vmax.f32 %v2442_v37, 1e-24  ;;  %v3518_v18 = vpop.f32.mrf.mxu3 }
 0x594   : > { %v2995_v47 = vmul.f32 %v4691_v24, %v2543_v28  ;;  %v3519_v7 = vadd.f32 %v6438_v8, %v3518_v18  ;;  %vm3001_vm11 = vweird.f32 %v4691_v24  ;;  %v2989_v49 = vmul.f32 %v6746_v56, %v2988_v31 }
 0x595   : > { %4692 = vrsqrt.f32 %v6766_v50  ;;  %vm3002_vm13 = vmor %vm3000_vm2, %vm3001_vm11  ;;  %vm3010_vm7 = vweird.f32 %v6766_v50 }
 0x596   : > { %v2996_v11 = vmul.f32 %v4691_v24, %v2995_v47  ;;  %v3632_v22 = vmax.f32 %v3519_v7, 0.0  ;;  %v2993_v53 = vsel %vm2992_vm15, %v6746_v56, %v2989_v49 }
 0x597   : > { %v3246_v0 = vmul.f32 %v2993_v53, %v6514_v34 }
 0x598   : > { %v2997_v54 = vmul.f32 0.5, %v2996_v11  ;;  %v3760_v40 = vadd.f32 %v3696_v29, %v3632_v22  ;;  %4244 = vmatmul.msk.bf16.gmra.mxu3 %vm968_vm1, %v3288_v48 }
 0x59a   : > { %v2998_v41 = vsub.f32 1.5, %v2997_v54  ;;  %3824 = vst.msk [vmem:[%s5909_s18 + $0xf8] sm:$0xff] %vm574_vm0, %v3760_v40  ;;  %v2445_v13 = vpop.xlane.xlu2 %2444 }
 0x59b   : > { %v4693_v61 = vpop.eup %4692  ;;  %v2545_v59 = vmax.f32 %v2445_v13, 1e-24  ;;  %v3521_v32 = vpop.f32.mrf.mxu3 }
 0x59c   : > { %v2999_v55 = vmul.f32 %v4691_v24, %v2998_v41  ;;  %v3522_v6 = vadd.f32 %v6438_v8, %v3521_v32  ;;  %v3005_v17 = vmul.f32 %v4693_v61, %v6766_v50  ;;  %vm3011_vm4 = vweird.f32 %v4693_v61 }
 0x59d   : > { %4694 = vrsqrt.f32 %v2545_v59  ;;  %vm3020_vm5 = vweird.f32 %v2545_v59  ;;  %vm3012_vm8 = vmor %vm3010_vm7, %vm3011_vm4 }
 0x59e   : > { %v3633_v43 = vmax.f32 %v3522_v6, 0.0  ;;  %v3003_v19 = vsel %vm3002_vm13, %v4691_v24, %v2999_v55  ;;  %v3006_v52 = vmul.f32 %v4693_v61, %v3005_v17 }
 0x59f   : > { %v3247_v25 = vmul.f32 %v3003_v19, %v6527_v39 }
 0x5a0   : > { %v3761_v58 = vadd.f32 %v3697_v35, %v3633_v43  ;;  %v3007_v4 = vmul.f32 0.5, %v3006_v52 }
 0x5a1   : > { %v3289_v26 = vpack.c.bf16 %v3247_v25, %v3246_v0 }
 0x5a2   : > { %3825 = vst.msk [vmem:[%s5909_s18 + $0x100] sm:$0xff] %vm574_vm0, %v3761_v58  ;;  %v2448_v20 = vpop.xlane.xlu0 %2447  ;;  %v3008_v37 = vsub.f32 1.5, %v3007_v4 }
 0x5a3   : > { %v4695_v36 = vpop.eup %4694  ;;  %v2546_v28 = vmax.f32 %v2448_v20, 1e-24  ;;  %v3523_v10 = vpop.f32.mrf.mxu3 }
 0x5a4   : > { %v3015_v60 = vmul.f32 %v4695_v36, %v2545_v59  ;;  %v3524_v1 = vadd.f32 %v6438_v8, %v3523_v10  ;;  %vm3021_vm3 = vweird.f32 %v4695_v36  ;;  %v3009_v34 = vmul.f32 %v4693_v61, %v3008_v37 }
 0x5a5   : > { %4696 = vrsqrt.f32 %v2546_v28  ;;  %vm3022_vm6 = vmor %vm3020_vm5, %vm3021_vm3  ;;  %vm3030_vm2 = vweird.f32 %v2546_v28 }
 0x5a6   : > { %v3016_v14 = vmul.f32 %v4695_v36, %v3015_v60  ;;  %v3634_v56 = vmax.f32 %v3524_v1, 0.0  ;;  %v3013_v7 = vsel %vm3012_vm8, %v4693_v61, %v3009_v34 }
 0x5a7   : > { %v3248_v22 = vmul.f32 %v3013_v7, %v6539_v44 }
 0x5a8   : > { %v3017_v30 = vmul.f32 0.5, %v3016_v14  ;;  %v3762_v5 = vadd.f32 %v3698_v63, %v3634_v56  ;;  %4245 = vmatmul.msk.bf16.gmra.mxu3 %vm968_vm1, %v3289_v26 }
 0x5aa   : > { %v3018_v39 = vsub.f32 1.5, %v3017_v30  ;;  %3826 = vst.msk [vmem:[%s5909_s18 + $0x108] sm:$0xff] %vm574_vm0, %v3762_v5  ;;  %v2451_v45 = vpop.xlane.xlu1 %2450 }
 0x5ab   : > { %v4697_v24 = vpop.eup %4696  ;;  %v2547_v15 = vmax.f32 %v2451_v45, 1e-24 }
 0x5ac   : > { %v3019_v8 = vmul.f32 %v4695_v36, %v3018_v39  ;;  %v3025_v18 = vmul.f32 %v4697_v24, %v2546_v28  ;;  %vm3031_vm10 = vweird.f32 %v4697_v24 }
 0x5ad   : > { %4698 = vrsqrt.f32 %v2547_v15  ;;  %vm3040_vm11 = vweird.f32 %v2547_v15  ;;  %vm3032_vm13 = vmor %vm3030_vm2, %vm3031_vm10 }
 0x5ae   : > { %v3023_v47 = vsel %vm3022_vm6, %v4695_v36, %v3019_v8  ;;  %v3026_v46 = vmul.f32 %v4697_v24, %v3025_v18 }
 0x5af   : > { %v3249_v38 = vmul.f32 %v3023_v47, %v6548_v51 }
 0x5b0   : > { %v3027_v48 = vmul.f32 0.5, %v3026_v46 }
 0x5b1   : > { %v3290_v40 = vpack.c.bf16 %v3249_v38, %v3248_v22 }
 0x5b2   : > { %v3028_v41 = vsub.f32 1.5, %v3027_v48 }
 0x5b3   : > { %v4699_v29 = vpop.eup %4698 }
 0x5b4   : > { %v3035_v11 = vmul.f32 %v4699_v29, %v2547_v15  ;;  %vm3041_vm9 = vweird.f32 %v4699_v29  ;;  %v3029_v32 = vmul.f32 %v4697_v24, %v3028_v41 }
 0x5b5   : > { %vm3042_vm12 = vmor %vm3040_vm11, %vm3041_vm9 }
 0x5b6   : > { %v3036_v54 = vmul.f32 %v4699_v29, %v3035_v11  ;;  %v3033_v44 = vsel %vm3032_vm13, %v4697_v24, %v3029_v32 }
 0x5b7   : > { %v3250_v6 = vmul.f32 %v3033_v44, %v6557_v57 }
 0x5b8   : > { %v3037_v31 = vmul.f32 0.5, %v3036_v54  ;;  %4246 = vmatmul.msk.bf16.gmra.mxu3 %vm968_vm1, %v3290_v40 }
 0x5ba   : > { %v3038_v13 = vsub.f32 1.5, %v3037_v31 }
 0x5bc   : > { %v3039_v59 = vmul.f32 %v4699_v29, %v3038_v13 }
 0x5bd   : > { %v2454_v50 = vpop.xlane.xlu2 %2453 }
 0x5be   : > { %v2548_v61 = vmax.f32 %v2454_v50, 1e-24  ;;  %v3043_v51 = vsel %vm3042_vm12, %v4699_v29, %v3039_v59 }
 0x5bf   : > { %v3251_v55 = vmul.f32 %v3043_v51, %v6566_v62 }
 0x5c0   : > { %4700 = vrsqrt.f32 %v2548_v61  ;;  %vm3050_vm15 = vweird.f32 %v2548_v61 }
 0x5c1   : > { %v3291_v19 = vpack.c.bf16 %v3251_v55, %v3250_v6 }
 0x5c5   : > { %v2457_v35 = vpop.xlane.xlu0 %2456 }
 0x5c6   : > { %v4701_v49 = vpop.eup %4700  ;;  %v2549_v17 = vmax.f32 %v2457_v35, 1e-24 }
 0x5c7   : > { %v3045_v43 = vmul.f32 %v4701_v49, %v2548_v61  ;;  %vm3051_vm14 = vweird.f32 %v4701_v49 }
 0x5c8   : > { %4702 = vrsqrt.f32 %v2549_v17  ;;  %4247 = vmatmul.msk.bf16.gmra.mxu3 %vm968_vm1, %v3291_v19  ;;  %vm3052_vm4 = vmor %vm3050_vm15, %vm3051_vm14  ;;  %vm3060_vm5 = vweird.f32 %v2549_v17  ;;  %v3699_v19 = vld [vmem:[%s5871_s13 + $0x110] sm:$0xff] }
 0x5c9   : > { %v3046_v58 = vmul.f32 %v4701_v49, %v3045_v43 }
 0x5cb   : > { %v3047_v53 = vmul.f32 0.5, %v3046_v58 }
 0x5cd   : > { %v2460_v52 = vpop.xlane.xlu1 %2459  ;;  %v3048_v25 = vsub.f32 1.5, %v3047_v53 }
 0x5ce   : > { %v4703_v20 = vpop.eup %4702  ;;  %v2550_v36 = vmax.f32 %v2460_v52, 1e-24 }
 0x5cf   : > { %v3055_v28 = vmul.f32 %v4703_v20, %v2549_v17  ;;  %v3049_v62 = vmul.f32 %v4701_v49, %v3048_v25  ;;  %vm3061_vm3 = vweird.f32 %v4703_v20  ;;  %v6829_v17 = vld [vmem:[%s7042_s7] ss:$0 sm:$0xff] }
 0x5d0   : > { %4704 = vrsqrt.f32 %v2550_v36  ;;  %vm3062_vm6 = vmor %vm3060_vm5, %vm3061_vm3  ;;  %vm3070_vm8 = vweird.f32 %v2550_v36 }
 0x5d1   : > { %v3056_v10 = vmul.f32 %v4703_v20, %v3055_v28  ;;  %v3053_v4 = vsel %vm3052_vm4, %v4701_v49, %v3049_v62 }
 0x5d2   : > { %v3252_v39 = vmul.f32 %v3053_v4, %v6584_v23 }
 0x5d3   : > { %v3057_v57 = vmul.f32 0.5, %v3056_v10 }
 0x5d5   : > { %v3058_v60 = vsub.f32 1.5, %v3057_v57  ;;  %v2463_v0 = vpop.xlane.xlu2 %2462 }
 0x5d6   : > { %v4705_v1 = vpop.eup %4704  ;;  %v6798_v63 = vpop.f32.mrf.mxu2  ;;  %v2551_v26 = vmax.f32 %v2463_v0, 1e-24 }
 0x5d7   : > { %v3059_v14 = vmul.f32 %v4703_v20, %v3058_v60  ;;  %v3065_v56 = vmul.f32 %v4705_v1, %v2550_v36  ;;  %v2302_v30 = vmul.f32 %v6798_v63, %v6798_v63  ;;  %vm3071_vm7 = vweird.f32 %v4705_v1 }
 0x5d8   : > { %4706 = vrsqrt.f32 %v2551_v26  ;;  %vm3072_vm10 = vmor %vm3070_vm8, %vm3071_vm7  ;;  %vm3080_vm11 = vweird.f32 %v2551_v26 }
 0x5d9   : > { %v3063_v5 = vsel %vm3062_vm6, %v4703_v20, %v3059_v14  ;;  %v3066_v37 = vmul.f32 %v4705_v1, %v3065_v56  ;;  %v2482_v24 = vsel %vm968_vm1, %v2302_v30, 0.0  ;;  %v3700_v14 = vld [vmem:[%s5871_s13 + $0x118] sm:$0xff] }
 0x5da   : > { %v3253_v45 = vmul.f32 %v3063_v5, %v6597_v42  ;;  %2483 = vadd.xlane.f32.xlu0 %v2482_v24 }
 0x5db   : > { %v3067_v15 = vmul.f32 0.5, %v3066_v37 }
 0x5dc   : > { %v3292_v8 = vpack.c.bf16 %v3253_v45, %v3252_v39 }
 0x5dd   : > { %v2466_v34 = vpop.xlane.xlu0 %2465  ;;  %v3068_v29 = vsub.f32 1.5, %v3067_v15 }
 0x5de   : > { %v6805_v18 = vpop.f32.mrf.mxu2  ;;  %4248 = vmatmul.msk.bf16.gmra.mxu3 %vm968_vm1, %v3292_v8  ;;  %v4707_v47 = vpop.eup %4706  ;;  %v6808_v7 = vmax.f32 %v2466_v34, 1e-24 }
 0x5df   : > { %v2303_v46 = vmul.f32 %v6805_v18, %v6805_v18  ;;  %v3075_v23 = vmul.f32 %v4707_v47, %v2551_v26  ;;  %v3069_v11 = vmul.f32 %v4705_v1, %v3068_v29  ;;  %vm3081_vm9 = vweird.f32 %v4707_v47 }
 0x5e0   : > { %4708 = vrsqrt.f32 %v6808_v7  ;;  %vm3082_vm12 = vmor %vm3080_vm11, %vm3081_vm9  ;;  %vm3090_vm13 = vweird.f32 %v6808_v7 }
 0x5e1   : > { %v2485_v42 = vsel %vm968_vm1, %v2303_v46, 0.0  ;;  %v3076_v38 = vmul.f32 %v4707_v47, %v3075_v23  ;;  %v3073_v13 = vsel %vm3072_vm10, %v4705_v1, %v3069_v11 }
 0x5e2   : > { %2486 = vadd.xlane.f32.xlu1 %v2485_v42  ;;  %v3254_v55 = vmul.f32 %v3073_v13, %v6606_v2 }
 0x5e3   : > { %v3077_v22 = vmul.f32 0.5, %v3076_v38 }
 0x5e5   : > { %v3078_v48 = vsub.f32 1.5, %v3077_v22  ;;  %v2469_v54 = vpop.xlane.xlu1 %2468  ;;  %v3701_v22 = vld [vmem:[%s5871_s13 + $0x120] sm:$0xff] }
 0x5e6   : > { %v6814_v40 = vpop.eup %4708  ;;  %v2553_v31 = vmax.f32 %v2469_v54, 1e-24  ;;  %v6816_v41 = vpop.f32.mrf.mxu2 }
 0x5e7   : > { %v3079_v59 = vmul.f32 %v4707_v47, %v3078_v48  ;;  %v3085_v50 = vmul.f32 %v6814_v40, %v6808_v7  ;;  %v2304_v32 = vmul.f32 %v6816_v41, %v6816_v41  ;;  %vm3091_vm2 = vweird.f32 %v6814_v40 }
 0x5e8   : > { %4710 = vrsqrt.f32 %v2553_v31  ;;  %vm3092_vm15 = vmor %vm3090_vm13, %vm3091_vm2  ;;  %vm3100_vm3 = vweird.f32 %v2553_v31 }
 0x5e9   : > { %v3083_v61 = vsel %vm3082_vm12, %v4707_v47, %v3079_v59  ;;  %v3086_v51 = vmul.f32 %v6814_v40, %v3085_v50  ;;  %v2488_v44 = vsel %vm968_vm1, %v2304_v32, 0.0 }
 0x5ea   : > { %v3255_v6 = vmul.f32 %v3083_v61, %v6619_v16  ;;  %2489 = vadd.xlane.f32.xlu2 %v2488_v44 }
 0x5eb   : > { %v3526_v35 = vpop.f32.mrf.mxu3  ;;  %v3087_v49 = vmul.f32 0.5, %v3086_v51 }
 0x5ec   : > { %v3527_v43 = vadd.f32 %v6829_v17, %v3526_v35  ;;  %v3293_v58 = vpack.c.bf16 %v3255_v6, %v3254_v55 }
 0x5ed   : > { %v2472_v52 = vpop.xlane.xlu2 %2471  ;;  %v3088_v16 = vsub.f32 1.5, %v3087_v49  ;;  %v3702_v49 = vld [vmem:[%s5871_s13 + $0x128] sm:$0xff] }
 0x5ee   : > { %v3635_v53 = vmax.f32 %v3527_v43, 0.0  ;;  %v4711_v20 = vpop.eup %4710  ;;  %v6833_v36 = vmax.f32 %v2472_v52, 1e-24  ;;  %v6835_v2 = vpop.f32.mrf.mxu2  ;;  %4249 = vmatmul.msk.bf16.gmra.mxu3 %vm968_vm1, %v3293_v58 }
 0x5ef   : > { %v3095_v25 = vmul.f32 %v4711_v20, %v2553_v31  ;;  %v2305_v10 = vmul.f32 %v6835_v2, %v6835_v2  ;;  %v3089_v1 = vmul.f32 %v6814_v40, %v3088_v16  ;;  %vm3101_vm14 = vweird.f32 %v4711_v20 }
 0x5f0   : > { %v3763_v28 = vadd.f32 %v3699_v19, %v3635_v53  ;;  %4712 = vrsqrt.f32 %v6833_v36  ;;  %vm3102_vm4 = vmor %vm3100_vm3, %vm3101_vm14  ;;  %vm3110_vm6 = vweird.f32 %v6833_v36 }
 0x5f1   : > { %v3096_v62 = vmul.f32 %v4711_v20, %v3095_v25  ;;  %v2491_v57 = vsel %vm968_vm1, %v2305_v10, 0.0  ;;  %v3093_v45 = vsel %vm3092_vm15, %v6814_v40, %v3089_v1 }
 0x5f2   : > { %3827 = vst.msk [vmem:[%s5909_s18 + $0x110] sm:$0xff] %vm574_vm0, %v3763_v28  ;;  %2492 = vadd.xlane.f32.xlu0 %v2491_v57  ;;  %v3256_v46 = vmul.f32 %v3093_v45, %v6648_v3 }
 0x5f3   : > { %v3528_v60 = vpop.f32.mrf.mxu3  ;;  %v3097_v0 = vmul.f32 0.5, %v3096_v62 }
 0x5f4   : > { %v3529_v4 = vadd.f32 %v6829_v17, %v3528_v60 }
 0x5f5   : > { %v3098_v56 = vsub.f32 1.5, %v3097_v0  ;;  %v2475_v30 = vpop.xlane.xlu0 %2474 }
 0x5f6   : > { %v3636_v26 = vmax.f32 %v3529_v4, 0.0  ;;  %v6849_v5 = vpop.eup %4712  ;;  %v2555_v37 = vmax.f32 %v2475_v30, 1e-24  ;;  %v6851_v39 = vpop.f32.mrf.mxu2 }
 0x5f7   : > { %v3099_v24 = vmul.f32 %v4711_v20, %v3098_v56  ;;  %v3105_v15 = vmul.f32 %v6849_v5, %v6833_v36  ;;  %v2306_v34 = vmul.f32 %v6851_v39, %v6851_v39  ;;  %vm3111_vm5 = vweird.f32 %v6849_v5 }
 0x5f8   : > { %v3764_v8 = vadd.f32 %v3700_v14, %v3636_v26  ;;  %4714 = vrsqrt.f32 %v2555_v37  ;;  %vm3112_vm8 = vmor %vm3110_vm6, %vm3111_vm5  ;;  %vm3120_vm9 = vweird.f32 %v2555_v37  ;;  %v3703_v14 = vld [vmem:[%s5871_s13 + $0x130] sm:$0xff] }
 0x5f9   : > { %v3103_v47 = vsel %vm3102_vm4, %v4711_v20, %v3099_v24  ;;  %v3106_v7 = vmul.f32 %v6849_v5, %v3105_v15  ;;  %v2494_v23 = vsel %vm968_vm1, %v2306_v34, 0.0  ;;  %v3704_v34 = vld [vmem:[%s5871_s13 + $0x138] sm:$0xff] }
 0x5fa   : > { %3828 = vst.msk [vmem:[%s5909_s18 + $0x118] sm:$0xff] %vm574_vm0, %v3764_v8  ;;  %v3257_v29 = vmul.f32 %v3103_v47, %v6664_v21  ;;  %2495 = vadd.xlane.f32.xlu1 %v2494_v23 }
 0x5fb   : > { %v3531_v42 = vpop.f32.mrf.mxu3  ;;  %v3107_v38 = vmul.f32 0.5, %v3106_v7 }
 0x5fc   : > { %v3532_v11 = vadd.f32 %v6829_v17, %v3531_v42  ;;  %v3294_v48 = vpack.c.bf16 %v3257_v29, %v3256_v46 }
 0x5fd   : > { %v2478_v40 = vpop.xlane.xlu1 %2477  ;;  %v3108_v3 = vsub.f32 1.5, %v3107_v38 }
 0x5fe   : > { %v3637_v54 = vmax.f32 %v3532_v11, 0.0  ;;  %v4715_v31 = vpop.eup %4714  ;;  %v2556_v13 = vmax.f32 %v2478_v40, 1e-24  ;;  %v6866_v59 = vpop.f32.mrf.mxu2  ;;  %4250 = vmatmul.msk.bf16.gmra.mxu3 %vm968_vm1, %v3294_v48 }
 0x5ff   : > { %v3115_v21 = vmul.f32 %v4715_v31, %v2555_v37  ;;  %v2307_v32 = vmul.f32 %v6866_v59, %v6866_v59  ;;  %v3109_v55 = vmul.f32 %v6849_v5, %v3108_v3  ;;  %vm3121_vm7 = vweird.f32 %v4715_v31 }
 0x600   : > { %v3765_v50 = vadd.f32 %v3701_v22, %v3637_v54  ;;  %4716 = vrsqrt.f32 %v2556_v13  ;;  %vm3122_vm10 = vmor %vm3120_vm9, %vm3121_vm7  ;;  %vm3130_vm12 = vweird.f32 %v2556_v13  ;;  %v3705_v54 = vld [vmem:[%s5871_s13 + $0x140] sm:$0xff] }
 0x601   : > { %v3116_v61 = vmul.f32 %v4715_v31, %v3115_v21  ;;  %v2497_v51 = vsel %vm968_vm1, %v2307_v32, 0.0  ;;  %v3113_v20 = vsel %vm3112_vm8, %v6849_v5, %v3109_v55 }
 0x602   : > { %3829 = vst.msk [vmem:[%s5909_s18 + $0x120] sm:$0xff] %vm574_vm0, %v3765_v50  ;;  %2498 = vadd.xlane.f32.xlu2 %v2497_v51  ;;  %v3258_v36 = vmul.f32 %v3113_v20, %v6695_v12 }
 0x603   : > { %v3533_v44 = vpop.f32.mrf.mxu3  ;;  %v3117_v6 = vmul.f32 0.5, %v3116_v61  ;;  %v3707_v61 = vld [vmem:[%s5871_s13 + $0x150] sm:$0xff] }
 0x604   : > { %v3534_v35 = vadd.f32 %v6829_v17, %v3533_v44 }
 0x605   : > { %v3118_v43 = vsub.f32 1.5, %v3117_v6  ;;  %v2481_v58 = vpop.xlane.xlu2 %2480 }
 0x606   : > { %v3638_v19 = vmax.f32 %v3534_v35, 0.0  ;;  %v4717_v53 = vpop.eup %4716  ;;  %v2557_v52 = vmax.f32 %v2481_v58, 1e-24  ;;  %v3708_v35 = vld [vmem:[%s5871_s13 + $0x158] sm:$0xff] }
 0x607   : > { %v3119_v16 = vmul.f32 %v4715_v31, %v3118_v43  ;;  %v3125_v25 = vmul.f32 %v4717_v53, %v2556_v13  ;;  %vm3131_vm11 = vweird.f32 %v4717_v53 }
 0x608   : > { %v3766_v28 = vadd.f32 %v3702_v49, %v3638_v19  ;;  %4718 = vrsqrt.f32 %v2557_v52  ;;  %vm3132_vm13 = vmor %vm3130_vm12, %vm3131_vm11  ;;  %vm3140_vm14 = vweird.f32 %v2557_v52 }
 0x609   : > { %v3123_v10 = vsel %vm3122_vm10, %v4715_v31, %v3119_v16  ;;  %v3126_v62 = vmul.f32 %v4717_v53, %v3125_v25 }
 0x60a   : > { %3830 = vst.msk [vmem:[%s5909_s18 + $0x128] sm:$0xff] %vm574_vm0, %v3766_v28  ;;  %v3259_v57 = vmul.f32 %v3123_v10, %v6715_v27  ;;  %v3710_v28 = vld [vmem:[%s5871_s13 + $0x168] sm:$0xff] }
 0x60b   : > { %v3127_v60 = vmul.f32 0.5, %v3126_v62  ;;  %v3536_v1 = vpop.f32.mrf.mxu3 }
 0x60c   : > { %v3537_v0 = vadd.f32 %v6829_v17, %v3536_v1  ;;  %v3295_v4 = vpack.c.bf16 %v3259_v57, %v3258_v36 }
 0x60d   : > { %v3128_v30 = vsub.f32 1.5, %v3127_v60  ;;  %v3711_v60 = vld [vmem:[%s5871_s13 + $0x170] sm:$0xff] }
 0x60e   : > { %v4719_v56 = vpop.eup %4718  ;;  %v3639_v26 = vmax.f32 %v3537_v0, 0.0  ;;  %4251 = vmatmul.msk.bf16.gmra.mxu3 %vm968_vm1, %v3295_v4 }
 0x60f   : > { %v3135_v5 = vmul.f32 %v4719_v56, %v2557_v52  ;;  %v3129_v12 = vmul.f32 %v4717_v53, %v3128_v30  ;;  %vm3141_vm2 = vweird.f32 %v4719_v56 }
 0x610   : > { %v3767_v37 = vadd.f32 %v3703_v14, %v3639_v26  ;;  %vm3142_vm15 = vmor %vm3140_vm14, %vm3141_vm2 }
 0x611   : > { %v3136_v45 = vmul.f32 %v4719_v56, %v3135_v5  ;;  %v3133_v7 = vsel %vm3132_vm13, %v4717_v53, %v3129_v12  ;;  %v3709_v53 = vld [vmem:[%s5871_s13 + $0x160] sm:$0xff]  ;;  %v3712_v5 = vld [vmem:[%s5871_s13 + $0x178] sm:$0xff] }
 0x612   : > { %3831 = vst.msk [vmem:[%s5909_s18 + $0x130] sm:$0xff] %vm574_vm0, %v3767_v37  ;;  %v3260_v42 = vmul.f32 %v3133_v7, %v6738_v9 }
 0x613   : > { %v3137_v27 = vmul.f32 0.5, %v3136_v45  ;;  %v3538_v24 = vpop.f32.mrf.mxu3 }
 0x614   : > { %v3539_v15 = vadd.f32 %v6829_v17, %v3538_v24 }
 0x615   : > { %v3138_v8 = vsub.f32 1.5, %v3137_v27 }
 0x616   : > { %v3640_v47 = vmax.f32 %v3539_v15, 0.0 }
 0x617   : > { %v3139_v46 = vmul.f32 %v4719_v56, %v3138_v8 }
 0x618   : > { %v3768_v29 = vadd.f32 %v3704_v34, %v3640_v47 }
 0x619   : > { %v3143_v23 = vsel %vm3142_vm15, %v4719_v56, %v3139_v46 }
 0x61a   : > { %v3261_v38 = vmul.f32 %v3143_v23, %v6755_v33  ;;  %3832 = vst.msk [vmem:[%s5909_s18 + $0x138] sm:$0xff] %vm574_vm0, %v3768_v29  ;;  %v3706_v33 = vld [vmem:[%s5871_s13 + $0x148] sm:$0xff] }
 0x61b   : > { %v3541_v11 = vpop.f32.mrf.mxu3 }
 0x61c   : > { %v3542_v22 = vadd.f32 %v6829_v17, %v3541_v11  ;;  %v3296_v48 = vpack.c.bf16 %v3261_v38, %v3260_v42 }
 0x61e   : > { %v3641_v40 = vmax.f32 %v3542_v22, 0.0  ;;  %4252 = vmatmul.msk.bf16.gmra.mxu3 %vm968_vm1, %v3296_v48  ;;  %v3713_v48 = vld [vmem:[%s5871_s13 + $0x180] sm:$0xff] }
 0x620   : > { %v3769_v31 = vadd.f32 %v3705_v54, %v3641_v40 }
 0x622   : > { %3833 = vst.msk [vmem:[%s5909_s18 + $0x140] sm:$0xff] %vm574_vm0, %v3769_v31 }
 0x623   : > { %v3543_v9 = vpop.f32.mrf.mxu3 }
 0x624   : > { %v3544_v13 = vadd.f32 %v6829_v17, %v3543_v9 }
 0x626   : > { %v3642_v3 = vmax.f32 %v3544_v13, 0.0 }
 0x628   : > { %v3770_v21 = vadd.f32 %v3706_v33, %v3642_v3 }
 0x62a   : > { %3834 = vst.msk [vmem:[%s5909_s18 + $0x148] sm:$0xff] %vm574_vm0, %v3770_v21 }
 0x62b   : > { %v3546_v50 = vpop.f32.mrf.mxu3 }
 0x62c   : > { %v3547_v32 = vadd.f32 %v6829_v17, %v3546_v50 }
 0x62e   : > { %v3643_v51 = vmax.f32 %v3547_v32, 0.0 }
 0x630   : > { %v3771_v44 = vadd.f32 %v3707_v61, %v3643_v51 }
 0x632   : > { %3835 = vst.msk [vmem:[%s5909_s18 + $0x150] sm:$0xff] %vm574_vm0, %v3771_v44 }
 0x633   : > { %v3548_v55 = vpop.f32.mrf.mxu3 }
 0x634   : > { %v3549_v6 = vadd.f32 %v6829_v17, %v3548_v55 }
 0x636   : > { %v3644_v49 = vmax.f32 %v3549_v6, 0.0 }
 0x638   : > { %v3772_v43 = vadd.f32 %v3708_v35, %v3644_v49  ;;  %v3714_v35 = vld [vmem:[%s5871_s13 + $0x188] sm:$0xff] }
 0x63a   : > { %3836 = vst.msk [vmem:[%s5909_s18 + $0x158] sm:$0xff] %vm574_vm0, %v3772_v43 }
 0x63b   : > { %v3551_v19 = vpop.f32.mrf.mxu3 }
 0x63c   : > { %v3552_v58 = vadd.f32 %v6829_v17, %v3551_v19 }
 0x63e   : > { %v3645_v52 = vmax.f32 %v3552_v58, 0.0 }
 0x640   : > { %v3773_v20 = vadd.f32 %v3709_v53, %v3645_v52 }
 0x642   : > { %3837 = vst.msk [vmem:[%s5909_s18 + $0x160] sm:$0xff] %vm574_vm0, %v3773_v20 }
 0x643   : > { %v3553_v16 = vpop.f32.mrf.mxu3 }
 0x644   : > { %v3554_v25 = vadd.f32 %v6829_v17, %v3553_v16 }
 0x646   : > { %v3646_v10 = vmax.f32 %v3554_v25, 0.0 }
 0x648   : > { %v3774_v62 = vadd.f32 %v3710_v28, %v3646_v10  ;;  %v3715_v10 = vld [vmem:[%s5871_s13 + $0x190] sm:$0xff] }
 0x64a   : > { %3838 = vst.msk [vmem:[%s5909_s18 + $0x168] sm:$0xff] %vm574_vm0, %v3774_v62 }
 0x64b   : > { %v3556_v36 = vpop.f32.mrf.mxu3 }
 0x64c   : > { %v3557_v57 = vadd.f32 %v6829_v17, %v3556_v36 }
 0x64d   : > { %v2484_v1 = vpop.xlane.xlu0 %2483 }
 0x64e   : > { %v3647_v0 = vmax.f32 %v3557_v57, 0.0  ;;  %v2558_v4 = vmax.f32 %v2484_v1, 1e-24 }
 0x650   : > { %v3775_v14 = vadd.f32 %v3711_v60, %v3647_v0  ;;  %4720 = vrsqrt.f32 %v2558_v4  ;;  %vm3150_vm4 = vweird.f32 %v2558_v4 }
 0x652   : > { %3839 = vst.msk [vmem:[%s5909_s18 + $0x170] sm:$0xff] %vm574_vm0, %v3775_v14 }
 0x653   : > { %v3558_v56 = vpop.f32.mrf.mxu3 }
 0x654   : > { %v3559_v26 = vadd.f32 %v6829_v17, %v3558_v56 }
 0x655   : > { %v2487_v30 = vpop.xlane.xlu1 %2486 }
 0x656   : > { %v2559_v37 = vmax.f32 %v2487_v30, 1e-24  ;;  %v4721_v45 = vpop.eup %4720  ;;  %v3648_v12 = vmax.f32 %v3559_v26, 0.0 }
 0x657   : > { %v3145_v27 = vmul.f32 %v4721_v45, %v2558_v4  ;;  %vm3151_vm3 = vweird.f32 %v4721_v45 }
 0x658   : > { %4722 = vrsqrt.f32 %v2559_v37  ;;  %v3776_v24 = vadd.f32 %v3712_v5, %v3648_v12  ;;  %vm3152_vm6 = vmor %vm3150_vm4, %vm3151_vm3  ;;  %vm3160_vm7 = vweird.f32 %v2559_v37 }
 0x659   : > { %v3146_v15 = vmul.f32 %v4721_v45, %v3145_v27 }
 0x65a   : > { %3840 = vst.msk [vmem:[%s5909_s18 + $0x178] sm:$0xff] %vm574_vm0, %v3776_v24 }
 0x65b   : > { %v3147_v8 = vmul.f32 0.5, %v3146_v15  ;;  %v3716_v15 = vld [vmem:[%s5871_s13 + $0x198] sm:$0xff] }
 0x65d   : > { %v2490_v47 = vpop.xlane.xlu2 %2489  ;;  %v3148_v7 = vsub.f32 1.5, %v3147_v8 }
 0x65e   : > { %v4723_v34 = vpop.eup %4722  ;;  %v2560_v29 = vmax.f32 %v2490_v47, 1e-24 }
 0x65f   : > { %v3155_v46 = vmul.f32 %v4723_v34, %v2559_v37  ;;  %v3149_v11 = vmul.f32 %v4721_v45, %v3148_v7  ;;  %vm3161_vm5 = vweird.f32 %v4723_v34 }
 0x660   : > { %4724 = vrsqrt.f32 %v2560_v29  ;;  %vm3162_vm8 = vmor %vm3160_vm7, %vm3161_vm5  ;;  %vm3170_vm10 = vweird.f32 %v2560_v29 }
 0x661   : > { %v3156_v23 = vmul.f32 %v4723_v34, %v3155_v46  ;;  %v3561_v42 = vpop.f32.mrf.mxu3  ;;  %v3153_v13 = vsel %vm3152_vm6, %v4721_v45, %v3149_v11 }
 0x662   : > { %v3562_v38 = vadd.f32 %v6829_v17, %v3561_v42  ;;  %v3262_v51 = vmul.f32 %v3153_v13, %v6798_v63 }
 0x663   : > { %v3157_v22 = vmul.f32 0.5, %v3156_v23 }
 0x664   : > { %v3649_v54 = vmax.f32 %v3562_v38, 0.0 }
 0x665   : > { %v3158_v40 = vsub.f32 1.5, %v3157_v22  ;;  %v2493_v3 = vpop.xlane.xlu0 %2492 }
 0x666   : > { %v3777_v31 = vadd.f32 %v3713_v48, %v3649_v54  ;;  %v4725_v9 = vpop.eup %4724  ;;  %v2561_v50 = vmax.f32 %v2493_v3, 1e-24 }
 0x667   : > { %v3159_v33 = vmul.f32 %v4723_v34, %v3158_v40  ;;  %v3165_v21 = vmul.f32 %v4725_v9, %v2560_v29  ;;  %vm3171_vm9 = vweird.f32 %v4725_v9 }
 0x668   : > { %3841 = vst.msk [vmem:[%s5909_s18 + $0x180] sm:$0xff] %vm574_vm0, %v3777_v31  ;;  %4726 = vrsqrt.f32 %v2561_v50  ;;  %vm3172_vm12 = vmor %vm3170_vm10, %vm3171_vm9  ;;  %vm3180_vm2 = vweird.f32 %v2561_v50 }
 0x669   : > { %v3163_v32 = vsel %vm3162_vm8, %v4723_v34, %v3159_v33  ;;  %v3563_v61 = vpop.f32.mrf.mxu3  ;;  %v3166_v55 = vmul.f32 %v4725_v9, %v3165_v21 }
 0x66a   : > { %v3263_v44 = vmul.f32 %v3163_v32, %v6805_v18  ;;  %v3564_v6 = vadd.f32 %v6829_v17, %v3563_v61  ;;  %v3718_v32 = vld [vmem:[%s5871_s13 + $0x1a8] sm:$0xff] }
 0x66b   : > { %v3167_v43 = vmul.f32 0.5, %v3166_v55 }
 0x66c   : > { %v3297_v49 = vpack.c.bf16 %v3263_v44, %v3262_v51  ;;  %v3650_v19 = vmax.f32 %v3564_v6, 0.0 }
 0x66d   : > { %v2496_v53 = vpop.xlane.xlu1 %2495  ;;  %v3168_v16 = vsub.f32 1.5, %v3167_v43 }
 0x66e   : > { %4253 = vmatmul.msk.bf16.gmra.mxu3 %vm968_vm1, %v3297_v49  ;;  %v3778_v58 = vadd.f32 %v3714_v35, %v3650_v19  ;;  %v4727_v52 = vpop.eup %4726  ;;  %v2562_v20 = vmax.f32 %v2496_v53, 1e-24  ;;  %v3719_v35 = vld [vmem:[%s5871_s13 + $0x1b0] sm:$0xff]  ;;  %v3720_v19 = vld [vmem:[%s5871_s13 + $0x1b8] sm:$0xff] }
 0x66f   : > { %v3175_v63 = vmul.f32 %v4727_v52, %v2561_v50  ;;  %v3169_v62 = vmul.f32 %v4725_v9, %v3168_v16  ;;  %vm3181_vm11 = vweird.f32 %v4727_v52  ;;  %v3721_v16 = vld [vmem:[%s5871_s13 + $0x1c0] sm:$0xff] }
 0x670   : > { %3842 = vst.msk [vmem:[%s5909_s18 + $0x188] sm:$0xff] %vm574_vm0, %v3778_v58  ;;  %4728 = vrsqrt.f32 %v2562_v20  ;;  %vm3182_vm13 = vmor %vm3180_vm2, %vm3181_vm11  ;;  %vm3190_vm15 = vweird.f32 %v2562_v20 }
 0x671   : > { %v3566_v18 = vpop.f32.mrf.mxu3  ;;  %v3176_v25 = vmul.f32 %v4727_v52, %v3175_v63  ;;  %v3173_v56 = vsel %vm3172_vm12, %v4725_v9, %v3169_v62 }
 0x672   : > { %v3567_v28 = vadd.f32 %v6829_v17, %v3566_v18  ;;  %v3264_v27 = vmul.f32 %v3173_v56, %v6816_v41  ;;  %v3717_v41 = vld [vmem:[%s5871_s13 + $0x1a0] sm:$0xff] }
 0x673   : > { %v3177_v36 = vmul.f32 0.5, %v3176_v25 }
 0x674   : > { %v3651_v57 = vmax.f32 %v3567_v28, 0.0 }
 0x675   : > { %v3178_v60 = vsub.f32 1.5, %v3177_v36  ;;  %v2499_v0 = vpop.xlane.xlu2 %2498 }
 0x676   : > { %v3779_v1 = vadd.f32 %v3715_v10, %v3651_v57  ;;  %v4729_v4 = vpop.eup %4728  ;;  %v2563_v14 = vmax.f32 %v2499_v0, 1e-24  ;;  %v3722_v10 = vld [vmem:[%s5871_s13 + $0x1c8] sm:$0xff] }
 0x677   : > { %v3179_v26 = vmul.f32 %v4727_v52, %v3178_v60  ;;  %v3185_v30 = vmul.f32 %v4729_v4, %v2562_v20  ;;  %vm3191_vm14 = vweird.f32 %v4729_v4 }
 0x678   : > { %3843 = vst.msk [vmem:[%s5909_s18 + $0x190] sm:$0xff] %vm574_vm0, %v3779_v1  ;;  %4730 = vrsqrt.f32 %v2563_v14  ;;  %vm3192_vm4 = vmor %vm3190_vm15, %vm3191_vm14  ;;  %vm3200_vm5 = vweird.f32 %v2563_v14  ;;  %v3723_v1 = vld [vmem:[%s5871_s13 + $0x1d0] sm:$0xff] }
 0x679   : > { %v3568_v5 = vpop.f32.mrf.mxu3  ;;  %v3183_v37 = vsel %vm3182_vm13, %v4727_v52, %v3179_v26  ;;  %v3186_v45 = vmul.f32 %v4729_v4, %v3185_v30  ;;  %v3724_v26 = vld [vmem:[%s5871_s13 + $0x1d8] sm:$0xff] }
 0x67a   : > { %v3569_v12 = vadd.f32 %v6829_v17, %v3568_v5  ;;  %v3265_v24 = vmul.f32 %v3183_v37, %v6835_v2 }
 0x67b   : > { %v3187_v8 = vmul.f32 0.5, %v3186_v45 }
 0x67c   : > { %v3652_v34 = vmax.f32 %v3569_v12, 0.0  ;;  %v3298_v47 = vpack.c.bf16 %v3265_v24, %v3264_v27  ;;  %v3725_v12 = vld [vmem:[%s5871_s13 + $0x1e0] sm:$0xff] }
 0x67d   : > { %v3188_v29 = vsub.f32 1.5, %v3187_v8 }
 0x67e   : > { %v3780_v7 = vadd.f32 %v3716_v15, %v3652_v34  ;;  %v4731_v46 = vpop.eup %4730  ;;  %4254 = vmatmul.msk.bf16.gmra.mxu3 %vm968_vm1, %v3298_v47  ;;  %v3726_v34 = vld [vmem:[%s5871_s13 + $0x1e8] sm:$0xff] }
 0x67f   : > { %v3195_v23 = vmul.f32 %v4731_v46, %v2563_v14  ;;  %v3189_v22 = vmul.f32 %v4729_v4, %v3188_v29  ;;  %vm3201_vm3 = vweird.f32 %v4731_v46 }
 0x680   : > { %3844 = vst.msk [vmem:[%s5909_s18 + $0x198] sm:$0xff] %vm574_vm0, %v3780_v7  ;;  %vm3202_vm6 = vmor %vm3200_vm5, %vm3201_vm3 }
 0x681   : > { %v3571_v42 = vpop.f32.mrf.mxu3  ;;  %v3196_v38 = vmul.f32 %v4731_v46, %v3195_v23  ;;  %v3193_v31 = vsel %vm3192_vm4, %v4729_v4, %v3189_v22  ;;  %v3727_v23 = vld [vmem:[%s5871_s13 + $0x1f0] sm:$0xff]  ;;  %v3728_v22 = vld [vmem:[%s5871_s13 + $0x1f8] sm:$0xff] }
 0x682   : > { %v3572_v11 = vadd.f32 %v6829_v17, %v3571_v42  ;;  %v3266_v21 = vmul.f32 %v3193_v31, %v6851_v39 }
 0x683   : > { %v3197_v2 = vmul.f32 0.5, %v3196_v38 }
 0x684   : > { %v3653_v48 = vmax.f32 %v3572_v11, 0.0 }
 0x685   : > { %v3198_v54 = vsub.f32 1.5, %v3197_v2 }
 0x686   : > { %v3781_v40 = vadd.f32 %v3717_v41, %v3653_v48 }
 0x687   : > { %v3199_v9 = vmul.f32 %v4731_v46, %v3198_v54 }
 0x688   : > { %3845 = vst.msk [vmem:[%s5909_s18 + $0x1a0] sm:$0xff] %vm574_vm0, %v3781_v40 }
 0x689   : > { %v3573_v13 = vpop.f32.mrf.mxu3  ;;  %v3203_v33 = vsel %vm3202_vm6, %v4731_v46, %v3199_v9 }
 0x68a   : > { %v3574_v3 = vadd.f32 %v6829_v17, %v3573_v13  ;;  %v3267_v50 = vmul.f32 %v3203_v33, %v6866_v59 }
 0x68c   : > { %v3654_v61 = vmax.f32 %v3574_v3, 0.0  ;;  %v3299_v51 = vpack.c.bf16 %v3267_v50, %v3266_v21 }
 0x68e   : > { %v3782_v44 = vadd.f32 %v3718_v32, %v3654_v61  ;;  %4255 = vmatmul.msk.bf16.gmra.mxu3 %vm968_vm1, %v3299_v51 }
 0x690   : > { %3846 = vst.msk [vmem:[%s5909_s18 + $0x1a8] sm:$0xff] %vm574_vm0, %v3782_v44 }
 0x691   : > { %v3576_v55 = vpop.f32.mrf.mxu3 }
 0x692   : > { %v3577_v6 = vadd.f32 %v6829_v17, %v3576_v55 }
 0x694   : > { %v3655_v49 = vmax.f32 %v3577_v6, 0.0 }
 0x696   : > { %v3783_v39 = vadd.f32 %v3719_v35, %v3655_v49 }
 0x698   : > { %3847 = vst.msk [vmem:[%s5909_s18 + $0x1b0] sm:$0xff] %vm574_vm0, %v3783_v39 }
 0x699   : > { %v3578_v59 = vpop.f32.mrf.mxu3 }
 0x69a   : > { %v3579_v43 = vadd.f32 %v6829_v17, %v3578_v59 }
 0x69c   : > { %v3656_v58 = vmax.f32 %v3579_v43, 0.0 }
 0x69e   : > { %v3784_v53 = vadd.f32 %v3720_v19, %v3656_v58 }
 0x6a0   : > { %3848 = vst.msk [vmem:[%s5909_s18 + $0x1b8] sm:$0xff] %vm574_vm0, %v3784_v53 }
 0x6a1   : > { %v3581_v52 = vpop.f32.mrf.mxu3 }
 0x6a2   : > { %v3582_v20 = vadd.f32 %v6829_v17, %v3581_v52 }
 0x6a4   : > { %v3657_v63 = vmax.f32 %v3582_v20, 0.0 }
 0x6a6   : > { %v3785_v18 = vadd.f32 %v3721_v16, %v3657_v63 }
 0x6a8   : > { %3849 = vst.msk [vmem:[%s5909_s18 + $0x1c0] sm:$0xff] %vm574_vm0, %v3785_v18 }
 0x6a9   : > { %v3583_v25 = vpop.f32.mrf.mxu3 }
 0x6aa   : > { %v3584_v28 = vadd.f32 %v6829_v17, %v3583_v25 }
 0x6ac   : > { %v3658_v62 = vmax.f32 %v3584_v28, 0.0 }
 0x6ae   : > { %v3786_v36 = vadd.f32 %v3722_v10, %v3658_v62 }
 0x6b0   : > { %3850 = vst.msk [vmem:[%s5909_s18 + $0x1c8] sm:$0xff] %vm574_vm0, %v3786_v36 }
 0x6f1   : > { %v3586_v57 = vpop.f32.mrf.mxu3 }
 0x6f2   : > { %v3587_v60 = vadd.f32 %v6829_v17, %v3586_v57 }
 0x6f4   : > { %v3659_v0 = vmax.f32 %v3587_v60, 0.0 }
 0x6f6   : > { %v3787_v4 = vadd.f32 %v3723_v1, %v3659_v0 }
 0x6f8   : > { %3851 = vst.msk [vmem:[%s5909_s18 + $0x1d0] sm:$0xff] %vm574_vm0, %v3787_v4 }
 0x6f9   : > { %v3588_v14 = vpop.f32.mrf.mxu3 }
 0x6fa   : > { %v3589_v56 = vadd.f32 %v6829_v17, %v3588_v14 }
 0x6fc   : > { %v3660_v30 = vmax.f32 %v3589_v56, 0.0 }
 0x6fe   : > { %v3788_v5 = vadd.f32 %v3724_v26, %v3660_v30 }
 0x700   : > { %3852 = vst.msk [vmem:[%s5909_s18 + $0x1d8] sm:$0xff] %vm574_vm0, %v3788_v5 }
 0x701   : > { %v3591_v37 = vpop.f32.mrf.mxu3 }
 0x702   : > { %v3592_v45 = vadd.f32 %v6829_v17, %v3591_v37 }
 0x704   : > { %v3661_v27 = vmax.f32 %v3592_v45, 0.0 }
 0x706   : > { %v3789_v24 = vadd.f32 %v3725_v12, %v3661_v27 }
 0x708   : > { %3853 = vst.msk [vmem:[%s5909_s18 + $0x1e0] sm:$0xff] %vm574_vm0, %v3789_v24 }
 0x709   : > { %v3593_v15 = vpop.f32.mrf.mxu3 }
 0x70a   : > { %v3594_v8 = vadd.f32 %v6829_v17, %v3593_v15 }
 0x70c   : > { %v3662_v47 = vmax.f32 %v3594_v8, 0.0 }
 0x70e   : > { %v3790_v7 = vadd.f32 %v3726_v34, %v3662_v47 }
 0x710   : > { %3854 = vst.msk [vmem:[%s5909_s18 + $0x1e8] sm:$0xff] %vm574_vm0, %v3790_v7 }
 0x711   : > { %v3596_v46 = vpop.f32.mrf.mxu3 }
 0x712   : > { %v3597_v29 = vadd.f32 %v6829_v17, %v3596_v46 }
 0x714   : > { %v3663_v42 = vmax.f32 %v3597_v29, 0.0 }
 0x716   : > { %v3791_v38 = vadd.f32 %v3727_v23, %v3663_v42 }
 0x718   : > { %3855 = vst.msk [vmem:[%s5909_s18 + $0x1f0] sm:$0xff] %vm574_vm0, %v3791_v38 }
 0x719   : > { %v3598_v11 = vpop.f32.mrf.mxu3 }
 0x71a   : > { %v3599_v41 = vadd.f32 %v6829_v17, %v3598_v11 }
 0x71c   : > { %v3664_v2 = vmax.f32 %v3599_v41, 0.0 }
 0x71e   : > { %v3792_v48 = vadd.f32 %v3728_v22, %v3664_v2 }
 0x720   : > { %3856 = vst.msk [vmem:[%s5909_s18 + $0x1f8] sm:$0xff] %vm574_vm0, %v3792_v48 }
 0x721   : > { %4762 = shalt.err (!%p4759_p3)
}
 0x722   : > { %s4799_s19 = smov 128   ;;  %s4800_s18 = smov 8  }
 0x723   : > { %4305 = dma.vmem_to_hbm [thread:$0]  (%p4884_p5), %s3871_s25, 8192, %s3873_s17, %s3858_s9, %s4799_s19, %s4799_s19, %s4800_s18  }
 0x724 PF: > { %p4311_p4 = scmp.ge.s32.totalorder %s4797_s30, 2  ;;  %s3887_s10 = sand.u32 1, %s4785_s27  }
 0x725   : > { %s3888_s12 = scalar_lea.sflag [#allocation3], %s3887_s10 }
 0x726   : > { %p4308_p7 = pnand %p4311_p4, %p4888_p6 }
 0x728   : > { %p4309_p8 = pneg %p4308_p7 }
 0x72a   : > { %4780 = dma.done.wait (%p4309_p8), %s3888_s12, 8192  }
 0x72b   : > { %4782 = vsyncadd (%p4309_p8), %s3888_s12, 4294959104  ;;  %p18_p9 = scmp.ge.s32.totalorder %s4871_s11, 4   ;;  %s7108_s27 = smov %s4789_s28 }
 0x72c   : > { %s7109_s28 = smov %s4793_s29  ;;  %s7110_s29 = smov %s4882_s14 }
 0x72d   : > { %s7111_s30 = smov %s4871_s11  ;;  %20 = sbr.rel (!%p18_p9) target bundleno = 3 (0x3), region = 90 }
 0x732   :  { %3894 = vsyncpa [#allocation3], 1 }
 0x733   :  { %3896 = vsyncpa [#allocation3 + $0x1], 1 }

</bundles_post_ra>
